<compile_context>
chip_gen: v5e
topology: v5e:2x2
jax: 0.10.0
libtpu: 0.0.40
codegen_flags: <defaults>
</compile_context>

<pallas_src>
import jax
import jax.numpy as jnp
from jax import lax
from jax.experimental import pallas as pl
from jax.experimental.pallas import tpu as pltpu

LANE = 128   # vreg lane width  -> hidden dim padded to this
SUB = 8      # vreg sublane width -> batch dim padded to this


# ----------------------------- Pallas kernel --------------------------------

def bigru_kernel(x_ref, len_ref, wih_ref, bih_ref, whh_ref, bhh_ref,
                 out_ref, hid_ref,
                 gi_ref, outb_ref):
    """Fused bidirectional GRU over the full (T, B, H) sequence.

    x_ref:    (T, B, H)    embedded inputs (B, H already sublane/lane padded)
    len_ref:  (B, 1) int32 valid lengths per batch row (0 for padded rows)
    wih_ref:  (H, 6H)      [W_ih_f | W_ih_b], transposed, gate blocks at k*H
    bih_ref:  (1, 6H)
    whh_ref:  (2H, 6H)     block-diagonal: fwd in [:H, :3H], bwd in [H:, 3H:]
    bhh_ref:  (1, 6H)
    out_ref:  (T, B, H)    fwd + bwd outputs (zero at padded positions)
    hid_ref:  (2, B, H)    final hidden states [forward, backward]
    gi_ref:   (T, B, 6H)   VMEM scratch: hoisted input projections
    outb_ref: (T, B, H)    VMEM scratch: backward-direction outputs
    """
    T, B, H = x_ref.shape
    H3 = 3 * H

    # ---- hoisted input projection: one big MXU matmul for all timesteps and
    #      both directions (removes 2 of 3 matmuls from the serial chain).
    x_all = x_ref[...].reshape(T * B, H)
    gi_all = jnp.dot(x_all, wih_ref[...], preferred_element_type=jnp.float32)
    gi_ref[...] = (gi_all + bih_ref[...]).reshape(T, B, 6 * H)

    lens = len_ref[...]          # (B, 1) int32
    whh = whh_ref[...]           # (2H, 6H)
    bhh = bhh_ref[...]           # (1, 6H)

    def gru_update(gi, gh, h_prev):
        # PyTorch GRU cell (gates r, z, n laid out in blocks of H)
        r = jax.nn.sigmoid(gi[:, 0:H] + gh[:, 0:H])
        z = jax.nn.sigmoid(gi[:, H:2 * H] + gh[:, H:2 * H])
        n = jnp.tanh(gi[:, 2 * H:H3] + r * gh[:, 2 * H:H3])
        return (1.0 - z) * n + z * h_prev

    def step(s, carry):
        h_f, h_b = carry
        tf = s                    # forward timestep
        tb = T - 1 - s            # backward timestep

        # single fused hidden projection for both directions (block-diag W_hh)
        h_cat = jnp.concatenate([h_f, h_b], axis=-1)              # (B, 2H)
        gh = jnp.dot(h_cat, whh, preferred_element_type=jnp.float32) + bhh

        gi_f = gi_ref[tf][:, 0:H3]
        gi_b = gi_ref[tb][:, H3:]

        hf_new = gru_update(gi_f, gh[:, 0:H3], h_f)
        hb_new = gru_update(gi_b, gh[:, H3:], h_b)

        m_f = tf < lens           # (B, 1) bool: t < length[b]
        m_b = tb < lens

        # packed-sequence semantics: freeze hidden past each sequence's end
        h_f = jnp.where(m_f, hf_new, h_f)
        h_b = jnp.where(m_b, hb_new, h_b)

        out_ref[tf] = jnp.where(m_f, hf_new, 0.0)      # fwd half
        outb_ref[tb] = jnp.where(m_b, hb_new, 0.0)     # bwd half (scratch)
        return (h_f, h_b)

    h0 = jnp.zeros((B, H), jnp.float32)
    h_f, h_b = lax.fori_loop(0, T, step, (h0, h0), unroll=True)

    # one vectorized add instead of T dependent read-modify-writes
    out_ref[...] = out_ref[...] + outb_ref[...]
    hid_ref[0] = h_f
    hid_ref[1] = h_b


# ------------------------------ JAX wrapper ----------------------------------

def _pad_gate_w(w, H, Hp):
    """(3H, H) PyTorch GRU weight -> (Hp, 3*Hp) transposed, gate blocks at g*Hp."""
    w = jnp.asarray(w, jnp.float32).T          # (H, 3H)
    out = jnp.zeros((Hp, 3 * Hp), jnp.float32)
    for g in range(3):
        out = out.at[:H, g * Hp:g * Hp + H].set(w[:, g * H:(g + 1) * H])
    return out


def _pad_gate_b(b, H, Hp):
    b = jnp.asarray(b, jnp.float32)
    out = jnp.zeros((1, 3 * Hp), jnp.float32)
    for g in range(3):
        out = out.at[0, g * Hp:g * Hp + H].set(b[g * H:(g + 1) * H])
    return out


def encoder_rnn_forward(params, input_seqs, input_lengths):
    """Equivalent of EncoderRNN.forward(input_seqs, input_lengths, hidden=None).

    input_seqs:    (T, B) int32 token ids
    input_lengths: (B,)   int32 valid lengths (pack_padded_sequence semantics)
    returns (outputs (T, B, H), hidden (2, B, H))
    """
    # Embedding lookup is glue (a gather), done in plain JAX.
    embedded = params["embedding"][input_seqs].astype(jnp.float32)   # (T, B, H)
    T, B, H = embedded.shape

    Hp = ((H + LANE - 1) // LANE) * LANE      # lane-dense hidden dim
    Bp = ((B + SUB - 1) // SUB) * SUB         # sublane-aligned batch dim

    x = jnp.zeros((T, Bp, Hp), jnp.float32).at[:, :B, :H].set(embedded)
    lens = jnp.zeros((Bp, 1), jnp.int32).at[:B, 0].set(
        input_lengths.astype(jnp.int32))

    # input weights: concat fwd|bwd along the gate axis -> (Hp, 6Hp)
    wih = jnp.concatenate([_pad_gate_w(params["w_ih_f"], H, Hp),
                           _pad_gate_w(params["w_ih_b"], H, Hp)], axis=1)
    bih = jnp.concatenate([_pad_gate_b(params["b_ih_f"], H, Hp),
                           _pad_gate_b(params["b_ih_b"], H, Hp)], axis=1)

    # hidden weights: block-diagonal (2Hp, 6Hp) so both directions share one matmul
    whh = jnp.zeros((2 * Hp, 6 * Hp), jnp.float32)
    whh = whh.at[:Hp, :3 * Hp].set(_pad_gate_w(params["w_hh_f"], H, Hp))
    whh = whh.at[Hp:, 3 * Hp:].set(_pad_gate_w(params["w_hh_b"], H, Hp))
    bhh = jnp.concatenate([_pad_gate_b(params["b_hh_f"], H, Hp),
                           _pad_gate_b(params["b_hh_b"], H, Hp)], axis=1)

    # TODO(synk): for production-scale T/H, grid over T chunks with BlockSpec
    # (hidden carried in scratch) and bf16 matmul inputs instead of keeping the
    # whole sequence VMEM-resident in f32.
    out_pad, hid_pad = pl.pallas_call(
        bigru_kernel,
        out_shape=(
            jax.ShapeDtypeStruct((T, Bp, Hp), jnp.float32),
            jax.ShapeDtypeStruct((2, Bp, Hp), jnp.float32),
        ),
        in_specs=[pl.BlockSpec(memory_space=pltpu.MemorySpace.VMEM)] * 6,
        out_specs=(
            pl.BlockSpec(memory_space=pltpu.MemorySpace.VMEM),
            pl.BlockSpec(memory_space=pltpu.MemorySpace.VMEM),
        ),
        scratch_shapes=[
            pltpu.VMEM((T, Bp, 6 * Hp), jnp.float32),   # hoisted input projections
            pltpu.VMEM((T, Bp, Hp), jnp.float32),       # backward-direction outputs
        ],
    )(x, lens, wih, bih, whh, bhh)

    return out_pad[:, :B, :H], hid_pad[:, :B, :H]


# --------------------------- pure-JAX reference -------------------------------

def encoder_rnn_reference(params, input_seqs, input_lengths):
    emb = params["embedding"][input_seqs].astype(jnp.float32)
    T, B, H = emb.shape
    mask = (jnp.arange(T)[:, None] < input_lengths[None, :]).astype(jnp.float32)[:, :, None]

    def cell(x, h, wih, whh, bih, bhh):
        hi = jnp.dot(x, wih.T, precision=lax.Precision.HIGHEST) + bih
        hh = jnp.dot(h, whh.T, precision=lax.Precision.HIGHEST) + bhh
        r = jax.nn.sigmoid(hi[:, :H] + hh[:, :H])
        z = jax.nn.sigmoid(hi[:, H:2 * H] + hh[:, H:2 * H])
        n = jnp.tanh(hi[:, 2 * H:] + r * hh[:, 2 * H:])
        return (1 - z) * n + z * h

    out_f = []
    h = jnp.zeros((B, H), jnp.float32)
    for t in range(T):
        hn = cell(emb[t], h, params["w_ih_f"], params["w_hh_f"],
                  params["b_ih_f"], params["b_hh_f"])
        h = mask[t] * hn + (1 - mask[t]) * h
        out_f.append(mask[t] * hn)
    h_fwd = h

    out_b = [None] * T
    h = jnp.zeros((B, H), jnp.float32)
    for t in range(T - 1, -1, -1):
        hn = cell(emb[t], h, params["w_ih_b"], params["w_hh_b"],
                  params["b_ih_b"], params["b_hh_b"])
        h = mask[t] * hn + (1 - mask[t]) * h
        out_b[t] = mask[t] * hn
    h_bwd = h

    outputs = jnp.stack(out_f) + jnp.stack(out_b)
    hidden = jnp.stack([h_fwd, h_bwd])
    return outputs, hidden


# ---------------------------------- main --------------------------------------

if __name__ == "__main__":
    # Small shapes consistent with the module: seq=8, batch=2, hidden=32, vocab=20.
    T, B, H, V = 8, 2, 32, 20

    key = jax.random.PRNGKey(0)
    ks = jax.random.split(key, 10)
    s = 1.0 / jnp.sqrt(jnp.float32(H))

    params = {
        "embedding": jax.random.normal(ks[0], (V, H), jnp.float32),
        "w_ih_f": jax.random.uniform(ks[1], (3 * H, H), jnp.float32, -s, s),
        "w_hh_f": jax.random.uniform(ks[2], (3 * H, H), jnp.float32, -s, s),
        "b_ih_f": jax.random.uniform(ks[3], (3 * H,), jnp.float32, -s, s),
        "b_hh_f": jax.random.uniform(ks[4], (3 * H,), jnp.float32, -s, s),
        "w_ih_b": jax.random.uniform(ks[5], (3 * H, H), jnp.float32, -s, s),
        "w_hh_b": jax.random.uniform(ks[6], (3 * H, H), jnp.float32, -s, s),
        "b_ih_b": jax.random.uniform(ks[7], (3 * H,), jnp.float32, -s, s),
        "b_hh_b": jax.random.uniform(ks[8], (3 * H,), jnp.float32, -s, s),
    }

    input_seqs = jax.random.randint(ks[9], (T, B), 0, V, jnp.int32)
    # pack_padded_sequence expects lengths sorted descending.
    input_lengths = jnp.array([T, 5], jnp.int32)

    outputs, hidden = encoder_rnn_forward(params, input_seqs, input_lengths)
    outputs = jax.block_until_ready(outputs)
    hidden = jax.block_until_ready(hidden)

    assert outputs.shape == (T, B, H)
    assert hidden.shape == (2, B, H)

    ref_out, ref_hid = encoder_rnn_reference(params, input_seqs, input_lengths)
    assert jnp.allclose(outputs, ref_out, atol=2e-3, rtol=2e-3)
    assert jnp.allclose(hidden, ref_hid, atol=2e-3, rtol=2e-3)

    print("KERNEL_OK")
</pallas_src>

<mosaic_0001>
module attributes {stable_mosaic.version = 11 : i64} {
  func.func @bigru_kernel(%arg0: memref<8x8x128xf32, #tpu.memory_space<vmem>>, %arg1: memref<8x1xi32, #tpu.memory_space<vmem>>, %arg2: memref<128x768xf32, #tpu.memory_space<vmem>>, %arg3: memref<1x768xf32, #tpu.memory_space<vmem>>, %arg4: memref<256x768xf32, #tpu.memory_space<vmem>>, %arg5: memref<1x768xf32, #tpu.memory_space<vmem>>, %arg6: memref<8x8x128xf32, #tpu.memory_space<vmem>>, %arg7: memref<2x8x128xf32, #tpu.memory_space<vmem>>, %arg8: memref<8x8x768xf32, #tpu.memory_space<vmem>>, %arg9: memref<8x8x128xf32, #tpu.memory_space<vmem>>) attributes {dimension_semantics = [], scalar_prefetch = 0 : i64, scratch_operands = 2 : i64, tpu.core_type = #tpu.core_type<tc>} {
    %c0 = arith.constant 0 : index
    %c0_0 = arith.constant 0 : index
    %c0_1 = arith.constant 0 : index
    %0 = vector.load %arg0[%c0, %c0_0, %c0_1] : memref<8x8x128xf32, #tpu.memory_space<vmem>>, vector<8x8x128xf32>
    %1 = vector.shape_cast %0 : vector<8x8x128xf32> to vector<64x128xf32>
    %c0_2 = arith.constant 0 : index
    %c0_3 = arith.constant 0 : index
    %2 = vector.load %arg2[%c0_2, %c0_3] : memref<128x768xf32, #tpu.memory_space<vmem>>, vector<128x768xf32>
    %cst = arith.constant dense<0.000000e+00> : vector<64x768xf32>
    %3 = tpu.matmul %1, %2, %cst {dimension_numbers = #tpu.dot_dimension_numbers<[1], [0], [0], [1], [0, 0, 1, 1], [], []>} : vector<64x128xf32>, vector<128x768xf32>, vector<64x768xf32> -> vector<64x768xf32>
    %c0_4 = arith.constant 0 : index
    %c0_5 = arith.constant 0 : index
    %4 = vector.load %arg3[%c0_4, %c0_5] : memref<1x768xf32, #tpu.memory_space<vmem>>, vector<1x768xf32>
    %5 = vector.broadcast %4 : vector<1x768xf32> to vector<64x768xf32>
    %6 = arith.addf %3, %5 : vector<64x768xf32>
    %7 = vector.shape_cast %6 : vector<64x768xf32> to vector<8x8x768xf32>
    %c0_6 = arith.constant 0 : index
    %c0_7 = arith.constant 0 : index
    %c0_8 = arith.constant 0 : index
    %8 = vector.load %arg8[%c0_6, %c0_7, %c0_8] : memref<8x8x768xf32, #tpu.memory_space<vmem>>, vector<8x8x768xf32>
    tpu.vector_store %arg8[%c0_6, %c0_7, %c0_8], %7 {strides = array<i32>} : memref<8x8x768xf32, #tpu.memory_space<vmem>>, vector<8x8x768xf32>,
    %c0_9 = arith.constant 0 : index
    %c0_10 = arith.constant 0 : index
    %9 = vector.load %arg1[%c0_9, %c0_10] : memref<8x1xi32, #tpu.memory_space<vmem>>, vector<8x1xi32>
    %c0_11 = arith.constant 0 : index
    %c0_12 = arith.constant 0 : index
    %10 = vector.load %arg4[%c0_11, %c0_12] : memref<256x768xf32, #tpu.memory_space<vmem>>, vector<256x768xf32>
    %c0_13 = arith.constant 0 : index
    %c0_14 = arith.constant 0 : index
    %11 = vector.load %arg5[%c0_13, %c0_14] : memref<1x768xf32, #tpu.memory_space<vmem>>, vector<1x768xf32>
    %cst_15 = arith.constant 0.000000e+00 : f32
    %12 = vector.broadcast %cst_15 : f32 to vector<8x128xf32>
    %c0_i32 = arith.constant 0 : i32
    %c7_i32 = arith.constant 7 : i32
    %13 = arith.subi %c7_i32, %c0_i32 : i32
    %14 = tpu.concatenate %12, %12 in 1 : vector<8x128xf32>, vector<8x128xf32> -> vector<8x256xf32>
    %cst_16 = arith.constant dense<0.000000e+00> : vector<8x768xf32>
    %15 = tpu.matmul %14, %10, %cst_16 {dimension_numbers = #tpu.dot_dimension_numbers<[1], [0], [0], [1], [0, 0, 1, 1], [], []>} : vector<8x256xf32>, vector<256x768xf32>, vector<8x768xf32> -> vector<8x768xf32>
    %16 = vector.broadcast %11 : vector<1x768xf32> to vector<8x768xf32>
    %17 = arith.addf %15, %16 : vector<8x768xf32>
    %18 = arith.index_cast %c0_i32 : i32 to index
    %c0_17 = arith.constant 0 : index
    %c0_18 = arith.constant 0 : index
    %19 = vector.load %arg8[%18, %c0_17, %c0_18] : memref<8x8x768xf32, #tpu.memory_space<vmem>>, vector<1x8x768xf32>
    %20 = vector.shape_cast %19 : vector<1x8x768xf32> to vector<8x768xf32>
    %21 = vector.extract_strided_slice %20 {offsets = [0, 0], sizes = [8, 384], strides = [1, 1]} : vector<8x768xf32> to vector<8x384xf32>
    %22 = arith.index_cast %13 : i32 to index
    %c0_19 = arith.constant 0 : index
    %c0_20 = arith.constant 0 : index
    %23 = vector.load %arg8[%22, %c0_19, %c0_20] : memref<8x8x768xf32, #tpu.memory_space<vmem>>, vector<1x8x768xf32>
    %24 = vector.shape_cast %23 : vector<1x8x768xf32> to vector<8x768xf32>
    %25 = vector.extract_strided_slice %24 {offsets = [0, 384], sizes = [8, 384], strides = [1, 1]} : vector<8x768xf32> to vector<8x384xf32>
    %26 = vector.extract_strided_slice %17 {offsets = [0, 0], sizes = [8, 384], strides = [1, 1]} : vector<8x768xf32> to vector<8x384xf32>
    %27 = vector.extract_strided_slice %21 {offsets = [0, 0], sizes = [8, 128], strides = [1, 1]} : vector<8x384xf32> to vector<8x128xf32>
    %28 = vector.extract_strided_slice %26 {offsets = [0, 0], sizes = [8, 128], strides = [1, 1]} : vector<8x384xf32> to vector<8x128xf32>
    %29 = arith.addf %27, %28 : vector<8x128xf32>
    %30 = arith.negf %29 : vector<8x128xf32>
    %31 = math.exp %30 : vector<8x128xf32>
    %cst_21 = arith.constant 1.000000e+00 : f32
    %32 = vector.broadcast %cst_21 : f32 to vector<8x128xf32>
    %33 = arith.addf %32, %31 : vector<8x128xf32>
    %34 = arith.divf %32, %33 : vector<8x128xf32>
    %35 = vector.extract_strided_slice %21 {offsets = [0, 128], sizes = [8, 128], strides = [1, 1]} : vector<8x384xf32> to vector<8x128xf32>
    %36 = vector.extract_strided_slice %26 {offsets = [0, 128], sizes = [8, 128], strides = [1, 1]} : vector<8x384xf32> to vector<8x128xf32>
    %37 = arith.addf %35, %36 : vector<8x128xf32>
    %38 = arith.negf %37 : vector<8x128xf32>
    %39 = math.exp %38 : vector<8x128xf32>
    %cst_22 = arith.constant 1.000000e+00 : f32
    %40 = vector.broadcast %cst_22 : f32 to vector<8x128xf32>
    %41 = arith.addf %40, %39 : vector<8x128xf32>
    %42 = arith.divf %40, %41 : vector<8x128xf32>
    %43 = vector.extract_strided_slice %21 {offsets = [0, 256], sizes = [8, 128], strides = [1, 1]} : vector<8x384xf32> to vector<8x128xf32>
    %44 = vector.extract_strided_slice %26 {offsets = [0, 256], sizes = [8, 128], strides = [1, 1]} : vector<8x384xf32> to vector<8x128xf32>
    %45 = arith.mulf %34, %44 : vector<8x128xf32>
    %46 = arith.addf %43, %45 : vector<8x128xf32>
    %47 = math.tanh %46 : vector<8x128xf32>
    %cst_23 = arith.constant 1.000000e+00 : f32
    %48 = vector.broadcast %cst_23 : f32 to vector<8x128xf32>
    %49 = arith.subf %48, %42 : vector<8x128xf32>
    %50 = arith.mulf %49, %47 : vector<8x128xf32>
    %51 = arith.mulf %42, %12 : vector<8x128xf32>
    %52 = arith.addf %50, %51 : vector<8x128xf32>
    %53 = vector.extract_strided_slice %17 {offsets = [0, 384], sizes = [8, 384], strides = [1, 1]} : vector<8x768xf32> to vector<8x384xf32>
    %54 = vector.extract_strided_slice %25 {offsets = [0, 0], sizes = [8, 128], strides = [1, 1]} : vector<8x384xf32> to vector<8x128xf32>
    %55 = vector.extract_strided_slice %53 {offsets = [0, 0], sizes = [8, 128], strides = [1, 1]} : vector<8x384xf32> to vector<8x128xf32>
    %56 = arith.addf %54, %55 : vector<8x128xf32>
    %57 = arith.negf %56 : vector<8x128xf32>
    %58 = math.exp %57 : vector<8x128xf32>
    %cst_24 = arith.constant 1.000000e+00 : f32
    %59 = vector.broadcast %cst_24 : f32 to vector<8x128xf32>
    %60 = arith.addf %59, %58 : vector<8x128xf32>
    %61 = arith.divf %59, %60 : vector<8x128xf32>
    %62 = vector.extract_strided_slice %25 {offsets = [0, 128], sizes = [8, 128], strides = [1, 1]} : vector<8x384xf32> to vector<8x128xf32>
    %63 = vector.extract_strided_slice %53 {offsets = [0, 128], sizes = [8, 128], strides = [1, 1]} : vector<8x384xf32> to vector<8x128xf32>
    %64 = arith.addf %62, %63 : vector<8x128xf32>
    %65 = arith.negf %64 : vector<8x128xf32>
    %66 = math.exp %65 : vector<8x128xf32>
    %cst_25 = arith.constant 1.000000e+00 : f32
    %67 = vector.broadcast %cst_25 : f32 to vector<8x128xf32>
    %68 = arith.addf %67, %66 : vector<8x128xf32>
    %69 = arith.divf %67, %68 : vector<8x128xf32>
    %70 = vector.extract_strided_slice %25 {offsets = [0, 256], sizes = [8, 128], strides = [1, 1]} : vector<8x384xf32> to vector<8x128xf32>
    %71 = vector.extract_strided_slice %53 {offsets = [0, 256], sizes = [8, 128], strides = [1, 1]} : vector<8x384xf32> to vector<8x128xf32>
    %72 = arith.mulf %61, %71 : vector<8x128xf32>
    %73 = arith.addf %70, %72 : vector<8x128xf32>
    %74 = math.tanh %73 : vector<8x128xf32>
    %cst_26 = arith.constant 1.000000e+00 : f32
    %75 = vector.broadcast %cst_26 : f32 to vector<8x128xf32>
    %76 = arith.subf %75, %69 : vector<8x128xf32>
    %77 = arith.mulf %76, %74 : vector<8x128xf32>
    %78 = arith.mulf %69, %12 : vector<8x128xf32>
    %79 = arith.addf %77, %78 : vector<8x128xf32>
    %80 = vector.broadcast %c0_i32 : i32 to vector<8x1xi32>
    %81 = arith.cmpi slt, %80, %9 : vector<8x1xi32>
    %82 = vector.broadcast %13 : i32 to vector<8x1xi32>
    %83 = arith.cmpi slt, %82, %9 : vector<8x1xi32>
    %84 = vector.shape_cast %81 : vector<8x1xi1> to vector<8x1xi1>
    %85 = vector.broadcast %84 : vector<8x1xi1> to vector<8x128xi1>
    %86 = arith.select %85, %52, %12 : vector<8x128xi1>, vector<8x128xf32>
    %87 = vector.shape_cast %83 : vector<8x1xi1> to vector<8x1xi1>
    %88 = vector.broadcast %87 : vector<8x1xi1> to vector<8x128xi1>
    %89 = arith.select %88, %79, %12 : vector<8x128xi1>, vector<8x128xf32>
    %cst_27 = arith.constant 0.000000e+00 : f32
    %90 = vector.shape_cast %81 : vector<8x1xi1> to vector<8x1xi1>
    %91 = vector.broadcast %90 : vector<8x1xi1> to vector<8x128xi1>
    %92 = vector.broadcast %cst_27 : f32 to vector<8x128xf32>
    %93 = arith.select %91, %52, %92 : vector<8x128xi1>, vector<8x128xf32>
    %94 = arith.index_cast %c0_i32 : i32 to index
    %c0_28 = arith.constant 0 : index
    %c0_29 = arith.constant 0 : index
    %95 = vector.load %arg6[%94, %c0_28, %c0_29] : memref<8x8x128xf32, #tpu.memory_space<vmem>>, vector<1x8x128xf32>
    %96 = vector.shape_cast %95 : vector<1x8x128xf32> to vector<8x128xf32>
    %97 = vector.shape_cast %93 : vector<8x128xf32> to vector<1x8x128xf32>
    tpu.vector_store %arg6[%94, %c0_28, %c0_29], %97 {strides = array<i32>} : memref<8x8x128xf32, #tpu.memory_space<vmem>>, vector<1x8x128xf32>,
    %cst_30 = arith.constant 0.000000e+00 : f32
    %98 = vector.shape_cast %83 : vector<8x1xi1> to vector<8x1xi1>
    %99 = vector.broadcast %98 : vector<8x1xi1> to vector<8x128xi1>
    %100 = vector.broadcast %cst_30 : f32 to vector<8x128xf32>
    %101 = arith.select %99, %79, %100 : vector<8x128xi1>, vector<8x128xf32>
    %102 = arith.index_cast %13 : i32 to index
    %c0_31 = arith.constant 0 : index
    %c0_32 = arith.constant 0 : index
    %103 = vector.load %arg9[%102, %c0_31, %c0_32] : memref<8x8x128xf32, #tpu.memory_space<vmem>>, vector<1x8x128xf32>
    %104 = vector.shape_cast %103 : vector<1x8x128xf32> to vector<8x128xf32>
    %105 = vector.shape_cast %101 : vector<8x128xf32> to vector<1x8x128xf32>
    tpu.vector_store %arg9[%102, %c0_31, %c0_32], %105 {strides = array<i32>} : memref<8x8x128xf32, #tpu.memory_space<vmem>>, vector<1x8x128xf32>,
    %c1_i32 = arith.constant 1 : i32
    %c7_i32_33 = arith.constant 7 : i32
    %106 = arith.subi %c7_i32_33, %c1_i32 : i32
    %107 = tpu.concatenate %86, %89 in 1 : vector<8x128xf32>, vector<8x128xf32> -> vector<8x256xf32>
    %cst_34 = arith.constant dense<0.000000e+00> : vector<8x768xf32>
    %108 = tpu.matmul %107, %10, %cst_34 {dimension_numbers = #tpu.dot_dimension_numbers<[1], [0], [0], [1], [0, 0, 1, 1], [], []>} : vector<8x256xf32>, vector<256x768xf32>, vector<8x768xf32> -> vector<8x768xf32>
    %109 = vector.broadcast %11 : vector<1x768xf32> to vector<8x768xf32>
    %110 = arith.addf %108, %109 : vector<8x768xf32>
    %111 = arith.index_cast %c1_i32 : i32 to index
    %c0_35 = arith.constant 0 : index
    %c0_36 = arith.constant 0 : index
    %112 = vector.load %arg8[%111, %c0_35, %c0_36] : memref<8x8x768xf32, #tpu.memory_space<vmem>>, vector<1x8x768xf32>
    %113 = vector.shape_cast %112 : vector<1x8x768xf32> to vector<8x768xf32>
    %114 = vector.extract_strided_slice %113 {offsets = [0, 0], sizes = [8, 384], strides = [1, 1]} : vector<8x768xf32> to vector<8x384xf32>
    %115 = arith.index_cast %106 : i32 to index
    %c0_37 = arith.constant 0 : index
    %c0_38 = arith.constant 0 : index
    %116 = vector.load %arg8[%115, %c0_37, %c0_38] : memref<8x8x768xf32, #tpu.memory_space<vmem>>, vector<1x8x768xf32>
    %117 = vector.shape_cast %116 : vector<1x8x768xf32> to vector<8x768xf32>
    %118 = vector.extract_strided_slice %117 {offsets = [0, 384], sizes = [8, 384], strides = [1, 1]} : vector<8x768xf32> to vector<8x384xf32>
    %119 = vector.extract_strided_slice %110 {offsets = [0, 0], sizes = [8, 384], strides = [1, 1]} : vector<8x768xf32> to vector<8x384xf32>
    %120 = vector.extract_strided_slice %114 {offsets = [0, 0], sizes = [8, 128], strides = [1, 1]} : vector<8x384xf32> to vector<8x128xf32>
    %121 = vector.extract_strided_slice %119 {offsets = [0, 0], sizes = [8, 128], strides = [1, 1]} : vector<8x384xf32> to vector<8x128xf32>
    %122 = arith.addf %120, %121 : vector<8x128xf32>
    %123 = arith.negf %122 : vector<8x128xf32>
    %124 = math.exp %123 : vector<8x128xf32>
    %cst_39 = arith.constant 1.000000e+00 : f32
    %125 = vector.broadcast %cst_39 : f32 to vector<8x128xf32>
    %126 = arith.addf %125, %124 : vector<8x128xf32>
    %127 = arith.divf %125, %126 : vector<8x128xf32>
    %128 = vector.extract_strided_slice %114 {offsets = [0, 128], sizes = [8, 128], strides = [1, 1]} : vector<8x384xf32> to vector<8x128xf32>
    %129 = vector.extract_strided_slice %119 {offsets = [0, 128], sizes = [8, 128], strides = [1, 1]} : vector<8x384xf32> to vector<8x128xf32>
    %130 = arith.addf %128, %129 : vector<8x128xf32>
    %131 = arith.negf %130 : vector<8x128xf32>
    %132 = math.exp %131 : vector<8x128xf32>
    %cst_40 = arith.constant 1.000000e+00 : f32
    %133 = vector.broadcast %cst_40 : f32 to vector<8x128xf32>
    %134 = arith.addf %133, %132 : vector<8x128xf32>
    %135 = arith.divf %133, %134 : vector<8x128xf32>
    %136 = vector.extract_strided_slice %114 {offsets = [0, 256], sizes = [8, 128], strides = [1, 1]} : vector<8x384xf32> to vector<8x128xf32>
    %137 = vector.extract_strided_slice %119 {offsets = [0, 256], sizes = [8, 128], strides = [1, 1]} : vector<8x384xf32> to vector<8x128xf32>
    %138 = arith.mulf %127, %137 : vector<8x128xf32>
    %139 = arith.addf %136, %138 : vector<8x128xf32>
    %140 = math.tanh %139 : vector<8x128xf32>
    %cst_41 = arith.constant 1.000000e+00 : f32
    %141 = vector.broadcast %cst_41 : f32 to vector<8x128xf32>
    %142 = arith.subf %141, %135 : vector<8x128xf32>
    %143 = arith.mulf %142, %140 : vector<8x128xf32>
    %144 = arith.mulf %135, %86 : vector<8x128xf32>
    %145 = arith.addf %143, %144 : vector<8x128xf32>
    %146 = vector.extract_strided_slice %110 {offsets = [0, 384], sizes = [8, 384], strides = [1, 1]} : vector<8x768xf32> to vector<8x384xf32>
    %147 = vector.extract_strided_slice %118 {offsets = [0, 0], sizes = [8, 128], strides = [1, 1]} : vector<8x384xf32> to vector<8x128xf32>
    %148 = vector.extract_strided_slice %146 {offsets = [0, 0], sizes = [8, 128], strides = [1, 1]} : vector<8x384xf32> to vector<8x128xf32>
    %149 = arith.addf %147, %148 : vector<8x128xf32>
    %150 = arith.negf %149 : vector<8x128xf32>
    %151 = math.exp %150 : vector<8x128xf32>
    %cst_42 = arith.constant 1.000000e+00 : f32
    %152 = vector.broadcast %cst_42 : f32 to vector<8x128xf32>
    %153 = arith.addf %152, %151 : vector<8x128xf32>
    %154 = arith.divf %152, %153 : vector<8x128xf32>
    %155 = vector.extract_strided_slice %118 {offsets = [0, 128], sizes = [8, 128], strides = [1, 1]} : vector<8x384xf32> to vector<8x128xf32>
    %156 = vector.extract_strided_slice %146 {offsets = [0, 128], sizes = [8, 128], strides = [1, 1]} : vector<8x384xf32> to vector<8x128xf32>
    %157 = arith.addf %155, %156 : vector<8x128xf32>
    %158 = arith.negf %157 : vector<8x128xf32>
    %159 = math.exp %158 : vector<8x128xf32>
    %cst_43 = arith.constant 1.000000e+00 : f32
    %160 = vector.broadcast %cst_43 : f32 to vector<8x128xf32>
    %161 = arith.addf %160, %159 : vector<8x128xf32>
    %162 = arith.divf %160, %161 : vector<8x128xf32>
    %163 = vector.extract_strided_slice %118 {offsets = [0, 256], sizes = [8, 128], strides = [1, 1]} : vector<8x384xf32> to vector<8x128xf32>
    %164 = vector.extract_strided_slice %146 {offsets = [0, 256], sizes = [8, 128], strides = [1, 1]} : vector<8x384xf32> to vector<8x128xf32>
    %165 = arith.mulf %154, %164 : vector<8x128xf32>
    %166 = arith.addf %163, %165 : vector<8x128xf32>
    %167 = math.tanh %166 : vector<8x128xf32>
    %cst_44 = arith.constant 1.000000e+00 : f32
    %168 = vector.broadcast %cst_44 : f32 to vector<8x128xf32>
    %169 = arith.subf %168, %162 : vector<8x128xf32>
    %170 = arith.mulf %169, %167 : vector<8x128xf32>
    %171 = arith.mulf %162, %89 : vector<8x128xf32>
    %172 = arith.addf %170, %171 : vector<8x128xf32>
    %173 = vector.broadcast %c1_i32 : i32 to vector<8x1xi32>
    %174 = arith.cmpi slt, %173, %9 : vector<8x1xi32>
    %175 = vector.broadcast %106 : i32 to vector<8x1xi32>
    %176 = arith.cmpi slt, %175, %9 : vector<8x1xi32>
    %177 = vector.shape_cast %174 : vector<8x1xi1> to vector<8x1xi1>
    %178 = vector.broadcast %177 : vector<8x1xi1> to vector<8x128xi1>
    %179 = arith.select %178, %145, %86 : vector<8x128xi1>, vector<8x128xf32>
    %180 = vector.shape_cast %176 : vector<8x1xi1> to vector<8x1xi1>
    %181 = vector.broadcast %180 : vector<8x1xi1> to vector<8x128xi1>
    %182 = arith.select %181, %172, %89 : vector<8x128xi1>, vector<8x128xf32>
    %cst_45 = arith.constant 0.000000e+00 : f32
    %183 = vector.shape_cast %174 : vector<8x1xi1> to vector<8x1xi1>
    %184 = vector.broadcast %183 : vector<8x1xi1> to vector<8x128xi1>
    %185 = vector.broadcast %cst_45 : f32 to vector<8x128xf32>
    %186 = arith.select %184, %145, %185 : vector<8x128xi1>, vector<8x128xf32>
    %187 = arith.index_cast %c1_i32 : i32 to index
    %c0_46 = arith.constant 0 : index
    %c0_47 = arith.constant 0 : index
    %188 = vector.load %arg6[%187, %c0_46, %c0_47] : memref<8x8x128xf32, #tpu.memory_space<vmem>>, vector<1x8x128xf32>
    %189 = vector.shape_cast %188 : vector<1x8x128xf32> to vector<8x128xf32>
    %190 = vector.shape_cast %186 : vector<8x128xf32> to vector<1x8x128xf32>
    tpu.vector_store %arg6[%187, %c0_46, %c0_47], %190 {strides = array<i32>} : memref<8x8x128xf32, #tpu.memory_space<vmem>>, vector<1x8x128xf32>,
    %cst_48 = arith.constant 0.000000e+00 : f32
    %191 = vector.shape_cast %176 : vector<8x1xi1> to vector<8x1xi1>
    %192 = vector.broadcast %191 : vector<8x1xi1> to vector<8x128xi1>
    %193 = vector.broadcast %cst_48 : f32 to vector<8x128xf32>
    %194 = arith.select %192, %172, %193 : vector<8x128xi1>, vector<8x128xf32>
    %195 = arith.index_cast %106 : i32 to index
    %c0_49 = arith.constant 0 : index
    %c0_50 = arith.constant 0 : index
    %196 = vector.load %arg9[%195, %c0_49, %c0_50] : memref<8x8x128xf32, #tpu.memory_space<vmem>>, vector<1x8x128xf32>
    %197 = vector.shape_cast %196 : vector<1x8x128xf32> to vector<8x128xf32>
    %198 = vector.shape_cast %194 : vector<8x128xf32> to vector<1x8x128xf32>
    tpu.vector_store %arg9[%195, %c0_49, %c0_50], %198 {strides = array<i32>} : memref<8x8x128xf32, #tpu.memory_space<vmem>>, vector<1x8x128xf32>,
    %c2_i32 = arith.constant 2 : i32
    %c7_i32_51 = arith.constant 7 : i32
    %199 = arith.subi %c7_i32_51, %c2_i32 : i32
    %200 = tpu.concatenate %179, %182 in 1 : vector<8x128xf32>, vector<8x128xf32> -> vector<8x256xf32>
    %cst_52 = arith.constant dense<0.000000e+00> : vector<8x768xf32>
    %201 = tpu.matmul %200, %10, %cst_52 {dimension_numbers = #tpu.dot_dimension_numbers<[1], [0], [0], [1], [0, 0, 1, 1], [], []>} : vector<8x256xf32>, vector<256x768xf32>, vector<8x768xf32> -> vector<8x768xf32>
    %202 = vector.broadcast %11 : vector<1x768xf32> to vector<8x768xf32>
    %203 = arith.addf %201, %202 : vector<8x768xf32>
    %204 = arith.index_cast %c2_i32 : i32 to index
    %c0_53 = arith.constant 0 : index
    %c0_54 = arith.constant 0 : index
    %205 = vector.load %arg8[%204, %c0_53, %c0_54] : memref<8x8x768xf32, #tpu.memory_space<vmem>>, vector<1x8x768xf32>
    %206 = vector.shape_cast %205 : vector<1x8x768xf32> to vector<8x768xf32>
    %207 = vector.extract_strided_slice %206 {offsets = [0, 0], sizes = [8, 384], strides = [1, 1]} : vector<8x768xf32> to vector<8x384xf32>
    %208 = arith.index_cast %199 : i32 to index
    %c0_55 = arith.constant 0 : index
    %c0_56 = arith.constant 0 : index
    %209 = vector.load %arg8[%208, %c0_55, %c0_56] : memref<8x8x768xf32, #tpu.memory_space<vmem>>, vector<1x8x768xf32>
    %210 = vector.shape_cast %209 : vector<1x8x768xf32> to vector<8x768xf32>
    %211 = vector.extract_strided_slice %210 {offsets = [0, 384], sizes = [8, 384], strides = [1, 1]} : vector<8x768xf32> to vector<8x384xf32>
    %212 = vector.extract_strided_slice %203 {offsets = [0, 0], sizes = [8, 384], strides = [1, 1]} : vector<8x768xf32> to vector<8x384xf32>
    %213 = vector.extract_strided_slice %207 {offsets = [0, 0], sizes = [8, 128], strides = [1, 1]} : vector<8x384xf32> to vector<8x128xf32>
    %214 = vector.extract_strided_slice %212 {offsets = [0, 0], sizes = [8, 128], strides = [1, 1]} : vector<8x384xf32> to vector<8x128xf32>
    %215 = arith.addf %213, %214 : vector<8x128xf32>
    %216 = arith.negf %215 : vector<8x128xf32>
    %217 = math.exp %216 : vector<8x128xf32>
    %cst_57 = arith.constant 1.000000e+00 : f32
    %218 = vector.broadcast %cst_57 : f32 to vector<8x128xf32>
    %219 = arith.addf %218, %217 : vector<8x128xf32>
    %220 = arith.divf %218, %219 : vector<8x128xf32>
    %221 = vector.extract_strided_slice %207 {offsets = [0, 128], sizes = [8, 128], strides = [1, 1]} : vector<8x384xf32> to vector<8x128xf32>
    %222 = vector.extract_strided_slice %212 {offsets = [0, 128], sizes = [8, 128], strides = [1, 1]} : vector<8x384xf32> to vector<8x128xf32>
    %223 = arith.addf %221, %222 : vector<8x128xf32>
    %224 = arith.negf %223 : vector<8x128xf32>
    %225 = math.exp %224 : vector<8x128xf32>
    %cst_58 = arith.constant 1.000000e+00 : f32
    %226 = vector.broadcast %cst_58 : f32 to vector<8x128xf32>
    %227 = arith.addf %226, %225 : vector<8x128xf32>
    %228 = arith.divf %226, %227 : vector<8x128xf32>
    %229 = vector.extract_strided_slice %207 {offsets = [0, 256], sizes = [8, 128], strides = [1, 1]} : vector<8x384xf32> to vector<8x128xf32>
    %230 = vector.extract_strided_slice %212 {offsets = [0, 256], sizes = [8, 128], strides = [1, 1]} : vector<8x384xf32> to vector<8x128xf32>
    %231 = arith.mulf %220, %230 : vector<8x128xf32>
    %232 = arith.addf %229, %231 : vector<8x128xf32>
    %233 = math.tanh %232 : vector<8x128xf32>
    %cst_59 = arith.constant 1.000000e+00 : f32
    %234 = vector.broadcast %cst_59 : f32 to vector<8x128xf32>
    %235 = arith.subf %234, %228 : vector<8x128xf32>
    %236 = arith.mulf %235, %233 : vector<8x128xf32>
    %237 = arith.mulf %228, %179 : vector<8x128xf32>
    %238 = arith.addf %236, %237 : vector<8x128xf32>
    %239 = vector.extract_strided_slice %203 {offsets = [0, 384], sizes = [8, 384], strides = [1, 1]} : vector<8x768xf32> to vector<8x384xf32>
    %240 = vector.extract_strided_slice %211 {offsets = [0, 0], sizes = [8, 128], strides = [1, 1]} : vector<8x384xf32> to vector<8x128xf32>
    %241 = vector.extract_strided_slice %239 {offsets = [0, 0], sizes = [8, 128], strides = [1, 1]} : vector<8x384xf32> to vector<8x128xf32>
    %242 = arith.addf %240, %241 : vector<8x128xf32>
    %243 = arith.negf %242 : vector<8x128xf32>
    %244 = math.exp %243 : vector<8x128xf32>
    %cst_60 = arith.constant 1.000000e+00 : f32
    %245 = vector.broadcast %cst_60 : f32 to vector<8x128xf32>
    %246 = arith.addf %245, %244 : vector<8x128xf32>
    %247 = arith.divf %245, %246 : vector<8x128xf32>
    %248 = vector.extract_strided_slice %211 {offsets = [0, 128], sizes = [8, 128], strides = [1, 1]} : vector<8x384xf32> to vector<8x128xf32>
    %249 = vector.extract_strided_slice %239 {offsets = [0, 128], sizes = [8, 128], strides = [1, 1]} : vector<8x384xf32> to vector<8x128xf32>
    %250 = arith.addf %248, %249 : vector<8x128xf32>
    %251 = arith.negf %250 : vector<8x128xf32>
    %252 = math.exp %251 : vector<8x128xf32>
    %cst_61 = arith.constant 1.000000e+00 : f32
    %253 = vector.broadcast %cst_61 : f32 to vector<8x128xf32>
    %254 = arith.addf %253, %252 : vector<8x128xf32>
    %255 = arith.divf %253, %254 : vector<8x128xf32>
    %256 = vector.extract_strided_slice %211 {offsets = [0, 256], sizes = [8, 128], strides = [1, 1]} : vector<8x384xf32> to vector<8x128xf32>
    %257 = vector.extract_strided_slice %239 {offsets = [0, 256], sizes = [8, 128], strides = [1, 1]} : vector<8x384xf32> to vector<8x128xf32>
    %258 = arith.mulf %247, %257 : vector<8x128xf32>
    %259 = arith.addf %256, %258 : vector<8x128xf32>
    %260 = math.tanh %259 : vector<8x128xf32>
    %cst_62 = arith.constant 1.000000e+00 : f32
    %261 = vector.broadcast %cst_62 : f32 to vector<8x128xf32>
    %262 = arith.subf %261, %255 : vector<8x128xf32>
    %263 = arith.mulf %262, %260 : vector<8x128xf32>
    %264 = arith.mulf %255, %182 : vector<8x128xf32>
    %265 = arith.addf %263, %264 : vector<8x128xf32>
    %266 = vector.broadcast %c2_i32 : i32 to vector<8x1xi32>
    %267 = arith.cmpi slt, %266, %9 : vector<8x1xi32>
    %268 = vector.broadcast %199 : i32 to vector<8x1xi32>
    %269 = arith.cmpi slt, %268, %9 : vector<8x1xi32>
    %270 = vector.shape_cast %267 : vector<8x1xi1> to vector<8x1xi1>
    %271 = vector.broadcast %270 : vector<8x1xi1> to vector<8x128xi1>
    %272 = arith.select %271, %238, %179 : vector<8x128xi1>, vector<8x128xf32>
    %273 = vector.shape_cast %269 : vector<8x1xi1> to vector<8x1xi1>
    %274 = vector.broadcast %273 : vector<8x1xi1> to vector<8x128xi1>
    %275 = arith.select %274, %265, %182 : vector<8x128xi1>, vector<8x128xf32>
    %cst_63 = arith.constant 0.000000e+00 : f32
    %276 = vector.shape_cast %267 : vector<8x1xi1> to vector<8x1xi1>
    %277 = vector.broadcast %276 : vector<8x1xi1> to vector<8x128xi1>
    %278 = vector.broadcast %cst_63 : f32 to vector<8x128xf32>
    %279 = arith.select %277, %238, %278 : vector<8x128xi1>, vector<8x128xf32>
    %280 = arith.index_cast %c2_i32 : i32 to index
    %c0_64 = arith.constant 0 : index
    %c0_65 = arith.constant 0 : index
    %281 = vector.load %arg6[%280, %c0_64, %c0_65] : memref<8x8x128xf32, #tpu.memory_space<vmem>>, vector<1x8x128xf32>
    %282 = vector.shape_cast %281 : vector<1x8x128xf32> to vector<8x128xf32>
    %283 = vector.shape_cast %279 : vector<8x128xf32> to vector<1x8x128xf32>
    tpu.vector_store %arg6[%280, %c0_64, %c0_65], %283 {strides = array<i32>} : memref<8x8x128xf32, #tpu.memory_space<vmem>>, vector<1x8x128xf32>,
    %cst_66 = arith.constant 0.000000e+00 : f32
    %284 = vector.shape_cast %269 : vector<8x1xi1> to vector<8x1xi1>
    %285 = vector.broadcast %284 : vector<8x1xi1> to vector<8x128xi1>
    %286 = vector.broadcast %cst_66 : f32 to vector<8x128xf32>
    %287 = arith.select %285, %265, %286 : vector<8x128xi1>, vector<8x128xf32>
    %288 = arith.index_cast %199 : i32 to index
    %c0_67 = arith.constant 0 : index
    %c0_68 = arith.constant 0 : index
    %289 = vector.load %arg9[%288, %c0_67, %c0_68] : memref<8x8x128xf32, #tpu.memory_space<vmem>>, vector<1x8x128xf32>
    %290 = vector.shape_cast %289 : vector<1x8x128xf32> to vector<8x128xf32>
    %291 = vector.shape_cast %287 : vector<8x128xf32> to vector<1x8x128xf32>
    tpu.vector_store %arg9[%288, %c0_67, %c0_68], %291 {strides = array<i32>} : memref<8x8x128xf32, #tpu.memory_space<vmem>>, vector<1x8x128xf32>,
    %c3_i32 = arith.constant 3 : i32
    %c7_i32_69 = arith.constant 7 : i32
    %292 = arith.subi %c7_i32_69, %c3_i32 : i32
    %293 = tpu.concatenate %272, %275 in 1 : vector<8x128xf32>, vector<8x128xf32> -> vector<8x256xf32>
    %cst_70 = arith.constant dense<0.000000e+00> : vector<8x768xf32>
    %294 = tpu.matmul %293, %10, %cst_70 {dimension_numbers = #tpu.dot_dimension_numbers<[1], [0], [0], [1], [0, 0, 1, 1], [], []>} : vector<8x256xf32>, vector<256x768xf32>, vector<8x768xf32> -> vector<8x768xf32>
    %295 = vector.broadcast %11 : vector<1x768xf32> to vector<8x768xf32>
    %296 = arith.addf %294, %295 : vector<8x768xf32>
    %297 = arith.index_cast %c3_i32 : i32 to index
    %c0_71 = arith.constant 0 : index
    %c0_72 = arith.constant 0 : index
    %298 = vector.load %arg8[%297, %c0_71, %c0_72] : memref<8x8x768xf32, #tpu.memory_space<vmem>>, vector<1x8x768xf32>
    %299 = vector.shape_cast %298 : vector<1x8x768xf32> to vector<8x768xf32>
    %300 = vector.extract_strided_slice %299 {offsets = [0, 0], sizes = [8, 384], strides = [1, 1]} : vector<8x768xf32> to vector<8x384xf32>
    %301 = arith.index_cast %292 : i32 to index
    %c0_73 = arith.constant 0 : index
    %c0_74 = arith.constant 0 : index
    %302 = vector.load %arg8[%301, %c0_73, %c0_74] : memref<8x8x768xf32, #tpu.memory_space<vmem>>, vector<1x8x768xf32>
    %303 = vector.shape_cast %302 : vector<1x8x768xf32> to vector<8x768xf32>
    %304 = vector.extract_strided_slice %303 {offsets = [0, 384], sizes = [8, 384], strides = [1, 1]} : vector<8x768xf32> to vector<8x384xf32>
    %305 = vector.extract_strided_slice %296 {offsets = [0, 0], sizes = [8, 384], strides = [1, 1]} : vector<8x768xf32> to vector<8x384xf32>
    %306 = vector.extract_strided_slice %300 {offsets = [0, 0], sizes = [8, 128], strides = [1, 1]} : vector<8x384xf32> to vector<8x128xf32>
    %307 = vector.extract_strided_slice %305 {offsets = [0, 0], sizes = [8, 128], strides = [1, 1]} : vector<8x384xf32> to vector<8x128xf32>
    %308 = arith.addf %306, %307 : vector<8x128xf32>
    %309 = arith.negf %308 : vector<8x128xf32>
    %310 = math.exp %309 : vector<8x128xf32>
    %cst_75 = arith.constant 1.000000e+00 : f32
    %311 = vector.broadcast %cst_75 : f32 to vector<8x128xf32>
    %312 = arith.addf %311, %310 : vector<8x128xf32>
    %313 = arith.divf %311, %312 : vector<8x128xf32>
    %314 = vector.extract_strided_slice %300 {offsets = [0, 128], sizes = [8, 128], strides = [1, 1]} : vector<8x384xf32> to vector<8x128xf32>
    %315 = vector.extract_strided_slice %305 {offsets = [0, 128], sizes = [8, 128], strides = [1, 1]} : vector<8x384xf32> to vector<8x128xf32>
    %316 = arith.addf %314, %315 : vector<8x128xf32>
    %317 = arith.negf %316 : vector<8x128xf32>
    %318 = math.exp %317 : vector<8x128xf32>
    %cst_76 = arith.constant 1.000000e+00 : f32
    %319 = vector.broadcast %cst_76 : f32 to vector<8x128xf32>
    %320 = arith.addf %319, %318 : vector<8x128xf32>
    %321 = arith.divf %319, %320 : vector<8x128xf32>
    %322 = vector.extract_strided_slice %300 {offsets = [0, 256], sizes = [8, 128], strides = [1, 1]} : vector<8x384xf32> to vector<8x128xf32>
    %323 = vector.extract_strided_slice %305 {offsets = [0, 256], sizes = [8, 128], strides = [1, 1]} : vector<8x384xf32> to vector<8x128xf32>
    %324 = arith.mulf %313, %323 : vector<8x128xf32>
    %325 = arith.addf %322, %324 : vector<8x128xf32>
    %326 = math.tanh %325 : vector<8x128xf32>
    %cst_77 = arith.constant 1.000000e+00 : f32
    %327 = vector.broadcast %cst_77 : f32 to vector<8x128xf32>
    %328 = arith.subf %327, %321 : vector<8x128xf32>
    %329 = arith.mulf %328, %326 : vector<8x128xf32>
    %330 = arith.mulf %321, %272 : vector<8x128xf32>
    %331 = arith.addf %329, %330 : vector<8x128xf32>
    %332 = vector.extract_strided_slice %296 {offsets = [0, 384], sizes = [8, 384], strides = [1, 1]} : vector<8x768xf32> to vector<8x384xf32>
    %333 = vector.extract_strided_slice %304 {offsets = [0, 0], sizes = [8, 128], strides = [1, 1]} : vector<8x384xf32> to vector<8x128xf32>
    %334 = vector.extract_strided_slice %332 {offsets = [0, 0], sizes = [8, 128], strides = [1, 1]} : vector<8x384xf32> to vector<8x128xf32>
    %335 = arith.addf %333, %334 : vector<8x128xf32>
    %336 = arith.negf %335 : vector<8x128xf32>
    %337 = math.exp %336 : vector<8x128xf32>
    %cst_78 = arith.constant 1.000000e+00 : f32
    %338 = vector.broadcast %cst_78 : f32 to vector<8x128xf32>
    %339 = arith.addf %338, %337 : vector<8x128xf32>
    %340 = arith.divf %338, %339 : vector<8x128xf32>
    %341 = vector.extract_strided_slice %304 {offsets = [0, 128], sizes = [8, 128], strides = [1, 1]} : vector<8x384xf32> to vector<8x128xf32>
    %342 = vector.extract_strided_slice %332 {offsets = [0, 128], sizes = [8, 128], strides = [1, 1]} : vector<8x384xf32> to vector<8x128xf32>
    %343 = arith.addf %341, %342 : vector<8x128xf32>
    %344 = arith.negf %343 : vector<8x128xf32>
    %345 = math.exp %344 : vector<8x128xf32>
    %cst_79 = arith.constant 1.000000e+00 : f32
    %346 = vector.broadcast %cst_79 : f32 to vector<8x128xf32>
    %347 = arith.addf %346, %345 : vector<8x128xf32>
    %348 = arith.divf %346, %347 : vector<8x128xf32>
    %349 = vector.extract_strided_slice %304 {offsets = [0, 256], sizes = [8, 128], strides = [1, 1]} : vector<8x384xf32> to vector<8x128xf32>
    %350 = vector.extract_strided_slice %332 {offsets = [0, 256], sizes = [8, 128], strides = [1, 1]} : vector<8x384xf32> to vector<8x128xf32>
    %351 = arith.mulf %340, %350 : vector<8x128xf32>
    %352 = arith.addf %349, %351 : vector<8x128xf32>
    %353 = math.tanh %352 : vector<8x128xf32>
    %cst_80 = arith.constant 1.000000e+00 : f32
    %354 = vector.broadcast %cst_80 : f32 to vector<8x128xf32>
    %355 = arith.subf %354, %348 : vector<8x128xf32>
    %356 = arith.mulf %355, %353 : vector<8x128xf32>
    %357 = arith.mulf %348, %275 : vector<8x128xf32>
    %358 = arith.addf %356, %357 : vector<8x128xf32>
    %359 = vector.broadcast %c3_i32 : i32 to vector<8x1xi32>
    %360 = arith.cmpi slt, %359, %9 : vector<8x1xi32>
    %361 = vector.broadcast %292 : i32 to vector<8x1xi32>
    %362 = arith.cmpi slt, %361, %9 : vector<8x1xi32>
    %363 = vector.shape_cast %360 : vector<8x1xi1> to vector<8x1xi1>
    %364 = vector.broadcast %363 : vector<8x1xi1> to vector<8x128xi1>
    %365 = arith.select %364, %331, %272 : vector<8x128xi1>, vector<8x128xf32>
    %366 = vector.shape_cast %362 : vector<8x1xi1> to vector<8x1xi1>
    %367 = vector.broadcast %366 : vector<8x1xi1> to vector<8x128xi1>
    %368 = arith.select %367, %358, %275 : vector<8x128xi1>, vector<8x128xf32>
    %cst_81 = arith.constant 0.000000e+00 : f32
    %369 = vector.shape_cast %360 : vector<8x1xi1> to vector<8x1xi1>
    %370 = vector.broadcast %369 : vector<8x1xi1> to vector<8x128xi1>
    %371 = vector.broadcast %cst_81 : f32 to vector<8x128xf32>
    %372 = arith.select %370, %331, %371 : vector<8x128xi1>, vector<8x128xf32>
    %373 = arith.index_cast %c3_i32 : i32 to index
    %c0_82 = arith.constant 0 : index
    %c0_83 = arith.constant 0 : index
    %374 = vector.load %arg6[%373, %c0_82, %c0_83] : memref<8x8x128xf32, #tpu.memory_space<vmem>>, vector<1x8x128xf32>
    %375 = vector.shape_cast %374 : vector<1x8x128xf32> to vector<8x128xf32>
    %376 = vector.shape_cast %372 : vector<8x128xf32> to vector<1x8x128xf32>
    tpu.vector_store %arg6[%373, %c0_82, %c0_83], %376 {strides = array<i32>} : memref<8x8x128xf32, #tpu.memory_space<vmem>>, vector<1x8x128xf32>,
    %cst_84 = arith.constant 0.000000e+00 : f32
    %377 = vector.shape_cast %362 : vector<8x1xi1> to vector<8x1xi1>
    %378 = vector.broadcast %377 : vector<8x1xi1> to vector<8x128xi1>
    %379 = vector.broadcast %cst_84 : f32 to vector<8x128xf32>
    %380 = arith.select %378, %358, %379 : vector<8x128xi1>, vector<8x128xf32>
    %381 = arith.index_cast %292 : i32 to index
    %c0_85 = arith.constant 0 : index
    %c0_86 = arith.constant 0 : index
    %382 = vector.load %arg9[%381, %c0_85, %c0_86] : memref<8x8x128xf32, #tpu.memory_space<vmem>>, vector<1x8x128xf32>
    %383 = vector.shape_cast %382 : vector<1x8x128xf32> to vector<8x128xf32>
    %384 = vector.shape_cast %380 : vector<8x128xf32> to vector<1x8x128xf32>
    tpu.vector_store %arg9[%381, %c0_85, %c0_86], %384 {strides = array<i32>} : memref<8x8x128xf32, #tpu.memory_space<vmem>>, vector<1x8x128xf32>,
    %c4_i32 = arith.constant 4 : i32
    %c7_i32_87 = arith.constant 7 : i32
    %385 = arith.subi %c7_i32_87, %c4_i32 : i32
    %386 = tpu.concatenate %365, %368 in 1 : vector<8x128xf32>, vector<8x128xf32> -> vector<8x256xf32>
    %cst_88 = arith.constant dense<0.000000e+00> : vector<8x768xf32>
    %387 = tpu.matmul %386, %10, %cst_88 {dimension_numbers = #tpu.dot_dimension_numbers<[1], [0], [0], [1], [0, 0, 1, 1], [], []>} : vector<8x256xf32>, vector<256x768xf32>, vector<8x768xf32> -> vector<8x768xf32>
    %388 = vector.broadcast %11 : vector<1x768xf32> to vector<8x768xf32>
    %389 = arith.addf %387, %388 : vector<8x768xf32>
    %390 = arith.index_cast %c4_i32 : i32 to index
    %c0_89 = arith.constant 0 : index
    %c0_90 = arith.constant 0 : index
    %391 = vector.load %arg8[%390, %c0_89, %c0_90] : memref<8x8x768xf32, #tpu.memory_space<vmem>>, vector<1x8x768xf32>
    %392 = vector.shape_cast %391 : vector<1x8x768xf32> to vector<8x768xf32>
    %393 = vector.extract_strided_slice %392 {offsets = [0, 0], sizes = [8, 384], strides = [1, 1]} : vector<8x768xf32> to vector<8x384xf32>
    %394 = arith.index_cast %385 : i32 to index
    %c0_91 = arith.constant 0 : index
    %c0_92 = arith.constant 0 : index
    %395 = vector.load %arg8[%394, %c0_91, %c0_92] : memref<8x8x768xf32, #tpu.memory_space<vmem>>, vector<1x8x768xf32>
    %396 = vector.shape_cast %395 : vector<1x8x768xf32> to vector<8x768xf32>
    %397 = vector.extract_strided_slice %396 {offsets = [0, 384], sizes = [8, 384], strides = [1, 1]} : vector<8x768xf32> to vector<8x384xf32>
    %398 = vector.extract_strided_slice %389 {offsets = [0, 0], sizes = [8, 384], strides = [1, 1]} : vector<8x768xf32> to vector<8x384xf32>
    %399 = vector.extract_strided_slice %393 {offsets = [0, 0], sizes = [8, 128], strides = [1, 1]} : vector<8x384xf32> to vector<8x128xf32>
    %400 = vector.extract_strided_slice %398 {offsets = [0, 0], sizes = [8, 128], strides = [1, 1]} : vector<8x384xf32> to vector<8x128xf32>
    %401 = arith.addf %399, %400 : vector<8x128xf32>
    %402 = arith.negf %401 : vector<8x128xf32>
    %403 = math.exp %402 : vector<8x128xf32>
    %cst_93 = arith.constant 1.000000e+00 : f32
    %404 = vector.broadcast %cst_93 : f32 to vector<8x128xf32>
    %405 = arith.addf %404, %403 : vector<8x128xf32>
    %406 = arith.divf %404, %405 : vector<8x128xf32>
    %407 = vector.extract_strided_slice %393 {offsets = [0, 128], sizes = [8, 128], strides = [1, 1]} : vector<8x384xf32> to vector<8x128xf32>
    %408 = vector.extract_strided_slice %398 {offsets = [0, 128], sizes = [8, 128], strides = [1, 1]} : vector<8x384xf32> to vector<8x128xf32>
    %409 = arith.addf %407, %408 : vector<8x128xf32>
    %410 = arith.negf %409 : vector<8x128xf32>
    %411 = math.exp %410 : vector<8x128xf32>
    %cst_94 = arith.constant 1.000000e+00 : f32
    %412 = vector.broadcast %cst_94 : f32 to vector<8x128xf32>
    %413 = arith.addf %412, %411 : vector<8x128xf32>
    %414 = arith.divf %412, %413 : vector<8x128xf32>
    %415 = vector.extract_strided_slice %393 {offsets = [0, 256], sizes = [8, 128], strides = [1, 1]} : vector<8x384xf32> to vector<8x128xf32>
    %416 = vector.extract_strided_slice %398 {offsets = [0, 256], sizes = [8, 128], strides = [1, 1]} : vector<8x384xf32> to vector<8x128xf32>
    %417 = arith.mulf %406, %416 : vector<8x128xf32>
    %418 = arith.addf %415, %417 : vector<8x128xf32>
    %419 = math.tanh %418 : vector<8x128xf32>
    %cst_95 = arith.constant 1.000000e+00 : f32
    %420 = vector.broadcast %cst_95 : f32 to vector<8x128xf32>
    %421 = arith.subf %420, %414 : vector<8x128xf32>
    %422 = arith.mulf %421, %419 : vector<8x128xf32>
    %423 = arith.mulf %414, %365 : vector<8x128xf32>
    %424 = arith.addf %422, %423 : vector<8x128xf32>
    %425 = vector.extract_strided_slice %389 {offsets = [0, 384], sizes = [8, 384], strides = [1, 1]} : vector<8x768xf32> to vector<8x384xf32>
    %426 = vector.extract_strided_slice %397 {offsets = [0, 0], sizes = [8, 128], strides = [1, 1]} : vector<8x384xf32> to vector<8x128xf32>
    %427 = vector.extract_strided_slice %425 {offsets = [0, 0], sizes = [8, 128], strides = [1, 1]} : vector<8x384xf32> to vector<8x128xf32>
    %428 = arith.addf %426, %427 : vector<8x128xf32>
    %429 = arith.negf %428 : vector<8x128xf32>
    %430 = math.exp %429 : vector<8x128xf32>
    %cst_96 = arith.constant 1.000000e+00 : f32
    %431 = vector.broadcast %cst_96 : f32 to vector<8x128xf32>
    %432 = arith.addf %431, %430 : vector<8x128xf32>
    %433 = arith.divf %431, %432 : vector<8x128xf32>
    %434 = vector.extract_strided_slice %397 {offsets = [0, 128], sizes = [8, 128], strides = [1, 1]} : vector<8x384xf32> to vector<8x128xf32>
    %435 = vector.extract_strided_slice %425 {offsets = [0, 128], sizes = [8, 128], strides = [1, 1]} : vector<8x384xf32> to vector<8x128xf32>
    %436 = arith.addf %434, %435 : vector<8x128xf32>
    %437 = arith.negf %436 : vector<8x128xf32>
    %438 = math.exp %437 : vector<8x128xf32>
    %cst_97 = arith.constant 1.000000e+00 : f32
    %439 = vector.broadcast %cst_97 : f32 to vector<8x128xf32>
    %440 = arith.addf %439, %438 : vector<8x128xf32>
    %441 = arith.divf %439, %440 : vector<8x128xf32>
    %442 = vector.extract_strided_slice %397 {offsets = [0, 256], sizes = [8, 128], strides = [1, 1]} : vector<8x384xf32> to vector<8x128xf32>
    %443 = vector.extract_strided_slice %425 {offsets = [0, 256], sizes = [8, 128], strides = [1, 1]} : vector<8x384xf32> to vector<8x128xf32>
    %444 = arith.mulf %433, %443 : vector<8x128xf32>
    %445 = arith.addf %442, %444 : vector<8x128xf32>
    %446 = math.tanh %445 : vector<8x128xf32>
    %cst_98 = arith.constant 1.000000e+00 : f32
    %447 = vector.broadcast %cst_98 : f32 to vector<8x128xf32>
    %448 = arith.subf %447, %441 : vector<8x128xf32>
    %449 = arith.mulf %448, %446 : vector<8x128xf32>
    %450 = arith.mulf %441, %368 : vector<8x128xf32>
    %451 = arith.addf %449, %450 : vector<8x128xf32>
    %452 = vector.broadcast %c4_i32 : i32 to vector<8x1xi32>
    %453 = arith.cmpi slt, %452, %9 : vector<8x1xi32>
    %454 = vector.broadcast %385 : i32 to vector<8x1xi32>
    %455 = arith.cmpi slt, %454, %9 : vector<8x1xi32>
    %456 = vector.shape_cast %453 : vector<8x1xi1> to vector<8x1xi1>
    %457 = vector.broadcast %456 : vector<8x1xi1> to vector<8x128xi1>
    %458 = arith.select %457, %424, %365 : vector<8x128xi1>, vector<8x128xf32>
    %459 = vector.shape_cast %455 : vector<8x1xi1> to vector<8x1xi1>
    %460 = vector.broadcast %459 : vector<8x1xi1> to vector<8x128xi1>
    %461 = arith.select %460, %451, %368 : vector<8x128xi1>, vector<8x128xf32>
    %cst_99 = arith.constant 0.000000e+00 : f32
    %462 = vector.shape_cast %453 : vector<8x1xi1> to vector<8x1xi1>
    %463 = vector.broadcast %462 : vector<8x1xi1> to vector<8x128xi1>
    %464 = vector.broadcast %cst_99 : f32 to vector<8x128xf32>
    %465 = arith.select %463, %424, %464 : vector<8x128xi1>, vector<8x128xf32>
    %466 = arith.index_cast %c4_i32 : i32 to index
    %c0_100 = arith.constant 0 : index
    %c0_101 = arith.constant 0 : index
    %467 = vector.load %arg6[%466, %c0_100, %c0_101] : memref<8x8x128xf32, #tpu.memory_space<vmem>>, vector<1x8x128xf32>
    %468 = vector.shape_cast %467 : vector<1x8x128xf32> to vector<8x128xf32>
    %469 = vector.shape_cast %465 : vector<8x128xf32> to vector<1x8x128xf32>
    tpu.vector_store %arg6[%466, %c0_100, %c0_101], %469 {strides = array<i32>} : memref<8x8x128xf32, #tpu.memory_space<vmem>>, vector<1x8x128xf32>,
    %cst_102 = arith.constant 0.000000e+00 : f32
    %470 = vector.shape_cast %455 : vector<8x1xi1> to vector<8x1xi1>
    %471 = vector.broadcast %470 : vector<8x1xi1> to vector<8x128xi1>
    %472 = vector.broadcast %cst_102 : f32 to vector<8x128xf32>
    %473 = arith.select %471, %451, %472 : vector<8x128xi1>, vector<8x128xf32>
    %474 = arith.index_cast %385 : i32 to index
    %c0_103 = arith.constant 0 : index
    %c0_104 = arith.constant 0 : index
    %475 = vector.load %arg9[%474, %c0_103, %c0_104] : memref<8x8x128xf32, #tpu.memory_space<vmem>>, vector<1x8x128xf32>
    %476 = vector.shape_cast %475 : vector<1x8x128xf32> to vector<8x128xf32>
    %477 = vector.shape_cast %473 : vector<8x128xf32> to vector<1x8x128xf32>
    tpu.vector_store %arg9[%474, %c0_103, %c0_104], %477 {strides = array<i32>} : memref<8x8x128xf32, #tpu.memory_space<vmem>>, vector<1x8x128xf32>,
    %c5_i32 = arith.constant 5 : i32
    %c7_i32_105 = arith.constant 7 : i32
    %478 = arith.subi %c7_i32_105, %c5_i32 : i32
    %479 = tpu.concatenate %458, %461 in 1 : vector<8x128xf32>, vector<8x128xf32> -> vector<8x256xf32>
    %cst_106 = arith.constant dense<0.000000e+00> : vector<8x768xf32>
    %480 = tpu.matmul %479, %10, %cst_106 {dimension_numbers = #tpu.dot_dimension_numbers<[1], [0], [0], [1], [0, 0, 1, 1], [], []>} : vector<8x256xf32>, vector<256x768xf32>, vector<8x768xf32> -> vector<8x768xf32>
    %481 = vector.broadcast %11 : vector<1x768xf32> to vector<8x768xf32>
    %482 = arith.addf %480, %481 : vector<8x768xf32>
    %483 = arith.index_cast %c5_i32 : i32 to index
    %c0_107 = arith.constant 0 : index
    %c0_108 = arith.constant 0 : index
    %484 = vector.load %arg8[%483, %c0_107, %c0_108] : memref<8x8x768xf32, #tpu.memory_space<vmem>>, vector<1x8x768xf32>
    %485 = vector.shape_cast %484 : vector<1x8x768xf32> to vector<8x768xf32>
    %486 = vector.extract_strided_slice %485 {offsets = [0, 0], sizes = [8, 384], strides = [1, 1]} : vector<8x768xf32> to vector<8x384xf32>
    %487 = arith.index_cast %478 : i32 to index
    %c0_109 = arith.constant 0 : index
    %c0_110 = arith.constant 0 : index
    %488 = vector.load %arg8[%487, %c0_109, %c0_110] : memref<8x8x768xf32, #tpu.memory_space<vmem>>, vector<1x8x768xf32>
    %489 = vector.shape_cast %488 : vector<1x8x768xf32> to vector<8x768xf32>
    %490 = vector.extract_strided_slice %489 {offsets = [0, 384], sizes = [8, 384], strides = [1, 1]} : vector<8x768xf32> to vector<8x384xf32>
    %491 = vector.extract_strided_slice %482 {offsets = [0, 0], sizes = [8, 384], strides = [1, 1]} : vector<8x768xf32> to vector<8x384xf32>
    %492 = vector.extract_strided_slice %486 {offsets = [0, 0], sizes = [8, 128], strides = [1, 1]} : vector<8x384xf32> to vector<8x128xf32>
    %493 = vector.extract_strided_slice %491 {offsets = [0, 0], sizes = [8, 128], strides = [1, 1]} : vector<8x384xf32> to vector<8x128xf32>
    %494 = arith.addf %492, %493 : vector<8x128xf32>
    %495 = arith.negf %494 : vector<8x128xf32>
    %496 = math.exp %495 : vector<8x128xf32>
    %cst_111 = arith.constant 1.000000e+00 : f32
    %497 = vector.broadcast %cst_111 : f32 to vector<8x128xf32>
    %498 = arith.addf %497, %496 : vector<8x128xf32>
    %499 = arith.divf %497, %498 : vector<8x128xf32>
    %500 = vector.extract_strided_slice %486 {offsets = [0, 128], sizes = [8, 128], strides = [1, 1]} : vector<8x384xf32> to vector<8x128xf32>
    %501 = vector.extract_strided_slice %491 {offsets = [0, 128], sizes = [8, 128], strides = [1, 1]} : vector<8x384xf32> to vector<8x128xf32>
    %502 = arith.addf %500, %501 : vector<8x128xf32>
    %503 = arith.negf %502 : vector<8x128xf32>
    %504 = math.exp %503 : vector<8x128xf32>
    %cst_112 = arith.constant 1.000000e+00 : f32
    %505 = vector.broadcast %cst_112 : f32 to vector<8x128xf32>
    %506 = arith.addf %505, %504 : vector<8x128xf32>
    %507 = arith.divf %505, %506 : vector<8x128xf32>
    %508 = vector.extract_strided_slice %486 {offsets = [0, 256], sizes = [8, 128], strides = [1, 1]} : vector<8x384xf32> to vector<8x128xf32>
    %509 = vector.extract_strided_slice %491 {offsets = [0, 256], sizes = [8, 128], strides = [1, 1]} : vector<8x384xf32> to vector<8x128xf32>
    %510 = arith.mulf %499, %509 : vector<8x128xf32>
    %511 = arith.addf %508, %510 : vector<8x128xf32>
    %512 = math.tanh %511 : vector<8x128xf32>
    %cst_113 = arith.constant 1.000000e+00 : f32
    %513 = vector.broadcast %cst_113 : f32 to vector<8x128xf32>
    %514 = arith.subf %513, %507 : vector<8x128xf32>
    %515 = arith.mulf %514, %512 : vector<8x128xf32>
    %516 = arith.mulf %507, %458 : vector<8x128xf32>
    %517 = arith.addf %515, %516 : vector<8x128xf32>
    %518 = vector.extract_strided_slice %482 {offsets = [0, 384], sizes = [8, 384], strides = [1, 1]} : vector<8x768xf32> to vector<8x384xf32>
    %519 = vector.extract_strided_slice %490 {offsets = [0, 0], sizes = [8, 128], strides = [1, 1]} : vector<8x384xf32> to vector<8x128xf32>
    %520 = vector.extract_strided_slice %518 {offsets = [0, 0], sizes = [8, 128], strides = [1, 1]} : vector<8x384xf32> to vector<8x128xf32>
    %521 = arith.addf %519, %520 : vector<8x128xf32>
    %522 = arith.negf %521 : vector<8x128xf32>
    %523 = math.exp %522 : vector<8x128xf32>
    %cst_114 = arith.constant 1.000000e+00 : f32
    %524 = vector.broadcast %cst_114 : f32 to vector<8x128xf32>
    %525 = arith.addf %524, %523 : vector<8x128xf32>
    %526 = arith.divf %524, %525 : vector<8x128xf32>
    %527 = vector.extract_strided_slice %490 {offsets = [0, 128], sizes = [8, 128], strides = [1, 1]} : vector<8x384xf32> to vector<8x128xf32>
    %528 = vector.extract_strided_slice %518 {offsets = [0, 128], sizes = [8, 128], strides = [1, 1]} : vector<8x384xf32> to vector<8x128xf32>
    %529 = arith.addf %527, %528 : vector<8x128xf32>
    %530 = arith.negf %529 : vector<8x128xf32>
    %531 = math.exp %530 : vector<8x128xf32>
    %cst_115 = arith.constant 1.000000e+00 : f32
    %532 = vector.broadcast %cst_115 : f32 to vector<8x128xf32>
    %533 = arith.addf %532, %531 : vector<8x128xf32>
    %534 = arith.divf %532, %533 : vector<8x128xf32>
    %535 = vector.extract_strided_slice %490 {offsets = [0, 256], sizes = [8, 128], strides = [1, 1]} : vector<8x384xf32> to vector<8x128xf32>
    %536 = vector.extract_strided_slice %518 {offsets = [0, 256], sizes = [8, 128], strides = [1, 1]} : vector<8x384xf32> to vector<8x128xf32>
    %537 = arith.mulf %526, %536 : vector<8x128xf32>
    %538 = arith.addf %535, %537 : vector<8x128xf32>
    %539 = math.tanh %538 : vector<8x128xf32>
    %cst_116 = arith.constant 1.000000e+00 : f32
    %540 = vector.broadcast %cst_116 : f32 to vector<8x128xf32>
    %541 = arith.subf %540, %534 : vector<8x128xf32>
    %542 = arith.mulf %541, %539 : vector<8x128xf32>
    %543 = arith.mulf %534, %461 : vector<8x128xf32>
    %544 = arith.addf %542, %543 : vector<8x128xf32>
    %545 = vector.broadcast %c5_i32 : i32 to vector<8x1xi32>
    %546 = arith.cmpi slt, %545, %9 : vector<8x1xi32>
    %547 = vector.broadcast %478 : i32 to vector<8x1xi32>
    %548 = arith.cmpi slt, %547, %9 : vector<8x1xi32>
    %549 = vector.shape_cast %546 : vector<8x1xi1> to vector<8x1xi1>
    %550 = vector.broadcast %549 : vector<8x1xi1> to vector<8x128xi1>
    %551 = arith.select %550, %517, %458 : vector<8x128xi1>, vector<8x128xf32>
    %552 = vector.shape_cast %548 : vector<8x1xi1> to vector<8x1xi1>
    %553 = vector.broadcast %552 : vector<8x1xi1> to vector<8x128xi1>
    %554 = arith.select %553, %544, %461 : vector<8x128xi1>, vector<8x128xf32>
    %cst_117 = arith.constant 0.000000e+00 : f32
    %555 = vector.shape_cast %546 : vector<8x1xi1> to vector<8x1xi1>
    %556 = vector.broadcast %555 : vector<8x1xi1> to vector<8x128xi1>
    %557 = vector.broadcast %cst_117 : f32 to vector<8x128xf32>
    %558 = arith.select %556, %517, %557 : vector<8x128xi1>, vector<8x128xf32>
    %559 = arith.index_cast %c5_i32 : i32 to index
    %c0_118 = arith.constant 0 : index
    %c0_119 = arith.constant 0 : index
    %560 = vector.load %arg6[%559, %c0_118, %c0_119] : memref<8x8x128xf32, #tpu.memory_space<vmem>>, vector<1x8x128xf32>
    %561 = vector.shape_cast %560 : vector<1x8x128xf32> to vector<8x128xf32>
    %562 = vector.shape_cast %558 : vector<8x128xf32> to vector<1x8x128xf32>
    tpu.vector_store %arg6[%559, %c0_118, %c0_119], %562 {strides = array<i32>} : memref<8x8x128xf32, #tpu.memory_space<vmem>>, vector<1x8x128xf32>,
    %cst_120 = arith.constant 0.000000e+00 : f32
    %563 = vector.shape_cast %548 : vector<8x1xi1> to vector<8x1xi1>
    %564 = vector.broadcast %563 : vector<8x1xi1> to vector<8x128xi1>
    %565 = vector.broadcast %cst_120 : f32 to vector<8x128xf32>
    %566 = arith.select %564, %544, %565 : vector<8x128xi1>, vector<8x128xf32>
    %567 = arith.index_cast %478 : i32 to index
    %c0_121 = arith.constant 0 : index
    %c0_122 = arith.constant 0 : index
    %568 = vector.load %arg9[%567, %c0_121, %c0_122] : memref<8x8x128xf32, #tpu.memory_space<vmem>>, vector<1x8x128xf32>
    %569 = vector.shape_cast %568 : vector<1x8x128xf32> to vector<8x128xf32>
    %570 = vector.shape_cast %566 : vector<8x128xf32> to vector<1x8x128xf32>
    tpu.vector_store %arg9[%567, %c0_121, %c0_122], %570 {strides = array<i32>} : memref<8x8x128xf32, #tpu.memory_space<vmem>>, vector<1x8x128xf32>,
    %c6_i32 = arith.constant 6 : i32
    %c7_i32_123 = arith.constant 7 : i32
    %571 = arith.subi %c7_i32_123, %c6_i32 : i32
    %572 = tpu.concatenate %551, %554 in 1 : vector<8x128xf32>, vector<8x128xf32> -> vector<8x256xf32>
    %cst_124 = arith.constant dense<0.000000e+00> : vector<8x768xf32>
    %573 = tpu.matmul %572, %10, %cst_124 {dimension_numbers = #tpu.dot_dimension_numbers<[1], [0], [0], [1], [0, 0, 1, 1], [], []>} : vector<8x256xf32>, vector<256x768xf32>, vector<8x768xf32> -> vector<8x768xf32>
    %574 = vector.broadcast %11 : vector<1x768xf32> to vector<8x768xf32>
    %575 = arith.addf %573, %574 : vector<8x768xf32>
    %576 = arith.index_cast %c6_i32 : i32 to index
    %c0_125 = arith.constant 0 : index
    %c0_126 = arith.constant 0 : index
    %577 = vector.load %arg8[%576, %c0_125, %c0_126] : memref<8x8x768xf32, #tpu.memory_space<vmem>>, vector<1x8x768xf32>
    %578 = vector.shape_cast %577 : vector<1x8x768xf32> to vector<8x768xf32>
    %579 = vector.extract_strided_slice %578 {offsets = [0, 0], sizes = [8, 384], strides = [1, 1]} : vector<8x768xf32> to vector<8x384xf32>
    %580 = arith.index_cast %571 : i32 to index
    %c0_127 = arith.constant 0 : index
    %c0_128 = arith.constant 0 : index
    %581 = vector.load %arg8[%580, %c0_127, %c0_128] : memref<8x8x768xf32, #tpu.memory_space<vmem>>, vector<1x8x768xf32>
    %582 = vector.shape_cast %581 : vector<1x8x768xf32> to vector<8x768xf32>
    %583 = vector.extract_strided_slice %582 {offsets = [0, 384], sizes = [8, 384], strides = [1, 1]} : vector<8x768xf32> to vector<8x384xf32>
    %584 = vector.extract_strided_slice %575 {offsets = [0, 0], sizes = [8, 384], strides = [1, 1]} : vector<8x768xf32> to vector<8x384xf32>
    %585 = vector.extract_strided_slice %579 {offsets = [0, 0], sizes = [8, 128], strides = [1, 1]} : vector<8x384xf32> to vector<8x128xf32>
    %586 = vector.extract_strided_slice %584 {offsets = [0, 0], sizes = [8, 128], strides = [1, 1]} : vector<8x384xf32> to vector<8x128xf32>
    %587 = arith.addf %585, %586 : vector<8x128xf32>
    %588 = arith.negf %587 : vector<8x128xf32>
    %589 = math.exp %588 : vector<8x128xf32>
    %cst_129 = arith.constant 1.000000e+00 : f32
    %590 = vector.broadcast %cst_129 : f32 to vector<8x128xf32>
    %591 = arith.addf %590, %589 : vector<8x128xf32>
    %592 = arith.divf %590, %591 : vector<8x128xf32>
    %593 = vector.extract_strided_slice %579 {offsets = [0, 128], sizes = [8, 128], strides = [1, 1]} : vector<8x384xf32> to vector<8x128xf32>
    %594 = vector.extract_strided_slice %584 {offsets = [0, 128], sizes = [8, 128], strides = [1, 1]} : vector<8x384xf32> to vector<8x128xf32>
    %595 = arith.addf %593, %594 : vector<8x128xf32>
    %596 = arith.negf %595 : vector<8x128xf32>
    %597 = math.exp %596 : vector<8x128xf32>
    %cst_130 = arith.constant 1.000000e+00 : f32
    %598 = vector.broadcast %cst_130 : f32 to vector<8x128xf32>
    %599 = arith.addf %598, %597 : vector<8x128xf32>
    %600 = arith.divf %598, %599 : vector<8x128xf32>
    %601 = vector.extract_strided_slice %579 {offsets = [0, 256], sizes = [8, 128], strides = [1, 1]} : vector<8x384xf32> to vector<8x128xf32>
    %602 = vector.extract_strided_slice %584 {offsets = [0, 256], sizes = [8, 128], strides = [1, 1]} : vector<8x384xf32> to vector<8x128xf32>
    %603 = arith.mulf %592, %602 : vector<8x128xf32>
    %604 = arith.addf %601, %603 : vector<8x128xf32>
    %605 = math.tanh %604 : vector<8x128xf32>
    %cst_131 = arith.constant 1.000000e+00 : f32
    %606 = vector.broadcast %cst_131 : f32 to vector<8x128xf32>
    %607 = arith.subf %606, %600 : vector<8x128xf32>
    %608 = arith.mulf %607, %605 : vector<8x128xf32>
    %609 = arith.mulf %600, %551 : vector<8x128xf32>
    %610 = arith.addf %608, %609 : vector<8x128xf32>
    %611 = vector.extract_strided_slice %575 {offsets = [0, 384], sizes = [8, 384], strides = [1, 1]} : vector<8x768xf32> to vector<8x384xf32>
    %612 = vector.extract_strided_slice %583 {offsets = [0, 0], sizes = [8, 128], strides = [1, 1]} : vector<8x384xf32> to vector<8x128xf32>
    %613 = vector.extract_strided_slice %611 {offsets = [0, 0], sizes = [8, 128], strides = [1, 1]} : vector<8x384xf32> to vector<8x128xf32>
    %614 = arith.addf %612, %613 : vector<8x128xf32>
    %615 = arith.negf %614 : vector<8x128xf32>
    %616 = math.exp %615 : vector<8x128xf32>
    %cst_132 = arith.constant 1.000000e+00 : f32
    %617 = vector.broadcast %cst_132 : f32 to vector<8x128xf32>
    %618 = arith.addf %617, %616 : vector<8x128xf32>
    %619 = arith.divf %617, %618 : vector<8x128xf32>
    %620 = vector.extract_strided_slice %583 {offsets = [0, 128], sizes = [8, 128], strides = [1, 1]} : vector<8x384xf32> to vector<8x128xf32>
    %621 = vector.extract_strided_slice %611 {offsets = [0, 128], sizes = [8, 128], strides = [1, 1]} : vector<8x384xf32> to vector<8x128xf32>
    %622 = arith.addf %620, %621 : vector<8x128xf32>
    %623 = arith.negf %622 : vector<8x128xf32>
    %624 = math.exp %623 : vector<8x128xf32>
    %cst_133 = arith.constant 1.000000e+00 : f32
    %625 = vector.broadcast %cst_133 : f32 to vector<8x128xf32>
    %626 = arith.addf %625, %624 : vector<8x128xf32>
    %627 = arith.divf %625, %626 : vector<8x128xf32>
    %628 = vector.extract_strided_slice %583 {offsets = [0, 256], sizes = [8, 128], strides = [1, 1]} : vector<8x384xf32> to vector<8x128xf32>
    %629 = vector.extract_strided_slice %611 {offsets = [0, 256], sizes = [8, 128], strides = [1, 1]} : vector<8x384xf32> to vector<8x128xf32>
    %630 = arith.mulf %619, %629 : vector<8x128xf32>
    %631 = arith.addf %628, %630 : vector<8x128xf32>
    %632 = math.tanh %631 : vector<8x128xf32>
    %cst_134 = arith.constant 1.000000e+00 : f32
    %633 = vector.broadcast %cst_134 : f32 to vector<8x128xf32>
    %634 = arith.subf %633, %627 : vector<8x128xf32>
    %635 = arith.mulf %634, %632 : vector<8x128xf32>
    %636 = arith.mulf %627, %554 : vector<8x128xf32>
    %637 = arith.addf %635, %636 : vector<8x128xf32>
    %638 = vector.broadcast %c6_i32 : i32 to vector<8x1xi32>
    %639 = arith.cmpi slt, %638, %9 : vector<8x1xi32>
    %640 = vector.broadcast %571 : i32 to vector<8x1xi32>
    %641 = arith.cmpi slt, %640, %9 : vector<8x1xi32>
    %642 = vector.shape_cast %639 : vector<8x1xi1> to vector<8x1xi1>
    %643 = vector.broadcast %642 : vector<8x1xi1> to vector<8x128xi1>
    %644 = arith.select %643, %610, %551 : vector<8x128xi1>, vector<8x128xf32>
    %645 = vector.shape_cast %641 : vector<8x1xi1> to vector<8x1xi1>
    %646 = vector.broadcast %645 : vector<8x1xi1> to vector<8x128xi1>
    %647 = arith.select %646, %637, %554 : vector<8x128xi1>, vector<8x128xf32>
    %cst_135 = arith.constant 0.000000e+00 : f32
    %648 = vector.shape_cast %639 : vector<8x1xi1> to vector<8x1xi1>
    %649 = vector.broadcast %648 : vector<8x1xi1> to vector<8x128xi1>
    %650 = vector.broadcast %cst_135 : f32 to vector<8x128xf32>
    %651 = arith.select %649, %610, %650 : vector<8x128xi1>, vector<8x128xf32>
    %652 = arith.index_cast %c6_i32 : i32 to index
    %c0_136 = arith.constant 0 : index
    %c0_137 = arith.constant 0 : index
    %653 = vector.load %arg6[%652, %c0_136, %c0_137] : memref<8x8x128xf32, #tpu.memory_space<vmem>>, vector<1x8x128xf32>
    %654 = vector.shape_cast %653 : vector<1x8x128xf32> to vector<8x128xf32>
    %655 = vector.shape_cast %651 : vector<8x128xf32> to vector<1x8x128xf32>
    tpu.vector_store %arg6[%652, %c0_136, %c0_137], %655 {strides = array<i32>} : memref<8x8x128xf32, #tpu.memory_space<vmem>>, vector<1x8x128xf32>,
    %cst_138 = arith.constant 0.000000e+00 : f32
    %656 = vector.shape_cast %641 : vector<8x1xi1> to vector<8x1xi1>
    %657 = vector.broadcast %656 : vector<8x1xi1> to vector<8x128xi1>
    %658 = vector.broadcast %cst_138 : f32 to vector<8x128xf32>
    %659 = arith.select %657, %637, %658 : vector<8x128xi1>, vector<8x128xf32>
    %660 = arith.index_cast %571 : i32 to index
    %c0_139 = arith.constant 0 : index
    %c0_140 = arith.constant 0 : index
    %661 = vector.load %arg9[%660, %c0_139, %c0_140] : memref<8x8x128xf32, #tpu.memory_space<vmem>>, vector<1x8x128xf32>
    %662 = vector.shape_cast %661 : vector<1x8x128xf32> to vector<8x128xf32>
    %663 = vector.shape_cast %659 : vector<8x128xf32> to vector<1x8x128xf32>
    tpu.vector_store %arg9[%660, %c0_139, %c0_140], %663 {strides = array<i32>} : memref<8x8x128xf32, #tpu.memory_space<vmem>>, vector<1x8x128xf32>,
    %c7_i32_141 = arith.constant 7 : i32
    %c7_i32_142 = arith.constant 7 : i32
    %664 = arith.subi %c7_i32_142, %c7_i32_141 : i32
    %665 = tpu.concatenate %644, %647 in 1 : vector<8x128xf32>, vector<8x128xf32> -> vector<8x256xf32>
    %cst_143 = arith.constant dense<0.000000e+00> : vector<8x768xf32>
    %666 = tpu.matmul %665, %10, %cst_143 {dimension_numbers = #tpu.dot_dimension_numbers<[1], [0], [0], [1], [0, 0, 1, 1], [], []>} : vector<8x256xf32>, vector<256x768xf32>, vector<8x768xf32> -> vector<8x768xf32>
    %667 = vector.broadcast %11 : vector<1x768xf32> to vector<8x768xf32>
    %668 = arith.addf %666, %667 : vector<8x768xf32>
    %669 = arith.index_cast %c7_i32_141 : i32 to index
    %c0_144 = arith.constant 0 : index
    %c0_145 = arith.constant 0 : index
    %670 = vector.load %arg8[%669, %c0_144, %c0_145] : memref<8x8x768xf32, #tpu.memory_space<vmem>>, vector<1x8x768xf32>
    %671 = vector.shape_cast %670 : vector<1x8x768xf32> to vector<8x768xf32>
    %672 = vector.extract_strided_slice %671 {offsets = [0, 0], sizes = [8, 384], strides = [1, 1]} : vector<8x768xf32> to vector<8x384xf32>
    %673 = arith.index_cast %664 : i32 to index
    %c0_146 = arith.constant 0 : index
    %c0_147 = arith.constant 0 : index
    %674 = vector.load %arg8[%673, %c0_146, %c0_147] : memref<8x8x768xf32, #tpu.memory_space<vmem>>, vector<1x8x768xf32>
    %675 = vector.shape_cast %674 : vector<1x8x768xf32> to vector<8x768xf32>
    %676 = vector.extract_strided_slice %675 {offsets = [0, 384], sizes = [8, 384], strides = [1, 1]} : vector<8x768xf32> to vector<8x384xf32>
    %677 = vector.extract_strided_slice %668 {offsets = [0, 0], sizes = [8, 384], strides = [1, 1]} : vector<8x768xf32> to vector<8x384xf32>
    %678 = vector.extract_strided_slice %672 {offsets = [0, 0], sizes = [8, 128], strides = [1, 1]} : vector<8x384xf32> to vector<8x128xf32>
    %679 = vector.extract_strided_slice %677 {offsets = [0, 0], sizes = [8, 128], strides = [1, 1]} : vector<8x384xf32> to vector<8x128xf32>
    %680 = arith.addf %678, %679 : vector<8x128xf32>
    %681 = arith.negf %680 : vector<8x128xf32>
    %682 = math.exp %681 : vector<8x128xf32>
    %cst_148 = arith.constant 1.000000e+00 : f32
    %683 = vector.broadcast %cst_148 : f32 to vector<8x128xf32>
    %684 = arith.addf %683, %682 : vector<8x128xf32>
    %685 = arith.divf %683, %684 : vector<8x128xf32>
    %686 = vector.extract_strided_slice %672 {offsets = [0, 128], sizes = [8, 128], strides = [1, 1]} : vector<8x384xf32> to vector<8x128xf32>
    %687 = vector.extract_strided_slice %677 {offsets = [0, 128], sizes = [8, 128], strides = [1, 1]} : vector<8x384xf32> to vector<8x128xf32>
    %688 = arith.addf %686, %687 : vector<8x128xf32>
    %689 = arith.negf %688 : vector<8x128xf32>
    %690 = math.exp %689 : vector<8x128xf32>
    %cst_149 = arith.constant 1.000000e+00 : f32
    %691 = vector.broadcast %cst_149 : f32 to vector<8x128xf32>
    %692 = arith.addf %691, %690 : vector<8x128xf32>
    %693 = arith.divf %691, %692 : vector<8x128xf32>
    %694 = vector.extract_strided_slice %672 {offsets = [0, 256], sizes = [8, 128], strides = [1, 1]} : vector<8x384xf32> to vector<8x128xf32>
    %695 = vector.extract_strided_slice %677 {offsets = [0, 256], sizes = [8, 128], strides = [1, 1]} : vector<8x384xf32> to vector<8x128xf32>
    %696 = arith.mulf %685, %695 : vector<8x128xf32>
    %697 = arith.addf %694, %696 : vector<8x128xf32>
    %698 = math.tanh %697 : vector<8x128xf32>
    %cst_150 = arith.constant 1.000000e+00 : f32
    %699 = vector.broadcast %cst_150 : f32 to vector<8x128xf32>
    %700 = arith.subf %699, %693 : vector<8x128xf32>
    %701 = arith.mulf %700, %698 : vector<8x128xf32>
    %702 = arith.mulf %693, %644 : vector<8x128xf32>
    %703 = arith.addf %701, %702 : vector<8x128xf32>
    %704 = vector.extract_strided_slice %668 {offsets = [0, 384], sizes = [8, 384], strides = [1, 1]} : vector<8x768xf32> to vector<8x384xf32>
    %705 = vector.extract_strided_slice %676 {offsets = [0, 0], sizes = [8, 128], strides = [1, 1]} : vector<8x384xf32> to vector<8x128xf32>
    %706 = vector.extract_strided_slice %704 {offsets = [0, 0], sizes = [8, 128], strides = [1, 1]} : vector<8x384xf32> to vector<8x128xf32>
    %707 = arith.addf %705, %706 : vector<8x128xf32>
    %708 = arith.negf %707 : vector<8x128xf32>
    %709 = math.exp %708 : vector<8x128xf32>
    %cst_151 = arith.constant 1.000000e+00 : f32
    %710 = vector.broadcast %cst_151 : f32 to vector<8x128xf32>
    %711 = arith.addf %710, %709 : vector<8x128xf32>
    %712 = arith.divf %710, %711 : vector<8x128xf32>
    %713 = vector.extract_strided_slice %676 {offsets = [0, 128], sizes = [8, 128], strides = [1, 1]} : vector<8x384xf32> to vector<8x128xf32>
    %714 = vector.extract_strided_slice %704 {offsets = [0, 128], sizes = [8, 128], strides = [1, 1]} : vector<8x384xf32> to vector<8x128xf32>
    %715 = arith.addf %713, %714 : vector<8x128xf32>
    %716 = arith.negf %715 : vector<8x128xf32>
    %717 = math.exp %716 : vector<8x128xf32>
    %cst_152 = arith.constant 1.000000e+00 : f32
    %718 = vector.broadcast %cst_152 : f32 to vector<8x128xf32>
    %719 = arith.addf %718, %717 : vector<8x128xf32>
    %720 = arith.divf %718, %719 : vector<8x128xf32>
    %721 = vector.extract_strided_slice %676 {offsets = [0, 256], sizes = [8, 128], strides = [1, 1]} : vector<8x384xf32> to vector<8x128xf32>
    %722 = vector.extract_strided_slice %704 {offsets = [0, 256], sizes = [8, 128], strides = [1, 1]} : vector<8x384xf32> to vector<8x128xf32>
    %723 = arith.mulf %712, %722 : vector<8x128xf32>
    %724 = arith.addf %721, %723 : vector<8x128xf32>
    %725 = math.tanh %724 : vector<8x128xf32>
    %cst_153 = arith.constant 1.000000e+00 : f32
    %726 = vector.broadcast %cst_153 : f32 to vector<8x128xf32>
    %727 = arith.subf %726, %720 : vector<8x128xf32>
    %728 = arith.mulf %727, %725 : vector<8x128xf32>
    %729 = arith.mulf %720, %647 : vector<8x128xf32>
    %730 = arith.addf %728, %729 : vector<8x128xf32>
    %731 = vector.broadcast %c7_i32_141 : i32 to vector<8x1xi32>
    %732 = arith.cmpi slt, %731, %9 : vector<8x1xi32>
    %733 = vector.broadcast %664 : i32 to vector<8x1xi32>
    %734 = arith.cmpi slt, %733, %9 : vector<8x1xi32>
    %735 = vector.shape_cast %732 : vector<8x1xi1> to vector<8x1xi1>
    %736 = vector.broadcast %735 : vector<8x1xi1> to vector<8x128xi1>
    %737 = arith.select %736, %703, %644 : vector<8x128xi1>, vector<8x128xf32>
    %738 = vector.shape_cast %734 : vector<8x1xi1> to vector<8x1xi1>
    %739 = vector.broadcast %738 : vector<8x1xi1> to vector<8x128xi1>
    %740 = arith.select %739, %730, %647 : vector<8x128xi1>, vector<8x128xf32>
    %cst_154 = arith.constant 0.000000e+00 : f32
    %741 = vector.shape_cast %732 : vector<8x1xi1> to vector<8x1xi1>
    %742 = vector.broadcast %741 : vector<8x1xi1> to vector<8x128xi1>
    %743 = vector.broadcast %cst_154 : f32 to vector<8x128xf32>
    %744 = arith.select %742, %703, %743 : vector<8x128xi1>, vector<8x128xf32>
    %745 = arith.index_cast %c7_i32_141 : i32 to index
    %c0_155 = arith.constant 0 : index
    %c0_156 = arith.constant 0 : index
    %746 = vector.load %arg6[%745, %c0_155, %c0_156] : memref<8x8x128xf32, #tpu.memory_space<vmem>>, vector<1x8x128xf32>
    %747 = vector.shape_cast %746 : vector<1x8x128xf32> to vector<8x128xf32>
    %748 = vector.shape_cast %744 : vector<8x128xf32> to vector<1x8x128xf32>
    tpu.vector_store %arg6[%745, %c0_155, %c0_156], %748 {strides = array<i32>} : memref<8x8x128xf32, #tpu.memory_space<vmem>>, vector<1x8x128xf32>,
    %cst_157 = arith.constant 0.000000e+00 : f32
    %749 = vector.shape_cast %734 : vector<8x1xi1> to vector<8x1xi1>
    %750 = vector.broadcast %749 : vector<8x1xi1> to vector<8x128xi1>
    %751 = vector.broadcast %cst_157 : f32 to vector<8x128xf32>
    %752 = arith.select %750, %730, %751 : vector<8x128xi1>, vector<8x128xf32>
    %753 = arith.index_cast %664 : i32 to index
    %c0_158 = arith.constant 0 : index
    %c0_159 = arith.constant 0 : index
    %754 = vector.load %arg9[%753, %c0_158, %c0_159] : memref<8x8x128xf32, #tpu.memory_space<vmem>>, vector<1x8x128xf32>
    %755 = vector.shape_cast %754 : vector<1x8x128xf32> to vector<8x128xf32>
    %756 = vector.shape_cast %752 : vector<8x128xf32> to vector<1x8x128xf32>
    tpu.vector_store %arg9[%753, %c0_158, %c0_159], %756 {strides = array<i32>} : memref<8x8x128xf32, #tpu.memory_space<vmem>>, vector<1x8x128xf32>,
    %c8_i32 = arith.constant 8 : i32
    %c0_160 = arith.constant 0 : index
    %c0_161 = arith.constant 0 : index
    %c0_162 = arith.constant 0 : index
    %757 = vector.load %arg6[%c0_160, %c0_161, %c0_162] : memref<8x8x128xf32, #tpu.memory_space<vmem>>, vector<8x8x128xf32>
    %c0_163 = arith.constant 0 : index
    %c0_164 = arith.constant 0 : index
    %c0_165 = arith.constant 0 : index
    %758 = vector.load %arg9[%c0_163, %c0_164, %c0_165] : memref<8x8x128xf32, #tpu.memory_space<vmem>>, vector<8x8x128xf32>
    %759 = arith.addf %757, %758 : vector<8x8x128xf32>
    %c0_166 = arith.constant 0 : index
    %c0_167 = arith.constant 0 : index
    %c0_168 = arith.constant 0 : index
    %760 = vector.load %arg6[%c0_166, %c0_167, %c0_168] : memref<8x8x128xf32, #tpu.memory_space<vmem>>, vector<8x8x128xf32>
    tpu.vector_store %arg6[%c0_166, %c0_167, %c0_168], %759 {strides = array<i32>} : memref<8x8x128xf32, #tpu.memory_space<vmem>>, vector<8x8x128xf32>,
    %c0_169 = arith.constant 0 : index
    %c0_170 = arith.constant 0 : index
    %c0_171 = arith.constant 0 : index
    %761 = vector.load %arg7[%c0_169, %c0_170, %c0_171] : memref<2x8x128xf32, #tpu.memory_space<vmem>>, vector<1x8x128xf32>
    %762 = vector.shape_cast %761 : vector<1x8x128xf32> to vector<8x128xf32>
    %763 = vector.shape_cast %737 : vector<8x128xf32> to vector<1x8x128xf32>
    tpu.vector_store %arg7[%c0_169, %c0_170, %c0_171], %763 {strides = array<i32>} : memref<2x8x128xf32, #tpu.memory_space<vmem>>, vector<1x8x128xf32>,
    %c1 = arith.constant 1 : index
    %c0_172 = arith.constant 0 : index
    %c0_173 = arith.constant 0 : index
    %764 = vector.load %arg7[%c1, %c0_172, %c0_173] : memref<2x8x128xf32, #tpu.memory_space<vmem>>, vector<1x8x128xf32>
    %765 = vector.shape_cast %764 : vector<1x8x128xf32> to vector<8x128xf32>
    %766 = vector.shape_cast %740 : vector<8x128xf32> to vector<1x8x128xf32>
    tpu.vector_store %arg7[%c1, %c0_172, %c0_173], %766 {strides = array<i32>} : memref<2x8x128xf32, #tpu.memory_space<vmem>>, vector<1x8x128xf32>,
    return
  }
}

</mosaic_0001>

<bundles_post_ra>
// kernel: tpu_custom_call.1
= control target key start
LH: loop header
LB: loop body
LE: loop exit
PB: predicated region body
PF: predicated region fallthrough
CT: control target
= control target key end

     0   :  { %13 = vsyncpa [#allocation5], 0  ;;  %s8256_s0 = inlined_call_operand.hbm [shape: f32[8,8,128], index: 0, kind: input, shape index: {}]   ;;  %s8257_s1 = inlined_call_operand.vmem [shape: s32[8,1], index: 1, kind: input, shape index: {}]   ;;  %s8258_s2 = inlined_call_operand.hbm [shape: f32[128,768], index: 2, kind: input, shape index: {}]   ;;  %s8259_s3 = inlined_call_operand.vmem [shape: f32[1,768], index: 3, kind: input, shape index: {}]   ;;  %s8260_s4 = inlined_call_operand.hbm [shape: f32[256,768], index: 4, kind: input, shape index: {}]   ;;  %s8261_s5 = inlined_call_operand.vmem [shape: f32[1,768], index: 5, kind: input, shape index: {}]   ;;  %s8262_s6 = inlined_call_operand.hbm [shape: f32[8,8,128], index: 6, kind: output, shape index: {0}]   ;;  %s8263_s7 = inlined_call_operand.hbm [shape: f32[2,8,128], index: 7, kind: output, shape index: {1}]  }
   0x1   :  { %14 = vsyncpa [#allocation8], 0 }
   0x2   :  { %15 = vsyncpa [#allocation6], 0  ;;  %s36_s26 = sshll.u32 %s8258_s2, 4  ;;  %s37_s26 = int_to_ptr.hbm [resolvable:$true] %s36_s26 }
   0x3   :  { %16 = vsyncpa [#allocation12], 0  ;;  %s4550_s27 = smov [#allocation7]   ;;  %s21_s8 = sshll.u32 %s8256_s0, 4  ;;  %s22_s8 = int_to_ptr.hbm [resolvable:$true] %s21_s8 }
   0x4   :  { %s38_s28 = sshll.u32 %s4550_s27, 4  ;;  %s4551_s9 = smov 768   ;;  %s39_s28 = int_to_ptr.vmem [resolvable:$true] %s38_s28 }
   0x5   :  { %s4552_s10 = smov 48   ;;  %s4553_s11 = smov [#allocation4]  }
   0x6   :  { %44 = dma.hbm_to_vmem [thread:$0]  %s37_s26, 12288, %s39_s28, [#allocation8], %s4551_s9, %s4551_s9, %s4552_s10  }
   0x7   :  { %s23_s12 = sshll.u32 %s4553_s11, 4  ;;  %s4554_s13 = smov 128   ;;  %s24_s12 = int_to_ptr.vmem [resolvable:$true] %s23_s12 }
   0x8   :  { %s4555_s14 = smov 8   ;;  %s51_s16 = sshll.u32 %s8260_s4, 4  ;;  %s52_s16 = int_to_ptr.hbm [resolvable:$true] %s51_s16 }
   0x9   :  { %29 = dma.hbm_to_vmem [thread:$0]  %s22_s8, 1024, %s24_s12, [#allocation5], %s4554_s13, %s4554_s13, %s4555_s14  }
   0xa   :  { %s4556_s17 = smov [#allocation9]  }
   0xb   :  { %s53_s0 = sshll.u32 %s4556_s17, 4  ;;  %s54_s0 = int_to_ptr.vmem [resolvable:$true] %s53_s0 }
   0xc   :  { %59 = dma.hbm_to_vmem [thread:$0]  %s52_s16, 24576, %s54_s0, [#allocation8], %s4551_s9, %s4551_s9, %s4552_s10  }
   0xd   :  { %4542 = dma.done.wait [#allocation5], 1024  }
   0xe   :  { %4543 = vsyncadd [#allocation5], 4294966272 }
   0xf   :  { %4544 = dma.done.wait [#allocation8], 36864  }
  0x10   :  { %4545 = vsyncadd [#allocation8], 4294930432  ;;  %v172_v0 = vld [vmem:[#allocation7 + $0x2d0] sm:$0xff]  ;;  %v174_v1 = vld [vmem:[#allocation7 + $0x2e0] sm:$0xff]  ;;  %s3582_s26 = sshll.u32 %s8263_s7, 4  ;;  %s4560_s27 = smov [#allocation10]   ;;  %s3583_s26 = int_to_ptr.hbm [resolvable:$true] %s3582_s26 }
  0x11   :  { %v166_v2 = vld [vmem:[#allocation7 + $0x2a0] sm:$0xff]  ;;  %192 = vmatpush.msra.mxu0 %v172_v0  ;;  %274 = vmatpush.msra.mxu2 %v174_v1  ;;  %v173_v3 = vld [vmem:[#allocation7 + $0x2d8] sm:$0xff]  ;;  %v168_v4 = vld [vmem:[#allocation7 + $0x2b0] sm:$0xff]  ;;  %s3567_s28 = sshll.u32 %s4560_s27, 4  ;;  %s3569_s8 = sshll.u32 %s8262_s6, 4  ;;  %s3568_s28 = int_to_ptr.vmem [resolvable:$true] %s3567_s28  ;;  %s3570_s8 = int_to_ptr.hbm [resolvable:$true] %s3569_s8 }
  0x12   :  { %v175_v5 = vld [vmem:[#allocation7 + $0x2e8] sm:$0xff]  ;;  %233 = vmatpush.msra.mxu1 %v173_v3  ;;  %v160_v6 = vld [vmem:[#allocation7 + $0x270] sm:$0xff]  ;;  %v162_v8 = vld [vmem:[#allocation7 + $0x280] sm:$0xff] }
  0x13   :  { %315 = vmatpush.msra.mxu3 %v175_v5  ;;  %v167_v7 = vld [vmem:[#allocation7 + $0x2a8] sm:$0xff]  ;;  %193 = vmatpush.msra.mxu0 %v166_v2  ;;  %v169_v9 = vld [vmem:[#allocation7 + $0x2b8] sm:$0xff]  ;;  %v154_v11 = vld [vmem:[#allocation7 + $0x240] sm:$0xff] }
  0x14   :  { %275 = vmatpush.msra.mxu2 %v168_v4  ;;  %v161_v10 = vld [vmem:[#allocation7 + $0x278] sm:$0xff]  ;;  %234 = vmatpush.msra.mxu1 %v167_v7  ;;  %v156_v12 = vld [vmem:[#allocation7 + $0x250] sm:$0xff]  ;;  %v163_v13 = vld [vmem:[#allocation7 + $0x288] sm:$0xff] }
  0x15   :  { %316 = vmatpush.msra.mxu3 %v169_v9  ;;  %194 = vmatpush.msra.mxu0 %v160_v6  ;;  %v155_v14 = vld [vmem:[#allocation7 + $0x248] sm:$0xff]  ;;  %v157_v15 = vld [vmem:[#allocation7 + $0x258] sm:$0xff]  ;;  %v148_v16 = vld [vmem:[#allocation7 + $0x210] sm:$0xff] }
  0x16   :  { %276 = vmatpush.msra.mxu2 %v162_v8  ;;  %235 = vmatpush.msra.mxu1 %v161_v10  ;;  %v150_v17 = vld [vmem:[#allocation7 + $0x220] sm:$0xff]  ;;  %v149_v18 = vld [vmem:[#allocation7 + $0x218] sm:$0xff]  ;;  %v151_v19 = vld [vmem:[#allocation7 + $0x228] sm:$0xff] }
  0x17   :  { %317 = vmatpush.msra.mxu3 %v163_v13  ;;  %195 = vmatpush.msra.mxu0 %v154_v11  ;;  %v142_v20 = vld [vmem:[#allocation7 + $0x1e0] sm:$0xff]  ;;  %v144_v21 = vld [vmem:[#allocation7 + $0x1f0] sm:$0xff]  ;;  %v143_v22 = vld [vmem:[#allocation7 + $0x1e8] sm:$0xff] }
  0x18   :  { %277 = vmatpush.msra.mxu2 %v156_v12  ;;  %236 = vmatpush.msra.mxu1 %v155_v14  ;;  %v145_v23 = vld [vmem:[#allocation7 + $0x1f8] sm:$0xff]  ;;  %v136_v24 = vld [vmem:[#allocation7 + $0x1b0] sm:$0xff]  ;;  %v138_v25 = vld [vmem:[#allocation7 + $0x1c0] sm:$0xff] }
  0x19   :  { %318 = vmatpush.msra.mxu3 %v157_v15  ;;  %196 = vmatpush.msra.mxu0 %v148_v16  ;;  %v137_v26 = vld [vmem:[#allocation7 + $0x1b8] sm:$0xff]  ;;  %v139_v27 = vld [vmem:[#allocation7 + $0x1c8] sm:$0xff]  ;;  %v130_v28 = vld [vmem:[#allocation7 + $0x180] sm:$0xff] }
  0x1a   :  { %278 = vmatpush.msra.mxu2 %v150_v17  ;;  %237 = vmatpush.msra.mxu1 %v149_v18  ;;  %v132_v29 = vld [vmem:[#allocation7 + $0x190] sm:$0xff]  ;;  %v131_v30 = vld [vmem:[#allocation7 + $0x188] sm:$0xff]  ;;  %v133_v31 = vld [vmem:[#allocation7 + $0x198] sm:$0xff] }
  0x1b   :  { %319 = vmatpush.msra.mxu3 %v151_v19  ;;  %197 = vmatpush.msra.mxu0 %v142_v20  ;;  %v124_v32 = vld [vmem:[#allocation7 + $0x150] sm:$0xff]  ;;  %v126_v33 = vld [vmem:[#allocation7 + $0x160] sm:$0xff]  ;;  %v125_v34 = vld [vmem:[#allocation7 + $0x158] sm:$0xff] }
  0x1c   :  { %279 = vmatpush.msra.mxu2 %v144_v21  ;;  %238 = vmatpush.msra.mxu1 %v143_v22  ;;  %v127_v35 = vld [vmem:[#allocation7 + $0x168] sm:$0xff]  ;;  %v118_v36 = vld [vmem:[#allocation7 + $0x120] sm:$0xff]  ;;  %v120_v37 = vld [vmem:[#allocation7 + $0x130] sm:$0xff] }
  0x1d   :  { %320 = vmatpush.msra.mxu3 %v145_v23  ;;  %198 = vmatpush.msra.mxu0 %v136_v24  ;;  %v119_v38 = vld [vmem:[#allocation7 + $0x128] sm:$0xff]  ;;  %v121_v39 = vld [vmem:[#allocation7 + $0x138] sm:$0xff]  ;;  %v112_v40 = vld [vmem:[#allocation7 + $0xf0] sm:$0xff] }
  0x1e   :  { %280 = vmatpush.msra.mxu2 %v138_v25  ;;  %239 = vmatpush.msra.mxu1 %v137_v26  ;;  %v114_v41 = vld [vmem:[#allocation7 + $0x100] sm:$0xff]  ;;  %v113_v42 = vld [vmem:[#allocation7 + $0xf8] sm:$0xff]  ;;  %v115_v43 = vld [vmem:[#allocation7 + $0x108] sm:$0xff] }
  0x1f   :  { %321 = vmatpush.msra.mxu3 %v139_v27  ;;  %199 = vmatpush.msra.mxu0 %v130_v28  ;;  %v106_v44 = vld [vmem:[#allocation7 + $0xc0] sm:$0xff]  ;;  %v108_v45 = vld [vmem:[#allocation7 + $0xd0] sm:$0xff]  ;;  %v107_v46 = vld [vmem:[#allocation7 + $0xc8] sm:$0xff] }
  0x20   :  { %281 = vmatpush.msra.mxu2 %v132_v29  ;;  %240 = vmatpush.msra.mxu1 %v131_v30  ;;  %v109_v47 = vld [vmem:[#allocation7 + $0xd8] sm:$0xff]  ;;  %v100_v48 = vld [vmem:[#allocation7 + $0x90] sm:$0xff]  ;;  %v102_v49 = vld [vmem:[#allocation7 + $0xa0] sm:$0xff] }
  0x21   :  { %322 = vmatpush.msra.mxu3 %v133_v31  ;;  %200 = vmatpush.msra.mxu0 %v124_v32  ;;  %v101_v50 = vld [vmem:[#allocation7 + $0x98] sm:$0xff]  ;;  %v103_v51 = vld [vmem:[#allocation7 + $0xa8] sm:$0xff]  ;;  %v94_v52 = vld [vmem:[#allocation7 + $0x60] sm:$0xff] }
  0x22   :  { %282 = vmatpush.msra.mxu2 %v126_v33  ;;  %241 = vmatpush.msra.mxu1 %v125_v34  ;;  %v96_v53 = vld [vmem:[#allocation7 + $0x70] sm:$0xff]  ;;  %v95_v54 = vld [vmem:[#allocation7 + $0x68] sm:$0xff]  ;;  %v97_v55 = vld [vmem:[#allocation7 + $0x78] sm:$0xff] }
  0x23   :  { %323 = vmatpush.msra.mxu3 %v127_v35  ;;  %201 = vmatpush.msra.mxu0 %v118_v36  ;;  %v88_v56 = vld [vmem:[#allocation7 + $0x30] sm:$0xff]  ;;  %v90_v57 = vld [vmem:[#allocation7 + $0x40] sm:$0xff]  ;;  %v89_v58 = vld [vmem:[#allocation7 + $0x38] sm:$0xff] }
  0x24   :  { %283 = vmatpush.msra.mxu2 %v120_v37  ;;  %242 = vmatpush.msra.mxu1 %v119_v38  ;;  %v91_v59 = vld [vmem:[#allocation7 + $0x48] sm:$0xff]  ;;  %v82_v60 = vld [vmem:[#allocation7] sm:$0xff]  ;;  %v84_v61 = vld [vmem:[#allocation7 + $0x10] sm:$0xff] }
  0x25   :  { %324 = vmatpush.msra.mxu3 %v121_v39  ;;  %202 = vmatpush.msra.mxu0 %v112_v40  ;;  %v4613_v62 = vld [vmem:[#allocation4] sm:$0xff]  ;;  %v176_v63 = vld [vmem:[#allocation7 + $0x2f0] sm:$0xff]  ;;  %v83_v0 = vld [vmem:[#allocation7 + $0x8] sm:$0xff] }
  0x26   :  { %284 = vmatpush.msra.mxu2 %v114_v41  ;;  %243 = vmatpush.msra.mxu1 %v113_v42  ;;  %v85_v1 = vld [vmem:[#allocation7 + $0x18] sm:$0xff]  ;;  %v577_v3 = vld [vmem:[#allocation9 + $0x2d0] sm:$0xff]  ;;  %v170_v4 = vld [vmem:[#allocation7 + $0x2c0] sm:$0xff] }
  0x27   :  { %325 = vmatpush.msra.mxu3 %v115_v43  ;;  %203 = vmatpush.msra.mxu0 %v106_v44  ;;  %v177_v2 = vld [vmem:[#allocation7 + $0x2f8] sm:$0xff]  ;;  %v673_v5 = vld [vmem:[#allocation9 + $0x5d0] sm:$0xff]  ;;  %v171_v6 = vld [vmem:[#allocation7 + $0x2c8] sm:$0xff] }
  0x28   :  { %285 = vmatpush.msra.mxu2 %v108_v45  ;;  %244 = vmatpush.msra.mxu1 %v107_v46  ;;  %v571_v7 = vld [vmem:[#allocation9 + $0x2a0] sm:$0xff]  ;;  %v164_v8 = vld [vmem:[#allocation7 + $0x290] sm:$0xff]  ;;  %v165_v10 = vld [vmem:[#allocation7 + $0x298] sm:$0xff] }
  0x29   :  { %326 = vmatpush.msra.mxu3 %v109_v47  ;;  %204 = vmatpush.msra.mxu0 %v100_v48  ;;  %v667_v9 = vld [vmem:[#allocation9 + $0x5a0] sm:$0xff]  ;;  %v565_v11 = vld [vmem:[#allocation9 + $0x270] sm:$0xff]  ;;  %v4619_v12 = vld [vmem:[#allocation4 + $0x8] sm:$0xff] }
  0x2a   :  { %286 = vmatpush.msra.mxu2 %v102_v49  ;;  %245 = vmatpush.msra.mxu1 %v101_v50  ;;  %v661_v13 = vld [vmem:[#allocation9 + $0x570] sm:$0xff]  ;;  %v559_v14 = vld [vmem:[#allocation9 + $0x240] sm:$0xff]  ;;  %v159_v18 = vld [vmem:[#allocation7 + $0x268] sm:$0xff] }
  0x2b   :  { %327 = vmatpush.msra.mxu3 %v103_v51  ;;  %205 = vmatpush.msra.mxu0 %v94_v52  ;;  %v158_v15 = vld [vmem:[#allocation7 + $0x260] sm:$0xff]  ;;  %v553_v16 = vld [vmem:[#allocation9 + $0x210] sm:$0xff]  ;;  %v153_v22 = vld [vmem:[#allocation7 + $0x238] sm:$0xff] }
  0x2c   :  { %287 = vmatpush.msra.mxu2 %v96_v53  ;;  %246 = vmatpush.msra.mxu1 %v95_v54  ;;  %v655_v17 = vld [vmem:[#allocation9 + $0x540] sm:$0xff]  ;;  %v152_v19 = vld [vmem:[#allocation7 + $0x230] sm:$0xff]  ;;  %v147_v31 = vld [vmem:[#allocation7 + $0x208] sm:$0xff] }
  0x2d   :  { %328 = vmatpush.msra.mxu3 %v97_v55  ;;  %206 = vmatpush.msra.mxu0 %v88_v56  ;;  %v547_v20 = vld [vmem:[#allocation9 + $0x1e0] sm:$0xff]  ;;  %v649_v21 = vld [vmem:[#allocation9 + $0x510] sm:$0xff]  ;;  %v141_v35 = vld [vmem:[#allocation7 + $0x1d8] sm:$0xff] }
  0x2e   :  { %288 = vmatpush.msra.mxu2 %v90_v57  ;;  %247 = vmatpush.msra.mxu1 %v89_v58  ;;  %v146_v23 = vld [vmem:[#allocation7 + $0x200] sm:$0xff]  ;;  %v541_v24 = vld [vmem:[#allocation9 + $0x1b0] sm:$0xff]  ;;  %v4633_v39 = vld [vmem:[#allocation4 + $0x18] sm:$0xff] }
  0x2f   :  { %329 = vmatpush.msra.mxu3 %v91_v59  ;;  %207 = vmatpush.msra.mxu0 %v82_v60  ;;  %v643_v25 = vld [vmem:[#allocation9 + $0x4e0] sm:$0xff]  ;;  %v4625_v26 = vld [vmem:[#allocation4 + $0x10] sm:$0xff]  ;;  %v135_v44 = vld [vmem:[#allocation7 + $0x1a8] sm:$0xff] }
  0x30   :  { %289 = vmatpush.msra.mxu2 %v84_v61  ;;  %208 = vmatmul.f32.vlgmr.msra.gmra.mxu0 %v4613_v62  ;;  %v535_v27 = vld [vmem:[#allocation9 + $0x180] sm:$0xff]  ;;  %v637_v28 = vld [vmem:[#allocation9 + $0x4b0] sm:$0xff]  ;;  %v129_v48 = vld [vmem:[#allocation7 + $0x178] sm:$0xff] }
  0x31   :  { %290 = vmatmul.f32.vlgmr.msra.gmra.mxu2 %v4613_v62  ;;  %356 = vmatpush.msrb.mxu0 %v176_v63  ;;  %v529_v29 = vld [vmem:[#allocation9 + $0x150] sm:$0xff]  ;;  %v631_v30 = vld [vmem:[#allocation9 + $0x480] sm:$0xff]  ;;  %v4667_v55 = vld [vmem:[#allocation9 + $0x2d8] sm:$0xff] }
  0x32   :  { %248 = vmatpush.msra.mxu1 %v83_v0  ;;  %330 = vmatpush.msra.mxu3 %v85_v1  ;;  %v140_v32 = vld [vmem:[#allocation7 + $0x1d0] sm:$0xff]  ;;  %v523_v33 = vld [vmem:[#allocation9 + $0x120] sm:$0xff]  ;;  %v123_v56 = vld [vmem:[#allocation7 + $0x148] sm:$0xff] }
  0x33   :  { %249 = vmatmul.f32.vlgmr.msra.gmra.mxu1 %v4613_v62  ;;  %331 = vmatmul.f32.vlgmr.msra.gmra.mxu3 %v4613_v62  ;;  %v625_v34 = vld [vmem:[#allocation9 + $0x450] sm:$0xff]  ;;  %v134_v36 = vld [vmem:[#allocation7 + $0x1a0] sm:$0xff]  ;;  %v4675_v58 = vld [vmem:[#allocation9 + $0x2a8] sm:$0xff] }
  0x34   :  { %397 = vmatpush.msrb.mxu1 %v177_v2  ;;  %693 = vmatpush.msrb.mxu2 %v577_v3  ;;  %v4631_v37 = vld [vmem:[#allocation9 + $0xf0] sm:$0xff]  ;;  %v619_v38 = vld [vmem:[#allocation9 + $0x420] sm:$0xff]  ;;  %v4679_v59 = vld [vmem:[#allocation9 + $0x5d8] sm:$0xff] }
  0x35   :  { %357 = vmatpush.msrb.mxu0 %v170_v4  ;;  %713 = vmatpush.msrb.mxu3 %v673_v5  ;;  %v4635_v40 = vld [vmem:[#allocation9 + $0xc0] sm:$0xff]  ;;  %v613_v41 = vld [vmem:[#allocation9 + $0x3f0] sm:$0xff]  ;;  %v4682_v61 = vld [vmem:[#allocation9 + $0x278] sm:$0xff] }
  0x36   :  { %398 = vmatpush.msrb.mxu1 %v171_v6  ;;  %694 = vmatpush.msrb.mxu2 %v571_v7  ;;  %v4640_v42 = vld [vmem:[#allocation9 + $0x90] sm:$0xff]  ;;  %v4642_v43 = vld [vmem:[#allocation9 + $0x3c0] sm:$0xff]  ;;  %v117_v63 = vld [vmem:[#allocation7 + $0x118] sm:$0xff] }
  0x37   :  { %358 = vmatpush.msrb.mxu0 %v164_v8  ;;  %714 = vmatpush.msrb.mxu3 %v667_v9  ;;  %v128_v45 = vld [vmem:[#allocation7 + $0x170] sm:$0xff]  ;;  %v4647_v46 = vld [vmem:[#allocation9 + $0x60] sm:$0xff]  ;;  %v4686_v0 = vld [vmem:[#allocation9 + $0x5a8] sm:$0xff] }
  0x38   :  { %399 = vmatpush.msrb.mxu1 %v165_v10  ;;  %695 = vmatpush.msrb.mxu2 %v565_v11  ;;  %v4649_v47 = vld [vmem:[#allocation9 + $0x390] sm:$0xff]  ;;  %v122_v49 = vld [vmem:[#allocation7 + $0x140] sm:$0xff]  ;;  %v4689_v2 = vld [vmem:[#allocation9 + $0x248] sm:$0xff] }
  0x39   :  { %211 = vmatmul.f32.gmra.mxu0 %v4619_v12  ;;  %293 = vmatmul.f32.gmra.mxu2 %v4619_v12  ;;  %v4653_v50 = vld [vmem:[#allocation9 + $0x30] sm:$0xff]  ;;  %v4655_v51 = vld [vmem:[#allocation9 + $0x360] sm:$0xff]  ;;  %v4691_v3 = vld [vmem:[#allocation4 + $0x28] sm:$0xff] }
  0x3a   :  { %715 = vmatpush.msrb.mxu3 %v661_v13  ;;  %696 = vmatpush.msrb.mxu2 %v559_v14  ;;  %v4659_v52 = vld [vmem:[#allocation4 + $0x20] sm:$0xff]  ;;  %v4663_v54 = vld [vmem:[#allocation9 + $0x330] sm:$0xff]  ;;  %v4694_v4 = vld [vmem:[#allocation9 + $0x578] sm:$0xff] }
  0x3b   :  { %252 = vmatmul.f32.gmra.mxu1 %v4619_v12  ;;  %334 = vmatmul.f32.gmra.mxu3 %v4619_v12  ;;  %v4661_v53 = vld [vmem:[#allocation9] sm:$0xff]  ;;  %v116_v60 = vld [vmem:[#allocation7 + $0x110] sm:$0xff]  ;;  %v4697_v5 = vld [vmem:[#allocation9 + $0x218] sm:$0xff] }
  0x3c   :  { %359 = vmatpush.msrb.mxu0 %v158_v15  ;;  %697 = vmatpush.msrb.mxu2 %v553_v16  ;;  %v4673_v57 = vld [vmem:[#allocation9 + $0x300] sm:$0xff]  ;;  %v4701_v6 = vld [vmem:[#allocation9 + $0x548] sm:$0xff]  ;;  %v4709_v9 = vld [vmem:[#allocation9 + $0x518] sm:$0xff] }
  0x3d   :  { %716 = vmatpush.msrb.mxu3 %v655_v17  ;;  %400 = vmatpush.msrb.mxu1 %v159_v18  ;;  %8788 = vst [vmem:[#allocation17_spill] sm:$0xff] %v4673_v57  ;;  %v110_v1 = vld [vmem:[#allocation7 + $0xe0] sm:$0xff]  ;;  %v111_v7 = vld [vmem:[#allocation7 + $0xe8] sm:$0xff]  ;;  %v104_v10 = vld [vmem:[#allocation7 + $0xb0] sm:$0xff] }
  0x3e   :  { %360 = vmatpush.msrb.mxu0 %v152_v19  ;;  %698 = vmatpush.msrb.mxu2 %v547_v20  ;;  %v4705_v8 = vld [vmem:[#allocation9 + $0x1e8] sm:$0xff]  ;;  %v4712_v11 = vld [vmem:[#allocation9 + $0x1b8] sm:$0xff]  ;;  %v98_v15 = vld [vmem:[#allocation7 + $0x80] sm:$0xff] }
  0x3f   :  { %717 = vmatpush.msrb.mxu3 %v649_v21  ;;  %401 = vmatpush.msrb.mxu1 %v153_v22  ;;  %v105_v13 = vld [vmem:[#allocation7 + $0xb8] sm:$0xff]  ;;  %v4716_v14 = vld [vmem:[#allocation9 + $0x4e8] sm:$0xff]  ;;  %v4721_v17 = vld [vmem:[#allocation4 + $0x30] sm:$0xff] }
  0x40   :  { %361 = vmatpush.msrb.mxu0 %v146_v23  ;;  %699 = vmatpush.msrb.mxu2 %v541_v24  ;;  %v4719_v16 = vld [vmem:[#allocation9 + $0x188] sm:$0xff]  ;;  %v4724_v18 = vld [vmem:[#allocation9 + $0x4b8] sm:$0xff]  ;;  %v92_v24 = vld [vmem:[#allocation7 + $0x50] sm:$0xff] }
  0x41   :  { %718 = vmatpush.msrb.mxu3 %v643_v25  ;;  %214 = vmatmul.f32.gmra.mxu0 %v4625_v26  ;;  %v4727_v19 = vld [vmem:[#allocation9 + $0x158] sm:$0xff]  ;;  %v4731_v20 = vld [vmem:[#allocation9 + $0x488] sm:$0xff] }
  0x42   :  { %296 = vmatmul.f32.gmra.mxu2 %v4625_v26  ;;  %402 = vmatpush.msrb.mxu1 %v147_v31  ;;  %v99_v21 = vld [vmem:[#allocation7 + $0x88] sm:$0xff]  ;;  %v4739_v23 = vld [vmem:[#allocation9 + $0x458] sm:$0xff] }
  0x43   :  { %700 = vmatpush.msrb.mxu2 %v535_v27  ;;  %719 = vmatpush.msrb.mxu3 %v637_v28  ;;  %v4735_v22 = vld [vmem:[#allocation9 + $0x128] sm:$0xff]  ;;  %v4742_v25 = vld [vmem:[#allocation9 + $0xf8] sm:$0xff] }
  0x44   :  { %255 = vmatmul.f32.gmra.mxu1 %v4625_v26  ;;  %337 = vmatmul.f32.gmra.mxu3 %v4625_v26  ;;  %v93_v27 = vld [vmem:[#allocation7 + $0x58] sm:$0xff]  ;;  %v4746_v28 = vld [vmem:[#allocation9 + $0x428] sm:$0xff] }
  0x45   :  { %701 = vmatpush.msrb.mxu2 %v529_v29  ;;  %720 = vmatpush.msrb.mxu3 %v631_v30  ;;  %v86_v29 = vld [vmem:[#allocation7 + $0x20] sm:$0xff]  ;;  %v4749_v30 = vld [vmem:[#allocation9 + $0xc8] sm:$0xff]  ;;  %v4751_v31 = vld [vmem:[#allocation4 + $0x38] sm:$0xff] }
  0x46   :  { %362 = vmatpush.msrb.mxu0 %v140_v32  ;;  %403 = vmatpush.msrb.mxu1 %v141_v35  ;;  %v4754_v32 = vld [vmem:[#allocation9 + $0x3f8] sm:$0xff]  ;;  %v87_v35 = vld [vmem:[#allocation7 + $0x28] sm:$0xff] }
  0x47   :  { %702 = vmatpush.msrb.mxu2 %v523_v33  ;;  %721 = vmatpush.msrb.mxu3 %v625_v34  ;;  %v4757_v33 = vld [vmem:[#allocation9 + $0x98] sm:$0xff]  ;;  %v4761_v34 = vld [vmem:[#allocation9 + $0x3c8] sm:$0xff] }
  0x48   :  { %363 = vmatpush.msrb.mxu0 %v134_v36  ;;  %404 = vmatpush.msrb.mxu1 %v135_v44  ;;  %v4765_v36 = vld [vmem:[#allocation9 + $0x68] sm:$0xff]  ;;  %v4774_v44 = vld [vmem:[#allocation9 + $0x38] sm:$0xff] }
  0x49   :  { %703 = vmatpush.msrb.mxu2 %v4631_v37  ;;  %722 = vmatpush.msrb.mxu3 %v619_v38  ;;  %v4769_v38 = vld [vmem:[#allocation9 + $0x398] sm:$0xff] }
  0x4a   :  { %217 = vmatmul.f32.gmra.mxu0 %v4633_v39  ;;  %299 = vmatmul.f32.gmra.mxu2 %v4633_v39 }
  0x4b   :  { %704 = vmatpush.msrb.mxu2 %v4635_v40  ;;  %723 = vmatpush.msrb.mxu3 %v613_v41  ;;  %v4771_v41 = vld [vmem:[#allocation9 + $0x2e0] sm:$0xff] }
  0x4c   :  { %258 = vmatmul.f32.gmra.mxu1 %v4633_v39  ;;  %340 = vmatmul.f32.gmra.mxu3 %v4633_v39 }
  0x4d   :  { %705 = vmatpush.msrb.mxu2 %v4640_v42  ;;  %724 = vmatpush.msrb.mxu3 %v4642_v43 }
  0x4e   :  { %364 = vmatpush.msrb.mxu0 %v128_v45  ;;  %405 = vmatpush.msrb.mxu1 %v129_v48  ;;  %v4776_v45 = vld [vmem:[#allocation9 + $0x5e0] sm:$0xff]  ;;  %v4780_v48 = vld [vmem:[#allocation9 + $0x368] sm:$0xff] }
  0x4f   :  { %706 = vmatpush.msrb.mxu2 %v4647_v46  ;;  %725 = vmatpush.msrb.mxu3 %v4649_v47  ;;  %8789 = vst [vmem:[#allocation18_spill] sm:$0xff] %v4776_v45 }
  0x50   :  { %365 = vmatpush.msrb.mxu0 %v122_v49  ;;  %406 = vmatpush.msrb.mxu1 %v123_v56  ;;  %v4782_v49 = vld [vmem:[#allocation9 + $0x2b0] sm:$0xff]  ;;  %v4785_v56 = vld [vmem:[#allocation9 + $0x8] sm:$0xff] }
  0x51   :  { %707 = vmatpush.msrb.mxu2 %v4653_v50  ;;  %726 = vmatpush.msrb.mxu3 %v4655_v51 }
  0x52   :  { %220 = vmatmul.f32.gmra.mxu0 %v4659_v52  ;;  %302 = vmatmul.f32.gmra.mxu2 %v4659_v52 }
  0x53   :  { %708 = vmatpush.msrb.mxu2 %v4661_v53  ;;  %727 = vmatpush.msrb.mxu3 %v4663_v54 }
  0x54   :  { %261 = vmatmul.f32.gmra.mxu1 %v4659_v52  ;;  %343 = vmatmul.f32.gmra.mxu3 %v4659_v52 }
  0x55   :  { %733 = vmatpush.msra.mxu2 %v4667_v55  ;;  %728 = vmatpush.msrb.mxu3 %v4673_v57  ;;  %v4856_v57 = vld [vmem:[#allocation9 + $0x520] sm:$0xff] }
  0x56   :  { %366 = vmatpush.msrb.mxu0 %v116_v60  ;;  %407 = vmatpush.msrb.mxu1 %v117_v63  ;;  %v4789_v60 = vld [vmem:[#allocation9 + $0x338] sm:$0xff]  ;;  %v4793_v63 = vld [vmem:[#allocation9 + $0x2e8] sm:$0xff]  ;;  %8806 = vst [vmem:[#allocation34_spill] sm:$0xff] %v4856_v57 }
  0x57   :  { %734 = vmatpush.msra.mxu2 %v4675_v58  ;;  %753 = vmatpush.msra.mxu3 %v4679_v59 }
  0x58   :  { %367 = vmatpush.msrb.mxu0 %v110_v1  ;;  %408 = vmatpush.msrb.mxu1 %v111_v7  ;;  %v4798_v1 = vld [vmem:[#allocation9 + $0x308] sm:$0xff]  ;;  %v4800_v7 = vld [vmem:[#allocation9 + $0x5b0] sm:$0xff] }
  0x59   :  { %735 = vmatpush.msra.mxu2 %v4682_v61  ;;  %754 = vmatpush.msra.mxu3 %v4686_v0  ;;  %8790 = vst [vmem:[#allocation19_spill] sm:$0xff] %v4798_v1 }
  0x5a   :  { %223 = vmatmul.f32.gmra.mxu0 %v4691_v3  ;;  %305 = vmatmul.f32.gmra.mxu2 %v4691_v3  ;;  %8791 = vst [vmem:[#allocation20_spill] sm:$0xff] %v4800_v7 }
  0x5b   :  { %736 = vmatpush.msra.mxu2 %v4689_v2  ;;  %755 = vmatpush.msra.mxu3 %v4694_v4 }
  0x5c   :  { %264 = vmatmul.f32.gmra.mxu1 %v4691_v3  ;;  %346 = vmatmul.f32.gmra.mxu3 %v4691_v3 }
  0x5d   :  { %737 = vmatpush.msra.mxu2 %v4697_v5  ;;  %756 = vmatpush.msra.mxu3 %v4701_v6 }
  0x5e   :  { %368 = vmatpush.msrb.mxu0 %v104_v10  ;;  %409 = vmatpush.msrb.mxu1 %v105_v13  ;;  %v8265_v10 = vmov 0.0   ;;  %v4804_v13 = vld [vmem:[#allocation9 + $0x2b8] sm:$0xff] }
  0x5f   :  { %738 = vmatpush.msra.mxu2 %v4705_v8  ;;  %757 = vmatpush.msra.mxu3 %v4709_v9 }
  0x60   :  { %369 = vmatpush.msrb.mxu0 %v98_v15  ;;  %410 = vmatpush.msrb.mxu1 %v99_v21  ;;  %v4808_v15 = vld [vmem:[#allocation9 + $0x5e8] sm:$0xff]  ;;  %v4810_v21 = vld [vmem:[#allocation9 + $0x280] sm:$0xff] }
  0x61   :  { %739 = vmatpush.msra.mxu2 %v4712_v11  ;;  %758 = vmatpush.msra.mxu3 %v4716_v14  ;;  %8792 = vst [vmem:[#allocation21_spill] sm:$0xff] %v4808_v15 }
  0x62   :  { %226 = vmatmul.f32.gmra.mxu0 %v4721_v17  ;;  %308 = vmatmul.f32.gmra.mxu2 %v4721_v17  ;;  %8793 = vst [vmem:[#allocation22_spill] sm:$0xff] %v4810_v21 }
  0x63   :  { %740 = vmatpush.msra.mxu2 %v4719_v16  ;;  %759 = vmatpush.msra.mxu3 %v4724_v18 }
  0x64   :  { %267 = vmatmul.f32.gmra.mxu1 %v4721_v17  ;;  %349 = vmatmul.f32.gmra.mxu3 %v4721_v17 }
  0x65   :  { %741 = vmatpush.msra.mxu2 %v4727_v19  ;;  %760 = vmatpush.msra.mxu3 %v4731_v20 }
  0x66   :  { %370 = vmatpush.msrb.mxu0 %v92_v24  ;;  %411 = vmatpush.msrb.mxu1 %v93_v27  ;;  %v4813_v24 = vld [vmem:[#allocation9 + $0x288] sm:$0xff]  ;;  %v4816_v27 = vld [vmem:[#allocation9 + $0x580] sm:$0xff] }
  0x67   :  { %742 = vmatpush.msra.mxu2 %v4735_v22  ;;  %761 = vmatpush.msra.mxu3 %v4739_v23  ;;  %8794 = vst [vmem:[#allocation23_spill] sm:$0xff] %v4816_v27 }
  0x68   :  { %371 = vmatpush.msrb.mxu0 %v86_v29  ;;  %412 = vmatpush.msrb.mxu1 %v87_v35  ;;  %v4820_v29 = vld [vmem:[#allocation9 + $0x5b8] sm:$0xff]  ;;  %v4822_v35 = vld [vmem:[#allocation9 + $0x250] sm:$0xff] }
  0x69   :  { %743 = vmatpush.msra.mxu2 %v4742_v25  ;;  %762 = vmatpush.msra.mxu3 %v4746_v28  ;;  %8795 = vst [vmem:[#allocation24_spill] sm:$0xff] %v4820_v29 }
  0x6a   :  { %229 = vmatmul.f32.gmra.mxu0 %v4751_v31  ;;  %311 = vmatmul.f32.gmra.mxu2 %v4751_v31  ;;  %8796 = vst [vmem:[#allocation25_spill] sm:$0xff] %v4822_v35 }
  0x6b   :  { %744 = vmatpush.msra.mxu2 %v4749_v30  ;;  %763 = vmatpush.msra.mxu3 %v4754_v32 }
  0x6c   :  { %270 = vmatmul.f32.gmra.mxu1 %v4751_v31  ;;  %352 = vmatmul.f32.gmra.mxu3 %v4751_v31 }
  0x6d   :  { %745 = vmatpush.msra.mxu2 %v4757_v33  ;;  %764 = vmatpush.msra.mxu3 %v4761_v34 }
  0x6e   :  { %773 = vmatpush.msra.mxu0 %v4771_v41  ;;  %793 = vmatpush.msra.mxu1 %v4776_v45  ;;  %v4829_v45 = vld [vmem:[#allocation9 + $0x588] sm:$0xff] }
  0x6f   :  { %746 = vmatpush.msra.mxu2 %v4765_v36  ;;  %765 = vmatpush.msra.mxu3 %v4769_v38  ;;  %8797 = vst [vmem:[#allocation26_spill] sm:$0xff] %v4829_v45 }
  0x70   :  { %774 = vmatpush.msra.mxu0 %v4782_v49  ;;  %794 = vmatpush.msra.mxu1 %v4800_v7  ;;  %v4838_v7 = vld [vmem:[#allocation9 + $0x558] sm:$0xff] }
  0x71   :  { %747 = vmatpush.msra.mxu2 %v4774_v44  ;;  %766 = vmatpush.msra.mxu3 %v4780_v48  ;;  %8799 = vst [vmem:[#allocation28_spill] sm:$0xff] %v4838_v7 }
  0x72   :  { %372 = vmatmul.f32.vlgmr.msrb.gmra.mxu0 %v4613_v62  ;;  %709 = vmatmul.f32.vlgmr.msrb.gmra.mxu2 %v8265_v10 }
  0x73   :  { %748 = vmatpush.msra.mxu2 %v4785_v56  ;;  %767 = vmatpush.msra.mxu3 %v4789_v60 }
  0x74   :  { %413 = vmatmul.f32.vlgmr.msrb.gmra.mxu1 %v4613_v62  ;;  %729 = vmatmul.f32.vlgmr.msrb.gmra.mxu3 %v8265_v10  ;;  %v4825_v62 = vld [vmem:[#allocation9 + $0x258] sm:$0xff]  ;;  %v4833_v10 = vld [vmem:[#allocation9 + $0x228] sm:$0xff] }
  0x75   :  { %813 = vmatpush.msrb.mxu2 %v4793_v63  ;;  %768 = vmatpush.msra.mxu3 %v4798_v1  ;;  %8798 = vst [vmem:[#allocation27_spill] sm:$0xff] %v4833_v10  ;;  %v8801_v1 = vmov 0.0  }
  0x76   :  { %775 = vmatpush.msra.mxu0 %v4810_v21  ;;  %795 = vmatpush.msra.mxu1 %v4816_v27  ;;  %v4844_v21 = vld [vmem:[#allocation9 + $0x1f8] sm:$0xff]  ;;  %v4848_v27 = vld [vmem:[#allocation9 + $0x528] sm:$0xff] }
  0x77   :  { %814 = vmatpush.msrb.mxu2 %v4804_v13  ;;  %833 = vmatpush.msrb.mxu3 %v4808_v15  ;;  %v4840_v15 = vld [vmem:[#allocation9 + $0x550] sm:$0xff]  ;;  %8802 = vst [vmem:[#allocation30_spill] sm:$0xff] %v4844_v21 }
  0x78   :  { %776 = vmatpush.msra.mxu0 %v4822_v35  ;;  %8800 = vst [vmem:[#allocation29_spill] sm:$0xff] %v4840_v15  ;;  %v4853_v35 = vld [vmem:[#allocation9 + $0x1c8] sm:$0xff]  ;;  %796 = vmatpush.msra.mxu1 %v4840_v15  ;;  %v4872_v15 = vld [vmem:[#allocation9 + $0x1c0] sm:$0xff] }
  0x79   :  { %815 = vmatpush.msrb.mxu2 %v4813_v24  ;;  %834 = vmatpush.msrb.mxu3 %v4820_v29  ;;  %8803 = vst [vmem:[#allocation31_spill] sm:$0xff] %v4848_v27  ;;  %v4850_v29 = vld [vmem:[#allocation9 + $0x220] sm:$0xff] }
  0x7a   :  { %375 = vmatmul.f32.gmra.mxu0 %v4619_v12  ;;  %749 = vmatmul.f32.vlgmr.msra.gmra.mxu2 %v8801_v1  ;;  %8804 = vst [vmem:[#allocation32_spill] sm:$0xff] %v4850_v29 }
  0x7b   :  { %816 = vmatpush.msrb.mxu2 %v4825_v62  ;;  %835 = vmatpush.msrb.mxu3 %v4829_v45  ;;  %8805 = vst [vmem:[#allocation33_spill] sm:$0xff] %v4853_v35  ;;  %v4860_v45 = vld [vmem:[#allocation9 + $0x4f8] sm:$0xff] }
  0x7c   :  { %416 = vmatmul.f32.gmra.mxu1 %v4619_v12  ;;  %769 = vmatmul.f32.vlgmr.msra.gmra.mxu3 %v8801_v1  ;;  %8807 = vst [vmem:[#allocation35_spill] sm:$0xff] %v4860_v45  ;;  %v4865_v12 = vld [vmem:[#allocation9 + $0x198] sm:$0xff] }
  0x7d   :  { %817 = vmatpush.msrb.mxu2 %v4833_v10  ;;  %836 = vmatpush.msrb.mxu3 %v4838_v7  ;;  %v4862_v10 = vld [vmem:[#allocation9 + $0x1f0] sm:$0xff]  ;;  %8809 = vst [vmem:[#allocation37_spill] sm:$0xff] %v4865_v12  ;;  %v4869_v7 = vld [vmem:[#allocation9 + $0x4c8] sm:$0xff] }
  0x7e   :  { %8808 = vst [vmem:[#allocation36_spill] sm:$0xff] %v4862_v10  ;;  %777 = vmatpush.msra.mxu0 %v4850_v29  ;;  %797 = vmatpush.msra.mxu1 %v4856_v57  ;;  %v4882_v29 = vld [vmem:[#allocation9 + $0x4f0] sm:$0xff] }
  0x7f   :  { %818 = vmatpush.msrb.mxu2 %v4844_v21  ;;  %837 = vmatpush.msrb.mxu3 %v4848_v27  ;;  %8810 = vst [vmem:[#allocation38_spill] sm:$0xff] %v4869_v7  ;;  %v4875_v21 = vld [vmem:[#allocation9 + $0x168] sm:$0xff]  ;;  %v4880_v27 = vld [vmem:[#allocation9 + $0x498] sm:$0xff]  ;;  %v4888_v57 = vld [vmem:[#allocation9 + $0x190] sm:$0xff] }
  0x80   :  { %8811 = vst [vmem:[#allocation39_spill] sm:$0xff] %v4872_v15  ;;  %778 = vmatpush.msra.mxu0 %v4862_v10  ;;  %v4894_v10 = vld [vmem:[#allocation9 + $0x4c0] sm:$0xff]  ;;  %798 = vmatpush.msra.mxu1 %v4882_v29 }
  0x81   :  { %819 = vmatpush.msrb.mxu2 %v4853_v35  ;;  %838 = vmatpush.msrb.mxu3 %v4860_v45  ;;  %8812 = vst [vmem:[#allocation40_spill] sm:$0xff] %v4875_v21  ;;  %v4885_v35 = vld [vmem:[#allocation9 + $0x138] sm:$0xff]  ;;  %v4892_v45 = vld [vmem:[#allocation9 + $0x468] sm:$0xff] }
  0x82   :  { %378 = vmatmul.f32.gmra.mxu0 %v4625_v26  ;;  %8813 = vst [vmem:[#allocation41_spill] sm:$0xff] %v4880_v27  ;;  %799 = vmatpush.msra.mxu1 %v4894_v10 }
  0x83   :  { %820 = vmatpush.msrb.mxu2 %v4865_v12  ;;  %8814 = vst [vmem:[#allocation42_spill] sm:$0xff] %v4882_v29  ;;  %839 = vmatpush.msrb.mxu3 %v4869_v7  ;;  %v4897_v12 = vld [vmem:[#allocation9 + $0x108] sm:$0xff]  ;;  %v4900_v7 = vld [vmem:[#allocation9 + $0x160] sm:$0xff]  ;;  %v4916_v29 = vld [vmem:[#allocation9 + $0x130] sm:$0xff] }
  0x84   :  { %8815 = vst [vmem:[#allocation43_spill] sm:$0xff] %v4885_v35  ;;  %779 = vmatpush.msra.mxu0 %v4872_v15  ;;  %419 = vmatmul.f32.gmra.mxu1 %v4625_v26  ;;  %v4903_v15 = vld [vmem:[#allocation9 + $0x438] sm:$0xff] }
  0x85   :  { %821 = vmatpush.msrb.mxu2 %v4875_v21  ;;  %8816 = vst [vmem:[#allocation44_spill] sm:$0xff] %v4892_v45  ;;  %840 = vmatpush.msrb.mxu3 %v4880_v27  ;;  %v4906_v21 = vld [vmem:[#allocation9 + $0x490] sm:$0xff]  ;;  %v4909_v26 = vld [vmem:[#allocation9 + $0xd8] sm:$0xff]  ;;  %v4913_v27 = vld [vmem:[#allocation9 + $0x408] sm:$0xff] }
  0x86   :  { %8817 = vst [vmem:[#allocation45_spill] sm:$0xff] %v4894_v10  ;;  %780 = vmatpush.msra.mxu0 %v4888_v57  ;;  %800 = vmatpush.msra.mxu1 %v4906_v21  ;;  %v4926_v10 = vld [vmem:[#allocation9 + $0x460] sm:$0xff] }
  0x87   :  { %8818 = vst [vmem:[#allocation46_spill] sm:$0xff] %v4897_v12  ;;  %822 = vmatpush.msrb.mxu2 %v4885_v35  ;;  %841 = vmatpush.msrb.mxu3 %v4892_v45  ;;  %v4919_v35 = vld [vmem:[#allocation9 + $0xa8] sm:$0xff]  ;;  %v4924_v45 = vld [vmem:[#allocation9 + $0x3d8] sm:$0xff] }
  0x88   :  { %8819 = vst [vmem:[#allocation47_spill] sm:$0xff] %v4900_v7  ;;  %781 = vmatpush.msra.mxu0 %v4900_v7  ;;  %v4932_v7 = vld [vmem:[#allocation9 + $0x100] sm:$0xff]  ;;  %801 = vmatpush.msra.mxu1 %v4926_v10 }
  0x89   :  { %8820 = vst [vmem:[#allocation48_spill] sm:$0xff] %v4903_v15  ;;  %823 = vmatpush.msrb.mxu2 %v4897_v12  ;;  %842 = vmatpush.msrb.mxu3 %v4903_v15  ;;  %v4929_v12 = vld [vmem:[#allocation9 + $0x78] sm:$0xff]  ;;  %v4936_v15 = vld [vmem:[#allocation9 + $0x3a8] sm:$0xff] }
  0x8a   :  { %8821 = vst [vmem:[#allocation49_spill] sm:$0xff] %v4906_v21  ;;  %381 = vmatmul.f32.gmra.mxu0 %v4633_v39  ;;  %v4938_v21 = vld [vmem:[#allocation9 + $0x430] sm:$0xff] }
  0x8b   :  { %8822 = vst [vmem:[#allocation50_spill] sm:$0xff] %v4909_v26  ;;  %824 = vmatpush.msrb.mxu2 %v4909_v26  ;;  %843 = vmatpush.msrb.mxu3 %v4913_v27  ;;  %v4942_v26 = vld [vmem:[#allocation9 + $0x48] sm:$0xff] }
  0x8c   :  { %8823 = vst [vmem:[#allocation51_spill] sm:$0xff] %v4913_v27  ;;  %782 = vmatpush.msra.mxu0 %v4916_v29  ;;  %422 = vmatmul.f32.gmra.mxu1 %v4633_v39  ;;  %v4944_v27 = vld [vmem:[#allocation9 + $0xd0] sm:$0xff]  ;;  %v4954_v39 = vld [vmem:[#allocation9 + $0x18] sm:$0xff] }
  0x8d   :  { %8824 = vst [vmem:[#allocation52_spill] sm:$0xff] %v4916_v29  ;;  %825 = vmatpush.msrb.mxu2 %v4919_v35  ;;  %844 = vmatpush.msrb.mxu3 %v4924_v45  ;;  %v4947_v29 = vld [vmem:[#allocation9 + $0x378] sm:$0xff] }
  0x8e   :  { %8825 = vst [vmem:[#allocation53_spill] sm:$0xff] %v4919_v35  ;;  %783 = vmatpush.msra.mxu0 %v4932_v7  ;;  %v4950_v35 = vld [vmem:[#allocation9 + $0x400] sm:$0xff]  ;;  %802 = vmatpush.msra.mxu1 %v4938_v21 }
  0x8f   :  { %8826 = vst [vmem:[#allocation54_spill] sm:$0xff] %v4924_v45  ;;  %826 = vmatpush.msrb.mxu2 %v4929_v12  ;;  %845 = vmatpush.msrb.mxu3 %v4936_v15  ;;  %v4957_v45 = vld [vmem:[#allocation9 + $0x348] sm:$0xff] }
  0x90   :  { %8827 = vst [vmem:[#allocation55_spill] sm:$0xff] %v4926_v10  ;;  %784 = vmatpush.msra.mxu0 %v4944_v27  ;;  %v4961_v10 = vld [vmem:[#allocation9 + $0x2f8] sm:$0xff]  ;;  %803 = vmatpush.msra.mxu1 %v4950_v35 }
  0x91   :  { %8828 = vst [vmem:[#allocation56_spill] sm:$0xff] %v4929_v12  ;;  %827 = vmatpush.msrb.mxu2 %v4942_v26  ;;  %846 = vmatpush.msrb.mxu3 %v4947_v29  ;;  %v4986_v12 = vld [vmem:[#allocation9 + $0x3a0] sm:$0xff] }
  0x92   :  { %8829 = vst [vmem:[#allocation57_spill] sm:$0xff] %v4936_v15  ;;  %384 = vmatmul.f32.gmra.mxu0 %v4659_v52  ;;  %v4966_v15 = vld [vmem:[#allocation9 + $0x318] sm:$0xff] }
  0x93   :  { %8830 = vst [vmem:[#allocation58_spill] sm:$0xff] %v4938_v21  ;;  %828 = vmatpush.msrb.mxu2 %v4954_v39  ;;  %v4968_v21 = vld [vmem:[#allocation9 + $0xa0] sm:$0xff]  ;;  %847 = vmatpush.msrb.mxu3 %v4957_v45 }
  0x94   :  { %8831 = vst [vmem:[#allocation59_spill] sm:$0xff] %v4942_v26  ;;  %829 = vmatmul.f32.vlgmr.msrb.gmra.mxu2 %v8801_v1  ;;  %v4972_v26 = vld [vmem:[#allocation9 + $0x2c8] sm:$0xff]  ;;  %425 = vmatmul.f32.gmra.mxu1 %v4659_v52 }
  0x95   :  { %8832 = vst [vmem:[#allocation60_spill] sm:$0xff] %v4944_v27  ;;  %893 = vmatpush.msra.mxu2 %v4961_v10  ;;  %848 = vmatpush.msrb.mxu3 %v4966_v15  ;;  %v4982_v27 = vld [vmem:[#allocation9 + $0x70] sm:$0xff]  ;;  %v4989_v52 = vld [vmem:[#allocation9 + $0x268] sm:$0xff] }
  0x96   :  { %8833 = vst [vmem:[#allocation61_spill] sm:$0xff] %v4947_v29  ;;  %v678_v29 = vld [vmem:[#allocation9 + $0x5f8] sm:$0xff]  ;;  %785 = vmatpush.msra.mxu0 %v4968_v21  ;;  %849 = vmatmul.f32.vlgmr.msrb.gmra.mxu3 %v8801_v1 }
  0x97   :  { %8834 = vst [vmem:[#allocation62_spill] sm:$0xff] %v4950_v35  ;;  %v4976_v35 = vld [vmem:[#allocation9 + $0x3d0] sm:$0xff]  ;;  %894 = vmatpush.msra.mxu2 %v4972_v26  ;;  %913 = vmatpush.msra.mxu3 %v678_v29  ;;  %v660_v29 = vld [vmem:[#allocation9 + $0x568] sm:$0xff] }
  0x98   :  { %8835 = vst [vmem:[#allocation63_spill] sm:$0xff] %v4954_v39  ;;  %v4980_v39 = vld [vmem:[#allocation9 + $0x298] sm:$0xff]  ;;  %804 = vmatpush.msra.mxu1 %v4976_v35  ;;  %786 = vmatpush.msra.mxu0 %v4982_v27 }
  0x99   :  { %8836 = vst [vmem:[#allocation64_spill] sm:$0xff] %v4957_v45  ;;  %v672_v45 = vld [vmem:[#allocation9 + $0x5c8] sm:$0xff]  ;;  %895 = vmatpush.msra.mxu2 %v4980_v39 }
  0x9a   :  { %8837 = vst [vmem:[#allocation65_spill] sm:$0xff] %v4961_v10  ;;  %v4991_v10 = vld [vmem:[#allocation9 + $0x40] sm:$0xff]  ;;  %914 = vmatpush.msra.mxu3 %v672_v45  ;;  %805 = vmatpush.msra.mxu1 %v4986_v12  ;;  %v5011_v45 = vld [vmem:[#allocation9 + $0x208] sm:$0xff] }
  0x9b   :  { %8838 = vst [vmem:[#allocation66_spill] sm:$0xff] %v4966_v15  ;;  %v666_v15 = vld [vmem:[#allocation9 + $0x598] sm:$0xff]  ;;  %896 = vmatpush.msra.mxu2 %v4989_v52  ;;  %787 = vmatpush.msra.mxu0 %v4991_v10 }
  0x9c   :  { %8839 = vst [vmem:[#allocation67_spill] sm:$0xff] %v4968_v21  ;;  %v4995_v21 = vld [vmem:[#allocation9 + $0x370] sm:$0xff]  ;;  %915 = vmatpush.msra.mxu3 %v666_v15  ;;  %387 = vmatmul.f32.gmra.mxu0 %v4691_v3 }
  0x9d   :  { %8840 = vst [vmem:[#allocation68_spill] sm:$0xff] %v4972_v26  ;;  %v4998_v26 = vld [vmem:[#allocation9 + $0x238] sm:$0xff]  ;;  %806 = vmatpush.msra.mxu1 %v4995_v21  ;;  %v5018_v15 = vld [vmem:[#allocation9 + $0x310] sm:$0xff] }
  0x9e   :  { %8841 = vst [vmem:[#allocation69_spill] sm:$0xff] %v4976_v35  ;;  %v5002_v35 = vld [vmem:[#allocation9 + $0x10] sm:$0xff]  ;;  %897 = vmatpush.msra.mxu2 %v4998_v26  ;;  %916 = vmatpush.msra.mxu3 %v660_v29 }
  0x9f   :  { %8842 = vst [vmem:[#allocation70_spill] sm:$0xff] %v4980_v39  ;;  %v5005_v39 = vld [vmem:[#allocation9 + $0x340] sm:$0xff]  ;;  %788 = vmatpush.msra.mxu0 %v5002_v35  ;;  %428 = vmatmul.f32.gmra.mxu1 %v4691_v3  ;;  %v5029_v29 = vld [vmem:[#allocation9 + $0x290] sm:$0xff]  ;;  %v5043_v3 = vld [vmem:[#allocation9 + $0x178] sm:$0xff] }
  0xa0   :  { %8843 = vst [vmem:[#allocation71_spill] sm:$0xff] %v4982_v27  ;;  %v5007_v27 = vld [vmem:[#allocation9 + $0x2f0] sm:$0xff]  ;;  %807 = vmatpush.msra.mxu1 %v5005_v39  ;;  %898 = vmatpush.msra.mxu2 %v5011_v45 }
  0xa1   :  { %8844 = vst [vmem:[#allocation72_spill] sm:$0xff] %v4986_v12  ;;  %v654_v12 = vld [vmem:[#allocation9 + $0x538] sm:$0xff]  ;;  %853 = vmatpush.msrb.mxu0 %v5007_v27 }
  0xa2   :  { %8845 = vst [vmem:[#allocation73_spill] sm:$0xff] %v4989_v52  ;;  %v5014_v52 = vld [vmem:[#allocation9 + $0x2c0] sm:$0xff]  ;;  %917 = vmatpush.msra.mxu3 %v654_v12  ;;  %808 = vmatpush.msra.mxu1 %v5018_v15 }
  0xa3   :  { %8846 = vst [vmem:[#allocation74_spill] sm:$0xff] %v4991_v10  ;;  %v5025_v10 = vld [vmem:[#allocation9 + $0x508] sm:$0xff]  ;;  %854 = vmatpush.msrb.mxu0 %v5014_v52  ;;  %v5041_v12 = vld [vmem:[#allocation9 + $0x260] sm:$0xff] }
  0xa4   :  { %8847 = vst [vmem:[#allocation75_spill] sm:$0xff] %v4995_v21  ;;  %v5020_v21 = vld [vmem:[#allocation9 + $0x1d8] sm:$0xff]  ;;  %918 = vmatpush.msra.mxu3 %v5025_v10  ;;  %390 = vmatmul.f32.gmra.mxu0 %v4721_v17 }
  0xa5   :  { %8848 = vst [vmem:[#allocation76_spill] sm:$0xff] %v4998_v26  ;;  %v5023_v26 = vld [vmem:[#allocation9 + $0x5f0] sm:$0xff]  ;;  %899 = vmatpush.msra.mxu2 %v5020_v21  ;;  %855 = vmatpush.msrb.mxu0 %v5029_v29 }
  0xa6   :  { %8849 = vst [vmem:[#allocation77_spill] sm:$0xff] %v5005_v39  ;;  %v5031_v39 = vld [vmem:[#allocation9 + $0x1a8] sm:$0xff]  ;;  %873 = vmatpush.msrb.mxu1 %v5023_v26 }
  0xa7   :  { %8850 = vst [vmem:[#allocation78_spill] sm:$0xff] %v5007_v27  ;;  %v5035_v27 = vld [vmem:[#allocation9 + $0x5c0] sm:$0xff]  ;;  %900 = vmatpush.msra.mxu2 %v5031_v39  ;;  %856 = vmatpush.msrb.mxu0 %v5041_v12 }
  0xa8   :  { %8851 = vst [vmem:[#allocation79_spill] sm:$0xff] %v5011_v45  ;;  %v5037_v45 = vld [vmem:[#allocation9 + $0x4d8] sm:$0xff]  ;;  %874 = vmatpush.msrb.mxu1 %v5035_v27 }
  0xa9   :  { %8852 = vst [vmem:[#allocation80_spill] sm:$0xff] %v5014_v52  ;;  %v5047_v52 = vld [vmem:[#allocation9 + $0x590] sm:$0xff]  ;;  %919 = vmatpush.msra.mxu3 %v5037_v45  ;;  %901 = vmatpush.msra.mxu2 %v5043_v3 }
  0xaa   :  { %8853 = vst [vmem:[#allocation81_spill] sm:$0xff] %v5018_v15  ;;  %v5049_v15 = vld [vmem:[#allocation9 + $0x4a8] sm:$0xff]  ;;  %875 = vmatpush.msrb.mxu1 %v5047_v52 }
  0xab   :  { %8854 = vst [vmem:[#allocation82_spill] sm:$0xff] %v5020_v21  ;;  %v5053_v21 = vld [vmem:[#allocation9 + $0x148] sm:$0xff]  ;;  %920 = vmatpush.msra.mxu3 %v5049_v15  ;;  %431 = vmatmul.f32.gmra.mxu1 %v4721_v17  ;;  %v5097_v17 = vld [vmem:[#allocation9 + $0xb8] sm:$0xff] }
  0xac   :  { %8855 = vst [vmem:[#allocation83_spill] sm:$0xff] %v5023_v26  ;;  %v5059_v26 = vld [vmem:[#allocation9 + $0x560] sm:$0xff]  ;;  %902 = vmatpush.msra.mxu2 %v5053_v21  ;;  %393 = vmatmul.f32.gmra.mxu0 %v4751_v31 }
  0xad   :  { %8856 = vst [vmem:[#allocation84_spill] sm:$0xff] %v5025_v10  ;;  %v5057_v10 = vld [vmem:[#allocation9 + $0x230] sm:$0xff]  ;;  %876 = vmatpush.msrb.mxu1 %v5059_v26 }
  0xae   :  { %8857 = vst [vmem:[#allocation85_spill] sm:$0xff] %v5029_v29  ;;  %857 = vmatpush.msrb.mxu0 %v5057_v10  ;;  %v5139_v29 = vld [vmem:[#allocation9 + $0x28] sm:$0xff] }
  0xaf   :  { %8858 = vst [vmem:[#allocation86_spill] sm:$0xff] %v5031_v39  ;;  %v5063_v39 = vld [vmem:[#allocation9 + $0x478] sm:$0xff] }
  0xb0   :  { %8859 = vst [vmem:[#allocation87_spill] sm:$0xff] %v5035_v27  ;;  %v5069_v27 = vld [vmem:[#allocation9 + $0x530] sm:$0xff]  ;;  %921 = vmatpush.msra.mxu3 %v5063_v39 }
  0xb1   :  { %8860 = vst [vmem:[#allocation88_spill] sm:$0xff] %v5037_v45  ;;  %v5067_v45 = vld [vmem:[#allocation9 + $0x200] sm:$0xff]  ;;  %877 = vmatpush.msrb.mxu1 %v5069_v27 }
  0xb2   :  { %8861 = vst [vmem:[#allocation89_spill] sm:$0xff] %v5041_v12  ;;  %v5075_v12 = vld [vmem:[#allocation9 + $0x448] sm:$0xff]  ;;  %858 = vmatpush.msrb.mxu0 %v5067_v45 }
  0xb3   :  { %8862 = vst [vmem:[#allocation90_spill] sm:$0xff] %v5043_v3  ;;  %v5073_v3 = vld [vmem:[#allocation9 + $0x118] sm:$0xff]  ;;  %922 = vmatpush.msra.mxu3 %v5075_v12  ;;  %434 = vmatmul.f32.gmra.mxu1 %v4751_v31  ;;  %v5152_v31 = vld [vmem:[%s8257_s1] sm:$0xff] }
  0xb4   :  { %8863 = vst [vmem:[#allocation91_spill] sm:$0xff] %v5047_v52  ;;  %v5081_v52 = vld [vmem:[#allocation9 + $0x500] sm:$0xff]  ;;  %903 = vmatpush.msra.mxu2 %v5073_v3  ;;  %vm1034_vm0 = vcmp.gt.s32.totalorder %v5152_v31, 0  ;;  %789 = vmatmul.f32.vlgmr.msra.gmra.mxu0 %v8801_v1  ;;  %vm1035_vm1 = vcmp.gt.s32.totalorder %v5152_v31, 7  ;;  %vm2117_vm2 = vcmp.gt.s32.totalorder %v5152_v31, 3 }
  0xb5   :  { %8864 = vst [vmem:[#allocation92_spill] sm:$0xff] %v5049_v15  ;;  %v5079_v15 = vld [vmem:[#allocation9 + $0x1d0] sm:$0xff]  ;;  %878 = vmatpush.msrb.mxu1 %v5081_v52 }
  0xb6   :  { %8865 = vst [vmem:[#allocation93_spill] sm:$0xff] %v5053_v21  ;;  %v5085_v21 = vld [vmem:[#allocation9 + $0xe8] sm:$0xff]  ;;  %859 = vmatpush.msrb.mxu0 %v5079_v15 }
  0xb7   :  { %8866 = vst [vmem:[#allocation94_spill] sm:$0xff] %v5057_v10  ;;  %v5087_v10 = vld [vmem:[#allocation9 + $0x418] sm:$0xff]  ;;  %904 = vmatpush.msra.mxu2 %v5085_v21 }
  0xb8   :  { %8867 = vst [vmem:[#allocation95_spill] sm:$0xff] %v5059_v26  ;;  %v5091_v26 = vld [vmem:[#allocation9 + $0x1a0] sm:$0xff]  ;;  %923 = vmatpush.msra.mxu3 %v5087_v10 }
  0xb9   :  { %8868 = vst [vmem:[#allocation96_spill] sm:$0xff] %v5063_v39  ;;  %v5093_v39 = vld [vmem:[#allocation9 + $0x4d0] sm:$0xff]  ;;  %860 = vmatpush.msrb.mxu0 %v5091_v26  ;;  %905 = vmatpush.msra.mxu2 %v5097_v17 }
  0xba   :  { %8869 = vst [vmem:[#allocation97_spill] sm:$0xff] %v5067_v45  ;;  %v5099_v45 = vld [vmem:[#allocation9 + $0x3e8] sm:$0xff]  ;;  %879 = vmatpush.msrb.mxu1 %v5093_v39 }
  0xbb   :  { %8870 = vst [vmem:[#allocation98_spill] sm:$0xff] %v5069_v27  ;;  %v5103_v27 = vld [vmem:[#allocation9 + $0x4a0] sm:$0xff]  ;;  %924 = vmatpush.msra.mxu3 %v5099_v45  ;;  %809 = vmatmul.f32.vlgmr.msra.gmra.mxu1 %v8801_v1 }
  0xbc   :  { %8871 = vst [vmem:[#allocation99_spill] sm:$0xff] %v5073_v3  ;;  %v5109_v3 = vld [vmem:[#allocation9 + $0x88] sm:$0xff]  ;;  %880 = vmatpush.msrb.mxu1 %v5103_v27 }
  0xbd   :  { %8872 = vst [vmem:[#allocation100_spill] sm:$0xff] %v5075_v12  ;;  %v5107_v12 = vld [vmem:[#allocation9 + $0x170] sm:$0xff]  ;;  %906 = vmatpush.msra.mxu2 %v5109_v3 }
  0xbe   :  { %8873 = vst [vmem:[#allocation101_spill] sm:$0xff] %v5079_v15  ;;  %v5111_v15 = vpop.f32.mrf.mxu0  ;;  %861 = vmatpush.msrb.mxu0 %v5107_v12 }
  0xbf   :  { %8874 = vst [vmem:[#allocation102_spill] sm:$0xff] %v5081_v52  ;;  %v5115_v52 = vld [vmem:[#allocation9 + $0x3b8] sm:$0xff] }
  0xc0   :  { %8875 = vst [vmem:[#allocation103_spill] sm:$0xff] %v5085_v21  ;;  %v5121_v21 = vld [vmem:[#allocation9 + $0x470] sm:$0xff]  ;;  %925 = vmatpush.msra.mxu3 %v5115_v52 }
  0xc1   :  { %8876 = vst [vmem:[#allocation104_spill] sm:$0xff] %v5087_v10  ;;  %v5119_v10 = vld [vmem:[#allocation9 + $0x140] sm:$0xff]  ;;  %881 = vmatpush.msrb.mxu1 %v5121_v21 }
  0xc2   :  { %8877 = vst [vmem:[#allocation105_spill] sm:$0xff] %v5091_v26  ;;  %v5127_v26 = vld [vmem:[#allocation9 + $0x58] sm:$0xff]  ;;  %862 = vmatpush.msrb.mxu0 %v5119_v10 }
  0xc3   :  { %8878 = vst [vmem:[#allocation106_spill] sm:$0xff] %v5093_v39  ;;  %v5123_v39 = vpop.f32.mrf.mxu1  ;;  %907 = vmatpush.msra.mxu2 %v5127_v26 }
  0xc4   :  { %8879 = vst [vmem:[#allocation107_spill] sm:$0xff] %v5097_v17  ;;  %v5129_v17 = vld [vmem:[#allocation9 + $0x388] sm:$0xff] }
  0xc5   :  { %8880 = vst [vmem:[#allocation108_spill] sm:$0xff] %v5099_v45  ;;  %v5133_v45 = vld [vmem:[#allocation9 + $0x110] sm:$0xff]  ;;  %926 = vmatpush.msra.mxu3 %v5129_v17  ;;  %908 = vmatpush.msra.mxu2 %v5139_v29 }
  0xc6   :  { %8881 = vst [vmem:[#allocation109_spill] sm:$0xff] %v5103_v27  ;;  %v5135_v27 = vld [vmem:[#allocation9 + $0x440] sm:$0xff]  ;;  %863 = vmatpush.msrb.mxu0 %v5133_v45  ;;  %909 = vmatmul.f32.vlgmr.msra.gmra.mxu2 %v8801_v1 }
  0xc7   :  { %8882 = vst [vmem:[#allocation110_spill] sm:$0xff] %v5107_v12  ;;  %v5141_v12 = vld [vmem:[#allocation9 + $0x358] sm:$0xff]  ;;  %882 = vmatpush.msrb.mxu1 %v5135_v27  ;;  %1091 = vmatpush.msrb.mxu2 %v4667_v55 }
  0xc8   :  { %8883 = vst [vmem:[#allocation111_spill] sm:$0xff] %v5109_v3  ;;  %v5145_v3 = vld [vmem:[#allocation9 + $0xe0] sm:$0xff]  ;;  %927 = vmatpush.msra.mxu3 %v5141_v12 }
  0xc9   :  { %8884 = vst [vmem:[#allocation112_spill] sm:$0xff] %v5115_v52  ;;  %v5147_v52 = vpop.f32.mrf.mxu2  ;;  %864 = vmatpush.msrb.mxu0 %v5145_v3  ;;  %1092 = vmatpush.msrb.mxu2 %v4675_v58  ;;  %v5225_v58 = vld [vmem:[#allocation9 + $0x2a0] sm:$0xff] }
  0xca   :  { %8885 = vst [vmem:[#allocation113_spill] sm:$0xff] %v5119_v10  ;;  %v5158_v10 = vld [vmem:[#allocation9 + $0x328] sm:$0xff] }
  0xcb   :  { %8886 = vst [vmem:[#allocation114_spill] sm:$0xff] %v5121_v21  ;;  %v5156_v21 = vld [vmem:[#allocation9 + $0x410] sm:$0xff]  ;;  %928 = vmatpush.msra.mxu3 %v5158_v10  ;;  %1093 = vmatpush.msrb.mxu2 %v4682_v61 }
  0xcc   :  { %8887 = vst [vmem:[#allocation115_spill] sm:$0xff] %v5127_v26  ;;  %v5166_v26 = vld [vmem:[#allocation9 + $0xb0] sm:$0xff]  ;;  %883 = vmatpush.msrb.mxu1 %v5156_v21  ;;  %929 = vmatmul.f32.vlgmr.msra.gmra.mxu3 %v8801_v1 }
  0xcd   :  { %8888 = vst [vmem:[#allocation116_spill] sm:$0xff] %v5129_v17  ;;  %v5162_v17 = vpop.f32.mrf.mxu0  ;;  %865 = vmatpush.msrb.mxu0 %v5166_v26  ;;  %1111 = vmatpush.msrb.mxu3 %v4679_v59  ;;  %v5228_v59 = vld [vmem:[#allocation9 + $0x5d0] sm:$0xff] }
  0xce   :  { %8889 = vst [vmem:[#allocation117_spill] sm:$0xff] %v5133_v45  ;;  %v5170_v45 = vpop.f32.mrf.mxu3  ;;  %1094 = vmatpush.msrb.mxu2 %v4689_v2 }
  0xcf   :  { %8890 = vst [vmem:[#allocation118_spill] sm:$0xff] %v5135_v27  ;;  %v5175_v27 = vpop.f32.mrf.mxu1  ;;  %1112 = vmatpush.msrb.mxu3 %v4686_v0  ;;  %v5261_v0 = vld [vmem:[#allocation9 + $0x540] sm:$0xff] }
  0xd0   :  { %8891 = vst [vmem:[#allocation119_spill] sm:$0xff] %v5139_v29  ;;  %1095 = vmatpush.msrb.mxu2 %v4697_v5  ;;  %v5250_v5 = vld [vmem:[#allocation9 + $0x570] sm:$0xff] }
  0xd1   :  { %8892 = vst [vmem:[#allocation120_spill] sm:$0xff] %v5141_v12  ;;  %v5181_v12 = vld [vmem:[#allocation9 + $0x3b0] sm:$0xff]  ;;  %1113 = vmatpush.msrb.mxu3 %v4694_v4 }
  0xd2   :  { %8893 = vst [vmem:[#allocation121_spill] sm:$0xff] %v5145_v3  ;;  %v5203_v3 = vld [vmem:[#allocation9 + $0x320] sm:$0xff]  ;;  %1096 = vmatpush.msrb.mxu2 %v4705_v8 }
  0xd3   :  { %8894 = vst [vmem:[#allocation122_spill] sm:$0xff] %v5147_v52  ;;  %v5168_v52 = vld [vmem:[#allocation9 + $0x3e0] sm:$0xff]  ;;  %1114 = vmatpush.msrb.mxu3 %v4701_v6 }
  0xd4   :  { %8895 = vst [vmem:[#allocation123_spill] sm:$0xff] %v5156_v21  ;;  %884 = vmatpush.msrb.mxu1 %v5168_v52  ;;  %v5194_v21 = vld [vmem:[#allocation9 + $0x20] sm:$0xff]  ;;  %1097 = vmatpush.msrb.mxu2 %v4712_v11  ;;  %v5269_v11 = vld [vmem:[#allocation9 + $0x510] sm:$0xff] }
  0xd5   :  { %8896 = vst [vmem:[#allocation124_spill] sm:$0xff] %v5158_v10  ;;  %v5187_v10 = vld [vmem:[#allocation9 + $0x50] sm:$0xff]  ;;  %v5266_v8 = vld [vmem:[#allocation9 + $0x1e0] sm:$0xff]  ;;  %1115 = vmatpush.msrb.mxu3 %v4709_v9 }
  0xd6   :  { %8897 = vst [vmem:[#allocation125_spill] sm:$0xff] %v5162_v17  ;;  %v5179_v17 = vld [vmem:[#allocation9 + $0x80] sm:$0xff]  ;;  %885 = vmatpush.msrb.mxu1 %v5181_v12  ;;  %1098 = vmatpush.msrb.mxu2 %v4719_v16  ;;  %v5294_v9 = vld [vmem:[#allocation9 + $0x4b0] sm:$0xff] }
  0xd7   :  { %8898 = vst [vmem:[#allocation126_spill] sm:$0xff] %v5166_v26  ;;  %866 = vmatpush.msrb.mxu0 %v5179_v17  ;;  %v5196_v26 = vld [vmem:[#allocation9 + $0x350] sm:$0xff]  ;;  %v5215_v55 = vpop.f32.mrf.mxu1  ;;  %1116 = vmatpush.msrb.mxu3 %v4716_v14  ;;  %v5305_v14 = vld [vmem:[#allocation9 + $0x120] sm:$0xff] }
  0xd8   :  { %8899 = vst [vmem:[#allocation127_spill] sm:$0xff] %v5168_v52  ;;  %v5198_v52 = vpop.f32.mrf.mxu2  ;;  %1099 = vmatpush.msrb.mxu2 %v4727_v19 }
  0xd9   :  { %8900 = vst [vmem:[#allocation128_spill] sm:$0xff] %v5170_v45  ;;  %v8375_v45 = vmov 0   ;;  %867 = vmatpush.msrb.mxu0 %v5187_v10  ;;  %1117 = vmatpush.msrb.mxu3 %v4724_v18 }
  0xda   :  { %8901 = vst [vmem:[#allocation129_spill] sm:$0xff] %v5175_v27  ;;  %v1036_v29 = vsel %vm1034_vm0, 1, %v8375_v45  ;;  %v5189_v27 = vld [vmem:[#allocation9 + $0x380] sm:$0xff]  ;;  %3656 = vset.pattern.permute.xlu0 %v8375_v45  ;;  %v5205_v45 = vpop.f32.mrf.mxu0  ;;  %1100 = vmatpush.msrb.mxu2 %v4735_v22 }
  0xdb   :  { %8902 = vst [vmem:[#allocation130_spill] sm:$0xff] %v5179_v17  ;;  %1038 = vperm.xlu0 %3656, %v1036_v29   ;;  %886 = vmatpush.msrb.mxu1 %v5189_v27  ;;  %v5207_v17 = vpop.f32.mrf.mxu3  ;;  %v8907_v29 = vmov 0   ;;  %v5302_v22 = vld [vmem:[#allocation9 + $0x480] sm:$0xff] }
  0xdc   :  { %8903 = vst [vmem:[#allocation131_spill] sm:$0xff] %v5198_v52  ;;  %868 = vmatpush.msrb.mxu0 %v5194_v21  ;;  %1101 = vmatpush.msrb.mxu2 %v4742_v25 }
  0xdd   :  { %8904 = vst [vmem:[#allocation132_spill] sm:$0xff] %v5205_v45  ;;  %887 = vmatpush.msrb.mxu1 %v5196_v26  ;;  %869 = vmatmul.f32.vlgmr.msrb.gmra.mxu0 %v8801_v1  ;;  %v5220_v45 = vld [vmem:[#allocation9 + $0x2d0] sm:$0xff] }
  0xde   :  { %8905 = vst [vmem:[#allocation133_spill] sm:$0xff] %v5207_v17  ;;  %v1042_v17 = vsel %vm1035_vm1, 1, %v8907_v29  ;;  %1051 = vmatpush.msra.mxu0 %v5220_v45  ;;  %1102 = vmatpush.msrb.mxu2 %v4749_v30  ;;  %v5320_v30 = vld [vmem:[#allocation9 + $0x420] sm:$0xff] }
  0xdf   :  { %8906 = vst [vmem:[#allocation134_spill] sm:$0xff] %v5215_v55  ;;  %888 = vmatpush.msrb.mxu1 %v5203_v3  ;;  %v5234_v55 = vld [vmem:[#allocation9 + $0x270] sm:$0xff]  ;;  %1118 = vmatpush.msrb.mxu3 %v4731_v20 }
  0xe0   :  { %889 = vmatmul.f32.vlgmr.msrb.gmra.mxu1 %v8801_v1  ;;  %1052 = vmatpush.msra.mxu0 %v5225_v58  ;;  %v5231_v61 = vpop.f32.mrf.mxu2  ;;  %v5237_v1 = vld [vmem:[#allocation9 + $0x5a0] sm:$0xff]  ;;  %8912 = vst [vmem:[#allocation139_spill] sm:$0xff] %v5261_v0 }
  0xe1   :  { %1071 = vmatpush.msra.mxu1 %v5228_v59  ;;  %8908 = vst [vmem:[#allocation135_spill] sm:$0xff] %v5231_v61  ;;  %v5253_v61 = vpop.f32.mrf.mxu1  ;;  %1103 = vmatpush.msrb.mxu2 %v4757_v33 }
  0xe2   :  { %1053 = vmatpush.msra.mxu0 %v5234_v55  ;;  %v5240_v2 = vpop.f32.mrf.mxu0  ;;  %8911 = vst [vmem:[#allocation138_spill] sm:$0xff] %v5253_v61  ;;  %v5275_v61 = vld [vmem:[#allocation9 + $0x1b0] sm:$0xff]  ;;  %1119 = vmatpush.msrb.mxu3 %v4739_v23  ;;  %v8929_v23 = vld [vmem:[#allocation30_spill] sm:$0xff] }
  0xe3   :  { %1044 = vperm.xlu0 %3656, %v1042_v17   ;;  %1072 = vmatpush.msra.mxu1 %v5237_v1  ;;  %8909 = vst [vmem:[#allocation136_spill] sm:$0xff] %v5240_v2  ;;  %v5242_v52 = vpop.f32.mrf.mxu3  ;;  %v5247_v17 = vld [vmem:[#allocation9 + $0x240] sm:$0xff]  ;;  %v5258_v2 = vld [vmem:[#allocation9 + $0x210] sm:$0xff] }
  0xe4   :  { %8910 = vst [vmem:[#allocation137_spill] sm:$0xff] %v5242_v52  ;;  %1054 = vmatpush.msra.mxu0 %v5247_v17  ;;  %v2119_v52 = vsel %vm2117_vm2, 1, %v8907_v29  ;;  %1104 = vmatpush.msrb.mxu2 %v4765_v36  ;;  %v8934_v36 = vld [vmem:[#allocation21_spill] sm:$0xff] }
  0xe5   :  { %1073 = vmatpush.msra.mxu1 %v5250_v5  ;;  %1120 = vmatpush.msrb.mxu3 %v4746_v28  ;;  %v8930_v28 = vld [vmem:[#allocation18_spill] sm:$0xff] }
  0xe6   :  { %1055 = vmatpush.msra.mxu0 %v5258_v2  ;;  %1105 = vmatpush.msrb.mxu2 %v4774_v44 }
  0xe7   :  { %1074 = vmatpush.msra.mxu1 %v5261_v0  ;;  %v5284_v0 = vld [vmem:[#allocation9 + $0x4e0] sm:$0xff]  ;;  %1121 = vmatpush.msrb.mxu3 %v4754_v32 }
  0xe8   :  { %1056 = vmatpush.msra.mxu0 %v5266_v8  ;;  %v5272_v4 = vpop.f32.mrf.mxu2  ;;  %1106 = vmatpush.msrb.mxu2 %v4785_v56  ;;  %v8940_v56 = vld [vmem:[#allocation37_spill] sm:$0xff] }
  0xe9   :  { %1075 = vmatpush.msra.mxu1 %v5269_v11  ;;  %8913 = vst [vmem:[#allocation140_spill] sm:$0xff] %v5272_v4  ;;  %v5287_v4 = vld [vmem:[#allocation9 + $0x180] sm:$0xff]  ;;  %v5291_v19 = vpop.f32.mrf.mxu1  ;;  %1122 = vmatpush.msrb.mxu3 %v4761_v34 }
  0xea   :  { %1057 = vmatpush.msra.mxu0 %v5275_v61  ;;  %v5279_v6 = vpop.f32.mrf.mxu0  ;;  %8916 = vst [vmem:[#allocation143_spill] sm:$0xff] %v5291_v19  ;;  %1171 = vmatpush.msra.mxu2 %v4793_v63 }
  0xeb   :  { %2121 = vperm.xlu0 %3656, %v2119_v52   ;;  %8914 = vst [vmem:[#allocation141_spill] sm:$0xff] %v5279_v6  ;;  %v5281_v16 = vpop.f32.mrf.mxu3  ;;  %1076 = vmatpush.msra.mxu1 %v5284_v0  ;;  %v5297_v52 = vld [vmem:[#allocation9 + $0x150] sm:$0xff] }
  0xec   :  { %8915 = vst [vmem:[#allocation142_spill] sm:$0xff] %v5281_v16  ;;  %1058 = vmatpush.msra.mxu0 %v5287_v4  ;;  %v5312_v16 = vld [vmem:[#allocation9 + $0x450] sm:$0xff]  ;;  %1172 = vmatpush.msra.mxu2 %v4804_v13  ;;  %v8942_v13 = vld [vmem:[#allocation36_spill] sm:$0xff] }
  0xed   :  { %1077 = vmatpush.msra.mxu1 %v5294_v9  ;;  %1123 = vmatpush.msrb.mxu3 %v4769_v38  ;;  %v8935_v38 = vld [vmem:[#allocation33_spill] sm:$0xff] }
  0xee   :  { %1059 = vmatpush.msra.mxu0 %v5297_v52  ;;  %1173 = vmatpush.msra.mxu2 %v4813_v24  ;;  %v8943_v24 = vld [vmem:[#allocation26_spill] sm:$0xff] }
  0xef   :  { %1078 = vmatpush.msra.mxu1 %v5302_v22  ;;  %1124 = vmatpush.msrb.mxu3 %v4780_v48  ;;  %v8938_v48 = vld [vmem:[#allocation32_spill] sm:$0xff] }
  0xf0   :  { %1060 = vmatpush.msra.mxu0 %v5305_v14  ;;  %v5309_v25 = vpop.f32.mrf.mxu2  ;;  %1174 = vmatpush.msra.mxu2 %v4825_v62  ;;  %v8944_v62 = vld [vmem:[#allocation40_spill] sm:$0xff] }
  0xf1   :  { %8917 = vst [vmem:[#allocation144_spill] sm:$0xff] %v5309_v25  ;;  %1079 = vmatpush.msra.mxu1 %v5312_v16  ;;  %v5327_v33 = vpop.f32.mrf.mxu1  ;;  %1125 = vmatpush.msrb.mxu3 %v4789_v60  ;;  %v8941_v60 = vld [vmem:[#allocation23_spill] sm:$0xff] }
  0xf2   :  { %1061 = vmatpush.msra.mxu0 %v4631_v37  ;;  %v5317_v18 = vpop.f32.mrf.mxu0  ;;  %8920 = vst [vmem:[#allocation147_spill] sm:$0xff] %v5327_v33  ;;  %v5330_v37 = vld [vmem:[#allocation9 + $0x3f0] sm:$0xff]  ;;  %3657 = vset.pattern.permute.xlu1 %v8907_v29 }
  0xf3   :  { %8918 = vst [vmem:[#allocation145_spill] sm:$0xff] %v5317_v18  ;;  %1080 = vmatpush.msra.mxu1 %v5320_v30  ;;  %v5323_v20 = vpop.f32.mrf.mxu3  ;;  %3658 = vset.pattern.permute.xlu2 %v8907_v29 }
  0xf4   :  { %8919 = vst [vmem:[#allocation146_spill] sm:$0xff] %v5323_v20  ;;  %1062 = vmatpush.msra.mxu0 %v4635_v40 }
  0xf5   :  { %1081 = vmatpush.msra.mxu1 %v5330_v37 }
  0xf6   :  { %1063 = vmatpush.msra.mxu0 %v4640_v42 }
  0xf7   :  { %1082 = vmatpush.msra.mxu1 %v4642_v43 }
  0xf8   :  { %1064 = vmatpush.msra.mxu0 %v4647_v46  ;;  %v5341_v40 = vpop.f32.mrf.mxu2 }
  0xf9   :  { %1083 = vmatpush.msra.mxu1 %v4649_v47  ;;  %8921 = vst [vmem:[#allocation148_spill] sm:$0xff] %v5341_v40  ;;  %v5353_v46 = vpop.f32.mrf.mxu1  ;;  %v8925_v47 = vld [vmem:[#allocation27_spill] sm:$0xff] }
  0xfa   :  { %1065 = vmatpush.msra.mxu0 %v4653_v50  ;;  %v5345_v42 = vpop.f32.mrf.mxu0  ;;  %8924 = vst [vmem:[#allocation151_spill] sm:$0xff] %v5353_v46  ;;  %1175 = vmatpush.msra.mxu2 %v8925_v47  ;;  %v8926_v50 = vld [vmem:[#allocation17_spill] sm:$0xff] }
  0xfb   :  { %8922 = vst [vmem:[#allocation149_spill] sm:$0xff] %v5345_v42  ;;  %1084 = vmatpush.msra.mxu1 %v4655_v51  ;;  %v5351_v43 = vpop.f32.mrf.mxu3  ;;  %v8927_v51 = vld [vmem:[#allocation22_spill] sm:$0xff]  ;;  %v8945_v47 = vld [vmem:[#allocation29_spill] sm:$0xff] }
  0xfc   :  { %1066 = vmatpush.msra.mxu0 %v4661_v53  ;;  %8923 = vst [vmem:[#allocation150_spill] sm:$0xff] %v5351_v43  ;;  %v8928_v53 = vld [vmem:[#allocation19_spill] sm:$0xff]  ;;  %1176 = vmatpush.msra.mxu2 %v8929_v23  ;;  %v8949_v23 = vld [vmem:[#allocation34_spill] sm:$0xff] }
  0xfd   :  { %1085 = vmatpush.msra.mxu1 %v4663_v54  ;;  %1126 = vmatpush.msrb.mxu3 %v8928_v53  ;;  %v8933_v54 = vld [vmem:[#allocation25_spill] sm:$0xff]  ;;  %v8948_v53 = vld [vmem:[#allocation43_spill] sm:$0xff] }
  0xfe   :  { %1131 = vmatpush.msrb.mxu0 %v4771_v41  ;;  %1177 = vmatpush.msra.mxu2 %v8935_v38  ;;  %v8936_v41 = vld [vmem:[#allocation20_spill] sm:$0xff]  ;;  %v8953_v38 = vld [vmem:[#allocation42_spill] sm:$0xff] }
  0xff   :  { %1086 = vmatpush.msra.mxu1 %v8926_v50  ;;  %1191 = vmatpush.msra.mxu3 %v8934_v36  ;;  %v8946_v50 = vld [vmem:[#allocation39_spill] sm:$0xff]  ;;  %v8952_v36 = vld [vmem:[#allocation46_spill] sm:$0xff] }
 0x100   :  { %1132 = vmatpush.msrb.mxu0 %v4782_v49  ;;  %v5367_v32 = vpop.f32.mrf.mxu2  ;;  %v8939_v49 = vld [vmem:[#allocation24_spill] sm:$0xff]  ;;  %1178 = vmatpush.msra.mxu2 %v8940_v56  ;;  %v8957_v56 = vld [vmem:[#allocation35_spill] sm:$0xff] }
 0x101   :  { %1151 = vmatpush.msrb.mxu1 %v8930_v28  ;;  %8931 = vst [vmem:[#allocation27_spill] sm:$0xff] %v5367_v32  ;;  %v5375_v44 = vpop.f32.mrf.mxu1  ;;  %1192 = vmatpush.msra.mxu3 %v8939_v49  ;;  %v8956_v49 = vld [vmem:[#allocation47_spill] sm:$0xff] }
 0x102   :  { %1133 = vmatpush.msrb.mxu0 %v8927_v51  ;;  %v5369_v34 = vpop.f32.mrf.mxu0  ;;  %8937 = vst [vmem:[#allocation22_spill] sm:$0xff] %v5375_v44  ;;  %1179 = vmatpush.msra.mxu2 %v8944_v62  ;;  %v8947_v51 = vld [vmem:[#allocation28_spill] sm:$0xff]  ;;  %v8962_v62 = vld [vmem:[#allocation53_spill] sm:$0xff] }
 0x103   :  { %8932 = vst [vmem:[#allocation17_spill] sm:$0xff] %v5369_v34  ;;  %1152 = vmatpush.msrb.mxu1 %v8936_v41  ;;  %v5381_v63 = vpop.f32.mrf.mxu3  ;;  %1193 = vmatpush.msra.mxu3 %v8943_v24  ;;  %v8960_v24 = vld [vmem:[#allocation52_spill] sm:$0xff] }
 0x104   :  { %1134 = vmatpush.msrb.mxu0 %v8933_v54  ;;  %1180 = vmatpush.msra.mxu2 %v8948_v53  ;;  %v8951_v54 = vld [vmem:[#allocation31_spill] sm:$0xff]  ;;  %v8965_v53 = vld [vmem:[#allocation56_spill] sm:$0xff] }
 0x105   :  { %1153 = vmatpush.msrb.mxu1 %v8941_v60  ;;  %1194 = vmatpush.msra.mxu3 %v8947_v51  ;;  %v8958_v60 = vld [vmem:[#allocation50_spill] sm:$0xff]  ;;  %v8964_v51 = vld [vmem:[#allocation41_spill] sm:$0xff] }
 0x106   :  { %1135 = vmatpush.msrb.mxu0 %v8938_v48  ;;  %1181 = vmatpush.msra.mxu2 %v8952_v36  ;;  %v8968_v36 = vld [vmem:[#allocation60_spill] sm:$0xff] }
 0x107   :  { %1154 = vmatpush.msrb.mxu1 %v8945_v47  ;;  %1195 = vmatpush.msra.mxu3 %v8951_v54  ;;  %v8963_v47 = vld [vmem:[#allocation49_spill] sm:$0xff] }
 0x108   :  { %1136 = vmatpush.msrb.mxu0 %v8942_v13  ;;  %v5397_v41 = vpop.f32.mrf.mxu2  ;;  %1182 = vmatpush.msra.mxu2 %v8958_v60  ;;  %v8959_v13 = vld [vmem:[#allocation45_spill] sm:$0xff] }
 0x109   :  { %1155 = vmatpush.msrb.mxu1 %v8949_v23  ;;  %8954 = vst [vmem:[#allocation30_spill] sm:$0xff] %v5397_v41  ;;  %v5399_v48 = vpop.f32.mrf.mxu1  ;;  %1196 = vmatpush.msra.mxu3 %v8957_v56  ;;  %v8966_v23 = vld [vmem:[#allocation55_spill] sm:$0xff]  ;;  %v8971_v56 = vld [vmem:[#allocation58_spill] sm:$0xff] }
 0x10a   :  { %1137 = vmatpush.msrb.mxu0 %v8946_v50  ;;  %v5391_v28 = vpop.f32.mrf.mxu0  ;;  %8955 = vst [vmem:[#allocation18_spill] sm:$0xff] %v5399_v48  ;;  %1183 = vmatpush.msra.mxu2 %v8962_v62  ;;  %v8976_v62 = vld [vmem:[#allocation62_spill] sm:$0xff]  ;;  %v8993_v48 = vld [vmem:[#allocation81_spill] sm:$0xff] }
 0x10b   :  { %8950 = vst [vmem:[#allocation19_spill] sm:$0xff] %v5391_v28  ;;  %1156 = vmatpush.msrb.mxu1 %v8953_v38  ;;  %v5409_v50 = vpop.f32.mrf.mxu3  ;;  %v8969_v38 = vld [vmem:[#allocation44_spill] sm:$0xff]  ;;  %v8994_v41 = vld [vmem:[#allocation66_spill] sm:$0xff] }
 0x10c   :  { %1138 = vmatpush.msrb.mxu0 %v4888_v57  ;;  %v8961_v57 = vld [vmem:[#allocation38_spill] sm:$0xff]  ;;  %1184 = vmatpush.msra.mxu2 %v8965_v53  ;;  %v8978_v53 = vld [vmem:[#allocation51_spill] sm:$0xff] }
 0x10d   :  { %1157 = vmatpush.msrb.mxu1 %v8959_v13  ;;  %1197 = vmatpush.msra.mxu3 %v8961_v57  ;;  %v8973_v13 = vld [vmem:[#allocation67_spill] sm:$0xff] }
 0x10e   :  { %1139 = vmatpush.msrb.mxu0 %v8956_v49  ;;  %v8970_v49 = vld [vmem:[#allocation59_spill] sm:$0xff] }
 0x10f   :  { %1158 = vmatpush.msrb.mxu1 %v8963_v47  ;;  %1198 = vmatpush.msra.mxu3 %v8964_v51  ;;  %v8975_v57 = vld [vmem:[#allocation63_spill] sm:$0xff] }
 0x110   :  { %1140 = vmatpush.msrb.mxu0 %v8960_v24  ;;  %1185 = vmatpush.msra.mxu2 %v8970_v49  ;;  %v5428_v24 = vld [vmem:[%s8261_s5] sm:$0x3f]  ;;  %v710_v47 = vpop.f32.mrf.mxu2  ;;  %v8982_v49 = vld [vmem:[#allocation54_spill] sm:$0xff] }
 0x111   :  { %1159 = vmatpush.msrb.mxu1 %v8966_v23  ;;  %1199 = vmatpush.msra.mxu3 %v8969_v38  ;;  %v5421_v60 = vpop.f32.mrf.mxu1  ;;  %v8977_v51 = vld [vmem:[#allocation71_spill] sm:$0xff]  ;;  %v8979_v23 = vld [vmem:[#allocation69_spill] sm:$0xff]  ;;  %v8981_v38 = vld [vmem:[#allocation74_spill] sm:$0xff] }
 0x112   :  { %1141 = vmatpush.msrb.mxu0 %v4932_v7  ;;  %v5415_v54 = vpop.f32.mrf.mxu0  ;;  %8972 = vst [vmem:[#allocation21_spill] sm:$0xff] %v5421_v60  ;;  %v8974_v7 = vld [vmem:[#allocation48_spill] sm:$0xff]  ;;  %1186 = vmatpush.msra.mxu2 %v8975_v57  ;;  %v8985_v57 = vld [vmem:[#allocation57_spill] sm:$0xff] }
 0x113   :  { %8967 = vst [vmem:[#allocation25_spill] sm:$0xff] %v5415_v54  ;;  %1160 = vmatpush.msrb.mxu1 %v8971_v56  ;;  %1200 = vmatpush.msra.mxu3 %v8974_v7  ;;  %v8983_v56 = vld [vmem:[#allocation72_spill] sm:$0xff] }
 0x114   :  { %1142 = vmatpush.msrb.mxu0 %v8968_v36  ;;  %v5437_v36 = vperm.slane %v5428_v24, 0 }
 0x115   :  { %1161 = vmatpush.msrb.mxu1 %v8976_v62  ;;  %1201 = vmatpush.msra.mxu3 %v8978_v53  ;;  %v5450_v62 = vld [vmem:[%s8259_s3] sm:$0x3f] }
 0x116   :  { %1143 = vmatpush.msrb.mxu0 %v8973_v13  ;;  %8980 = vst [vmem:[#allocation33_spill] sm:$0xff] %v5437_v36  ;;  %v730_v13 = vpop.f32.mrf.mxu3  ;;  %v711_v53 = vadd.f32 %v710_v47, %v5437_v36  ;;  %v5509_v6 = vperm.slane %v5450_v62, 2 }
 0x117   :  { %1162 = vmatpush.msrb.mxu1 %v8979_v23  ;;  %1202 = vmatpush.msra.mxu3 %v8982_v49  ;;  %v8989_v49 = vld [vmem:[#allocation77_spill] sm:$0xff] }
 0x118   :  { %1144 = vmatpush.msrb.mxu0 %v8977_v51  ;;  %v8986_v51 = vld [vmem:[#allocation75_spill] sm:$0xff]  ;;  %v731_v28 = vadd.f32 %v730_v13, %v711_v53  ;;  %9007 = vst [vmem:[#allocation47_spill] sm:$0xff] %v5509_v6 }
 0x119   :  { %1163 = vmatpush.msrb.mxu1 %v8983_v56  ;;  %1203 = vmatpush.msra.mxu3 %v8985_v57  ;;  %v5454_v23 = vpop.f32.mrf.mxu1  ;;  %v5459_v56 = vperm.slane %v5450_v62, 0  ;;  %v5463_v57 = vperm.slane %v5428_v24, 1 }
 0x11a   :  { %1145 = vmatpush.msrb.mxu0 %v8981_v38  ;;  %v5443_v7 = vpop.f32.mrf.mxu0  ;;  %8987 = vst [vmem:[#allocation32_spill] sm:$0xff] %v5454_v23  ;;  %v8988_v38 = vld [vmem:[#allocation61_spill] sm:$0xff] }
 0x11b   :  { %8984 = vst [vmem:[#allocation20_spill] sm:$0xff] %v5443_v7  ;;  %1164 = vmatpush.msrb.mxu1 %v8986_v51  ;;  %1204 = vmatpush.msra.mxu3 %v8988_v38  ;;  %v750_v51 = vpop.f32.mrf.mxu2  ;;  %v210_v47 = vadd.f32 %v5111_v15, %v5459_v56 }
 0x11c   :  { %1146 = vmatpush.msrb.mxu0 %v5002_v35  ;;  %8990 = vst [vmem:[#allocation24_spill] sm:$0xff] %v5459_v56  ;;  %v8991_v35 = vld [vmem:[#allocation64_spill] sm:$0xff] }
 0x11d   :  { %1165 = vmatpush.msrb.mxu1 %v8989_v49  ;;  %1205 = vmatpush.msra.mxu3 %v8991_v35  ;;  %8992 = vst [vmem:[#allocation37_spill] sm:$0xff] %v5463_v57  ;;  %v751_v49 = vadd.f32 %v750_v51, %v5463_v57  ;;  %v940_v44 = vadd.f32 %v731_v28, %v210_v47  ;;  %v5475_v35 = vperm.slane %v5450_v62, 1  ;;  %v5484_v28 = vperm.slane %v5428_v24, 3 }
 0x11e   :  { %v770_v34 = vpop.f32.mrf.mxu3 }
 0x11f   :  { %1166 = vmatpush.msrb.mxu1 %v8993_v48  ;;  %1206 = vmatpush.msra.mxu3 %v8994_v41  ;;  %8997 = vst [vmem:[#allocation26_spill] sm:$0xff] %v5475_v35  ;;  %v771_v54 = vadd.f32 %v770_v34, %v751_v49  ;;  %v3601_v48 = vmul.f32 -1.442695, %v940_v44  ;;  %v251_v13 = vadd.f32 %v5123_v39, %v5475_v35  ;;  %v5490_v39 = vperm.slane %v5450_v62, 3 }
 0x120   :  { %9000 = vst [vmem:[#allocation39_spill] sm:$0xff] %v5484_v28 }
 0x121   :  { %v5472_v60 = vpop.f32.mrf.mxu1  ;;  %v960_v41 = vadd.f32 %v771_v54, %v251_v13  ;;  %3659 = vpow2.f32 %v3601_v48  ;;  %9002 = vst [vmem:[#allocation43_spill] sm:$0xff] %v5490_v39 }
 0x122   :  { %v5469_v38 = vpop.f32.mrf.mxu0  ;;  %8996 = vst [vmem:[#allocation36_spill] sm:$0xff] %v5472_v60 }
 0x123   :  { %8995 = vst [vmem:[#allocation23_spill] sm:$0xff] %v5469_v38  ;;  %v3602_v32 = vmul.f32 -1.442695, %v960_v41  ;;  %v830_v51 = vpop.f32.mrf.mxu2  ;;  %v354_v41 = vadd.f32 %v5409_v50, %v5490_v39 }
 0x124   :  { %v831_v46 = vadd.f32 %v830_v51, %v5484_v28 }
 0x125   :  { %3661 = vpow2.f32 %v3602_v32 }
 0x126   :  { %v850_v34 = vpop.f32.mrf.mxu3 }
 0x127   :  { %v3660_v47 = vpop.eup %3659  ;;  %v851_v54 = vadd.f32 %v850_v34, %v831_v46 }
 0x128   :  { %v944_v44 = vadd.f32 1.0, %v3660_v47 }
 0x129   :  { %v5481_v15 = vpop.f32.mrf.mxu1  ;;  %v987_v42 = vadd.f32 %v851_v54, %v354_v41 }
 0x12a   :  { %v5479_v53 = vpop.f32.mrf.mxu0  ;;  %8999 = vst [vmem:[#allocation29_spill] sm:$0xff] %v5481_v15  ;;  %3663 = vrcp.f32 %v944_v44  ;;  %v956_v41 = vand.u32 2147483648, %v944_v44  ;;  %vm950_vm4 = vweird.f32 %v944_v44 }
 0x12b   :  { %8998 = vst [vmem:[#allocation40_spill] sm:$0xff] %v5479_v53  ;;  %v3662_v13 = vpop.eup %3661  ;;  %v3603_v7 = vmul.f32 -1.442695, %v987_v42  ;;  %v5505_v42 = vperm.slane %v5428_v24, 2 }
 0x12c   :  { %v964_v23 = vadd.f32 1.0, %v3662_v13  ;;  %v957_v15 = vor.u32 1.1754944e-38, %v956_v41 }
 0x12d   :  { %9006 = vst [vmem:[#allocation42_spill] sm:$0xff] %v5505_v42 }
 0x12e   :  { %3665 = vrcp.f32 %v964_v23  ;;  %vm970_vm8 = vweird.f32 %v964_v23 }
 0x12f   :  { %3667 = vpow2.f32 %v3603_v7  ;;  %v954_v7 = vand.u32 2147483647, %v944_v44 }
 0x130   :  { %v3664_v32 = vpop.eup %3663 }
 0x131   :  { %v5492_v48 = vpop.f32.mrf.mxu1  ;;  %v946_v40 = vmul.f32 %v3664_v32, %v944_v44  ;;  %vm951_vm3 = vweird.f32 %v3664_v32  ;;  %vm955_vm6 = vcmp.eq.f32.partialorder %v954_v7, 8.507059e+37 }
 0x132   :  { %v5487_v49 = vpop.f32.mrf.mxu0  ;;  %9003 = vst [vmem:[#allocation34_spill] sm:$0xff] %v5492_v48  ;;  %vm952_vm5 = vmor %vm950_vm4, %vm951_vm3 }
 0x133   :  { %9001 = vst [vmem:[#allocation28_spill] sm:$0xff] %v5487_v49  ;;  %v947_v46 = vsub.f32 1.0, %v946_v40  ;;  %v9008_v49 = vld [vmem:[#allocation122_spill] sm:$0xff] }
 0x134   :  { %v3666_v33 = vpop.eup %3665  ;;  %v292_v44 = vadd.f32 %v9008_v49, %v5509_v6 }
 0x135   :  { %v3668_v18 = vpop.eup %3667  ;;  %v966_v60 = vmul.f32 %v3666_v33, %v964_v23  ;;  %v948_v50 = vmul.f32 %v3664_v32, %v947_v46  ;;  %vm971_vm7 = vweird.f32 %v3666_v33 }
 0x136   :  { %v5502_v25 = vadd.f32 1.0, %v3668_v18  ;;  %vm972_vm9 = vmor %vm970_vm8, %vm971_vm7  ;;  %vm2118_vm7 = vcmp.gt.s32.totalorder %v5152_v31, 4 }
 0x137   :  { %v967_v54 = vsub.f32 1.0, %v966_v60  ;;  %v949_v13 = vadd.f32 %v3664_v32, %v948_v50 }
 0x138   :  { %3669 = vrcp.f32 %v5502_v25  ;;  %vm997_vm13 = vweird.f32 %v5502_v25 }
 0x139   :  { %v5498_v47 = vpop.f32.mrf.mxu1  ;;  %v968_v40 = vmul.f32 %v3666_v33, %v967_v54  ;;  %v953_v46 = vsel %vm952_vm5, %v3664_v32, %v949_v13  ;;  %v976_v54 = vand.u32 2147483648, %v964_v23  ;;  %vm1393_vm5 = vcmp.gt.s32.totalorder %v5152_v31, 1 }
 0x13a   :  { %v5496_v51 = vpop.f32.mrf.mxu0  ;;  %9005 = vst [vmem:[#allocation46_spill] sm:$0xff] %v5498_v47  ;;  %v958_v50 = vsel %vm955_vm6, %v957_v15, %v953_v46  ;;  %v5515_v47 = vperm.slane %v5428_v24, 4  ;;  %v5519_v15 = vperm.slane %v5450_v62, 4  ;;  %vm1394_vm6 = vcmp.gt.s32.totalorder %v5152_v31, 6  ;;  %v9055_v31 = vld [vmem:[#allocation118_spill] sm:$0xff] }
 0x13b   :  { %9004 = vst [vmem:[#allocation31_spill] sm:$0xff] %v5496_v51  ;;  %v969_v20 = vadd.f32 %v3666_v33, %v968_v40  ;;  %v974_v51 = vand.u32 2147483647, %v964_v23  ;;  %v977_v7 = vor.u32 1.1754944e-38, %v976_v54 }
 0x13c   :  { %9009 = vst [vmem:[#allocation35_spill] sm:$0xff] %v5515_v47 }
 0x13d   :  { %v973_v32 = vsel %vm972_vm9, %v3666_v33, %v969_v20  ;;  %vm975_vm10 = vcmp.eq.f32.partialorder %v974_v51, 8.507059e+37  ;;  %v5529_v51 = vperm.slane %v5428_v24, 5  ;;  %v9011_v24 = vld [vmem:[#allocation78_spill] sm:$0xff] }
 0x13e   :  { %v3670_v48 = vpop.eup %3669 }
 0x13f   :  { %v993_v13 = vmul.f32 %v3670_v48, %v5502_v25  ;;  %vm998_vm12 = vweird.f32 %v3670_v48 }
 0x140   :  { %vm999_vm14 = vmor %vm997_vm13, %vm998_vm12 }
 0x141   :  { %v5500_v38 = vpop.f32.mrf.mxu1  ;;  %v994_v23 = vsub.f32 1.0, %v993_v13  ;;  %v9012_v13 = vld [vmem:[#allocation65_spill] sm:$0xff] }
 0x142   :  { %v394_v34 = vpop.f32.mrf.mxu0 }
 0x143   :  { %v395_v40 = vadd.f32 %v394_v34, %v5519_v15 }
 0x149   :  { %v810_v60 = vpop.f32.mrf.mxu1  ;;  %v910_v34 = vpop.f32.mrf.mxu2 }
 0x14a   :  { %v790_v19 = vpop.f32.mrf.mxu0 }
 0x14b   :  { %v791_v18 = vadd.f32 %v790_v19, %v5505_v42  ;;  %v995_v42 = vmul.f32 %v3670_v48, %v994_v23 }
 0x14d   :  { %v811_v53 = vadd.f32 %v810_v60, %v791_v18  ;;  %v978_v18 = vsel %vm975_vm10, %v977_v7, %v973_v32  ;;  %v5523_v20 = vpop.permute.xlu0 %1038 }
 0x14e   :  { %9010 = vst [vmem:[#allocation50_spill] sm:$0xff] %v5523_v20  ;;  %v985_v6 = vmul.f32 0.0, %v978_v18  ;;  %vm1040_vm11 = vcmp.eq.s32.totalorder %v5523_v20, 1  ;;  %v5803_v20 = vld [vmem:[#allocation9 + $0x220] sm:$0xff] }
 0x14f   :  { %v980_v43 = vmul.f32 %v958_v50, %v811_v53  ;;  %9082 = vst [vmem:[#allocation51_spill] sm:$0xff] %v5803_v20 }
 0x151   :  { %v981_v19 = vadd.f32 %v980_v43, %v292_v44  ;;  %v983_v43 = vsub.f32 1.0, %v978_v18 }
 0x153   :  { %3671 = vtanh.f32 %v981_v19  ;;  %v996_v19 = vadd.f32 %v3670_v48, %v995_v42  ;;  %v911_v42 = vadd.f32 %v910_v34, %v5529_v51  ;;  %v9020_v34 = vld [vmem:[#allocation76_spill] sm:$0xff] }
 0x155   :  { %v1000_v18 = vsel %vm999_vm14, %v3670_v48, %v996_v19  ;;  %v9019_v48 = vld [vmem:[#allocation94_spill] sm:$0xff]  ;;  %v5564_v19 = vperm.slane %v5450_v62, 5 }
 0x156   :  { %v9026_v62 = vld [vmem:[#allocation86_spill] sm:$0xff] }
 0x159   :  { %v3672_v33 = vpop.eup %3671 }
 0x15a   :  { %v870_v41 = vpop.f32.mrf.mxu0  ;;  %v984_v44 = vmul.f32 %v3672_v33, %v983_v43  ;;  %v9016_v43 = vld [vmem:[#allocation70_spill] sm:$0xff] }
 0x15b   :  { %v871_v49 = vadd.f32 %v870_v41, %v5515_v47  ;;  %v1001_v41 = vand.u32 2147483647, %v5502_v25 }
 0x15c   :  { %v5526_v54 = vadd.f32 %v985_v6, %v984_v44  ;;  %v1003_v6 = vand.u32 2147483648, %v5502_v25  ;;  %v9017_v44 = vld [vmem:[#allocation89_spill] sm:$0xff] }
 0x15d   :  { %v890_v53 = vpop.f32.mrf.mxu1  ;;  %vm1002_vm15 = vcmp.eq.f32.partialorder %v1001_v41, 8.507059e+37  ;;  %v9018_v25 = vld [vmem:[#allocation73_spill] sm:$0xff]  ;;  %v436_v41 = vadd.f32 %v5500_v38, %v5564_v19 }
 0x15e   :  { %v891_v46 = vadd.f32 %v890_v53, %v871_v49  ;;  %3605 = vmatmul.msk.f32.vlgmr.msra.gmra.mxu0 %vm1040_vm11, %v5526_v54  ;;  %3607 = vmatmul.msk.f32.vlgmr.msrb.gmra.mxu2 %vm1040_vm11, %v5526_v54  ;;  %v5540_v32 = vsel %vm1040_vm11, %v5526_v54, 0.0  ;;  %v930_v49 = vpop.f32.mrf.mxu3  ;;  %v9013_v53 = vld [vmem:[#allocation80_spill] sm:$0xff]  ;;  %v1004_v23 = vor.u32 1.1754944e-38, %v1003_v6 }
 0x15f   :  { %1211 = vmatpush.msra.mxu0 %v9011_v24  ;;  %1251 = vmatpush.msrb.mxu2 %v9012_v13  ;;  %1048 = vst [vmem:[#allocation10] sm:$0xff] %v5540_v32  ;;  %v931_v33 = vadd.f32 %v930_v49, %v911_v42  ;;  %v9021_v24 = vld [vmem:[#allocation97_spill] sm:$0xff]  ;;  %v9022_v13 = vld [vmem:[#allocation79_spill] sm:$0xff] }
 0x160   :  { %v1007_v60 = vadd.f32 %v891_v46, %v395_v40  ;;  %v9014_v40 = vld [vmem:[#allocation68_spill] sm:$0xff]  ;;  %v9023_v49 = vld [vmem:[#allocation101_spill] sm:$0xff] }
 0x161   :  { %1212 = vmatpush.msra.mxu0 %v9013_v53  ;;  %1252 = vmatpush.msrb.mxu2 %v9014_v40  ;;  %v9024_v53 = vld [vmem:[#allocation82_spill] sm:$0xff] }
 0x162   :  { %v3604_v50 = vmul.f32 -1.442695, %v1007_v60  ;;  %v9015_v60 = vld [vmem:[#allocation85_spill] sm:$0xff] }
 0x163   :  { %1213 = vmatpush.msra.mxu0 %v9015_v60  ;;  %1253 = vmatpush.msrb.mxu2 %v9016_v43 }
 0x164   :  { %3673 = vpow2.f32 %v3604_v50  ;;  %v1005_v50 = vsel %vm1002_vm15, %v1004_v23, %v1000_v18  ;;  %v9025_v23 = vld [vmem:[#allocation105_spill] sm:$0xff] }
 0x165   :  { %1214 = vmatpush.msra.mxu0 %v9017_v44  ;;  %1254 = vmatpush.msrb.mxu2 %v9018_v25  ;;  %v1027_v6 = vmul.f32 %v1005_v50, %v931_v33  ;;  %v9027_v50 = vld [vmem:[#allocation110_spill] sm:$0xff]  ;;  %v9029_v25 = vld [vmem:[#allocation113_spill] sm:$0xff] }
 0x166   :  { %3609 = vmatmul.msk.f32.vlgmr.msrb.gmra.mxu0 %vm1040_vm11, %v5526_v54  ;;  %3611 = vmatmul.msk.f32.vlgmr.msra.gmra.mxu2 %vm1040_vm11, %v5526_v54  ;;  %v9028_v44 = vld [vmem:[#allocation90_spill] sm:$0xff] }
 0x167   :  { %1215 = vmatpush.msra.mxu0 %v9019_v48  ;;  %1255 = vmatpush.msrb.mxu2 %v9020_v34  ;;  %v1028_v40 = vadd.f32 %v1027_v6, %v436_v41  ;;  %v9030_v48 = vld [vmem:[#allocation93_spill] sm:$0xff] }
 0x169   :  { %1216 = vmatpush.msra.mxu0 %v9021_v24  ;;  %1256 = vmatpush.msrb.mxu2 %v9022_v13  ;;  %v9031_v24 = vld [vmem:[#allocation117_spill] sm:$0xff]  ;;  %v9032_v13 = vld [vmem:[#allocation99_spill] sm:$0xff] }
 0x16a   :  { %v3674_v7 = vpop.eup %3673 }
 0x16b   :  { %v1011_v46 = vadd.f32 1.0, %v3674_v7  ;;  %1217 = vmatpush.msra.mxu0 %v9023_v49  ;;  %1257 = vmatpush.msrb.mxu2 %v9024_v53  ;;  %v9033_v49 = vld [vmem:[#allocation121_spill] sm:$0xff]  ;;  %v9034_v53 = vld [vmem:[#allocation103_spill] sm:$0xff] }
 0x16d   :  { %3675 = vrcp.f32 %v1011_v46  ;;  %1218 = vmatpush.msra.mxu0 %v9025_v23  ;;  %1258 = vmatpush.msrb.mxu2 %v9026_v62  ;;  %v1023_v60 = vand.u32 2147483648, %v1011_v46  ;;  %v1021_v33 = vand.u32 2147483647, %v1011_v46  ;;  %vm1017_vm1 = vweird.f32 %v1011_v46  ;;  %v9035_v23 = vld [vmem:[#allocation126_spill] sm:$0xff]  ;;  %v9036_v62 = vld [vmem:[#allocation107_spill] sm:$0xff] }
 0x16e   :  { %3677 = vtanh.f32 %v1028_v40 }
 0x16f   :  { %1219 = vmatpush.msra.mxu0 %v9027_v50  ;;  %1259 = vmatpush.msrb.mxu2 %v9028_v44  ;;  %v1024_v34 = vor.u32 1.1754944e-38, %v1023_v60  ;;  %vm1022_vm3 = vcmp.eq.f32.partialorder %v1021_v33, 8.507059e+37  ;;  %v5588_v33 = vpop.permute.xlu0 %1044  ;;  %v9040_v50 = vld [vmem:[#allocation115_spill] sm:$0xff] }
 0x170   :  { %9039 = vst [vmem:[#allocation45_spill] sm:$0xff] %v5588_v33  ;;  %vm1046_vm4 = vcmp.eq.s32.totalorder %v5588_v33, 1  ;;  %v9041_v44 = vld [vmem:[#allocation83_spill] sm:$0xff]  ;;  %v6113_v33 = vld [vmem:[#allocation9 + $0x110] sm:$0xff] }
 0x171   :  { %1220 = vmatpush.msra.mxu0 %v9029_v25  ;;  %1260 = vmatpush.msrb.mxu2 %v9030_v48  ;;  %v1395_v25 = vsel %vm1393_vm5, 1, %v8907_v29  ;;  %v9043_v48 = vld [vmem:[#allocation87_spill] sm:$0xff] }
 0x172   :  { %1397 = vperm.xlu1 %3657, %v1395_v25   ;;  %v9057_v25 = vld [vmem:[#allocation123_spill] sm:$0xff] }
 0x173   :  { %v3676_v42 = vpop.eup %3675  ;;  %1221 = vmatpush.msra.mxu0 %v9031_v24  ;;  %1261 = vmatpush.msrb.mxu2 %v9032_v13  ;;  %v9045_v24 = vld [vmem:[#allocation95_spill] sm:$0xff]  ;;  %v5624_v13 = vld [vmem:[#allocation9 + $0x2d8] sm:$0xff] }
 0x174   :  { %v1013_v7 = vmul.f32 %v3676_v42, %v1011_v46  ;;  %vm1018_vm0 = vweird.f32 %v3676_v42  ;;  %v3678_v40 = vpop.eup %3677 }
 0x175   :  { %vm1019_vm2 = vmor %vm1017_vm1, %vm1018_vm0  ;;  %1222 = vmatpush.msra.mxu0 %v9033_v49  ;;  %1262 = vmatpush.msrb.mxu2 %v9034_v53  ;;  %v9047_v49 = vld [vmem:[#allocation102_spill] sm:$0xff]  ;;  %v5643_v53 = vld [vmem:[#allocation9 + $0x2a8] sm:$0xff] }
 0x176   :  { %v1014_v18 = vsub.f32 1.0, %v1013_v7 }
 0x177   :  { %1223 = vmatpush.msra.mxu0 %v9035_v23  ;;  %1263 = vmatpush.msrb.mxu2 %v9036_v62  ;;  %v5650_v23 = vld [vmem:[#allocation9 + $0x278] sm:$0xff]  ;;  %v9052_v62 = vld [vmem:[#allocation92_spill] sm:$0xff] }
 0x178   :  { %v1015_v43 = vmul.f32 %v3676_v42, %v1014_v18 }
 0x17a   :  { %v1016_v38 = vadd.f32 %v3676_v42, %v1015_v43  ;;  %v9038_v43 = vld [vmem:[#allocation111_spill] sm:$0xff] }
 0x17b   :  { %1264 = vmatpush.msrb.mxu2 %v9038_v43  ;;  %v9054_v43 = vld [vmem:[#allocation96_spill] sm:$0xff] }
 0x17c   :  { %v1020_v6 = vsel %vm1019_vm2, %v3676_v42, %v1016_v38  ;;  %v9037_v42 = vld [vmem:[#allocation130_spill] sm:$0xff] }
 0x17d   :  { %v1025_v41 = vsel %vm1022_vm3, %v1024_v34, %v1020_v6  ;;  %1224 = vmatpush.msra.mxu0 %v9037_v42  ;;  %1265 = vmatpush.msrb.mxu2 %v9040_v50  ;;  %v5600_v38 = vld [vmem:[#allocation9 + $0x5f8] sm:$0xff]  ;;  %v5614_v34 = vld [vmem:[#allocation9 + $0x5c8] sm:$0xff]  ;;  %v9044_v6 = vld [vmem:[#allocation91_spill] sm:$0xff]  ;;  %v2125_v50 = vsel %vm2118_vm7, 1, %v8907_v29 }
 0x17e   :  { %v1030_v7 = vsub.f32 1.0, %v1025_v41  ;;  %v1032_v18 = vmul.f32 0.0, %v1025_v41  ;;  %v5637_v41 = vld [vmem:[#allocation9 + $0x538] sm:$0xff]  ;;  %v5657_v42 = vld [vmem:[#allocation9 + $0x248] sm:$0xff] }
 0x17f   :  { %1225 = vmatpush.msra.mxu0 %v5187_v10  ;;  %v9042_v10 = vld [vmem:[#allocation119_spill] sm:$0xff] }
 0x180   :  { %v1031_v46 = vmul.f32 %v3678_v40, %v1030_v7  ;;  %1266 = vmatpush.msrb.mxu2 %v9042_v10  ;;  %v1401_v7 = vsel %vm1394_vm6, 1, %v8907_v29  ;;  %v9048_v40 = vld [vmem:[#allocation84_spill] sm:$0xff] }
 0x181   :  { %1226 = vmatpush.msra.mxu0 %v5194_v21  ;;  %3615 = vmatmul.msk.f32.vlgmr.msrb.gmra.mxu2 %vm1040_vm11, %v5526_v54  ;;  %v5618_v21 = vld [vmem:[#allocation9 + $0x598] sm:$0xff]  ;;  %v5670_v10 = vld [vmem:[#allocation9 + $0x1e8] sm:$0xff] }
 0x182   :  { %v5584_v60 = vadd.f32 %v1032_v18, %v1031_v46  ;;  %3613 = vmatmul.msk.f32.vlgmr.msra.gmra.mxu0 %vm1040_vm11, %v5526_v54  ;;  %1453 = vmatpush.msra.mxu2 %v5624_v13  ;;  %v5627_v54 = vld [vmem:[#allocation9 + $0x568] sm:$0xff]  ;;  %v9049_v46 = vld [vmem:[#allocation106_spill] sm:$0xff] }
 0x183   :  { %1413 = vmatpush.msrb.mxu0 %v5220_v45  ;;  %v9046_v45 = vld [vmem:[#allocation98_spill] sm:$0xff]  ;;  %1403 = vperm.xlu1 %3657, %v1401_v7   ;;  %v9050_v18 = vld [vmem:[#allocation88_spill] sm:$0xff] }
 0x184   :  { %3606 = vmatmul.msk.f32.vlgmr.msra.gmra.mxu1 %vm1046_vm4, %v5584_v60  ;;  %3608 = vmatmul.msk.f32.vlgmr.msrb.gmra.mxu3 %vm1046_vm4, %v5584_v60  ;;  %v9062_v7 = vld [vmem:[#allocation116_spill] sm:$0xff] }
 0x185   :  { %1231 = vmatpush.msra.mxu1 %v9041_v44  ;;  %1271 = vmatpush.msrb.mxu3 %v5600_v38  ;;  %v5664_v44 = vld [vmem:[#allocation9 + $0x218] sm:$0xff] }
 0x186   :  { %1414 = vmatpush.msrb.mxu0 %v5225_v58  ;;  %1454 = vmatpush.msra.mxu2 %v5643_v53  ;;  %v9051_v58 = vld [vmem:[#allocation109_spill] sm:$0xff] }
 0x187   :  { %1232 = vmatpush.msra.mxu1 %v9043_v48  ;;  %1272 = vmatpush.msrb.mxu3 %v5614_v34  ;;  %v9059_v48 = vld [vmem:[#allocation127_spill] sm:$0xff] }
 0x188   :  { %1415 = vmatpush.msrb.mxu0 %v5234_v55  ;;  %1455 = vmatpush.msra.mxu2 %v5650_v23  ;;  %v9053_v55 = vld [vmem:[#allocation114_spill] sm:$0xff] }
 0x189   :  { %1233 = vmatpush.msra.mxu1 %v9044_v6  ;;  %1273 = vmatpush.msrb.mxu3 %v5618_v21  ;;  %v5677_v6 = vld [vmem:[#allocation9 + $0x1b8] sm:$0xff] }
 0x18a   :  { %1416 = vmatpush.msrb.mxu0 %v5247_v17  ;;  %1456 = vmatpush.msra.mxu2 %v5657_v42  ;;  %v9056_v17 = vld [vmem:[#allocation100_spill] sm:$0xff] }
 0x18b   :  { %1234 = vmatpush.msra.mxu1 %v9045_v24  ;;  %1274 = vmatpush.msrb.mxu3 %v5627_v54  ;;  %v5683_v24 = vld [vmem:[#allocation9 + $0x188] sm:$0xff] }
 0x18c   :  { %3610 = vmatmul.msk.f32.vlgmr.msrb.gmra.mxu1 %vm1046_vm4, %v5584_v60  ;;  %3612 = vmatmul.msk.f32.vlgmr.msra.gmra.mxu3 %vm1046_vm4, %v5584_v60 }
 0x18d   :  { %1235 = vmatpush.msra.mxu1 %v9046_v45  ;;  %1275 = vmatpush.msrb.mxu3 %v5637_v41  ;;  %v9061_v45 = vld [vmem:[#allocation112_spill] sm:$0xff] }
 0x18e   :  { %1417 = vmatpush.msrb.mxu0 %v5258_v2  ;;  %1457 = vmatpush.msra.mxu2 %v5664_v44  ;;  %v9058_v2 = vld [vmem:[#allocation104_spill] sm:$0xff] }
 0x18f   :  { %1236 = vmatpush.msra.mxu1 %v9047_v49  ;;  %1276 = vmatpush.msrb.mxu3 %v9048_v40  ;;  %v5699_v49 = vld [vmem:[#allocation9 + $0xf0] sm:$0xff] }
 0x190   :  { %1418 = vmatpush.msrb.mxu0 %v5266_v8  ;;  %1458 = vmatpush.msra.mxu2 %v5670_v10  ;;  %v9060_v8 = vld [vmem:[#allocation108_spill] sm:$0xff]  ;;  %v5723_v40 = vld [vmem:[#allocation9 + $0x90] sm:$0xff] }
 0x191   :  { %1237 = vmatpush.msra.mxu1 %v9049_v46  ;;  %1277 = vmatpush.msrb.mxu3 %v9050_v18  ;;  %v5727_v46 = vld [vmem:[#allocation9 + $0x98] sm:$0xff]  ;;  %v5730_v18 = vld [vmem:[#allocation9 + $0x5a8] sm:$0xff] }
 0x192   :  { %2127 = vperm.xlu1 %3657, %v2125_v50   ;;  %1419 = vmatpush.msrb.mxu0 %v5275_v61  ;;  %v5689_v61 = vld [vmem:[#allocation9 + $0x158] sm:$0xff]  ;;  %v5750_v50 = vld [vmem:[#allocation9 + $0x548] sm:$0xff] }
 0x193   :  { %1238 = vmatpush.msra.mxu1 %v9051_v58  ;;  %1278 = vmatpush.msrb.mxu3 %v9052_v62  ;;  %v5737_v58 = vld [vmem:[#allocation9 + $0x68] sm:$0xff]  ;;  %v5740_v62 = vld [vmem:[#allocation9 + $0x578] sm:$0xff] }
 0x194   :  { %1459 = vmatpush.msra.mxu2 %v5677_v6  ;;  %1420 = vmatpush.msrb.mxu0 %v5287_v4  ;;  %v9063_v4 = vld [vmem:[#allocation120_spill] sm:$0xff] }
 0x195   :  { %1239 = vmatpush.msra.mxu1 %v9053_v55  ;;  %1279 = vmatpush.msrb.mxu3 %v9054_v43  ;;  %v9066_v55 = vld [vmem:[#allocation139_spill] sm:$0xff]  ;;  %v5747_v43 = vld [vmem:[#allocation9 + $0x38] sm:$0xff] }
 0x196   :  { %1460 = vmatpush.msra.mxu2 %v5683_v24  ;;  %1421 = vmatpush.msrb.mxu0 %v5297_v52  ;;  %v9064_v52 = vld [vmem:[#allocation124_spill] sm:$0xff]  ;;  %9067 = vst [vmem:[#allocation38_spill] sm:$0xff] %v5747_v43 }
 0x197   :  { %1240 = vmatpush.msra.mxu1 %v9055_v31  ;;  %1280 = vmatpush.msrb.mxu3 %v9056_v17  ;;  %v5757_v31 = vld [vmem:[#allocation9 + $0x8] sm:$0xff]  ;;  %v5760_v17 = vld [vmem:[#allocation9 + $0x518] sm:$0xff] }
 0x198   :  { %1461 = vmatpush.msra.mxu2 %v5689_v61  ;;  %1422 = vmatpush.msrb.mxu0 %v5305_v14  ;;  %v5720_v14 = vld [vmem:[#allocation9 + $0x5d8] sm:$0xff]  ;;  %9069 = vst [vmem:[#allocation49_spill] sm:$0xff] %v5757_v31 }
 0x199   :  { %1241 = vmatpush.msra.mxu1 %v9057_v25  ;;  %1281 = vmatpush.msrb.mxu3 %v9058_v2  ;;  %v5763_v25 = vld [vmem:[#allocation9 + $0x2e0] sm:$0xff]  ;;  %v5766_v2 = vld [vmem:[#allocation9 + $0x2e8] sm:$0xff] }
 0x19a   :  { %1423 = vmatpush.msrb.mxu0 %v5699_v49  ;;  %9070 = vst [vmem:[#allocation41_spill] sm:$0xff] %v5763_v25 }
 0x19b   :  { %1242 = vmatpush.msra.mxu1 %v9059_v48  ;;  %1282 = vmatpush.msrb.mxu3 %v9060_v8  ;;  %9071 = vst [vmem:[#allocation56_spill] sm:$0xff] %v5766_v2  ;;  %v5770_v48 = vld [vmem:[#allocation9 + $0x4e8] sm:$0xff]  ;;  %v5776_v8 = vld [vmem:[#allocation9 + $0x2b8] sm:$0xff] }
 0x19c   :  { %9072 = vst [vmem:[#allocation55_spill] sm:$0xff] %v5770_v48 }
 0x19d   :  { %1243 = vmatpush.msra.mxu1 %v5181_v12  ;;  %1283 = vmatpush.msrb.mxu3 %v9061_v45  ;;  %v5695_v12 = vld [vmem:[#allocation9 + $0x128] sm:$0xff]  ;;  %9074 = vst [vmem:[#allocation44_spill] sm:$0xff] %v5776_v8  ;;  %v5780_v45 = vld [vmem:[#allocation9 + $0x4b8] sm:$0xff] }
 0x19e   :  { %1462 = vmatpush.msra.mxu2 %v5695_v12  ;;  %9075 = vst [vmem:[#allocation59_spill] sm:$0xff] %v5780_v45 }
 0x19f   :  { %1244 = vmatpush.msra.mxu1 %v5189_v27  ;;  %1284 = vmatpush.msrb.mxu3 %v9062_v7  ;;  %v5703_v27 = vld [vmem:[#allocation9 + $0xf8] sm:$0xff]  ;;  %v5783_v7 = vld [vmem:[#allocation9 + $0x280] sm:$0xff] }
 0x1a0   :  { %1463 = vmatpush.msra.mxu2 %v5703_v27  ;;  %9076 = vst [vmem:[#allocation58_spill] sm:$0xff] %v5783_v7 }
 0x1a1   :  { %1245 = vmatpush.msra.mxu1 %v5196_v26  ;;  %1285 = vmatpush.msrb.mxu3 %v9063_v4  ;;  %v5713_v26 = vld [vmem:[#allocation9 + $0xc0] sm:$0xff]  ;;  %v5790_v4 = vld [vmem:[#allocation9 + $0x488] sm:$0xff] }
 0x1a2   :  { %1424 = vmatpush.msrb.mxu0 %v5713_v26  ;;  %9078 = vst [vmem:[#allocation48_spill] sm:$0xff] %v5790_v4 }
 0x1a3   :  { %1246 = vmatpush.msra.mxu1 %v5203_v3  ;;  %1286 = vmatpush.msrb.mxu3 %v9064_v52  ;;  %v5717_v3 = vld [vmem:[#allocation9 + $0xc8] sm:$0xff]  ;;  %v5793_v52 = vld [vmem:[#allocation9 + $0x250] sm:$0xff] }
 0x1a4   :  { %3614 = vmatmul.msk.f32.vlgmr.msra.gmra.mxu1 %vm1046_vm4, %v5584_v60  ;;  %3616 = vmatmul.msk.f32.vlgmr.msrb.gmra.mxu3 %vm1046_vm4, %v5584_v60  ;;  %9079 = vst [vmem:[#allocation63_spill] sm:$0xff] %v5793_v52 }
 0x1a5   :  { %1433 = vmatpush.msrb.mxu1 %v5228_v59  ;;  %1464 = vmatpush.msra.mxu2 %v5717_v3  ;;  %v5733_v59 = vld [vmem:[#allocation9 + $0x60] sm:$0xff] }
 0x1a6   :  { %1473 = vmatpush.msra.mxu3 %v5720_v14  ;;  %1425 = vmatpush.msrb.mxu0 %v5723_v40 }
 0x1a7   :  { %1434 = vmatpush.msrb.mxu1 %v5237_v1  ;;  %1465 = vmatpush.msra.mxu2 %v5727_v46  ;;  %v5743_v1 = vld [vmem:[#allocation9 + $0x30] sm:$0xff] }
 0x1a8   :  { %1474 = vmatpush.msra.mxu3 %v5730_v18  ;;  %1426 = vmatpush.msrb.mxu0 %v5733_v59  ;;  %9065 = vst [vmem:[#allocation52_spill] sm:$0xff] %v5743_v1 }
 0x1a9   :  { %1435 = vmatpush.msrb.mxu1 %v5250_v5  ;;  %1466 = vmatpush.msra.mxu2 %v5737_v58  ;;  %v5753_v5 = vld [vmem:[#allocation9] sm:$0xff] }
 0x1aa   :  { %1475 = vmatpush.msra.mxu3 %v5740_v62  ;;  %1427 = vmatpush.msrb.mxu0 %v5743_v1  ;;  %9068 = vst [vmem:[#allocation53_spill] sm:$0xff] %v5753_v5 }
 0x1ab   :  { %1436 = vmatpush.msrb.mxu1 %v9066_v55  ;;  %1467 = vmatpush.msra.mxu2 %v5747_v43  ;;  %v5800_v55 = vld [vmem:[#allocation9 + $0x458] sm:$0xff] }
 0x1ac   :  { %1476 = vmatpush.msra.mxu3 %v5750_v50  ;;  %1428 = vmatpush.msrb.mxu0 %v5753_v5  ;;  %9081 = vst [vmem:[#allocation71_spill] sm:$0xff] %v5800_v55  ;;  %v9155_v5 = vld [vmem:[#allocation31_spill] sm:$0xff] }
 0x1ad   :  { %1437 = vmatpush.msrb.mxu1 %v5269_v11  ;;  %1468 = vmatpush.msra.mxu2 %v5757_v31  ;;  %v5773_v11 = vld [vmem:[#allocation9 + $0x2b0] sm:$0xff] }
 0x1ae   :  { %1477 = vmatpush.msra.mxu3 %v5760_v17  ;;  %1493 = vmatpush.msra.mxu0 %v5763_v25  ;;  %9073 = vst [vmem:[#allocation60_spill] sm:$0xff] %v5773_v11 }
 0x1af   :  { %1533 = vmatpush.msrb.mxu2 %v5766_v2  ;;  %1438 = vmatpush.msrb.mxu1 %v5284_v0  ;;  %v5786_v0 = vld [vmem:[#allocation9 + $0x288] sm:$0xff] }
 0x1b0   :  { %1478 = vmatpush.msra.mxu3 %v5770_v48  ;;  %1494 = vmatpush.msra.mxu0 %v5773_v11  ;;  %9077 = vst [vmem:[#allocation67_spill] sm:$0xff] %v5786_v0  ;;  %v392_v48 = vadd.f32 %v9155_v5, %v5519_v15 }
 0x1b1   :  { %1534 = vmatpush.msrb.mxu2 %v5776_v8  ;;  %1439 = vmatpush.msrb.mxu1 %v5294_v9  ;;  %v5796_v9 = vld [vmem:[#allocation9 + $0x258] sm:$0xff] }
 0x1b2   :  { %1479 = vmatpush.msra.mxu3 %v5780_v45  ;;  %1495 = vmatpush.msra.mxu0 %v5783_v7  ;;  %9080 = vst [vmem:[#allocation62_spill] sm:$0xff] %v5796_v9 }
 0x1b3   :  { %1535 = vmatpush.msrb.mxu2 %v5786_v0  ;;  %1440 = vmatpush.msrb.mxu1 %v5302_v22  ;;  %v5806_v22 = vld [vmem:[#allocation9 + $0x228] sm:$0xff] }
 0x1b4   :  { %1480 = vmatpush.msra.mxu3 %v5790_v4  ;;  %1496 = vmatpush.msra.mxu0 %v5793_v52  ;;  %9083 = vst [vmem:[#allocation69_spill] sm:$0xff] %v5806_v22  ;;  %v5810_v52 = vld [vmem:[#allocation9 + $0x428] sm:$0xff] }
 0x1b5   :  { %1536 = vmatpush.msrb.mxu2 %v5796_v9  ;;  %1441 = vmatpush.msrb.mxu1 %v5312_v16  ;;  %9084 = vst [vmem:[#allocation74_spill] sm:$0xff] %v5810_v52  ;;  %v5813_v9 = vld [vmem:[#allocation9 + $0x1f0] sm:$0xff]  ;;  %v5816_v16 = vld [vmem:[#allocation9 + $0x1f8] sm:$0xff] }
 0x1b6   :  { %1481 = vmatpush.msra.mxu3 %v5800_v55  ;;  %1497 = vmatpush.msra.mxu0 %v5803_v20  ;;  %9085 = vst [vmem:[#allocation54_spill] sm:$0xff] %v5813_v9  ;;  %v5820_v20 = vld [vmem:[#allocation9 + $0x3f8] sm:$0xff]  ;;  %v9150_v55 = vld [vmem:[#allocation125_spill] sm:$0xff] }
 0x1b7   :  { %1537 = vmatpush.msrb.mxu2 %v5806_v22  ;;  %1442 = vmatpush.msrb.mxu1 %v5320_v30  ;;  %9086 = vst [vmem:[#allocation72_spill] sm:$0xff] %v5816_v16  ;;  %v5823_v22 = vld [vmem:[#allocation9 + $0x1c0] sm:$0xff]  ;;  %v5826_v30 = vld [vmem:[#allocation9 + $0x1c8] sm:$0xff]  ;;  %v213_v0 = vadd.f32 %v9150_v55, %v5459_v56 }
 0x1b8   :  { %1482 = vmatpush.msra.mxu3 %v5810_v52  ;;  %1498 = vmatpush.msra.mxu0 %v5813_v9  ;;  %9087 = vst [vmem:[#allocation57_spill] sm:$0xff] %v5820_v20  ;;  %v5829_v52 = vld [vmem:[#allocation9 + $0x3c0] sm:$0xff]  ;;  %v5832_v9 = vld [vmem:[#allocation9 + $0x3c8] sm:$0xff] }
 0x1b9   :  { %1538 = vmatpush.msrb.mxu2 %v5816_v16  ;;  %1443 = vmatpush.msrb.mxu1 %v5330_v37  ;;  %9088 = vst [vmem:[#allocation75_spill] sm:$0xff] %v5823_v22  ;;  %v5835_v37 = vld [vmem:[#allocation9 + $0x190] sm:$0xff]  ;;  %v5838_v16 = vld [vmem:[#allocation9 + $0x198] sm:$0xff] }
 0x1ba   :  { %1483 = vmatpush.msra.mxu3 %v5820_v20  ;;  %1499 = vmatpush.msra.mxu0 %v5823_v22  ;;  %9089 = vst [vmem:[#allocation61_spill] sm:$0xff] %v5826_v30  ;;  %v5841_v22 = vld [vmem:[#allocation9 + $0x390] sm:$0xff] }
 0x1bb   :  { %1539 = vmatpush.msrb.mxu2 %v5826_v30  ;;  %9090 = vst [vmem:[#allocation77_spill] sm:$0xff] %v5829_v52  ;;  %1444 = vmatpush.msrb.mxu1 %v5829_v52  ;;  %v5844_v30 = vld [vmem:[#allocation9 + $0x398] sm:$0xff]  ;;  %v5847_v52 = vld [vmem:[#allocation9 + $0x160] sm:$0xff] }
 0x1bc   :  { %9091 = vst [vmem:[#allocation64_spill] sm:$0xff] %v5832_v9  ;;  %1484 = vmatpush.msra.mxu3 %v5832_v9  ;;  %1500 = vmatpush.msra.mxu0 %v5835_v37  ;;  %v5850_v9 = vld [vmem:[#allocation9 + $0x168] sm:$0xff] }
 0x1bd   :  { %9092 = vst [vmem:[#allocation81_spill] sm:$0xff] %v5835_v37  ;;  %1540 = vmatpush.msrb.mxu2 %v5838_v16  ;;  %1445 = vmatpush.msrb.mxu1 %v5841_v22  ;;  %v5853_v37 = vld [vmem:[#allocation9 + $0x360] sm:$0xff] }
 0x1be   :  { %9093 = vst [vmem:[#allocation66_spill] sm:$0xff] %v5838_v16  ;;  %1485 = vmatpush.msra.mxu3 %v5844_v30  ;;  %1501 = vmatpush.msra.mxu0 %v5847_v52  ;;  %v5856_v16 = vld [vmem:[#allocation9 + $0x368] sm:$0xff] }
 0x1bf   :  { %9094 = vst [vmem:[#allocation122_spill] sm:$0xff] %v5841_v22  ;;  %1541 = vmatpush.msrb.mxu2 %v5850_v9  ;;  %1446 = vmatpush.msrb.mxu1 %v5853_v37  ;;  %v5859_v22 = vld [vmem:[#allocation9 + $0x130] sm:$0xff] }
 0x1c0   :  { %9095 = vst [vmem:[#allocation78_spill] sm:$0xff] %v5844_v30  ;;  %1486 = vmatpush.msra.mxu3 %v5856_v16  ;;  %1502 = vmatpush.msra.mxu0 %v5859_v22  ;;  %v5862_v30 = vld [vmem:[#allocation9 + $0x138] sm:$0xff] }
 0x1c1   :  { %9096 = vst [vmem:[#allocation65_spill] sm:$0xff] %v5847_v52  ;;  %1542 = vmatpush.msrb.mxu2 %v5862_v30  ;;  %v5865_v52 = vld [vmem:[#allocation9 + $0x330] sm:$0xff] }
 0x1c2   :  { %9097 = vst [vmem:[#allocation80_spill] sm:$0xff] %v5850_v9  ;;  %1447 = vmatpush.msrb.mxu1 %v5865_v52  ;;  %v5868_v9 = vld [vmem:[#allocation9 + $0x338] sm:$0xff] }
 0x1c3   :  { %9098 = vst [vmem:[#allocation68_spill] sm:$0xff] %v5853_v37  ;;  %1487 = vmatpush.msra.mxu3 %v5868_v9  ;;  %v5871_v37 = vld [vmem:[#allocation9 + $0x100] sm:$0xff] }
 0x1c4   :  { %9099 = vst [vmem:[#allocation85_spill] sm:$0xff] %v5856_v16  ;;  %1503 = vmatpush.msra.mxu0 %v5871_v37  ;;  %v5874_v16 = vld [vmem:[#allocation9 + $0x108] sm:$0xff] }
 0x1c5   :  { %9100 = vst [vmem:[#allocation70_spill] sm:$0xff] %v5859_v22  ;;  %1543 = vmatpush.msrb.mxu2 %v5874_v16  ;;  %v5877_v22 = vld [vmem:[#allocation9 + $0x300] sm:$0xff] }
 0x1c6   :  { %9101 = vst [vmem:[#allocation89_spill] sm:$0xff] %v5862_v30  ;;  %1448 = vmatpush.msrb.mxu1 %v5877_v22  ;;  %v5880_v30 = vld [vmem:[#allocation9 + $0x308] sm:$0xff] }
 0x1c7   :  { %9102 = vst [vmem:[#allocation73_spill] sm:$0xff] %v5865_v52  ;;  %1488 = vmatpush.msra.mxu3 %v5880_v30  ;;  %v5883_v52 = vld [vmem:[#allocation9 + $0xd0] sm:$0xff] }
 0x1c8   :  { %9103 = vst [vmem:[#allocation94_spill] sm:$0xff] %v5868_v9  ;;  %1504 = vmatpush.msra.mxu0 %v5883_v52  ;;  %v5886_v9 = vld [vmem:[#allocation9 + $0x5e0] sm:$0xff] }
 0x1c9   :  { %9104 = vst [vmem:[#allocation76_spill] sm:$0xff] %v5871_v37  ;;  %1513 = vmatpush.msra.mxu1 %v5886_v9  ;;  %v5889_v37 = vld [vmem:[#allocation9 + $0xd8] sm:$0xff] }
 0x1ca   :  { %9105 = vst [vmem:[#allocation97_spill] sm:$0xff] %v5874_v16  ;;  %1544 = vmatpush.msrb.mxu2 %v5889_v37  ;;  %v5892_v16 = vld [vmem:[#allocation9 + $0x5e8] sm:$0xff] }
 0x1cb   :  { %9106 = vst [vmem:[#allocation79_spill] sm:$0xff] %v5877_v22  ;;  %1553 = vmatpush.msrb.mxu3 %v5892_v16  ;;  %v5895_v22 = vld [vmem:[#allocation9 + $0xa0] sm:$0xff] }
 0x1cc   :  { %9107 = vst [vmem:[#allocation101_spill] sm:$0xff] %v5880_v30  ;;  %1505 = vmatpush.msra.mxu0 %v5895_v22  ;;  %v5898_v30 = vld [vmem:[#allocation9 + $0x5b0] sm:$0xff] }
 0x1cd   :  { %9108 = vst [vmem:[#allocation82_spill] sm:$0xff] %v5883_v52  ;;  %1514 = vmatpush.msra.mxu1 %v5898_v30  ;;  %v5901_v52 = vld [vmem:[#allocation9 + $0xa8] sm:$0xff] }
 0x1ce   :  { %9109 = vst [vmem:[#allocation105_spill] sm:$0xff] %v5886_v9  ;;  %1545 = vmatpush.msrb.mxu2 %v5901_v52  ;;  %v5904_v9 = vld [vmem:[#allocation9 + $0x5b8] sm:$0xff] }
 0x1cf   :  { %9110 = vst [vmem:[#allocation86_spill] sm:$0xff] %v5889_v37  ;;  %1554 = vmatpush.msrb.mxu3 %v5904_v9  ;;  %v5907_v37 = vld [vmem:[#allocation9 + $0x70] sm:$0xff] }
 0x1d0   :  { %9111 = vst [vmem:[#allocation110_spill] sm:$0xff] %v5892_v16  ;;  %1506 = vmatpush.msra.mxu0 %v5907_v37  ;;  %v5910_v16 = vld [vmem:[#allocation9 + $0x580] sm:$0xff] }
 0x1d1   :  { %9112 = vst [vmem:[#allocation90_spill] sm:$0xff] %v5895_v22  ;;  %1515 = vmatpush.msra.mxu1 %v5910_v16  ;;  %v5913_v22 = vld [vmem:[#allocation9 + $0x78] sm:$0xff] }
 0x1d2   :  { %9113 = vst [vmem:[#allocation113_spill] sm:$0xff] %v5898_v30  ;;  %1546 = vmatpush.msrb.mxu2 %v5913_v22  ;;  %v5916_v30 = vld [vmem:[#allocation9 + $0x588] sm:$0xff] }
 0x1d3   :  { %9114 = vst [vmem:[#allocation93_spill] sm:$0xff] %v5901_v52  ;;  %1555 = vmatpush.msrb.mxu3 %v5916_v30  ;;  %v5919_v52 = vld [vmem:[#allocation9 + $0x40] sm:$0xff] }
 0x1d4   :  { %9115 = vst [vmem:[#allocation117_spill] sm:$0xff] %v5904_v9  ;;  %1507 = vmatpush.msra.mxu0 %v5919_v52  ;;  %v5922_v9 = vld [vmem:[#allocation9 + $0x550] sm:$0xff] }
 0x1d5   :  { %9116 = vst [vmem:[#allocation99_spill] sm:$0xff] %v5907_v37  ;;  %1516 = vmatpush.msra.mxu1 %v5922_v9  ;;  %v5925_v37 = vld [vmem:[#allocation9 + $0x48] sm:$0xff] }
 0x1d6   :  { %9117 = vst [vmem:[#allocation121_spill] sm:$0xff] %v5910_v16  ;;  %1547 = vmatpush.msrb.mxu2 %v5925_v37  ;;  %v5928_v16 = vld [vmem:[#allocation9 + $0x558] sm:$0xff] }
 0x1d7   :  { %9118 = vst [vmem:[#allocation103_spill] sm:$0xff] %v5913_v22  ;;  %1556 = vmatpush.msrb.mxu3 %v5928_v16  ;;  %v5931_v22 = vld [vmem:[#allocation9 + $0x10] sm:$0xff] }
 0x1d8   :  { %9119 = vst [vmem:[#allocation126_spill] sm:$0xff] %v5916_v30  ;;  %1508 = vmatpush.msra.mxu0 %v5931_v22  ;;  %v5934_v30 = vld [vmem:[#allocation9 + $0x520] sm:$0xff] }
 0x1d9   :  { %9120 = vst [vmem:[#allocation107_spill] sm:$0xff] %v5919_v52  ;;  %1517 = vmatpush.msra.mxu1 %v5934_v30  ;;  %v5937_v52 = vld [vmem:[#allocation9 + $0x18] sm:$0xff] }
 0x1da   :  { %9121 = vst [vmem:[#allocation130_spill] sm:$0xff] %v5922_v9  ;;  %1548 = vmatpush.msrb.mxu2 %v5937_v52  ;;  %v5940_v9 = vld [vmem:[#allocation9 + $0x528] sm:$0xff] }
 0x1db   :  { %9122 = vst [vmem:[#allocation111_spill] sm:$0xff] %v5925_v37  ;;  %1557 = vmatpush.msrb.mxu3 %v5940_v9  ;;  %v5943_v37 = vld [vmem:[#allocation9 + $0x4f0] sm:$0xff] }
 0x1dc   :  { %9123 = vst [vmem:[#allocation115_spill] sm:$0xff] %v5928_v16  ;;  %1518 = vmatpush.msra.mxu1 %v5943_v37  ;;  %v5946_v16 = vld [vmem:[#allocation9 + $0x4f8] sm:$0xff] }
 0x1dd   :  { %9124 = vst [vmem:[#allocation83_spill] sm:$0xff] %v5931_v22  ;;  %1558 = vmatpush.msrb.mxu3 %v5946_v16  ;;  %v5949_v22 = vld [vmem:[#allocation9 + $0x4c0] sm:$0xff] }
 0x1de   :  { %9125 = vst [vmem:[#allocation119_spill] sm:$0xff] %v5934_v30  ;;  %1519 = vmatpush.msra.mxu1 %v5949_v22  ;;  %v5952_v30 = vld [vmem:[#allocation9 + $0x4c8] sm:$0xff] }
 0x1df   :  { %9126 = vst [vmem:[#allocation87_spill] sm:$0xff] %v5937_v52  ;;  %1559 = vmatpush.msrb.mxu3 %v5952_v30  ;;  %v5955_v52 = vld [vmem:[#allocation9 + $0x490] sm:$0xff] }
 0x1e0   :  { %9127 = vst [vmem:[#allocation91_spill] sm:$0xff] %v5940_v9  ;;  %1520 = vmatpush.msra.mxu1 %v5955_v52  ;;  %v5958_v9 = vld [vmem:[#allocation9 + $0x498] sm:$0xff] }
 0x1e1   :  { %9128 = vst [vmem:[#allocation95_spill] sm:$0xff] %v5943_v37  ;;  %1560 = vmatpush.msrb.mxu3 %v5958_v9  ;;  %v5961_v37 = vld [vmem:[#allocation9 + $0x460] sm:$0xff]  ;;  %v1108_v7 = vpop.f32.mrf.mxu2 }
 0x1e2   :  { %9129 = vst [vmem:[#allocation98_spill] sm:$0xff] %v5946_v16  ;;  %1521 = vmatpush.msra.mxu1 %v5961_v37  ;;  %v5964_v16 = vld [vmem:[#allocation9 + $0x468] sm:$0xff] }
 0x1e3   :  { %9130 = vst [vmem:[#allocation102_spill] sm:$0xff] %v5949_v22  ;;  %1561 = vmatpush.msrb.mxu3 %v5964_v16  ;;  %v5967_v22 = vld [vmem:[#allocation9 + $0x430] sm:$0xff] }
 0x1e4   :  { %9131 = vst [vmem:[#allocation84_spill] sm:$0xff] %v5952_v30  ;;  %1522 = vmatpush.msra.mxu1 %v5967_v22  ;;  %v5970_v30 = vld [vmem:[#allocation9 + $0x438] sm:$0xff] }
 0x1e5   :  { %9132 = vst [vmem:[#allocation106_spill] sm:$0xff] %v5955_v52  ;;  %1562 = vmatpush.msrb.mxu3 %v5970_v30  ;;  %v5973_v52 = vld [vmem:[#allocation9 + $0x400] sm:$0xff] }
 0x1e6   :  { %9133 = vst [vmem:[#allocation88_spill] sm:$0xff] %v5958_v9  ;;  %1523 = vmatpush.msra.mxu1 %v5973_v52  ;;  %v5976_v9 = vld [vmem:[#allocation9 + $0x408] sm:$0xff] }
 0x1e7   :  { %9134 = vst [vmem:[#allocation109_spill] sm:$0xff] %v5961_v37  ;;  %1563 = vmatpush.msrb.mxu3 %v5976_v9  ;;  %v5979_v37 = vld [vmem:[#allocation9 + $0x3d0] sm:$0xff] }
 0x1e8   :  { %9135 = vst [vmem:[#allocation92_spill] sm:$0xff] %v5964_v16  ;;  %1524 = vmatpush.msra.mxu1 %v5979_v37  ;;  %v5982_v16 = vld [vmem:[#allocation9 + $0x3d8] sm:$0xff] }
 0x1e9   :  { %9136 = vst [vmem:[#allocation114_spill] sm:$0xff] %v5967_v22  ;;  %1564 = vmatpush.msrb.mxu3 %v5982_v16  ;;  %v5985_v22 = vld [vmem:[#allocation9 + $0x3a0] sm:$0xff]  ;;  %v1188_v31 = vpop.f32.mrf.mxu2 }
 0x1ea   :  { %9137 = vst [vmem:[#allocation96_spill] sm:$0xff] %v5970_v30  ;;  %1525 = vmatpush.msra.mxu1 %v5985_v22  ;;  %v5988_v30 = vld [vmem:[#allocation9 + $0x3a8] sm:$0xff]  ;;  %v1189_v55 = vadd.f32 %v1188_v31, %v5484_v28 }
 0x1eb   :  { %9138 = vst [vmem:[#allocation118_spill] sm:$0xff] %v5973_v52  ;;  %1565 = vmatpush.msrb.mxu3 %v5988_v30  ;;  %v5991_v52 = vld [vmem:[#allocation9 + $0x370] sm:$0xff] }
 0x1ec   :  { %9139 = vst [vmem:[#allocation100_spill] sm:$0xff] %v5976_v9  ;;  %1526 = vmatpush.msra.mxu1 %v5991_v52  ;;  %v5994_v9 = vld [vmem:[#allocation9 + $0x378] sm:$0xff] }
 0x1ed   :  { %9140 = vst [vmem:[#allocation123_spill] sm:$0xff] %v5979_v37  ;;  %1566 = vmatpush.msrb.mxu3 %v5994_v9  ;;  %v5997_v37 = vld [vmem:[#allocation9 + $0x340] sm:$0xff] }
 0x1ee   :  { %9141 = vst [vmem:[#allocation104_spill] sm:$0xff] %v5982_v16  ;;  %1527 = vmatpush.msra.mxu1 %v5997_v37  ;;  %v6000_v16 = vld [vmem:[#allocation9 + $0x348] sm:$0xff] }
 0x1ef   :  { %9142 = vst [vmem:[#allocation127_spill] sm:$0xff] %v5985_v22  ;;  %1567 = vmatpush.msrb.mxu3 %v6000_v16  ;;  %v6003_v22 = vld [vmem:[#allocation9 + $0x310] sm:$0xff] }
 0x1f0   :  { %9143 = vst [vmem:[#allocation108_spill] sm:$0xff] %v5988_v30  ;;  %1528 = vmatpush.msra.mxu1 %v6003_v22  ;;  %v6006_v30 = vld [vmem:[#allocation9 + $0x318] sm:$0xff] }
 0x1f1   :  { %9144 = vst [vmem:[#allocation112_spill] sm:$0xff] %v5991_v52  ;;  %1568 = vmatpush.msrb.mxu3 %v6006_v30  ;;  %v1068_v52 = vpop.f32.mrf.mxu0 }
 0x1f2   :  { %9145 = vst [vmem:[#allocation116_spill] sm:$0xff] %v5994_v9  ;;  %v1069_v20 = vadd.f32 %v1068_v52, %v5437_v36 }
 0x1f3   :  { %9146 = vst [vmem:[#allocation120_spill] sm:$0xff] %v5997_v37 }
 0x1f4   :  { %9147 = vst [vmem:[#allocation124_spill] sm:$0xff] %v6000_v16  ;;  %v1109_v16 = vadd.f32 %v1108_v7, %v5463_v57  ;;  %v351_v7 = vadd.f32 %v5381_v63, %v5490_v39  ;;  %v9152_v63 = vld [vmem:[#allocation42_spill] sm:$0xff] }
 0x1f5   :  { %9148 = vst [vmem:[#allocation139_spill] sm:$0xff] %v6003_v22  ;;  %v9151_v22 = vld [vmem:[#allocation129_spill] sm:$0xff] }
 0x1f6   :  { %9149 = vst [vmem:[#allocation152_spill] sm:$0xff] %v6006_v30  ;;  %v254_v45 = vadd.f32 %v9151_v22, %v5475_v35 }
 0x201   :  { %v1088_v9 = vpop.f32.mrf.mxu1 }
 0x202   :  { %v1089_v37 = vadd.f32 %v1088_v9, %v1069_v20  ;;  %v1148_v9 = vpop.f32.mrf.mxu0 }
 0x204   :  { %v1299_v4 = vadd.f32 %v1089_v37, %v213_v0 }
 0x206   :  { %v3617_v8 = vmul.f32 -1.442695, %v1299_v4 }
 0x207   :  { %v1128_v11 = vpop.f32.mrf.mxu3 }
 0x208   :  { %3679 = vpow2.f32 %v3617_v8  ;;  %v1129_v2 = vadd.f32 %v1128_v11, %v1109_v16 }
 0x20a   :  { %v1319_v30 = vadd.f32 %v1129_v2, %v254_v45  ;;  %v1168_v45 = vpop.f32.mrf.mxu1 }
 0x20c   :  { %v3618_v25 = vmul.f32 -1.442695, %v1319_v30  ;;  %v1228_v30 = vpop.f32.mrf.mxu0 }
 0x20e   :  { %v3680_v52 = vpop.eup %3679  ;;  %3681 = vpow2.f32 %v3618_v25 }
 0x20f   :  { %v1303_v36 = vadd.f32 1.0, %v3680_v52  ;;  %v1208_v20 = vpop.f32.mrf.mxu3 }
 0x210   :  { %v1209_v0 = vadd.f32 %v1208_v20, %v1189_v55  ;;  %v1149_v55 = vadd.f32 %v1148_v9, %v9152_v63 }
 0x211   :  { %3683 = vrcp.f32 %v1303_v36  ;;  %v1315_v16 = vand.u32 2147483648, %v1303_v36  ;;  %v1313_v52 = vand.u32 2147483647, %v1303_v36  ;;  %vm1309_vm9 = vweird.f32 %v1303_v36 }
 0x212   :  { %v1346_v37 = vadd.f32 %v1209_v0, %v351_v7  ;;  %v9153_v7 = vld [vmem:[#allocation47_spill] sm:$0xff]  ;;  %v1169_v56 = vadd.f32 %v1168_v45, %v1149_v55 }
 0x213   :  { %v9154_v0 = vld [vmem:[#allocation131_spill] sm:$0xff]  ;;  %vm1314_vm12 = vcmp.eq.f32.partialorder %v1313_v52, 8.507059e+37 }
 0x214   :  { %v3682_v4 = vpop.eup %3681  ;;  %v3619_v8 = vmul.f32 -1.442695, %v1346_v37  ;;  %v1229_v37 = vadd.f32 %v1228_v30, %v5515_v47 }
 0x215   :  { %v1323_v22 = vadd.f32 1.0, %v3682_v4  ;;  %v295_v4 = vadd.f32 %v9154_v0, %v9153_v7 }
 0x217   :  { %v3684_v11 = vpop.eup %3683  ;;  %3685 = vrcp.f32 %v1323_v22  ;;  %v1333_v0 = vand.u32 2147483647, %v1323_v22  ;;  %vm1329_vm14 = vweird.f32 %v1323_v22 }
 0x218   :  { %v1305_v2 = vmul.f32 %v3684_v11, %v1303_v36  ;;  %3687 = vpow2.f32 %v3619_v8  ;;  %vm1310_vm8 = vweird.f32 %v3684_v11  ;;  %v1316_v8 = vor.u32 1.1754944e-38, %v1315_v16 }
 0x219   :  { %vm1311_vm10 = vmor %vm1309_vm9, %vm1310_vm8  ;;  %vm1334_vm0 = vcmp.eq.f32.partialorder %v1333_v0, 8.507059e+37 }
 0x21a   :  { %v1306_v25 = vsub.f32 1.0, %v1305_v2 }
 0x21c   :  { %v1307_v31 = vmul.f32 %v3684_v11, %v1306_v25 }
 0x21d   :  { %v3686_v28 = vpop.eup %3685 }
 0x21e   :  { %v3688_v35 = vpop.eup %3687  ;;  %v1325_v20 = vmul.f32 %v3686_v28, %v1323_v22  ;;  %v1308_v39 = vadd.f32 %v3684_v11, %v1307_v31  ;;  %v1335_v31 = vand.u32 2147483648, %v1323_v22  ;;  %vm1330_vm13 = vweird.f32 %v3686_v28  ;;  %v6024_v22 = vpop.permute.xlu1 %1397 }
 0x21f   :  { %v1350_v2 = vadd.f32 1.0, %v3688_v35  ;;  %vm1331_vm15 = vmor %vm1329_vm14, %vm1330_vm13  ;;  %9156 = vst [vmem:[#allocation125_spill] sm:$0xff] %v6024_v22  ;;  %vm1399_vm3 = vcmp.eq.s32.totalorder %v6024_v22, 1  ;;  %v6140_v22 = vld [vmem:[#allocation9 + $0x5c0] sm:$0xff] }
 0x220   :  { %v1326_v57 = vsub.f32 1.0, %v1325_v20  ;;  %v1312_v25 = vsel %vm1311_vm10, %v3684_v11, %v1308_v39  ;;  %v1336_v11 = vor.u32 1.1754944e-38, %v1335_v31 }
 0x221   :  { %v1317_v43 = vsel %vm1314_vm12, %v1316_v8, %v1312_v25  ;;  %3689 = vrcp.f32 %v1350_v2  ;;  %v1248_v9 = vpop.f32.mrf.mxu1  ;;  %vm1356_vm2 = vweird.f32 %v1350_v2 }
 0x222   :  { %v1339_v36 = vmul.f32 %v1317_v43, %v1169_v56  ;;  %v1249_v63 = vadd.f32 %v1248_v9, %v1229_v37  ;;  %v1327_v1 = vmul.f32 %v3686_v28, %v1326_v57  ;;  %v1268_v56 = vpop.f32.mrf.mxu2  ;;  %v1362_v43 = vand.u32 2147483648, %v1350_v2 }
 0x224   :  { %v1340_v30 = vadd.f32 %v1339_v36, %v295_v4  ;;  %v1366_v47 = vadd.f32 %v1249_v63, %v392_v48  ;;  %v1328_v16 = vadd.f32 %v3686_v28, %v1327_v1  ;;  %v1360_v48 = vand.u32 2147483647, %v1350_v2 }
 0x225   :  { %v1269_v4 = vadd.f32 %v1268_v56, %v5529_v51  ;;  %v1363_v9 = vor.u32 1.1754944e-38, %v1362_v43  ;;  %v6052_v43 = vld [vmem:[#allocation9 + $0x290] sm:$0xff] }
 0x226   :  { %3691 = vtanh.f32 %v1340_v30  ;;  %v3620_v35 = vmul.f32 -1.442695, %v1366_v47  ;;  %v1332_v39 = vsel %vm1331_vm15, %v3686_v28, %v1328_v16  ;;  %vm1361_vm6 = vcmp.eq.f32.partialorder %v1360_v48, 8.507059e+37  ;;  %v6061_v48 = vld [vmem:[#allocation9 + $0x268] sm:$0xff] }
 0x227   :  { %v3690_v45 = vpop.eup %3689  ;;  %v1337_v52 = vsel %vm1334_vm0, %v1336_v11, %v1332_v39  ;;  %v1288_v1 = vpop.f32.mrf.mxu3 }
 0x228   :  { %3693 = vpow2.f32 %v3620_v35  ;;  %v1352_v5 = vmul.f32 %v3690_v45, %v1350_v2  ;;  %v1342_v57 = vsub.f32 1.0, %v1337_v52  ;;  %vm1357_vm1 = vweird.f32 %v3690_v45  ;;  %v9157_v2 = vld [vmem:[#allocation46_spill] sm:$0xff] }
 0x229   :  { %v1344_v28 = vmul.f32 %v1337_v52, %v5540_v32  ;;  %vm1358_vm5 = vmor %vm1356_vm2, %vm1357_vm1  ;;  %v1289_v36 = vadd.f32 %v1288_v1, %v1269_v4  ;;  %v433_v39 = vadd.f32 %v9157_v2, %v5564_v19  ;;  %v6046_v52 = vld [vmem:[#allocation9 + $0x2c0] sm:$0xff]  ;;  %9162 = vst [vmem:[#allocation46_spill] sm:$0xff] %v6140_v22 }
 0x22a   :  { %v1353_v55 = vsub.f32 1.0, %v1352_v5  ;;  %v6043_v5 = vld [vmem:[#allocation9 + $0x2f8] sm:$0xff] }
 0x22c   :  { %v3692_v20 = vpop.eup %3691  ;;  %v1354_v37 = vmul.f32 %v3690_v45, %v1353_v55  ;;  %v6049_v55 = vld [vmem:[#allocation9 + $0x2c8] sm:$0xff] }
 0x22d   :  { %v1343_v63 = vmul.f32 %v3692_v20, %v1342_v57  ;;  %v6055_v57 = vld [vmem:[#allocation9 + $0x298] sm:$0xff] }
 0x22e   :  { %v3694_v47 = vpop.eup %3693  ;;  %v1355_v8 = vadd.f32 %v3690_v45, %v1354_v37  ;;  %v6058_v37 = vld [vmem:[#allocation9 + $0x260] sm:$0xff] }
 0x22f   :  { %v1370_v25 = vadd.f32 1.0, %v3694_v47  ;;  %v1345_v31 = vadd.f32 %v1344_v28, %v1343_v63  ;;  %v6066_v28 = vld [vmem:[#allocation9 + $0x230] sm:$0xff]  ;;  %v6069_v47 = vld [vmem:[#allocation9 + $0x238] sm:$0xff] }
 0x230   :  { %v1359_v0 = vsel %vm1358_vm5, %v3690_v45, %v1355_v8  ;;  %v6040_v45 = vld [vmem:[#allocation9 + $0x2f0] sm:$0xff] }
 0x231   :  { %3695 = vrcp.f32 %v1370_v25  ;;  %v1364_v30 = vsel %vm1361_vm6, %v1363_v9, %v1359_v0  ;;  %v6032_v16 = vsel %vm1399_vm3, %v1345_v31, %v5540_v32  ;;  %v1407_v35 = vsel %vm1399_vm3, %v1345_v31, 0.0  ;;  %v6072_v9 = vld [vmem:[#allocation9 + $0x200] sm:$0xff]  ;;  %v6075_v31 = vld [vmem:[#allocation9 + $0x208] sm:$0xff] }
 0x232   :  { %v1386_v11 = vmul.f32 %v1364_v30, %v1289_v36  ;;  %1409 = vst [vmem:[#allocation10 + $0x8] sm:$0xff] %v1407_v35  ;;  %1429 = vmatmul.f32.vlgmr.msrb.gmra.mxu0 %v6032_v16  ;;  %1469 = vmatmul.f32.vlgmr.msra.gmra.mxu2 %v6032_v16  ;;  %v1382_v63 = vand.u32 2147483648, %v1370_v25  ;;  %v1380_v8 = vand.u32 2147483647, %v1370_v25  ;;  %vm1376_vm8 = vweird.f32 %v1370_v25  ;;  %v6078_v30 = vld [vmem:[#allocation9 + $0x1d0] sm:$0xff]  ;;  %v6081_v35 = vld [vmem:[#allocation9 + $0x1d8] sm:$0xff] }
 0x233   :  { %1573 = vmatpush.msrb.mxu0 %v6040_v45  ;;  %1613 = vmatpush.msra.mxu2 %v6043_v5 }
 0x234   :  { %v1387_v32 = vadd.f32 %v1386_v11, %v433_v39  ;;  %v1383_v0 = vor.u32 1.1754944e-38, %v1382_v63  ;;  %vm1381_vm10 = vcmp.eq.f32.partialorder %v1380_v8, 8.507059e+37  ;;  %v6084_v11 = vld [vmem:[#allocation9 + $0x1a0] sm:$0xff]  ;;  %v6095_v63 = vld [vmem:[#allocation9 + $0x170] sm:$0xff] }
 0x235   :  { %1574 = vmatpush.msrb.mxu0 %v6046_v52  ;;  %1614 = vmatpush.msra.mxu2 %v6049_v55 }
 0x236   :  { %3697 = vtanh.f32 %v1387_v32  ;;  %v6087_v32 = vld [vmem:[#allocation9 + $0x1a8] sm:$0xff] }
 0x237   :  { %v3696_v56 = vpop.eup %3695  ;;  %1575 = vmatpush.msrb.mxu0 %v6052_v43  ;;  %1615 = vmatpush.msra.mxu2 %v6055_v57 }
 0x238   :  { %v1372_v20 = vmul.f32 %v3696_v56, %v1370_v25  ;;  %vm1377_vm7 = vweird.f32 %v3696_v56 }
 0x239   :  { %1576 = vmatpush.msrb.mxu0 %v6058_v37  ;;  %1616 = vmatpush.msra.mxu2 %v6061_v48  ;;  %vm1378_vm9 = vmor %vm1376_vm8, %vm1377_vm7 }
 0x23a   :  { %v1373_v1 = vsub.f32 1.0, %v1372_v20  ;;  %1509 = vmatmul.f32.vlgmr.msra.gmra.mxu0 %v6032_v16  ;;  %1549 = vmatmul.f32.vlgmr.msrb.gmra.mxu2 %v6032_v16 }
 0x23b   :  { %1577 = vmatpush.msrb.mxu0 %v6066_v28  ;;  %1617 = vmatpush.msra.mxu2 %v6069_v47 }
 0x23c   :  { %v1374_v4 = vmul.f32 %v3696_v56, %v1373_v1  ;;  %v3698_v20 = vpop.eup %3697  ;;  %v6093_v1 = vsel %vm1046_vm4, %v5584_v60, 0.0  ;;  %v6108_v60 = vpop.permute.xlu1 %1403 }
 0x23d   :  { %1578 = vmatpush.msrb.mxu0 %v6072_v9  ;;  %1618 = vmatpush.msra.mxu2 %v6075_v31  ;;  %9158 = vst [vmem:[#allocation129_spill] sm:$0xff] %v6093_v1  ;;  %vm1405_vm12 = vcmp.eq.s32.totalorder %v6108_v60, 1 }
 0x23e   :  { %v1375_v36 = vadd.f32 %v3696_v56, %v1374_v4  ;;  %9159 = vst [vmem:[#allocation47_spill] sm:$0xff] %v6108_v60  ;;  %v6143_v60 = vld [vmem:[#allocation9 + $0xb8] sm:$0xff] }
 0x23f   :  { %1579 = vmatpush.msrb.mxu0 %v6078_v30  ;;  %1619 = vmatpush.msra.mxu2 %v6081_v35  ;;  %9163 = vst [vmem:[#allocation153_spill] sm:$0xff] %v6143_v60 }
 0x240   :  { %v1379_v2 = vsel %vm1378_vm9, %v3696_v56, %v1375_v36  ;;  %v6098_v56 = vld [vmem:[#allocation9 + $0x178] sm:$0xff]  ;;  %v6102_v36 = vld [vmem:[#allocation9 + $0x140] sm:$0xff] }
 0x241   :  { %v1384_v39 = vsel %vm1381_vm10, %v1383_v0, %v1379_v2  ;;  %1580 = vmatpush.msrb.mxu0 %v6084_v11  ;;  %1620 = vmatpush.msra.mxu2 %v6087_v32  ;;  %v6105_v0 = vld [vmem:[#allocation9 + $0x148] sm:$0xff] }
 0x242   :  { %v1389_v25 = vsub.f32 1.0, %v1384_v39  ;;  %v1391_v8 = vmul.f32 %v1384_v39, %v6093_v1 }
 0x243   :  { %1581 = vmatpush.msrb.mxu0 %v6095_v63  ;;  %1621 = vmatpush.msra.mxu2 %v6098_v56 }
 0x244   :  { %v1390_v4 = vmul.f32 %v3698_v20, %v1389_v25  ;;  %v6116_v25 = vld [vmem:[#allocation9 + $0x118] sm:$0xff]  ;;  %v6127_v20 = vld [vmem:[#allocation9 + $0xe0] sm:$0xff] }
 0x245   :  { %1582 = vmatpush.msrb.mxu0 %v6102_v36  ;;  %1622 = vmatpush.msra.mxu2 %v6105_v0 }
 0x246   :  { %v6110_v2 = vadd.f32 %v1391_v8, %v1390_v4  ;;  %v6130_v4 = vld [vmem:[#allocation9 + $0x5f0] sm:$0xff]  ;;  %v6133_v8 = vld [vmem:[#allocation9 + $0xe8] sm:$0xff] }
 0x247   :  { %1583 = vmatpush.msrb.mxu0 %v6113_v33  ;;  %1623 = vmatpush.msra.mxu2 %v6116_v25  ;;  %9161 = vst [vmem:[#allocation31_spill] sm:$0xff] %v6130_v4 }
 0x248   :  { %9160 = vst [vmem:[#allocation131_spill] sm:$0xff] %v6110_v2  ;;  %v6123_v39 = vsel %vm1405_vm12, %v6110_v2, %v6093_v1  ;;  %v6137_v1 = vld [vmem:[#allocation9 + $0xb0] sm:$0xff]  ;;  %v6147_v2 = vld [vmem:[#allocation9 + $0x80] sm:$0xff] }
 0x249   :  { %1449 = vmatmul.f32.vlgmr.msrb.gmra.mxu1 %v6123_v39  ;;  %1489 = vmatmul.f32.vlgmr.msra.gmra.mxu3 %v6123_v39 }
 0x24a   :  { %1584 = vmatpush.msrb.mxu0 %v6127_v20  ;;  %1593 = vmatpush.msrb.mxu1 %v6130_v4  ;;  %v6150_v4 = vld [vmem:[#allocation9 + $0x590] sm:$0xff] }
 0x24b   :  { %1624 = vmatpush.msra.mxu2 %v6133_v8  ;;  %1633 = vmatpush.msra.mxu3 %v5600_v38  ;;  %9164 = vst [vmem:[#allocation154_spill] sm:$0xff] %v6150_v4  ;;  %v6153_v38 = vld [vmem:[#allocation9 + $0x88] sm:$0xff] }
 0x24c   :  { %1585 = vmatpush.msrb.mxu0 %v6137_v1  ;;  %1594 = vmatpush.msrb.mxu1 %v6140_v22  ;;  %v6157_v22 = vld [vmem:[#allocation9 + $0x50] sm:$0xff] }
 0x24d   :  { %1625 = vmatpush.msra.mxu2 %v6143_v60  ;;  %1634 = vmatpush.msra.mxu3 %v5614_v34  ;;  %9165 = vst [vmem:[#allocation155_spill] sm:$0xff] %v6157_v22  ;;  %v6160_v60 = vld [vmem:[#allocation9 + $0x560] sm:$0xff]  ;;  %v6163_v34 = vld [vmem:[#allocation9 + $0x58] sm:$0xff] }
 0x24e   :  { %1586 = vmatpush.msrb.mxu0 %v6147_v2  ;;  %1595 = vmatpush.msrb.mxu1 %v6150_v4  ;;  %9166 = vst [vmem:[#allocation156_spill] sm:$0xff] %v6160_v60  ;;  %v3986_v4 = vld [vmem:[%s8257_s1] sm:$0xff]  ;;  %s4559_s1 = smov [#allocation11]  }
 0x24f   :  { %1626 = vmatpush.msra.mxu2 %v6153_v38  ;;  %1635 = vmatpush.msra.mxu3 %v5618_v21  ;;  %9167 = vst [vmem:[#allocation157_spill] sm:$0xff] %v6163_v34  ;;  %vm1755_vm13 = vcmp.gt.s32.totalorder %v3986_v4, 2  ;;  %v6172_v21 = vld [vmem:[#allocation9 + $0x20] sm:$0xff]  ;;  %vm1756_vm14 = vcmp.gt.s32.totalorder %v3986_v4, 5  ;;  %v6214_v4 = vld [vmem:[#allocation9 + $0x470] sm:$0xff]  ;;  %s3580_s23 = sshll.u32 %s4559_s1, 4  ;;  %s3581_s23 = int_to_ptr.vmem [resolvable:$true] %s3580_s23 }
 0x250   :  { %1587 = vmatpush.msrb.mxu0 %v6157_v22  ;;  %1596 = vmatpush.msrb.mxu1 %v6160_v60  ;;  %9168 = vst [vmem:[#allocation158_spill] sm:$0xff] %v6172_v21  ;;  %v6175_v60 = vld [vmem:[#allocation9 + $0x530] sm:$0xff]  ;;  %v6185_v22 = vld [vmem:[#allocation9 + $0x500] sm:$0xff] }
 0x251   :  { %1627 = vmatpush.msra.mxu2 %v6163_v34  ;;  %1636 = vmatpush.msra.mxu3 %v5627_v54  ;;  %9169 = vst [vmem:[#allocation159_spill] sm:$0xff] %v6175_v60  ;;  %v6178_v34 = vld [vmem:[#allocation9 + $0x28] sm:$0xff]  ;;  %v1757_v54 = vsel %vm1755_vm13, 1, %v8907_v29 }
 0x252   :  { %1529 = vmatmul.f32.vlgmr.msra.gmra.mxu1 %v6123_v39  ;;  %1569 = vmatmul.f32.vlgmr.msrb.gmra.mxu3 %v6123_v39  ;;  %9170 = vst [vmem:[#allocation160_spill] sm:$0xff] %v6178_v34 }
 0x253   :  { %1588 = vmatpush.msrb.mxu0 %v6172_v21  ;;  %1597 = vmatpush.msrb.mxu1 %v6175_v60  ;;  %9171 = vst [vmem:[#allocation161_spill] sm:$0xff] %v6185_v22  ;;  %v6188_v21 = vld [vmem:[#allocation9 + $0x508] sm:$0xff]  ;;  %v6191_v60 = vld [vmem:[#allocation9 + $0x2d0] sm:$0xff] }
 0x254   :  { %1628 = vmatpush.msra.mxu2 %v6178_v34  ;;  %1637 = vmatpush.msra.mxu3 %v5637_v41  ;;  %9172 = vst [vmem:[#allocation162_spill] sm:$0xff] %v6191_v60  ;;  %v6194_v41 = vld [vmem:[#allocation9 + $0x4d0] sm:$0xff]  ;;  %v6197_v34 = vld [vmem:[#allocation9 + $0x4d8] sm:$0xff] }
 0x255   :  { %1589 = vmatmul.f32.vlgmr.msrb.gmra.mxu0 %v6032_v16  ;;  %1629 = vmatmul.f32.vlgmr.msra.gmra.mxu2 %v6032_v16  ;;  %9173 = vst [vmem:[#allocation163_spill] sm:$0xff] %v6194_v41 }
 0x256   :  { %1598 = vmatpush.msrb.mxu1 %v6185_v22  ;;  %1638 = vmatpush.msra.mxu3 %v6188_v21  ;;  %v6201_v22 = vld [vmem:[#allocation9 + $0x2a0] sm:$0xff] }
 0x257   :  { %1759 = vperm.xlu2 %3658, %v1757_v54   ;;  %1775 = vmatpush.msra.mxu0 %v6191_v60  ;;  %9174 = vst [vmem:[#allocation164_spill] sm:$0xff] %v6201_v22  ;;  %v6204_v54 = vld [vmem:[#allocation9 + $0x4a0] sm:$0xff]  ;;  %v6207_v60 = vld [vmem:[#allocation9 + $0x4a8] sm:$0xff] }
 0x258   :  { %1599 = vmatpush.msrb.mxu1 %v6194_v41  ;;  %1639 = vmatpush.msra.mxu3 %v6197_v34  ;;  %9175 = vst [vmem:[#allocation165_spill] sm:$0xff] %v6204_v54  ;;  %v6211_v41 = vld [vmem:[#allocation9 + $0x270] sm:$0xff] }
 0x259   :  { %1815 = vmatpush.msrb.mxu2 %v5624_v13  ;;  %1776 = vmatpush.msra.mxu0 %v6201_v22  ;;  %9176 = vst [vmem:[#allocation166_spill] sm:$0xff] %v6211_v41  ;;  %v6217_v13 = vld [vmem:[#allocation9 + $0x478] sm:$0xff]  ;;  %v6222_v22 = vld [vmem:[#allocation9 + $0x240] sm:$0xff] }
 0x25a   :  { %1600 = vmatpush.msrb.mxu1 %v6204_v54  ;;  %1640 = vmatpush.msra.mxu3 %v6207_v60  ;;  %9177 = vst [vmem:[#allocation167_spill] sm:$0xff] %v6217_v13  ;;  %v1763_v54 = vsel %vm1756_vm14, 1, %v8907_v29  ;;  %v6235_v29 = vld [vmem:[#allocation9 + $0x418] sm:$0xff] }
 0x25b   :  { %1816 = vmatpush.msrb.mxu2 %v5643_v53  ;;  %1777 = vmatpush.msra.mxu0 %v6211_v41  ;;  %v6225_v53 = vld [vmem:[#allocation9 + $0x440] sm:$0xff]  ;;  %v6228_v41 = vld [vmem:[#allocation9 + $0x448] sm:$0xff]  ;;  %9181 = vst [vmem:[#allocation171_spill] sm:$0xff] %v6235_v29 }
 0x25c   :  { %1601 = vmatpush.msrb.mxu1 %v6214_v4  ;;  %1641 = vmatpush.msra.mxu3 %v6217_v13  ;;  %9178 = vst [vmem:[#allocation168_spill] sm:$0xff] %v6225_v53  ;;  %v6232_v13 = vld [vmem:[#allocation9 + $0x410] sm:$0xff] }
 0x25d   :  { %1817 = vmatpush.msrb.mxu2 %v5650_v23  ;;  %1778 = vmatpush.msra.mxu0 %v6222_v22  ;;  %9179 = vst [vmem:[#allocation169_spill] sm:$0xff] %v6228_v41  ;;  %v6238_v23 = vld [vmem:[#allocation9 + $0x210] sm:$0xff] }
 0x25e   :  { %1602 = vmatpush.msrb.mxu1 %v6225_v53  ;;  %1642 = vmatpush.msra.mxu3 %v6228_v41  ;;  %9180 = vst [vmem:[#allocation170_spill] sm:$0xff] %v6232_v13  ;;  %v6242_v53 = vld [vmem:[#allocation9 + $0x3e0] sm:$0xff] }
 0x25f   :  { %1765 = vperm.xlu2 %3658, %v1763_v54   ;;  %1818 = vmatpush.msrb.mxu2 %v5657_v42  ;;  %9182 = vst [vmem:[#allocation172_spill] sm:$0xff] %v6238_v23  ;;  %v6245_v54 = vld [vmem:[#allocation9 + $0x3e8] sm:$0xff]  ;;  %v6248_v42 = vld [vmem:[#allocation9 + $0x1e0] sm:$0xff] }
 0x260   :  { %1603 = vmatpush.msrb.mxu1 %v6232_v13  ;;  %1643 = vmatpush.msra.mxu3 %v6235_v29  ;;  %9183 = vst [vmem:[#allocation173_spill] sm:$0xff] %v6242_v53  ;;  %v6252_v29 = vld [vmem:[#allocation9 + $0x3b0] sm:$0xff]  ;;  %v6255_v13 = vld [vmem:[#allocation9 + $0x3b8] sm:$0xff] }
 0x261   :  { %1779 = vmatpush.msra.mxu0 %v6238_v23  ;;  %1819 = vmatpush.msrb.mxu2 %v5664_v44  ;;  %9184 = vst [vmem:[#allocation174_spill] sm:$0xff] %v6245_v54  ;;  %v6258_v44 = vld [vmem:[#allocation9 + $0x1b0] sm:$0xff] }
 0x262   :  { %1604 = vmatpush.msrb.mxu1 %v6242_v53  ;;  %1644 = vmatpush.msra.mxu3 %v6245_v54  ;;  %9185 = vst [vmem:[#allocation175_spill] sm:$0xff] %v6248_v42  ;;  %v6262_v54 = vld [vmem:[#allocation9 + $0x380] sm:$0xff]  ;;  %v6265_v53 = vld [vmem:[#allocation9 + $0x388] sm:$0xff] }
 0x263   :  { %1780 = vmatpush.msra.mxu0 %v6248_v42  ;;  %1820 = vmatpush.msrb.mxu2 %v5670_v10  ;;  %9186 = vst [vmem:[#allocation176_spill] sm:$0xff] %v6252_v29  ;;  %v6268_v10 = vld [vmem:[#allocation9 + $0x180] sm:$0xff] }
 0x264   :  { %1605 = vmatpush.msrb.mxu1 %v6252_v29  ;;  %9187 = vst [vmem:[#allocation177_spill] sm:$0xff] %v6255_v13  ;;  %1645 = vmatpush.msra.mxu3 %v6255_v13  ;;  %v6272_v13 = vld [vmem:[#allocation9 + $0x350] sm:$0xff]  ;;  %v6275_v29 = vld [vmem:[#allocation9 + $0x358] sm:$0xff]  ;;  %v9304_v42 = vld [vmem:[#allocation35_spill] sm:$0xff] }
 0x265   :  { %9188 = vst [vmem:[#allocation178_spill] sm:$0xff] %v6258_v44  ;;  %1781 = vmatpush.msra.mxu0 %v6258_v44  ;;  %1821 = vmatpush.msrb.mxu2 %v5677_v6  ;;  %v6278_v6 = vld [vmem:[#allocation9 + $0x150] sm:$0xff] }
 0x266   :  { %9189 = vst [vmem:[#allocation179_spill] sm:$0xff] %v6262_v54  ;;  %1606 = vmatpush.msrb.mxu1 %v6262_v54  ;;  %1646 = vmatpush.msra.mxu3 %v6265_v53  ;;  %v6285_v54 = vld [vmem:[#allocation9 + $0x328] sm:$0xff] }
 0x267   :  { %9190 = vst [vmem:[#allocation180_spill] sm:$0xff] %v6265_v53  ;;  %1782 = vmatpush.msra.mxu0 %v6268_v10  ;;  %1822 = vmatpush.msrb.mxu2 %v5683_v24  ;;  %v6282_v53 = vld [vmem:[#allocation9 + $0x320] sm:$0xff] }
 0x268   :  { %9191 = vst [vmem:[#allocation181_spill] sm:$0xff] %v6268_v10  ;;  %1607 = vmatpush.msrb.mxu1 %v6272_v13  ;;  %1647 = vmatpush.msra.mxu3 %v6275_v29  ;;  %v6290_v24 = vld [vmem:[#allocation9 + $0x120] sm:$0xff] }
 0x269   :  { %9192 = vst [vmem:[#allocation182_spill] sm:$0xff] %v6272_v13  ;;  %1783 = vmatpush.msra.mxu0 %v6278_v6  ;;  %1823 = vmatpush.msrb.mxu2 %v5689_v61  ;;  %v6300_v61 = vld [vmem:[#allocation9 + $0x5a0] sm:$0xff] }
 0x26a   :  { %9193 = vst [vmem:[#allocation183_spill] sm:$0xff] %v6275_v29  ;;  %1608 = vmatpush.msrb.mxu1 %v6282_v53  ;;  %1648 = vmatpush.msra.mxu3 %v6285_v54  ;;  %v6294_v29 = vld [vmem:[#allocation9 + $0x5d0] sm:$0xff]  ;;  %v9299_v10 = vld [vmem:[#allocation39_spill] sm:$0xff] }
 0x26b   :  { %9194 = vst [vmem:[#allocation184_spill] sm:$0xff] %v6278_v6  ;;  %1609 = vmatmul.f32.vlgmr.msrb.gmra.mxu1 %v6123_v39  ;;  %1649 = vmatmul.f32.vlgmr.msra.gmra.mxu3 %v6123_v39 }
 0x26c   :  { %9195 = vst [vmem:[#allocation185_spill] sm:$0xff] %v6282_v53  ;;  %1784 = vmatpush.msra.mxu0 %v6290_v24  ;;  %1824 = vmatpush.msrb.mxu2 %v5695_v12  ;;  %v6306_v12 = vld [vmem:[#allocation9 + $0x570] sm:$0xff]  ;;  %v9297_v53 = vld [vmem:[#allocation26_spill] sm:$0xff] }
 0x26d   :  { %9196 = vst [vmem:[#allocation186_spill] sm:$0xff] %v6285_v54  ;;  %1795 = vmatpush.msra.mxu1 %v6294_v29  ;;  %1835 = vmatpush.msrb.mxu3 %v5720_v14  ;;  %v6324_v14 = vld [vmem:[#allocation9 + $0x4e0] sm:$0xff] }
 0x26e   :  { %9197 = vst [vmem:[#allocation187_spill] sm:$0xff] %v6290_v24  ;;  %1785 = vmatpush.msra.mxu0 %v5699_v49  ;;  %1825 = vmatpush.msrb.mxu2 %v5703_v27  ;;  %v6312_v49 = vld [vmem:[#allocation9 + $0x540] sm:$0xff]  ;;  %v6318_v27 = vld [vmem:[#allocation9 + $0x510] sm:$0xff] }
 0x26f   :  { %9198 = vst [vmem:[#allocation188_spill] sm:$0xff] %v6294_v29  ;;  %1796 = vmatpush.msra.mxu1 %v6300_v61  ;;  %1836 = vmatpush.msrb.mxu3 %v5730_v18  ;;  %v9208_v18 = vld [vmem:[#allocation49_spill] sm:$0xff] }
 0x270   :  { %9199 = vst [vmem:[#allocation189_spill] sm:$0xff] %v6300_v61  ;;  %1786 = vmatpush.msra.mxu0 %v5713_v26  ;;  %1826 = vmatpush.msrb.mxu2 %v5717_v3  ;;  %v9203_v26 = vld [vmem:[#allocation52_spill] sm:$0xff]  ;;  %v9204_v3 = vld [vmem:[#allocation38_spill] sm:$0xff]  ;;  %v9296_v29 = vld [vmem:[#allocation37_spill] sm:$0xff] }
 0x271   :  { %9200 = vst [vmem:[#allocation190_spill] sm:$0xff] %v6306_v12  ;;  %1797 = vmatpush.msra.mxu1 %v6306_v12  ;;  %1837 = vmatpush.msrb.mxu3 %v5740_v62  ;;  %v6332_v62 = vld [vmem:[#allocation9 + $0x4b0] sm:$0xff] }
 0x272   :  { %1787 = vmatpush.msra.mxu0 %v5723_v40  ;;  %1827 = vmatpush.msrb.mxu2 %v5727_v46  ;;  %9201 = vst [vmem:[#allocation191_spill] sm:$0xff] %v6312_v49  ;;  %v9206_v40 = vld [vmem:[#allocation55_spill] sm:$0xff]  ;;  %v9207_v46 = vld [vmem:[#allocation53_spill] sm:$0xff] }
 0x273   :  { %1798 = vmatpush.msra.mxu1 %v6312_v49  ;;  %1838 = vmatpush.msrb.mxu3 %v5750_v50  ;;  %9202 = vst [vmem:[#allocation192_spill] sm:$0xff] %v6318_v27  ;;  %v9212_v50 = vld [vmem:[#allocation59_spill] sm:$0xff]  ;;  %v9294_v49 = vld [vmem:[#allocation24_spill] sm:$0xff] }
 0x274   :  { %1788 = vmatpush.msra.mxu0 %v5733_v59  ;;  %1828 = vmatpush.msrb.mxu2 %v5737_v58  ;;  %9205 = vst [vmem:[#allocation52_spill] sm:$0xff] %v6324_v14  ;;  %v9209_v59 = vld [vmem:[#allocation41_spill] sm:$0xff]  ;;  %v9210_v58 = vld [vmem:[#allocation56_spill] sm:$0xff] }
 0x275   :  { %1799 = vmatpush.msra.mxu1 %v6318_v27  ;;  %1839 = vmatpush.msrb.mxu3 %v5760_v17  ;;  %9211 = vst [vmem:[#allocation38_spill] sm:$0xff] %v6332_v62  ;;  %v9213_v17 = vld [vmem:[#allocation60_spill] sm:$0xff] }
 0x276   :  { %1789 = vmatpush.msra.mxu0 %v9203_v26  ;;  %1829 = vmatpush.msrb.mxu2 %v9204_v3  ;;  %v9214_v26 = vld [vmem:[#allocation44_spill] sm:$0xff]  ;;  %v6338_v3 = vld [vmem:[#allocation9 + $0x480] sm:$0xff] }
 0x277   :  { %1800 = vmatpush.msra.mxu1 %v6324_v14  ;;  %1840 = vmatpush.msrb.mxu3 %v9206_v40  ;;  %9215 = vst [vmem:[#allocation55_spill] sm:$0xff] %v6338_v3  ;;  %v9216_v40 = vld [vmem:[#allocation48_spill] sm:$0xff]  ;;  %v9237_v14 = vld [vmem:[#allocation81_spill] sm:$0xff] }
 0x278   :  { %1790 = vmatpush.msra.mxu0 %v9207_v46  ;;  %1830 = vmatpush.msrb.mxu2 %v9208_v18  ;;  %v9217_v46 = vld [vmem:[#allocation58_spill] sm:$0xff]  ;;  %v9218_v18 = vld [vmem:[#allocation67_spill] sm:$0xff] }
 0x279   :  { %1801 = vmatpush.msra.mxu1 %v6332_v62  ;;  %1841 = vmatpush.msrb.mxu3 %v9212_v50  ;;  %v9221_v50 = vld [vmem:[#allocation63_spill] sm:$0xff]  ;;  %v9232_v62 = vld [vmem:[#allocation64_spill] sm:$0xff] }
 0x27a   :  { %1855 = vmatpush.msrb.mxu0 %v9209_v59  ;;  %1895 = vmatpush.msra.mxu2 %v9210_v58  ;;  %v6344_v59 = vld [vmem:[#allocation9 + $0x450] sm:$0xff]  ;;  %v9220_v58 = vld [vmem:[#allocation71_spill] sm:$0xff] }
 0x27b   :  { %1802 = vmatpush.msra.mxu1 %v6338_v3  ;;  %1842 = vmatpush.msrb.mxu3 %v9216_v40  ;;  %9219 = vst [vmem:[#allocation53_spill] sm:$0xff] %v6344_v59  ;;  %v9224_v3 = vld [vmem:[#allocation74_spill] sm:$0xff]  ;;  %v9225_v40 = vld [vmem:[#allocation51_spill] sm:$0xff] }
 0x27c   :  { %1856 = vmatpush.msrb.mxu0 %v9213_v17  ;;  %1896 = vmatpush.msra.mxu2 %v9214_v26  ;;  %v9222_v17 = vld [vmem:[#allocation62_spill] sm:$0xff]  ;;  %v6350_v26 = vld [vmem:[#allocation9 + $0x420] sm:$0xff] }
 0x27d   :  { %1803 = vmatpush.msra.mxu1 %v6344_v59  ;;  %1843 = vmatpush.msrb.mxu3 %v9220_v58  ;;  %9223 = vst [vmem:[#allocation49_spill] sm:$0xff] %v6350_v26  ;;  %v9228_v59 = vld [vmem:[#allocation57_spill] sm:$0xff]  ;;  %v9229_v58 = vld [vmem:[#allocation54_spill] sm:$0xff] }
 0x27e   :  { %1857 = vmatpush.msrb.mxu0 %v9217_v46  ;;  %1897 = vmatpush.msra.mxu2 %v9218_v18  ;;  %v9226_v46 = vld [vmem:[#allocation69_spill] sm:$0xff] }
 0x27f   :  { %1804 = vmatpush.msra.mxu1 %v6350_v26  ;;  %1844 = vmatpush.msrb.mxu3 %v9224_v3  ;;  %v6356_v18 = vld [vmem:[#allocation9 + $0x3f0] sm:$0xff]  ;;  %v9233_v26 = vld [vmem:[#allocation75_spill] sm:$0xff] }
 0x280   :  { %1858 = vmatpush.msrb.mxu0 %v9221_v50  ;;  %1898 = vmatpush.msra.mxu2 %v9222_v17  ;;  %9227 = vst [vmem:[#allocation41_spill] sm:$0xff] %v6356_v18  ;;  %v9230_v50 = vld [vmem:[#allocation72_spill] sm:$0xff]  ;;  %v9231_v17 = vld [vmem:[#allocation77_spill] sm:$0xff] }
 0x281   :  { %1805 = vmatpush.msra.mxu1 %v6356_v18  ;;  %1845 = vmatpush.msrb.mxu3 %v9228_v59  ;;  %v9234_v3 = vld [vmem:[#allocation61_spill] sm:$0xff]  ;;  %v9238_v18 = vld [vmem:[#allocation66_spill] sm:$0xff]  ;;  %v9239_v59 = vld [vmem:[#allocation68_spill] sm:$0xff] }
 0x282   :  { %1859 = vmatpush.msrb.mxu0 %v9225_v40  ;;  %1899 = vmatpush.msra.mxu2 %v9226_v46  ;;  %v9235_v40 = vld [vmem:[#allocation122_spill] sm:$0xff] }
 0x283   :  { %1806 = vmatpush.msra.mxu1 %v9231_v17  ;;  %1846 = vmatpush.msrb.mxu3 %v9232_v62  ;;  %v9236_v46 = vld [vmem:[#allocation78_spill] sm:$0xff]  ;;  %v9242_v17 = vld [vmem:[#allocation80_spill] sm:$0xff]  ;;  %v9243_v62 = vld [vmem:[#allocation73_spill] sm:$0xff] }
 0x284   :  { %1860 = vmatpush.msrb.mxu0 %v9229_v58  ;;  %1900 = vmatpush.msra.mxu2 %v9230_v50  ;;  %v9240_v58 = vld [vmem:[#allocation85_spill] sm:$0xff] }
 0x285   :  { %1807 = vmatpush.msra.mxu1 %v9235_v40  ;;  %1847 = vmatpush.msrb.mxu3 %v9236_v46  ;;  %v9241_v50 = vld [vmem:[#allocation65_spill] sm:$0xff]  ;;  %v9247_v46 = vld [vmem:[#allocation79_spill] sm:$0xff] }
 0x286   :  { %1861 = vmatpush.msrb.mxu0 %v9233_v26  ;;  %1901 = vmatpush.msra.mxu2 %v9234_v3  ;;  %v9244_v26 = vld [vmem:[#allocation94_spill] sm:$0xff]  ;;  %v9246_v40 = vld [vmem:[#allocation89_spill] sm:$0xff] }
 0x287   :  { %1808 = vmatpush.msra.mxu1 %v9239_v59  ;;  %1848 = vmatpush.msrb.mxu3 %v9240_v58  ;;  %v9245_v3 = vld [vmem:[#allocation70_spill] sm:$0xff]  ;;  %v9250_v59 = vld [vmem:[#allocation97_spill] sm:$0xff] }
 0x288   :  { %1862 = vmatpush.msrb.mxu0 %v9237_v14  ;;  %1902 = vmatpush.msra.mxu2 %v9238_v18  ;;  %v9248_v14 = vld [vmem:[#allocation101_spill] sm:$0xff]  ;;  %v9249_v18 = vld [vmem:[#allocation76_spill] sm:$0xff] }
 0x289   :  { %1809 = vmatpush.msra.mxu1 %v9243_v62  ;;  %1849 = vmatpush.msrb.mxu3 %v9244_v26  ;;  %v9251_v58 = vld [vmem:[#allocation105_spill] sm:$0xff]  ;;  %v9254_v62 = vld [vmem:[#allocation86_spill] sm:$0xff] }
 0x28a   :  { %1863 = vmatpush.msrb.mxu0 %v9241_v50  ;;  %1903 = vmatpush.msra.mxu2 %v9242_v17  ;;  %v9252_v50 = vld [vmem:[#allocation110_spill] sm:$0xff]  ;;  %v9255_v26 = vld [vmem:[#allocation113_spill] sm:$0xff] }
 0x28b   :  { %1810 = vmatpush.msra.mxu1 %v9247_v46  ;;  %1850 = vmatpush.msrb.mxu3 %v9248_v14  ;;  %v9253_v17 = vld [vmem:[#allocation82_spill] sm:$0xff]  ;;  %v9258_v46 = vld [vmem:[#allocation93_spill] sm:$0xff] }
 0x28c   :  { %1864 = vmatpush.msrb.mxu0 %v9245_v3  ;;  %1904 = vmatpush.msra.mxu2 %v9246_v40  ;;  %v9256_v3 = vld [vmem:[#allocation117_spill] sm:$0xff]  ;;  %v9257_v40 = vld [vmem:[#allocation90_spill] sm:$0xff] }
 0x28d   :  { %1875 = vmatpush.msrb.mxu1 %v9251_v58  ;;  %1915 = vmatpush.msra.mxu3 %v9252_v50  ;;  %v9259_v14 = vld [vmem:[#allocation121_spill] sm:$0xff]  ;;  %v9262_v58 = vld [vmem:[#allocation103_spill] sm:$0xff]  ;;  %v9263_v50 = vld [vmem:[#allocation130_spill] sm:$0xff] }
 0x28e   :  { %1865 = vmatpush.msrb.mxu0 %v9249_v18  ;;  %1905 = vmatpush.msra.mxu2 %v9250_v59  ;;  %v9260_v18 = vld [vmem:[#allocation126_spill] sm:$0xff]  ;;  %v9261_v59 = vld [vmem:[#allocation99_spill] sm:$0xff] }
 0x28f   :  { %1876 = vmatpush.msrb.mxu1 %v9255_v26  ;;  %1916 = vmatpush.msra.mxu3 %v9256_v3  ;;  %v9266_v26 = vld [vmem:[#allocation111_spill] sm:$0xff] }
 0x290   :  { %1866 = vmatpush.msrb.mxu0 %v9253_v17  ;;  %1906 = vmatpush.msra.mxu2 %v9254_v62  ;;  %v9264_v17 = vld [vmem:[#allocation115_spill] sm:$0xff] }
 0x291   :  { %1877 = vmatpush.msrb.mxu1 %v9259_v14  ;;  %1917 = vmatpush.msra.mxu3 %v9260_v18  ;;  %v9265_v62 = vld [vmem:[#allocation107_spill] sm:$0xff] }
 0x292   :  { %1867 = vmatpush.msrb.mxu0 %v9257_v40  ;;  %1907 = vmatpush.msra.mxu2 %v9258_v46  ;;  %v9267_v3 = vld [vmem:[#allocation119_spill] sm:$0xff] }
 0x293   :  { %1878 = vmatpush.msrb.mxu1 %v9263_v50  ;;  %1918 = vmatpush.msra.mxu3 %v9264_v17  ;;  %v9268_v40 = vld [vmem:[#allocation91_spill] sm:$0xff]  ;;  %v9274_v50 = vld [vmem:[#allocation84_spill] sm:$0xff]  ;;  %v9275_v17 = vld [vmem:[#allocation106_spill] sm:$0xff] }
 0x294   :  { %1868 = vmatpush.msrb.mxu0 %v9261_v59  ;;  %1908 = vmatpush.msra.mxu2 %v9262_v58  ;;  %v9269_v46 = vld [vmem:[#allocation83_spill] sm:$0xff]  ;;  %v9272_v59 = vld [vmem:[#allocation98_spill] sm:$0xff] }
 0x295   :  { %1879 = vmatpush.msrb.mxu1 %v9267_v3  ;;  %1919 = vmatpush.msra.mxu3 %v9268_v40  ;;  %v9270_v14 = vld [vmem:[#allocation87_spill] sm:$0xff]  ;;  %v9273_v58 = vld [vmem:[#allocation102_spill] sm:$0xff]  ;;  %v9278_v3 = vld [vmem:[#allocation92_spill] sm:$0xff] }
 0x296   :  { %1869 = vmatpush.msrb.mxu0 %v9265_v62  ;;  %1909 = vmatpush.msra.mxu2 %v9266_v26  ;;  %v9271_v18 = vld [vmem:[#allocation95_spill] sm:$0xff]  ;;  %v9276_v62 = vld [vmem:[#allocation88_spill] sm:$0xff]  ;;  %v9277_v26 = vld [vmem:[#allocation109_spill] sm:$0xff] }
 0x297   :  { %1880 = vmatpush.msrb.mxu1 %v9271_v18  ;;  %1920 = vmatpush.msra.mxu3 %v9272_v59  ;;  %v9279_v40 = vld [vmem:[#allocation114_spill] sm:$0xff]  ;;  %v9282_v18 = vld [vmem:[#allocation100_spill] sm:$0xff]  ;;  %v9283_v59 = vld [vmem:[#allocation123_spill] sm:$0xff] }
 0x298   :  { %1870 = vmatpush.msrb.mxu0 %v9269_v46  ;;  %1910 = vmatpush.msra.mxu2 %v9270_v14  ;;  %v9280_v46 = vld [vmem:[#allocation96_spill] sm:$0xff]  ;;  %v9281_v14 = vld [vmem:[#allocation118_spill] sm:$0xff] }
 0x299   :  { %1881 = vmatpush.msrb.mxu1 %v9273_v58  ;;  %1921 = vmatpush.msra.mxu3 %v9274_v50  ;;  %v9284_v58 = vld [vmem:[#allocation104_spill] sm:$0xff]  ;;  %v9285_v50 = vld [vmem:[#allocation127_spill] sm:$0xff] }
 0x29b   :  { %1882 = vmatpush.msrb.mxu1 %v9275_v17  ;;  %1922 = vmatpush.msra.mxu3 %v9276_v62  ;;  %v9286_v17 = vld [vmem:[#allocation108_spill] sm:$0xff] }
 0x29c   :  { %v9287_v62 = vld [vmem:[#allocation112_spill] sm:$0xff] }
 0x29d   :  { %1883 = vmatpush.msrb.mxu1 %v9277_v26  ;;  %1923 = vmatpush.msra.mxu3 %v9278_v3  ;;  %v9288_v26 = vld [vmem:[#allocation116_spill] sm:$0xff] }
 0x29e   :  { %v9289_v3 = vld [vmem:[#allocation120_spill] sm:$0xff] }
 0x29f   :  { %1884 = vmatpush.msrb.mxu1 %v9279_v40  ;;  %1924 = vmatpush.msra.mxu3 %v9280_v46  ;;  %v9290_v40 = vld [vmem:[#allocation124_spill] sm:$0xff]  ;;  %v9291_v46 = vld [vmem:[#allocation139_spill] sm:$0xff] }
 0x2a1   :  { %1885 = vmatpush.msrb.mxu1 %v9281_v14  ;;  %1925 = vmatpush.msra.mxu3 %v9282_v18  ;;  %v9292_v14 = vld [vmem:[#allocation152_spill] sm:$0xff] }
 0x2a3   :  { %1886 = vmatpush.msrb.mxu1 %v9283_v59  ;;  %1926 = vmatpush.msra.mxu3 %v9284_v58  ;;  %v9293_v59 = vld [vmem:[#allocation33_spill] sm:$0xff] }
 0x2a5   :  { %1887 = vmatpush.msrb.mxu1 %v9285_v50  ;;  %1927 = vmatpush.msra.mxu3 %v9286_v17  ;;  %v9295_v50 = vld [vmem:[#allocation132_spill] sm:$0xff] }
 0x2a6   :  { %v216_v12 = vadd.f32 %v9295_v50, %v9294_v49 }
 0x2a7   :  { %1888 = vmatpush.msrb.mxu1 %v9287_v62  ;;  %1928 = vmatpush.msra.mxu3 %v9288_v26 }
 0x2a9   :  { %1889 = vmatpush.msrb.mxu1 %v9289_v3  ;;  %1929 = vmatpush.msra.mxu3 %v9290_v40  ;;  %v9298_v40 = vld [vmem:[#allocation134_spill] sm:$0xff] }
 0x2aa   :  { %v257_v24 = vadd.f32 %v9298_v40, %v9297_v53  ;;  %v9302_v53 = vld [vmem:[#allocation42_spill] sm:$0xff] }
 0x2ab   :  { %1890 = vmatpush.msrb.mxu1 %v9291_v46  ;;  %1930 = vmatpush.msra.mxu3 %v9292_v14 }
 0x2af   :  { %v1430_v18 = vpop.f32.mrf.mxu0 }
 0x2b0   :  { %v1431_v27 = vadd.f32 %v1430_v18, %v9293_v59 }
 0x2b5   :  { %v1470_v61 = vpop.f32.mrf.mxu2 }
 0x2b6   :  { %v1471_v26 = vadd.f32 %v1470_v61, %v9296_v29 }
 0x2b7   :  { %v1510_v40 = vpop.f32.mrf.mxu0 }
 0x2bd   :  { %v1550_v6 = vpop.f32.mrf.mxu2 }
 0x2be   :  { %v1551_v50 = vadd.f32 %v1550_v6, %v9299_v10 }
 0x2c6   :  { %v1450_v58 = vpop.f32.mrf.mxu1 }
 0x2c7   :  { %v1451_v17 = vadd.f32 %v1450_v58, %v1431_v27  ;;  %v9301_v58 = vld [vmem:[#allocation150_spill] sm:$0xff] }
 0x2c9   :  { %v1661_v62 = vadd.f32 %v1451_v17, %v216_v12  ;;  %v9300_v12 = vld [vmem:[#allocation43_spill] sm:$0xff] }
 0x2ca   :  { %v348_v61 = vadd.f32 %v9301_v58, %v9300_v12  ;;  %v1511_v58 = vadd.f32 %v1510_v40, %v9302_v53 }
 0x2cb   :  { %v3621_v54 = vmul.f32 -1.442695, %v1661_v62 }
 0x2cc   :  { %v1490_v3 = vpop.f32.mrf.mxu3 }
 0x2cd   :  { %3699 = vpow2.f32 %v3621_v54  ;;  %v1491_v46 = vadd.f32 %v1490_v3, %v1471_v26 }
 0x2cf   :  { %v1681_v14 = vadd.f32 %v1491_v46, %v257_v24 }
 0x2d1   :  { %v3622_v13 = vmul.f32 -1.442695, %v1681_v14 }
 0x2d3   :  { %v3700_v18 = vpop.eup %3699  ;;  %3701 = vpow2.f32 %v3622_v13  ;;  %v1530_v13 = vpop.f32.mrf.mxu1 }
 0x2d4   :  { %v1665_v59 = vadd.f32 1.0, %v3700_v18  ;;  %v1531_v12 = vadd.f32 %v1530_v13, %v1511_v58 }
 0x2d5   :  { %v1570_v27 = vpop.f32.mrf.mxu3 }
 0x2d6   :  { %3703 = vrcp.f32 %v1665_v59  ;;  %v1571_v17 = vadd.f32 %v1570_v27, %v1551_v50  ;;  %v1677_v46 = vand.u32 2147483648, %v1665_v59  ;;  %v1675_v6 = vand.u32 2147483647, %v1665_v59 }
 0x2d7   :  { %vm1671_vm0 = vweird.f32 %v1665_v59 }
 0x2d8   :  { %v1708_v29 = vadd.f32 %v1571_v17, %v348_v61  ;;  %v1590_v61 = vpop.f32.mrf.mxu0  ;;  %vm1676_vm2 = vcmp.eq.f32.partialorder %v1675_v6, 8.507059e+37 }
 0x2d9   :  { %v3702_v62 = vpop.eup %3701  ;;  %v1591_v23 = vadd.f32 %v1590_v61, %v9304_v42 }
 0x2da   :  { %v1685_v49 = vadd.f32 1.0, %v3702_v62  ;;  %v3623_v54 = vmul.f32 -1.442695, %v1708_v29  ;;  %v1678_v29 = vor.u32 1.1754944e-38, %v1677_v46 }
 0x2dc   :  { %v3704_v26 = vpop.eup %3703  ;;  %3705 = vrcp.f32 %v1685_v49  ;;  %vm1691_vm6 = vweird.f32 %v1685_v49 }
 0x2dd   :  { %v1667_v24 = vmul.f32 %v3704_v26, %v1665_v59  ;;  %3707 = vpow2.f32 %v3623_v54  ;;  %vm1672_vm15 = vweird.f32 %v3704_v26  ;;  %v9305_v59 = vld [vmem:[#allocation28_spill] sm:$0xff] }
 0x2de   :  { %vm1673_vm1 = vmor %vm1671_vm0, %vm1672_vm15  ;;  %v389_v53 = vadd.f32 %v9305_v59, %v5519_v15  ;;  %v6439_v59 = vpop.permute.xlu2 %1759 }
 0x2df   :  { %v1668_v3 = vsub.f32 1.0, %v1667_v24  ;;  %v9303_v24 = vld [vmem:[#allocation135_spill] sm:$0xff]  ;;  %9306 = vst [vmem:[#allocation56_spill] sm:$0xff] %v6439_v59  ;;  %vm1761_vm13 = vcmp.eq.s32.totalorder %v6439_v59, 1  ;;  %v6716_v59 = vld [vmem:[#allocation9 + $0x3c8] sm:$0xff] }
 0x2e0   :  { %9380 = vst [vmem:[#allocation85_spill] sm:$0xff] %v6716_v59 }
 0x2e1   :  { %v1669_v14 = vmul.f32 %v3704_v26, %v1668_v3  ;;  %v298_v3 = vadd.f32 %v9303_v24, %v9153_v7 }
 0x2e2   :  { %v3706_v18 = vpop.eup %3705 }
 0x2e3   :  { %v3708_v10 = vpop.eup %3707  ;;  %v1687_v50 = vmul.f32 %v3706_v18, %v1685_v49  ;;  %v1670_v27 = vadd.f32 %v3704_v26, %v1669_v14  ;;  %vm1692_vm5 = vweird.f32 %v3706_v18  ;;  %v1697_v14 = vand.u32 2147483648, %v1685_v49 }
 0x2e4   :  { %v1712_v17 = vadd.f32 1.0, %v3708_v10  ;;  %v1695_v10 = vand.u32 2147483647, %v1685_v49  ;;  %vm1693_vm7 = vmor %vm1691_vm6, %vm1692_vm5 }
 0x2e5   :  { %v1688_v62 = vsub.f32 1.0, %v1687_v50  ;;  %v1674_v54 = vsel %vm1673_vm1, %v3704_v26, %v1670_v27  ;;  %v1698_v27 = vor.u32 1.1754944e-38, %v1697_v14 }
 0x2e6   :  { %v1679_v44 = vsel %vm1676_vm2, %v1678_v29, %v1674_v54  ;;  %3709 = vrcp.f32 %v1712_v17  ;;  %vm1696_vm8 = vcmp.eq.f32.partialorder %v1695_v10, 8.507059e+37  ;;  %v1630_v54 = vpop.f32.mrf.mxu2  ;;  %v1724_v24 = vand.u32 2147483648, %v1712_v17 }
 0x2e7   :  { %v1701_v41 = vmul.f32 %v1679_v44, %v1531_v12  ;;  %v1689_v40 = vmul.f32 %v3706_v18, %v1688_v62  ;;  %v1722_v49 = vand.u32 2147483647, %v1712_v17  ;;  %v1631_v14 = vadd.f32 %v1630_v54, %v5529_v51 }
 0x2e8   :  { %v1610_v46 = vpop.f32.mrf.mxu1  ;;  %vm1718_vm10 = vweird.f32 %v1712_v17  ;;  %v1725_v10 = vor.u32 1.1754944e-38, %v1724_v24  ;;  %v9319_v24 = vld [vmem:[#allocation160_spill] sm:$0xff] }
 0x2e9   :  { %v1702_v50 = vadd.f32 %v1701_v41, %v298_v3  ;;  %v1611_v13 = vadd.f32 %v1610_v46, %v1591_v23  ;;  %v1690_v26 = vadd.f32 %v3706_v18, %v1689_v40  ;;  %vm1723_vm15 = vcmp.eq.f32.partialorder %v1722_v49, 8.507059e+37  ;;  %v6530_v49 = vld [vmem:[#allocation9 + $0x2d8] sm:$0xff] }
 0x2eb   :  { %3711 = vtanh.f32 %v1702_v50  ;;  %v1728_v6 = vadd.f32 %v1611_v13, %v389_v53  ;;  %v1694_v58 = vsel %vm1693_vm7, %v3706_v18, %v1690_v26 }
 0x2ec   :  { %v3710_v61 = vpop.eup %3709  ;;  %v1699_v29 = vsel %vm1696_vm8, %v1698_v27, %v1694_v58 }
 0x2ed   :  { %v3624_v44 = vmul.f32 -1.442695, %v1728_v6  ;;  %v1714_v12 = vmul.f32 %v3710_v61, %v1712_v17  ;;  %v1704_v41 = vsub.f32 1.0, %v1699_v29  ;;  %vm1719_vm9 = vweird.f32 %v3710_v61  ;;  %v9307_v17 = vld [vmem:[#allocation34_spill] sm:$0xff] }
 0x2ee   :  { %v1650_v40 = vpop.f32.mrf.mxu3  ;;  %v1706_v18 = vmul.f32 %v1699_v29, %v6032_v16  ;;  %vm1720_vm14 = vmor %vm1718_vm10, %vm1719_vm9  ;;  %v430_v29 = vadd.f32 %v9307_v17, %v5564_v19  ;;  %v9335_v17 = vld [vmem:[#allocation178_spill] sm:$0xff] }
 0x2ef   :  { %3713 = vpow2.f32 %v3624_v44  ;;  %v1715_v62 = vsub.f32 1.0, %v1714_v12  ;;  %v1651_v26 = vadd.f32 %v1650_v40, %v1631_v14  ;;  %v9322_v40 = vld [vmem:[#allocation163_spill] sm:$0xff]  ;;  %v9324_v14 = vld [vmem:[#allocation165_spill] sm:$0xff] }
 0x2f1   :  { %v3712_v23 = vpop.eup %3711  ;;  %v1716_v3 = vmul.f32 %v3710_v61, %v1715_v62 }
 0x2f2   :  { %v1705_v53 = vmul.f32 %v3712_v23, %v1704_v41  ;;  %v6522_v41 = vld [vmem:[#allocation9 + $0x538] sm:$0xff]  ;;  %v9320_v23 = vld [vmem:[#allocation161_spill] sm:$0xff] }
 0x2f3   :  { %v1717_v46 = vadd.f32 %v3710_v61, %v1716_v3  ;;  %v9321_v3 = vld [vmem:[#allocation162_spill] sm:$0xff] }
 0x2f4   :  { %v1707_v50 = vadd.f32 %v1706_v18, %v1705_v53  ;;  %v9323_v53 = vld [vmem:[#allocation164_spill] sm:$0xff] }
 0x2f5   :  { %v3714_v13 = vpop.eup %3713  ;;  %v1721_v6 = vsel %vm1720_vm14, %v3710_v61, %v1717_v46  ;;  %v6536_v18 = vld [vmem:[#allocation9 + $0x2a8] sm:$0xff]  ;;  %v6542_v46 = vld [vmem:[#allocation9 + $0x278] sm:$0xff] }
 0x2f6   :  { %v1732_v58 = vadd.f32 1.0, %v3714_v13  ;;  %v1726_v27 = vsel %vm1723_vm15, %v1725_v10, %v1721_v6  ;;  %v6447_v44 = vsel %vm1761_vm13, %v1707_v50, %v6032_v16  ;;  %v1769_v12 = vsel %vm1761_vm13, %v1707_v50, 0.0  ;;  %v9326_v10 = vld [vmem:[#allocation167_spill] sm:$0xff]  ;;  %v9327_v50 = vld [vmem:[#allocation168_spill] sm:$0xff]  ;;  %v9328_v13 = vld [vmem:[#allocation169_spill] sm:$0xff] }
 0x2f7   :  { %v1748_v62 = vmul.f32 %v1726_v27, %v1651_v26  ;;  %1771 = vst [vmem:[#allocation10 + $0x10] sm:$0xff] %v1769_v12  ;;  %1791 = vmatmul.f32.vlgmr.msra.gmra.mxu0 %v6447_v44  ;;  %1831 = vmatmul.f32.vlgmr.msrb.gmra.mxu2 %v6447_v44  ;;  %v6554_v26 = vld [vmem:[#allocation9 + $0x218] sm:$0xff]  ;;  %v9333_v27 = vld [vmem:[#allocation173_spill] sm:$0xff] }
 0x2f8   :  { %3715 = vrcp.f32 %v1732_v58  ;;  %1935 = vmatpush.msra.mxu0 %v6040_v45  ;;  %1975 = vmatpush.msrb.mxu2 %v6043_v5  ;;  %v1744_v5 = vand.u32 2147483648, %v1732_v58  ;;  %vm1738_vm1 = vweird.f32 %v1732_v58  ;;  %v9330_v6 = vld [vmem:[#allocation170_spill] sm:$0xff] }
 0x2f9   :  { %v1749_v61 = vadd.f32 %v1748_v62, %v430_v29  ;;  %v9334_v12 = vld [vmem:[#allocation174_spill] sm:$0xff]  ;;  %v9336_v62 = vld [vmem:[#allocation176_spill] sm:$0xff] }
 0x2fa   :  { %1936 = vmatpush.msra.mxu0 %v6046_v52  ;;  %1976 = vmatpush.msrb.mxu2 %v6049_v55  ;;  %v1742_v55 = vand.u32 2147483647, %v1732_v58  ;;  %v6566_v29 = vld [vmem:[#allocation9 + $0x1b8] sm:$0xff] }
 0x2fb   :  { %3717 = vtanh.f32 %v1749_v61  ;;  %v9337_v61 = vld [vmem:[#allocation177_spill] sm:$0xff] }
 0x2fc   :  { %1937 = vmatpush.msra.mxu0 %v6052_v43  ;;  %1977 = vmatpush.msrb.mxu2 %v6055_v57  ;;  %v1745_v57 = vor.u32 1.1754944e-38, %v1744_v5  ;;  %vm1743_vm5 = vcmp.eq.f32.partialorder %v1742_v55, 8.507059e+37  ;;  %v9340_v5 = vld [vmem:[#allocation180_spill] sm:$0xff]  ;;  %v6578_v55 = vld [vmem:[#allocation9 + $0x158] sm:$0xff] }
 0x2fe   :  { %v3716_v16 = vpop.eup %3715  ;;  %1938 = vmatpush.msra.mxu0 %v6058_v37  ;;  %1978 = vmatpush.msrb.mxu2 %v6061_v48 }
 0x2ff   :  { %v1734_v54 = vmul.f32 %v3716_v16, %v1732_v58  ;;  %1871 = vmatmul.f32.vlgmr.msrb.gmra.mxu0 %v6447_v44  ;;  %1911 = vmatmul.f32.vlgmr.msra.gmra.mxu2 %v6447_v44  ;;  %vm1739_vm0 = vweird.f32 %v3716_v16  ;;  %v9332_v58 = vld [vmem:[#allocation175_spill] sm:$0xff] }
 0x300   :  { %1939 = vmatpush.msra.mxu0 %v6066_v28  ;;  %1979 = vmatpush.msrb.mxu2 %v6069_v47  ;;  %vm1740_vm2 = vmor %vm1738_vm1, %vm1739_vm0 }
 0x301   :  { %v1735_v45 = vsub.f32 1.0, %v1734_v54  ;;  %v3718_v47 = vpop.eup %3717  ;;  %v6572_v54 = vld [vmem:[#allocation9 + $0x188] sm:$0xff] }
 0x302   :  { %1940 = vmatpush.msra.mxu0 %v6072_v9  ;;  %1980 = vmatpush.msrb.mxu2 %v6075_v31  ;;  %v6477_v9 = vpop.permute.xlu2 %1765 }
 0x303   :  { %v1736_v52 = vmul.f32 %v3716_v16, %v1735_v45  ;;  %9308 = vst [vmem:[#allocation59_spill] sm:$0xff] %v6477_v9  ;;  %vm1767_vm6 = vcmp.eq.s32.totalorder %v6477_v9, 1  ;;  %v9339_v45 = vld [vmem:[#allocation179_spill] sm:$0xff]  ;;  %v6722_v9 = vld [vmem:[#allocation9 + $0x198] sm:$0xff] }
 0x304   :  { %1941 = vmatpush.msra.mxu0 %v6078_v30  ;;  %1981 = vmatpush.msrb.mxu2 %v6081_v35  ;;  %9382 = vst [vmem:[#allocation80_spill] sm:$0xff] %v6722_v9 }
 0x305   :  { %v1737_v43 = vadd.f32 %v3716_v16, %v1736_v52  ;;  %v9341_v52 = vld [vmem:[#allocation184_spill] sm:$0xff] }
 0x306   :  { %1942 = vmatpush.msra.mxu0 %v6084_v11  ;;  %1982 = vmatpush.msrb.mxu2 %v6087_v32  ;;  %v6496_v32 = vld [vmem:[#allocation9 + $0x5f8] sm:$0xff] }
 0x307   :  { %v1741_v37 = vsel %vm1740_vm2, %v3716_v16, %v1737_v43  ;;  %v9338_v16 = vld [vmem:[#allocation181_spill] sm:$0xff]  ;;  %v9342_v43 = vld [vmem:[#allocation182_spill] sm:$0xff] }
 0x308   :  { %v1746_v48 = vsel %vm1743_vm5, %v1745_v57, %v1741_v37  ;;  %1943 = vmatpush.msra.mxu0 %v6095_v63  ;;  %1983 = vmatpush.msrb.mxu2 %v6098_v56  ;;  %v9311_v63 = vld [vmem:[#allocation153_spill] sm:$0xff]  ;;  %v9312_v56 = vld [vmem:[#allocation46_spill] sm:$0xff]  ;;  %v9343_v57 = vld [vmem:[#allocation183_spill] sm:$0xff] }
 0x309   :  { %v1751_v28 = vsub.f32 1.0, %v1746_v48  ;;  %v1753_v30 = vmul.f32 %v1746_v48, %v6123_v39  ;;  %v9344_v37 = vld [vmem:[#allocation187_spill] sm:$0xff]  ;;  %v6584_v48 = vld [vmem:[#allocation9 + $0x128] sm:$0xff] }
 0x30a   :  { %1944 = vmatpush.msra.mxu0 %v6102_v36  ;;  %1984 = vmatpush.msrb.mxu2 %v6105_v0  ;;  %v6502_v36 = vld [vmem:[#allocation9 + $0x5c8] sm:$0xff]  ;;  %v9313_v0 = vld [vmem:[#allocation154_spill] sm:$0xff] }
 0x30b   :  { %v1752_v31 = vmul.f32 %v3718_v47, %v1751_v28  ;;  %v9345_v28 = vld [vmem:[#allocation185_spill] sm:$0xff]  ;;  %v9346_v47 = vld [vmem:[#allocation186_spill] sm:$0xff] }
 0x30c   :  { %1945 = vmatpush.msra.mxu0 %v6113_v33  ;;  %1985 = vmatpush.msrb.mxu2 %v6116_v25  ;;  %v9310_v33 = vld [vmem:[#allocation31_spill] sm:$0xff]  ;;  %v6508_v25 = vld [vmem:[#allocation9 + $0x598] sm:$0xff] }
 0x30d   :  { %v6482_v35 = vadd.f32 %v1753_v30, %v1752_v31  ;;  %v6591_v31 = vld [vmem:[#allocation9 + $0xf0] sm:$0xff]  ;;  %v6594_v30 = vld [vmem:[#allocation9 + $0xf8] sm:$0xff] }
 0x30e   :  { %1946 = vmatpush.msra.mxu0 %v6127_v20  ;;  %1986 = vmatpush.msrb.mxu2 %v6133_v8  ;;  %v9316_v20 = vld [vmem:[#allocation156_spill] sm:$0xff] }
 0x30f   :  { %9309 = vst [vmem:[#allocation60_spill] sm:$0xff] %v6482_v35  ;;  %v6491_v11 = vsel %vm1767_vm6, %v6482_v35, %v6123_v39  ;;  %v9314_v39 = vld [vmem:[#allocation155_spill] sm:$0xff]  ;;  %v6514_v8 = vld [vmem:[#allocation9 + $0x568] sm:$0xff]  ;;  %v6725_v35 = vld [vmem:[#allocation9 + $0x390] sm:$0xff] }
 0x310   :  { %1811 = vmatmul.f32.vlgmr.msra.gmra.mxu1 %v6491_v11  ;;  %1851 = vmatmul.f32.vlgmr.msrb.gmra.mxu3 %v6491_v11  ;;  %9383 = vst [vmem:[#allocation73_spill] sm:$0xff] %v6725_v35 }
 0x311   :  { %1955 = vmatpush.msra.mxu1 %v9310_v33  ;;  %1995 = vmatpush.msrb.mxu3 %v6496_v32  ;;  %v9347_v33 = vld [vmem:[#allocation188_spill] sm:$0xff] }
 0x312   :  { %1947 = vmatpush.msra.mxu0 %v6137_v1  ;;  %1987 = vmatpush.msrb.mxu2 %v9311_v63  ;;  %v9315_v1 = vld [vmem:[#allocation157_spill] sm:$0xff]  ;;  %v6598_v63 = vld [vmem:[#allocation9 + $0x5d8] sm:$0xff] }
 0x313   :  { %1956 = vmatpush.msra.mxu1 %v9312_v56  ;;  %1996 = vmatpush.msrb.mxu3 %v6502_v36  ;;  %v6601_v56 = vld [vmem:[#allocation9 + $0xc0] sm:$0xff] }
 0x314   :  { %1948 = vmatpush.msra.mxu0 %v6147_v2  ;;  %1988 = vmatpush.msrb.mxu2 %v6153_v38  ;;  %v9317_v2 = vld [vmem:[#allocation158_spill] sm:$0xff]  ;;  %v9318_v38 = vld [vmem:[#allocation159_spill] sm:$0xff] }
 0x315   :  { %1957 = vmatpush.msra.mxu1 %v9313_v0  ;;  %1997 = vmatpush.msrb.mxu3 %v6508_v25  ;;  %v6604_v0 = vld [vmem:[#allocation9 + $0xc8] sm:$0xff] }
 0x316   :  { %1949 = vmatpush.msra.mxu0 %v9314_v39  ;;  %1989 = vmatpush.msrb.mxu2 %v9315_v1  ;;  %v9348_v39 = vld [vmem:[#allocation189_spill] sm:$0xff]  ;;  %v6608_v1 = vld [vmem:[#allocation9 + $0x5a8] sm:$0xff] }
 0x317   :  { %1958 = vmatpush.msra.mxu1 %v9316_v20  ;;  %1998 = vmatpush.msrb.mxu3 %v6514_v8  ;;  %v6611_v20 = vld [vmem:[#allocation9 + $0x90] sm:$0xff] }
 0x318   :  { %1891 = vmatmul.f32.vlgmr.msrb.gmra.mxu1 %v6491_v11  ;;  %1931 = vmatmul.f32.vlgmr.msra.gmra.mxu3 %v6491_v11 }
 0x319   :  { %1950 = vmatpush.msra.mxu0 %v9317_v2  ;;  %1959 = vmatpush.msra.mxu1 %v9318_v38  ;;  %v6614_v2 = vld [vmem:[#allocation9 + $0x98] sm:$0xff] }
 0x31a   :  { %1990 = vmatpush.msrb.mxu2 %v9319_v24  ;;  %1999 = vmatpush.msrb.mxu3 %v6522_v41  ;;  %v9349_v38 = vld [vmem:[#allocation190_spill] sm:$0xff] }
 0x31b   :  { %1951 = vmatmul.f32.vlgmr.msra.gmra.mxu0 %v6447_v44  ;;  %1991 = vmatmul.f32.vlgmr.msrb.gmra.mxu2 %v6447_v44  ;;  %v6618_v24 = vld [vmem:[#allocation9 + $0x578] sm:$0xff] }
 0x31c   :  { %1960 = vmatpush.msra.mxu1 %v9320_v23  ;;  %2000 = vmatpush.msrb.mxu3 %v6188_v21  ;;  %v9325_v21 = vld [vmem:[#allocation166_spill] sm:$0xff]  ;;  %v6621_v23 = vld [vmem:[#allocation9 + $0x60] sm:$0xff] }
 0x31d   :  { %2137 = vmatpush.msrb.mxu0 %v9321_v3  ;;  %2177 = vmatpush.msra.mxu2 %v6530_v49  ;;  %v6624_v3 = vld [vmem:[#allocation9 + $0x68] sm:$0xff] }
 0x31e   :  { %1961 = vmatpush.msra.mxu1 %v9322_v40  ;;  %2001 = vmatpush.msrb.mxu3 %v6197_v34  ;;  %v6548_v34 = vld [vmem:[#allocation9 + $0x248] sm:$0xff]  ;;  %v9350_v40 = vld [vmem:[#allocation191_spill] sm:$0xff] }
 0x31f   :  { %2138 = vmatpush.msrb.mxu0 %v9323_v53  ;;  %2178 = vmatpush.msra.mxu2 %v6536_v18  ;;  %v6628_v53 = vld [vmem:[#allocation9 + $0x548] sm:$0xff] }
 0x320   :  { %1962 = vmatpush.msra.mxu1 %v9324_v14  ;;  %2002 = vmatpush.msrb.mxu3 %v6207_v60  ;;  %v9329_v60 = vld [vmem:[#allocation172_spill] sm:$0xff]  ;;  %v6631_v14 = vld [vmem:[#allocation9 + $0x30] sm:$0xff] }
 0x321   :  { %2139 = vmatpush.msrb.mxu0 %v9325_v21  ;;  %2179 = vmatpush.msra.mxu2 %v6542_v46  ;;  %v6634_v21 = vld [vmem:[#allocation9 + $0x38] sm:$0xff] }
 0x322   :  { %1963 = vmatpush.msra.mxu1 %v6214_v4  ;;  %2003 = vmatpush.msrb.mxu3 %v9326_v10  ;;  %v9331_v4 = vld [vmem:[#allocation171_spill] sm:$0xff]  ;;  %v9351_v10 = vld [vmem:[#allocation192_spill] sm:$0xff] }
 0x323   :  { %2140 = vmatpush.msrb.mxu0 %v6222_v22  ;;  %2180 = vmatpush.msra.mxu2 %v6548_v34  ;;  %v6560_v22 = vld [vmem:[#allocation9 + $0x1e8] sm:$0xff] }
 0x324   :  { %1964 = vmatpush.msra.mxu1 %v9327_v50  ;;  %2004 = vmatpush.msrb.mxu3 %v9328_v13  ;;  %v6638_v50 = vld [vmem:[#allocation9 + $0x518] sm:$0xff]  ;;  %v6641_v13 = vld [vmem:[#allocation9] sm:$0xff] }
 0x325   :  { %2141 = vmatpush.msrb.mxu0 %v9329_v60  ;;  %2181 = vmatpush.msra.mxu2 %v6554_v26  ;;  %v6644_v60 = vld [vmem:[#allocation9 + $0x8] sm:$0xff] }
 0x326   :  { %1965 = vmatpush.msra.mxu1 %v9330_v6  ;;  %2005 = vmatpush.msrb.mxu3 %v9331_v4  ;;  %9352 = vst [vmem:[#allocation44_spill] sm:$0xff] %v6644_v60  ;;  %v6647_v6 = vld [vmem:[#allocation9 + $0x2e0] sm:$0xff]  ;;  %v6650_v4 = vld [vmem:[#allocation9 + $0x2e8] sm:$0xff] }
 0x327   :  { %2142 = vmatpush.msrb.mxu0 %v9332_v58  ;;  %2182 = vmatpush.msra.mxu2 %v6560_v22  ;;  %9353 = vst [vmem:[#allocation48_spill] sm:$0xff] %v6647_v6  ;;  %v9355_v58 = vld [vmem:[#allocation52_spill] sm:$0xff] }
 0x328   :  { %1966 = vmatpush.msra.mxu1 %v9333_v27  ;;  %2006 = vmatpush.msrb.mxu3 %v9334_v12  ;;  %9354 = vst [vmem:[#allocation58_spill] sm:$0xff] %v6650_v4  ;;  %v6654_v27 = vld [vmem:[#allocation9 + $0x4e8] sm:$0xff]  ;;  %v6657_v12 = vld [vmem:[#allocation9 + $0x2b0] sm:$0xff] }
 0x329   :  { %2143 = vmatpush.msrb.mxu0 %v9335_v17  ;;  %2183 = vmatpush.msra.mxu2 %v6566_v29  ;;  %9356 = vst [vmem:[#allocation67_spill] sm:$0xff] %v6654_v27  ;;  %v6660_v17 = vld [vmem:[#allocation9 + $0x2b8] sm:$0xff] }
 0x32a   :  { %1967 = vmatpush.msra.mxu1 %v9336_v62  ;;  %2007 = vmatpush.msrb.mxu3 %v9337_v61  ;;  %9357 = vst [vmem:[#allocation71_spill] sm:$0xff] %v6657_v12  ;;  %v9359_v62 = vld [vmem:[#allocation38_spill] sm:$0xff] }
 0x32b   :  { %2144 = vmatpush.msrb.mxu0 %v9338_v16  ;;  %2184 = vmatpush.msra.mxu2 %v6572_v54  ;;  %9358 = vst [vmem:[#allocation63_spill] sm:$0xff] %v6660_v17  ;;  %v6664_v61 = vld [vmem:[#allocation9 + $0x4b8] sm:$0xff]  ;;  %v6667_v16 = vld [vmem:[#allocation9 + $0x280] sm:$0xff] }
 0x32c   :  { %1968 = vmatpush.msra.mxu1 %v9339_v45  ;;  %2008 = vmatpush.msrb.mxu3 %v9340_v5  ;;  %9360 = vst [vmem:[#allocation62_spill] sm:$0xff] %v6664_v61  ;;  %v6670_v45 = vld [vmem:[#allocation9 + $0x288] sm:$0xff]  ;;  %v9363_v5 = vld [vmem:[#allocation55_spill] sm:$0xff] }
 0x32d   :  { %2145 = vmatpush.msrb.mxu0 %v9341_v52  ;;  %2185 = vmatpush.msra.mxu2 %v6578_v55  ;;  %9361 = vst [vmem:[#allocation74_spill] sm:$0xff] %v6667_v16  ;;  %v6674_v52 = vld [vmem:[#allocation9 + $0x488] sm:$0xff] }
 0x32e   :  { %1969 = vmatpush.msra.mxu1 %v9342_v43  ;;  %2009 = vmatpush.msrb.mxu3 %v9343_v57  ;;  %9362 = vst [vmem:[#allocation51_spill] sm:$0xff] %v6670_v45  ;;  %v6677_v43 = vld [vmem:[#allocation9 + $0x250] sm:$0xff]  ;;  %v6680_v57 = vld [vmem:[#allocation9 + $0x258] sm:$0xff] }
 0x32f   :  { %2146 = vmatpush.msrb.mxu0 %v9344_v37  ;;  %2186 = vmatpush.msra.mxu2 %v6584_v48  ;;  %9364 = vst [vmem:[#allocation69_spill] sm:$0xff] %v6674_v52  ;;  %v9367_v37 = vld [vmem:[#allocation53_spill] sm:$0xff] }
 0x330   :  { %1970 = vmatpush.msra.mxu1 %v9345_v28  ;;  %2010 = vmatpush.msrb.mxu3 %v9346_v47  ;;  %9365 = vst [vmem:[#allocation57_spill] sm:$0xff] %v6677_v43  ;;  %v6684_v28 = vld [vmem:[#allocation9 + $0x458] sm:$0xff]  ;;  %v6687_v47 = vld [vmem:[#allocation9 + $0x220] sm:$0xff] }
 0x331   :  { %1971 = vmatmul.f32.vlgmr.msra.gmra.mxu1 %v6491_v11  ;;  %2011 = vmatmul.f32.vlgmr.msrb.gmra.mxu3 %v6491_v11  ;;  %9366 = vst [vmem:[#allocation54_spill] sm:$0xff] %v6680_v57 }
 0x332   :  { %2147 = vmatpush.msrb.mxu0 %v6591_v31  ;;  %2187 = vmatpush.msra.mxu2 %v6594_v30  ;;  %9368 = vst [vmem:[#allocation72_spill] sm:$0xff] %v6684_v28 }
 0x333   :  { %2157 = vmatpush.msrb.mxu1 %v9347_v33  ;;  %2197 = vmatpush.msra.mxu3 %v6598_v63  ;;  %9369 = vst [vmem:[#allocation77_spill] sm:$0xff] %v6687_v47  ;;  %v6690_v33 = vld [vmem:[#allocation9 + $0x228] sm:$0xff] }
 0x334   :  { %2148 = vmatpush.msrb.mxu0 %v6601_v56  ;;  %2188 = vmatpush.msra.mxu2 %v6604_v0  ;;  %9370 = vst [vmem:[#allocation64_spill] sm:$0xff] %v6690_v33 }
 0x335   :  { %2158 = vmatpush.msrb.mxu1 %v9348_v39  ;;  %2198 = vmatpush.msra.mxu3 %v6608_v1  ;;  %v9371_v39 = vld [vmem:[#allocation49_spill] sm:$0xff] }
 0x336   :  { %2149 = vmatpush.msrb.mxu0 %v6611_v20  ;;  %2189 = vmatpush.msra.mxu2 %v6614_v2 }
 0x337   :  { %2159 = vmatpush.msrb.mxu1 %v9349_v38  ;;  %2199 = vmatpush.msra.mxu3 %v6618_v24  ;;  %v6694_v38 = vld [vmem:[#allocation9 + $0x428] sm:$0xff] }
 0x338   :  { %2150 = vmatpush.msrb.mxu0 %v6621_v23  ;;  %2190 = vmatpush.msra.mxu2 %v6624_v3  ;;  %9372 = vst [vmem:[#allocation75_spill] sm:$0xff] %v6694_v38 }
 0x339   :  { %2160 = vmatpush.msrb.mxu1 %v9350_v40  ;;  %2200 = vmatpush.msra.mxu3 %v6628_v53  ;;  %v6697_v40 = vld [vmem:[#allocation9 + $0x1f0] sm:$0xff] }
 0x33a   :  { %2151 = vmatpush.msrb.mxu0 %v6631_v14  ;;  %2191 = vmatpush.msra.mxu2 %v6634_v21  ;;  %9373 = vst [vmem:[#allocation61_spill] sm:$0xff] %v6697_v40 }
 0x33b   :  { %2161 = vmatpush.msrb.mxu1 %v9351_v10  ;;  %2201 = vmatpush.msra.mxu3 %v6638_v50  ;;  %v6700_v10 = vld [vmem:[#allocation9 + $0x1f8] sm:$0xff] }
 0x33c   :  { %2152 = vmatpush.msrb.mxu0 %v6641_v13  ;;  %2192 = vmatpush.msra.mxu2 %v6644_v60  ;;  %9374 = vst [vmem:[#allocation122_spill] sm:$0xff] %v6700_v10 }
 0x33d   :  { %2162 = vmatpush.msrb.mxu1 %v9355_v58  ;;  %2202 = vmatpush.msra.mxu3 %v6654_v27  ;;  %v9375_v58 = vld [vmem:[#allocation41_spill] sm:$0xff] }
 0x33e   :  { %2217 = vmatpush.msra.mxu0 %v6647_v6  ;;  %2257 = vmatpush.msrb.mxu2 %v6650_v4 }
 0x33f   :  { %2163 = vmatpush.msrb.mxu1 %v9359_v62  ;;  %2203 = vmatpush.msra.mxu3 %v6664_v61  ;;  %v6704_v62 = vld [vmem:[#allocation9 + $0x3f8] sm:$0xff] }
 0x340   :  { %2218 = vmatpush.msra.mxu0 %v6657_v12  ;;  %2258 = vmatpush.msrb.mxu2 %v6660_v17  ;;  %9376 = vst [vmem:[#allocation78_spill] sm:$0xff] %v6704_v62 }
 0x341   :  { %2164 = vmatpush.msrb.mxu1 %v9363_v5  ;;  %2204 = vmatpush.msra.mxu3 %v6674_v52  ;;  %v6707_v5 = vld [vmem:[#allocation9 + $0x1c0] sm:$0xff]  ;;  %v9443_v52 = vld [vmem:[#allocation26_spill] sm:$0xff] }
 0x342   :  { %2219 = vmatpush.msra.mxu0 %v6667_v16  ;;  %2259 = vmatpush.msrb.mxu2 %v6670_v45  ;;  %9377 = vst [vmem:[#allocation81_spill] sm:$0xff] %v6707_v5 }
 0x343   :  { %2165 = vmatpush.msrb.mxu1 %v9367_v37  ;;  %2205 = vmatpush.msra.mxu3 %v6684_v28  ;;  %v6710_v37 = vld [vmem:[#allocation9 + $0x1c8] sm:$0xff]  ;;  %v9442_v28 = vld [vmem:[#allocation37_spill] sm:$0xff] }
 0x344   :  { %2220 = vmatpush.msra.mxu0 %v6677_v43  ;;  %2260 = vmatpush.msrb.mxu2 %v6680_v57  ;;  %9378 = vst [vmem:[#allocation66_spill] sm:$0xff] %v6710_v37 }
 0x345   :  { %2166 = vmatpush.msrb.mxu1 %v9371_v39  ;;  %2206 = vmatpush.msra.mxu3 %v6694_v38  ;;  %v6713_v39 = vld [vmem:[#allocation9 + $0x3c0] sm:$0xff]  ;;  %v9441_v38 = vld [vmem:[#allocation136_spill] sm:$0xff] }
 0x346   :  { %2221 = vmatpush.msra.mxu0 %v6687_v47  ;;  %2261 = vmatpush.msrb.mxu2 %v6690_v33  ;;  %9379 = vst [vmem:[#allocation68_spill] sm:$0xff] %v6713_v39 }
 0x347   :  { %2167 = vmatpush.msrb.mxu1 %v9375_v58  ;;  %2207 = vmatpush.msra.mxu3 %v6704_v62  ;;  %v6719_v58 = vld [vmem:[#allocation9 + $0x190] sm:$0xff] }
 0x348   :  { %2222 = vmatpush.msra.mxu0 %v6697_v40  ;;  %2262 = vmatpush.msrb.mxu2 %v6700_v10  ;;  %9381 = vst [vmem:[#allocation65_spill] sm:$0xff] %v6719_v58  ;;  %v9440_v40 = vld [vmem:[#allocation24_spill] sm:$0xff] }
 0x349   :  { %2168 = vmatpush.msrb.mxu1 %v6713_v39  ;;  %2208 = vmatpush.msra.mxu3 %v6716_v59  ;;  %v6731_v39 = vld [vmem:[#allocation9 + $0x160] sm:$0xff]  ;;  %v6734_v59 = vld [vmem:[#allocation9 + $0x168] sm:$0xff] }
 0x34a   :  { %2223 = vmatpush.msra.mxu0 %v6707_v5  ;;  %2263 = vmatpush.msrb.mxu2 %v6710_v37  ;;  %v6728_v37 = vld [vmem:[#allocation9 + $0x398] sm:$0xff]  ;;  %9385 = vst [vmem:[#allocation70_spill] sm:$0xff] %v6731_v39  ;;  %v9439_v5 = vld [vmem:[#allocation33_spill] sm:$0xff] }
 0x34b   :  { %2169 = vmatpush.msrb.mxu1 %v6725_v35  ;;  %9384 = vst [vmem:[#allocation94_spill] sm:$0xff] %v6728_v37  ;;  %2209 = vmatpush.msra.mxu3 %v6728_v37  ;;  %v6743_v35 = vld [vmem:[#allocation9 + $0x130] sm:$0xff]  ;;  %v6746_v37 = vld [vmem:[#allocation9 + $0x138] sm:$0xff] }
 0x34c   :  { %2224 = vmatpush.msra.mxu0 %v6719_v58  ;;  %2264 = vmatpush.msrb.mxu2 %v6722_v9  ;;  %9386 = vst [vmem:[#allocation89_spill] sm:$0xff] %v6734_v59  ;;  %v6737_v58 = vld [vmem:[#allocation9 + $0x360] sm:$0xff]  ;;  %v6740_v9 = vld [vmem:[#allocation9 + $0x368] sm:$0xff] }
 0x34d   :  { %9387 = vst [vmem:[#allocation79_spill] sm:$0xff] %v6737_v58  ;;  %2170 = vmatpush.msrb.mxu1 %v6737_v58  ;;  %2210 = vmatpush.msra.mxu3 %v6740_v9  ;;  %v6755_v58 = vld [vmem:[#allocation9 + $0x100] sm:$0xff] }
 0x34e   :  { %2225 = vmatpush.msra.mxu0 %v6731_v39  ;;  %2265 = vmatpush.msrb.mxu2 %v6734_v59  ;;  %9388 = vst [vmem:[#allocation101_spill] sm:$0xff] %v6740_v9  ;;  %v6749_v39 = vld [vmem:[#allocation9 + $0x330] sm:$0xff]  ;;  %v6752_v59 = vld [vmem:[#allocation9 + $0x338] sm:$0xff]  ;;  %v6758_v9 = vld [vmem:[#allocation9 + $0x108] sm:$0xff] }
 0x34f   :  { %9389 = vst [vmem:[#allocation76_spill] sm:$0xff] %v6743_v35  ;;  %2171 = vmatpush.msrb.mxu1 %v6749_v39  ;;  %2211 = vmatpush.msra.mxu3 %v6752_v59 }
 0x350   :  { %2226 = vmatpush.msra.mxu0 %v6743_v35  ;;  %9390 = vst [vmem:[#allocation97_spill] sm:$0xff] %v6746_v37  ;;  %2266 = vmatpush.msrb.mxu2 %v6746_v37  ;;  %v6761_v35 = vld [vmem:[#allocation9 + $0x300] sm:$0xff]  ;;  %v6764_v37 = vld [vmem:[#allocation9 + $0x308] sm:$0xff] }
 0x351   :  { %9391 = vst [vmem:[#allocation105_spill] sm:$0xff] %v6749_v39  ;;  %2172 = vmatpush.msrb.mxu1 %v6761_v35  ;;  %2212 = vmatpush.msra.mxu3 %v6764_v37  ;;  %v6767_v39 = vld [vmem:[#allocation9 + $0xd0] sm:$0xff] }
 0x352   :  { %9392 = vst [vmem:[#allocation110_spill] sm:$0xff] %v6752_v59  ;;  %2227 = vmatpush.msra.mxu0 %v6755_v58  ;;  %2267 = vmatpush.msrb.mxu2 %v6758_v9  ;;  %v6770_v59 = vld [vmem:[#allocation9 + $0x5e0] sm:$0xff] }
 0x353   :  { %9393 = vst [vmem:[#allocation82_spill] sm:$0xff] %v6755_v58  ;;  %2237 = vmatpush.msra.mxu1 %v6770_v59  ;;  %v6773_v58 = vld [vmem:[#allocation9 + $0xd8] sm:$0xff] }
 0x354   :  { %9394 = vst [vmem:[#allocation86_spill] sm:$0xff] %v6758_v9  ;;  %2228 = vmatpush.msra.mxu0 %v6767_v39  ;;  %2268 = vmatpush.msrb.mxu2 %v6773_v58  ;;  %v6776_v9 = vld [vmem:[#allocation9 + $0x5e8] sm:$0xff] }
 0x355   :  { %9395 = vst [vmem:[#allocation113_spill] sm:$0xff] %v6761_v35  ;;  %2277 = vmatpush.msrb.mxu3 %v6776_v9  ;;  %v6779_v35 = vld [vmem:[#allocation9 + $0xa0] sm:$0xff] }
 0x356   :  { %9396 = vst [vmem:[#allocation117_spill] sm:$0xff] %v6764_v37  ;;  %2229 = vmatpush.msra.mxu0 %v6779_v35  ;;  %v6782_v37 = vld [vmem:[#allocation9 + $0x5b0] sm:$0xff] }
 0x357   :  { %9397 = vst [vmem:[#allocation90_spill] sm:$0xff] %v6767_v39  ;;  %2238 = vmatpush.msra.mxu1 %v6782_v37  ;;  %v6785_v39 = vld [vmem:[#allocation9 + $0xa8] sm:$0xff] }
 0x358   :  { %9398 = vst [vmem:[#allocation93_spill] sm:$0xff] %v6770_v59  ;;  %2269 = vmatpush.msrb.mxu2 %v6785_v39  ;;  %v6788_v59 = vld [vmem:[#allocation9 + $0x5b8] sm:$0xff] }
 0x359   :  { %9399 = vst [vmem:[#allocation121_spill] sm:$0xff] %v6773_v58  ;;  %2278 = vmatpush.msrb.mxu3 %v6788_v59  ;;  %v6791_v58 = vld [vmem:[#allocation9 + $0x70] sm:$0xff] }
 0x35a   :  { %9400 = vst [vmem:[#allocation126_spill] sm:$0xff] %v6776_v9  ;;  %2230 = vmatpush.msra.mxu0 %v6791_v58  ;;  %v6794_v9 = vld [vmem:[#allocation9 + $0x580] sm:$0xff] }
 0x35b   :  { %9401 = vst [vmem:[#allocation99_spill] sm:$0xff] %v6779_v35  ;;  %2239 = vmatpush.msra.mxu1 %v6794_v9  ;;  %v6797_v35 = vld [vmem:[#allocation9 + $0x78] sm:$0xff] }
 0x35c   :  { %9402 = vst [vmem:[#allocation103_spill] sm:$0xff] %v6782_v37  ;;  %2270 = vmatpush.msrb.mxu2 %v6797_v35  ;;  %v6800_v37 = vld [vmem:[#allocation9 + $0x588] sm:$0xff] }
 0x35d   :  { %9403 = vst [vmem:[#allocation130_spill] sm:$0xff] %v6785_v39  ;;  %2279 = vmatpush.msrb.mxu3 %v6800_v37  ;;  %v6803_v39 = vld [vmem:[#allocation9 + $0x40] sm:$0xff] }
 0x35e   :  { %9404 = vst [vmem:[#allocation115_spill] sm:$0xff] %v6788_v59  ;;  %2231 = vmatpush.msra.mxu0 %v6803_v39  ;;  %v6806_v59 = vld [vmem:[#allocation9 + $0x550] sm:$0xff] }
 0x35f   :  { %9405 = vst [vmem:[#allocation107_spill] sm:$0xff] %v6791_v58  ;;  %2240 = vmatpush.msra.mxu1 %v6806_v59  ;;  %v6809_v58 = vld [vmem:[#allocation9 + $0x48] sm:$0xff] }
 0x360   :  { %9406 = vst [vmem:[#allocation111_spill] sm:$0xff] %v6794_v9  ;;  %2271 = vmatpush.msrb.mxu2 %v6809_v58  ;;  %v6812_v9 = vld [vmem:[#allocation9 + $0x558] sm:$0xff] }
 0x361   :  { %9407 = vst [vmem:[#allocation119_spill] sm:$0xff] %v6797_v35  ;;  %2280 = vmatpush.msrb.mxu3 %v6812_v9  ;;  %v6815_v35 = vld [vmem:[#allocation9 + $0x10] sm:$0xff] }
 0x362   :  { %9408 = vst [vmem:[#allocation91_spill] sm:$0xff] %v6800_v37  ;;  %2232 = vmatpush.msra.mxu0 %v6815_v35  ;;  %v6818_v37 = vld [vmem:[#allocation9 + $0x520] sm:$0xff] }
 0x363   :  { %9409 = vst [vmem:[#allocation83_spill] sm:$0xff] %v6803_v39  ;;  %2241 = vmatpush.msra.mxu1 %v6818_v37  ;;  %v6821_v39 = vld [vmem:[#allocation9 + $0x18] sm:$0xff] }
 0x364   :  { %9410 = vst [vmem:[#allocation87_spill] sm:$0xff] %v6806_v59  ;;  %2272 = vmatpush.msrb.mxu2 %v6821_v39  ;;  %v6824_v59 = vld [vmem:[#allocation9 + $0x528] sm:$0xff] }
 0x365   :  { %9411 = vst [vmem:[#allocation95_spill] sm:$0xff] %v6809_v58  ;;  %2281 = vmatpush.msrb.mxu3 %v6824_v59  ;;  %v6827_v58 = vld [vmem:[#allocation9 + $0x4f0] sm:$0xff] }
 0x366   :  { %9412 = vst [vmem:[#allocation98_spill] sm:$0xff] %v6812_v9  ;;  %2242 = vmatpush.msra.mxu1 %v6827_v58  ;;  %v6830_v9 = vld [vmem:[#allocation9 + $0x4f8] sm:$0xff] }
 0x367   :  { %9413 = vst [vmem:[#allocation102_spill] sm:$0xff] %v6815_v35  ;;  %2282 = vmatpush.msrb.mxu3 %v6830_v9  ;;  %v6833_v35 = vld [vmem:[#allocation9 + $0x4c0] sm:$0xff] }
 0x368   :  { %9414 = vst [vmem:[#allocation84_spill] sm:$0xff] %v6818_v37  ;;  %2243 = vmatpush.msra.mxu1 %v6833_v35  ;;  %v6836_v37 = vld [vmem:[#allocation9 + $0x4c8] sm:$0xff] }
 0x369   :  { %9415 = vst [vmem:[#allocation106_spill] sm:$0xff] %v6821_v39  ;;  %2283 = vmatpush.msrb.mxu3 %v6836_v37  ;;  %v6839_v39 = vld [vmem:[#allocation9 + $0x490] sm:$0xff] }
 0x36a   :  { %9416 = vst [vmem:[#allocation88_spill] sm:$0xff] %v6824_v59  ;;  %2244 = vmatpush.msra.mxu1 %v6839_v39  ;;  %v6842_v59 = vld [vmem:[#allocation9 + $0x498] sm:$0xff] }
 0x36b   :  { %9417 = vst [vmem:[#allocation109_spill] sm:$0xff] %v6827_v58  ;;  %2284 = vmatpush.msrb.mxu3 %v6842_v59  ;;  %v6845_v58 = vld [vmem:[#allocation9 + $0x460] sm:$0xff] }
 0x36c   :  { %9418 = vst [vmem:[#allocation92_spill] sm:$0xff] %v6830_v9  ;;  %2245 = vmatpush.msra.mxu1 %v6845_v58  ;;  %v6848_v9 = vld [vmem:[#allocation9 + $0x468] sm:$0xff] }
 0x36d   :  { %9419 = vst [vmem:[#allocation114_spill] sm:$0xff] %v6833_v35  ;;  %2285 = vmatpush.msrb.mxu3 %v6848_v9  ;;  %v6851_v35 = vld [vmem:[#allocation9 + $0x430] sm:$0xff] }
 0x36e   :  { %9420 = vst [vmem:[#allocation96_spill] sm:$0xff] %v6836_v37  ;;  %2246 = vmatpush.msra.mxu1 %v6851_v35  ;;  %v6854_v37 = vld [vmem:[#allocation9 + $0x438] sm:$0xff] }
 0x36f   :  { %9421 = vst [vmem:[#allocation118_spill] sm:$0xff] %v6839_v39  ;;  %2286 = vmatpush.msrb.mxu3 %v6854_v37  ;;  %v6857_v39 = vld [vmem:[#allocation9 + $0x400] sm:$0xff] }
 0x370   :  { %9422 = vst [vmem:[#allocation100_spill] sm:$0xff] %v6842_v59  ;;  %2247 = vmatpush.msra.mxu1 %v6857_v39  ;;  %v6860_v59 = vld [vmem:[#allocation9 + $0x408] sm:$0xff] }
 0x371   :  { %9423 = vst [vmem:[#allocation123_spill] sm:$0xff] %v6845_v58  ;;  %2287 = vmatpush.msrb.mxu3 %v6860_v59  ;;  %v6863_v58 = vld [vmem:[#allocation9 + $0x3d0] sm:$0xff] }
 0x372   :  { %9424 = vst [vmem:[#allocation104_spill] sm:$0xff] %v6848_v9  ;;  %2248 = vmatpush.msra.mxu1 %v6863_v58  ;;  %v6866_v9 = vld [vmem:[#allocation9 + $0x3d8] sm:$0xff] }
 0x373   :  { %9425 = vst [vmem:[#allocation127_spill] sm:$0xff] %v6851_v35  ;;  %2288 = vmatpush.msrb.mxu3 %v6866_v9  ;;  %v6869_v35 = vld [vmem:[#allocation9 + $0x3a0] sm:$0xff] }
 0x374   :  { %9426 = vst [vmem:[#allocation108_spill] sm:$0xff] %v6854_v37  ;;  %2249 = vmatpush.msra.mxu1 %v6869_v35  ;;  %v6872_v37 = vld [vmem:[#allocation9 + $0x3a8] sm:$0xff] }
 0x375   :  { %9427 = vst [vmem:[#allocation112_spill] sm:$0xff] %v6857_v39  ;;  %2289 = vmatpush.msrb.mxu3 %v6872_v37  ;;  %v6875_v39 = vld [vmem:[#allocation9 + $0x370] sm:$0xff] }
 0x376   :  { %9428 = vst [vmem:[#allocation116_spill] sm:$0xff] %v6860_v59  ;;  %2250 = vmatpush.msra.mxu1 %v6875_v39  ;;  %v6878_v59 = vld [vmem:[#allocation9 + $0x378] sm:$0xff] }
 0x377   :  { %9429 = vst [vmem:[#allocation120_spill] sm:$0xff] %v6863_v58  ;;  %2290 = vmatpush.msrb.mxu3 %v6878_v59  ;;  %v6881_v58 = vld [vmem:[#allocation9 + $0x340] sm:$0xff] }
 0x378   :  { %9430 = vst [vmem:[#allocation124_spill] sm:$0xff] %v6866_v9  ;;  %2251 = vmatpush.msra.mxu1 %v6881_v58  ;;  %v6884_v9 = vld [vmem:[#allocation9 + $0x348] sm:$0xff] }
 0x379   :  { %9431 = vst [vmem:[#allocation139_spill] sm:$0xff] %v6869_v35  ;;  %2291 = vmatpush.msrb.mxu3 %v6884_v9  ;;  %v6887_v35 = vld [vmem:[#allocation9 + $0x310] sm:$0xff] }
 0x37a   :  { %9432 = vst [vmem:[#allocation152_spill] sm:$0xff] %v6872_v37  ;;  %2252 = vmatpush.msra.mxu1 %v6887_v35  ;;  %v6890_v37 = vld [vmem:[#allocation9 + $0x318] sm:$0xff] }
 0x37b   :  { %9433 = vst [vmem:[#allocation132_spill] sm:$0xff] %v6875_v39  ;;  %2292 = vmatpush.msrb.mxu3 %v6890_v37  ;;  %v1792_v39 = vpop.f32.mrf.mxu0 }
 0x37c   :  { %9434 = vst [vmem:[#allocation134_spill] sm:$0xff] %v6878_v59  ;;  %v1793_v62 = vadd.f32 %v1792_v39, %v9439_v5  ;;  %v1832_v59 = vpop.f32.mrf.mxu2  ;;  %v9445_v5 = vld [vmem:[#allocation39_spill] sm:$0xff] }
 0x37d   :  { %9435 = vst [vmem:[#allocation150_spill] sm:$0xff] %v6881_v58  ;;  %v219_v58 = vadd.f32 %v9441_v38, %v9440_v40 }
 0x37e   :  { %9436 = vst [vmem:[#allocation135_spill] sm:$0xff] %v6884_v9  ;;  %v1833_v9 = vadd.f32 %v1832_v59, %v9442_v28 }
 0x37f   :  { %9437 = vst [vmem:[#allocation35_spill] sm:$0xff] %v6887_v35  ;;  %v9444_v35 = vld [vmem:[#allocation138_spill] sm:$0xff] }
 0x380   :  { %9438 = vst [vmem:[#allocation28_spill] sm:$0xff] %v6890_v37  ;;  %v260_v45 = vadd.f32 %v9444_v35, %v9443_v52 }
 0x384   :  { %v1912_v61 = vpop.f32.mrf.mxu2 }
 0x385   :  { %v1913_v12 = vadd.f32 %v1912_v61, %v9445_v5 }
 0x38d   :  { %v1812_v10 = vpop.f32.mrf.mxu1 }
 0x38e   :  { %v1813_v33 = vadd.f32 %v1812_v10, %v1793_v62  ;;  %v9446_v10 = vld [vmem:[#allocation43_spill] sm:$0xff] }
 0x390   :  { %v2023_v47 = vadd.f32 %v1813_v33, %v219_v58  ;;  %v9447_v33 = vld [vmem:[#allocation146_spill] sm:$0xff] }
 0x391   :  { %v345_v62 = vadd.f32 %v9447_v33, %v9446_v10 }
 0x392   :  { %v3625_v57 = vmul.f32 -1.442695, %v2023_v47 }
 0x393   :  { %v1852_v43 = vpop.f32.mrf.mxu3 }
 0x394   :  { %3719 = vpow2.f32 %v3625_v57  ;;  %v1853_v16 = vadd.f32 %v1852_v43, %v1833_v9  ;;  %v1872_v57 = vpop.f32.mrf.mxu0 }
 0x396   :  { %v2043_v37 = vadd.f32 %v1853_v16, %v260_v45  ;;  %v1892_v45 = vpop.f32.mrf.mxu1 }
 0x398   :  { %v3626_v17 = vmul.f32 -1.442695, %v2043_v37 }
 0x39a   :  { %v3720_v39 = vpop.eup %3719  ;;  %3721 = vpow2.f32 %v3626_v17 }
 0x39b   :  { %v2027_v27 = vadd.f32 1.0, %v3720_v39  ;;  %v1932_v38 = vpop.f32.mrf.mxu3 }
 0x39c   :  { %v1933_v59 = vadd.f32 %v1932_v38, %v1913_v12  ;;  %v9448_v12 = vld [vmem:[#allocation42_spill] sm:$0xff] }
 0x39d   :  { %3723 = vrcp.f32 %v2027_v27  ;;  %v2039_v61 = vand.u32 2147483648, %v2027_v27  ;;  %v2037_v39 = vand.u32 2147483647, %v2027_v27  ;;  %v1873_v38 = vadd.f32 %v1872_v57, %v9448_v12 }
 0x39e   :  { %v2070_v47 = vadd.f32 %v1933_v59, %v345_v62  ;;  %vm2033_vm8 = vweird.f32 %v2027_v27 }
 0x39f   :  { %v1893_v10 = vadd.f32 %v1892_v45, %v1873_v38  ;;  %vm2038_vm10 = vcmp.eq.f32.partialorder %v2037_v39, 8.507059e+37 }
 0x3a0   :  { %v3722_v58 = vpop.eup %3721  ;;  %v3627_v28 = vmul.f32 -1.442695, %v2070_v47  ;;  %v1952_v47 = vpop.f32.mrf.mxu0 }
 0x3a1   :  { %v2047_v35 = vadd.f32 1.0, %v3722_v58  ;;  %v1953_v4 = vadd.f32 %v1952_v47, %v9304_v42 }
 0x3a2   :  { %3725 = vpow2.f32 %v3627_v28  ;;  %v2040_v28 = vor.u32 1.1754944e-38, %v2039_v61 }
 0x3a3   :  { %v3724_v9 = vpop.eup %3723  ;;  %3727 = vrcp.f32 %v2047_v35  ;;  %v2059_v57 = vand.u32 2147483648, %v2047_v35  ;;  %v2057_v61 = vand.u32 2147483647, %v2047_v35  ;;  %vm2053_vm15 = vweird.f32 %v2047_v35 }
 0x3a4   :  { %v2029_v16 = vmul.f32 %v3724_v9, %v2027_v27  ;;  %vm2034_vm7 = vweird.f32 %v3724_v9  ;;  %v9450_v27 = vld [vmem:[#allocation40_spill] sm:$0xff] }
 0x3a5   :  { %vm2035_vm9 = vmor %vm2033_vm8, %vm2034_vm7  ;;  %v386_v6 = vadd.f32 %v9450_v27, %v5519_v15  ;;  %vm2058_vm1 = vcmp.eq.f32.partialorder %v2057_v61, 8.507059e+37 }
 0x3a6   :  { %v2030_v43 = vsub.f32 1.0, %v2029_v16  ;;  %v9449_v16 = vld [vmem:[#allocation140_spill] sm:$0xff] }
 0x3a8   :  { %v3726_v17 = vpop.eup %3725  ;;  %v2031_v37 = vmul.f32 %v3724_v9, %v2030_v43  ;;  %v301_v43 = vadd.f32 %v9449_v16, %v9153_v7 }
 0x3a9   :  { %v3728_v5 = vpop.eup %3727  ;;  %v2074_v33 = vadd.f32 1.0, %v3726_v17 }
 0x3aa   :  { %v2049_v62 = vmul.f32 %v3728_v5, %v2047_v35  ;;  %v2032_v59 = vadd.f32 %v3724_v9, %v2031_v37  ;;  %vm2054_vm14 = vweird.f32 %v3728_v5 }
 0x3ab   :  { %3729 = vrcp.f32 %v2074_v33  ;;  %vm2055_vm0 = vmor %vm2053_vm15, %vm2054_vm14  ;;  %vm2080_vm5 = vweird.f32 %v2074_v33 }
 0x3ac   :  { %v2050_v58 = vsub.f32 1.0, %v2049_v62  ;;  %v2036_v52 = vsel %vm2035_vm9, %v3724_v9, %v2032_v59  ;;  %v2060_v62 = vor.u32 1.1754944e-38, %v2059_v57 }
 0x3ad   :  { %v2041_v40 = vsel %vm2038_vm10, %v2040_v28, %v2036_v52 }
 0x3ae   :  { %v2051_v17 = vmul.f32 %v3728_v5, %v2050_v58  ;;  %v2063_v12 = vmul.f32 %v2041_v40, %v1893_v10  ;;  %v1972_v37 = vpop.f32.mrf.mxu1  ;;  %v1992_v10 = vpop.f32.mrf.mxu2  ;;  %v2086_v58 = vand.u32 2147483648, %v2074_v33 }
 0x3af   :  { %v1973_v60 = vadd.f32 %v1972_v37, %v1953_v4  ;;  %v2084_v4 = vand.u32 2147483647, %v2074_v33 }
 0x3b0   :  { %v2052_v45 = vadd.f32 %v3728_v5, %v2051_v17  ;;  %v2064_v9 = vadd.f32 %v2063_v12, %v301_v43  ;;  %v1993_v43 = vadd.f32 %v1992_v10, %v5529_v51  ;;  %v2087_v37 = vor.u32 1.1754944e-38, %v2086_v58  ;;  %v6931_v10 = vld [vmem:[#allocation9 + $0x2c0] sm:$0xff]  ;;  %v6937_v58 = vld [vmem:[#allocation9 + $0x290] sm:$0xff] }
 0x3b1   :  { %v3730_v39 = vpop.eup %3729  ;;  %v2090_v38 = vadd.f32 %v1973_v60, %v386_v6  ;;  %v6909_v6 = vpop.permute.xlu0 %2121  ;;  %vm2085_vm8 = vcmp.eq.f32.partialorder %v2084_v4, 8.507059e+37 }
 0x3b2   :  { %v2056_v52 = vsel %vm2055_vm0, %v3728_v5, %v2052_v45  ;;  %3731 = vtanh.f32 %v2064_v9  ;;  %v2076_v59 = vmul.f32 %v3730_v39, %v2074_v33  ;;  %vm2081_vm2 = vweird.f32 %v3730_v39  ;;  %9451 = vst [vmem:[#allocation34_spill] sm:$0xff] %v6909_v6  ;;  %v9453_v33 = vld [vmem:[#allocation29_spill] sm:$0xff] }
 0x3b3   :  { %v3628_v47 = vmul.f32 -1.442695, %v2090_v38  ;;  %v2061_v28 = vsel %vm2058_vm1, %v2060_v62, %v2056_v52  ;;  %vm2082_vm7 = vmor %vm2080_vm5, %vm2081_vm2  ;;  %vm2123_vm9 = vcmp.eq.s32.totalorder %v6909_v6, 1  ;;  %v6972_v6 = vld [vmem:[#allocation9 + $0x1a8] sm:$0xff] }
 0x3b4   :  { %v2077_v40 = vsub.f32 1.0, %v2076_v59  ;;  %v2066_v35 = vsub.f32 1.0, %v2061_v28  ;;  %v2012_v17 = vpop.f32.mrf.mxu3  ;;  %v2068_v57 = vmul.f32 %v2061_v28, %v6447_v44  ;;  %v427_v59 = vadd.f32 %v9453_v33, %v5564_v19  ;;  %v6925_v28 = vld [vmem:[#allocation9 + $0x2f0] sm:$0xff]  ;;  %v6966_v33 = vld [vmem:[#allocation9 + $0x1d8] sm:$0xff] }
 0x3b5   :  { %3733 = vpow2.f32 %v3628_v47  ;;  %v2013_v27 = vadd.f32 %v2012_v17, %v1993_v43  ;;  %v6943_v17 = vld [vmem:[#allocation9 + $0x260] sm:$0xff] }
 0x3b6   :  { %v2078_v16 = vmul.f32 %v3730_v39, %v2077_v40  ;;  %v6928_v40 = vld [vmem:[#allocation9 + $0x2f8] sm:$0xff] }
 0x3b8   :  { %v3732_v12 = vpop.eup %3731  ;;  %v2079_v60 = vadd.f32 %v3730_v39, %v2078_v16  ;;  %v6940_v16 = vld [vmem:[#allocation9 + $0x298] sm:$0xff] }
 0x3b9   :  { %v2067_v5 = vmul.f32 %v3732_v12, %v2066_v35  ;;  %v6946_v12 = vld [vmem:[#allocation9 + $0x268] sm:$0xff] }
 0x3ba   :  { %v2083_v61 = vsel %vm2082_vm7, %v3730_v39, %v2079_v60  ;;  %v6951_v60 = vld [vmem:[#allocation9 + $0x230] sm:$0xff] }
 0x3bb   :  { %v3734_v45 = vpop.eup %3733  ;;  %v6912_v9 = vadd.f32 %v2068_v57, %v2067_v5  ;;  %v2088_v38 = vsel %vm2085_vm8, %v2087_v37, %v2083_v61  ;;  %v6954_v5 = vld [vmem:[#allocation9 + $0x238] sm:$0xff]  ;;  %v6957_v61 = vld [vmem:[#allocation9 + $0x200] sm:$0xff] }
 0x3bc   :  { %v2094_v62 = vadd.f32 1.0, %v3734_v45  ;;  %v2110_v52 = vmul.f32 %v2088_v38, %v2013_v27  ;;  %v6960_v45 = vld [vmem:[#allocation9 + $0x208] sm:$0xff] }
 0x3bd   :  { %9452 = vst [vmem:[#allocation31_spill] sm:$0xff] %v6912_v9  ;;  %v6921_v47 = vsel %vm2123_vm9, %v6912_v9, %v6447_v44  ;;  %v6934_v44 = vld [vmem:[#allocation9 + $0x2c8] sm:$0xff]  ;;  %v6978_v9 = vld [vmem:[#allocation9 + $0x178] sm:$0xff] }
 0x3be   :  { %3735 = vrcp.f32 %v2094_v62  ;;  %2153 = vmatmul.f32.vlgmr.msrb.gmra.mxu0 %v6921_v47  ;;  %2193 = vmatmul.f32.vlgmr.msra.gmra.mxu2 %v6921_v47  ;;  %v2111_v39 = vadd.f32 %v2110_v52, %v427_v59  ;;  %v2106_v57 = vand.u32 2147483648, %v2094_v62  ;;  %v2104_v27 = vand.u32 2147483647, %v2094_v62  ;;  %v6963_v52 = vld [vmem:[#allocation9 + $0x1d0] sm:$0xff]  ;;  %9456 = vst [vmem:[#allocation154_spill] sm:$0xff] %v6978_v9 }
 0x3bf   :  { %2297 = vmatpush.msrb.mxu0 %v6925_v28  ;;  %2337 = vmatpush.msra.mxu2 %v6928_v40  ;;  %vm2100_vm14 = vweird.f32 %v2094_v62 }
 0x3c0   :  { %3737 = vtanh.f32 %v2111_v39  ;;  %v2107_v59 = vor.u32 1.1754944e-38, %v2106_v57  ;;  %vm2105_vm0 = vcmp.eq.f32.partialorder %v2104_v27, 8.507059e+37  ;;  %v6981_v57 = vpop.permute.xlu1 %2127 }
 0x3c1   :  { %2298 = vmatpush.msrb.mxu0 %v6931_v10  ;;  %2338 = vmatpush.msra.mxu2 %v6934_v44  ;;  %vm2129_vm1 = vcmp.eq.s32.totalorder %v6981_v57, 1 }
 0x3c3   :  { %2299 = vmatpush.msrb.mxu0 %v6937_v58  ;;  %2339 = vmatpush.msra.mxu2 %v6940_v16 }
 0x3c4   :  { %v3736_v4 = vpop.eup %3735 }
 0x3c5   :  { %v2096_v35 = vmul.f32 %v3736_v4, %v2094_v62  ;;  %2300 = vmatpush.msrb.mxu0 %v6943_v17  ;;  %2340 = vmatpush.msra.mxu2 %v6946_v12  ;;  %vm2101_vm10 = vweird.f32 %v3736_v4 }
 0x3c6   :  { %2233 = vmatmul.f32.vlgmr.msra.gmra.mxu0 %v6921_v47  ;;  %2273 = vmatmul.f32.vlgmr.msrb.gmra.mxu2 %v6921_v47  ;;  %vm2102_vm15 = vmor %vm2100_vm14, %vm2101_vm10 }
 0x3c7   :  { %v2097_v43 = vsub.f32 1.0, %v2096_v35  ;;  %2301 = vmatpush.msrb.mxu0 %v6951_v60  ;;  %2341 = vmatpush.msra.mxu2 %v6954_v5 }
 0x3c9   :  { %v2098_v37 = vmul.f32 %v3736_v4, %v2097_v43  ;;  %2302 = vmatpush.msrb.mxu0 %v6957_v61  ;;  %2342 = vmatpush.msra.mxu2 %v6960_v45  ;;  %v6969_v43 = vld [vmem:[#allocation9 + $0x1a0] sm:$0xff] }
 0x3ca   :  { %9454 = vst [vmem:[#allocation153_spill] sm:$0xff] %v6969_v43 }
 0x3cb   :  { %v2099_v38 = vadd.f32 %v3736_v4, %v2098_v37  ;;  %2303 = vmatpush.msrb.mxu0 %v6963_v52  ;;  %2343 = vmatpush.msra.mxu2 %v6966_v33  ;;  %v6975_v37 = vld [vmem:[#allocation9 + $0x170] sm:$0xff] }
 0x3cc   :  { %9455 = vst [vmem:[#allocation46_spill] sm:$0xff] %v6975_v37 }
 0x3cd   :  { %v2103_v35 = vsel %vm2102_vm15, %v3736_v4, %v2099_v38  ;;  %2304 = vmatpush.msrb.mxu0 %v6969_v43  ;;  %2344 = vmatpush.msra.mxu2 %v6972_v6  ;;  %v3738_v4 = vpop.eup %3737  ;;  %v6984_v43 = vld [vmem:[#allocation9 + $0x140] sm:$0xff] }
 0x3ce   :  { %v2108_v62 = vsel %vm2105_vm0, %v2107_v59, %v2103_v35  ;;  %v6987_v59 = vld [vmem:[#allocation9 + $0x148] sm:$0xff] }
 0x3cf   :  { %v2113_v39 = vsub.f32 1.0, %v2108_v62  ;;  %2305 = vmatpush.msrb.mxu0 %v6975_v37  ;;  %2345 = vmatpush.msra.mxu2 %v6978_v9  ;;  %v2115_v38 = vmul.f32 %v2108_v62, %v6491_v11  ;;  %v6992_v37 = vld [vmem:[#allocation9 + $0x110] sm:$0xff]  ;;  %v6995_v9 = vld [vmem:[#allocation9 + $0x118] sm:$0xff] }
 0x3d1   :  { %v2114_v27 = vmul.f32 %v3738_v4, %v2113_v39  ;;  %2306 = vmatpush.msrb.mxu0 %v6984_v43  ;;  %2346 = vmatpush.msra.mxu2 %v6987_v59  ;;  %v7005_v39 = vld [vmem:[#allocation9 + $0xe0] sm:$0xff]  ;;  %v7008_v4 = vld [vmem:[#allocation9 + $0xe8] sm:$0xff] }
 0x3d2   :  { %9457 = vst [vmem:[#allocation155_spill] sm:$0xff] %v7005_v39 }
 0x3d3   :  { %v6990_v35 = vadd.f32 %v2115_v38, %v2114_v27  ;;  %2307 = vmatpush.msrb.mxu0 %v6992_v37  ;;  %2347 = vmatpush.msra.mxu2 %v6995_v9  ;;  %9458 = vst [vmem:[#allocation157_spill] sm:$0xff] %v7008_v4  ;;  %v7013_v27 = vld [vmem:[#allocation9 + $0x5f0] sm:$0xff]  ;;  %v7020_v38 = vld [vmem:[#allocation9 + $0xb8] sm:$0xff] }
 0x3d4   :  { %9459 = vst [vmem:[#allocation156_spill] sm:$0xff] %v7013_v27 }
 0x3d5   :  { %v7003_v62 = vsel %vm2129_vm1, %v6990_v35, %v6491_v11  ;;  %2308 = vmatpush.msrb.mxu0 %v7005_v39  ;;  %2348 = vmatpush.msra.mxu2 %v7008_v4  ;;  %v7017_v11 = vld [vmem:[#allocation9 + $0xb0] sm:$0xff]  ;;  %9460 = vst [vmem:[#allocation158_spill] sm:$0xff] %v7020_v38  ;;  %v7023_v39 = vld [vmem:[#allocation9 + $0x5c0] sm:$0xff] }
 0x3d6   :  { %2173 = vmatmul.f32.vlgmr.msrb.gmra.mxu1 %v7003_v62  ;;  %2213 = vmatmul.f32.vlgmr.msra.gmra.mxu3 %v7003_v62  ;;  %9461 = vst [vmem:[#allocation159_spill] sm:$0xff] %v7023_v39  ;;  %v7027_v4 = vld [vmem:[#allocation9 + $0x80] sm:$0xff] }
 0x3d7   :  { %2317 = vmatpush.msrb.mxu1 %v7013_v27  ;;  %2357 = vmatpush.msra.mxu3 %v6496_v32  ;;  %v7030_v27 = vld [vmem:[#allocation9 + $0x88] sm:$0xff]  ;;  %v7033_v32 = vld [vmem:[#allocation9 + $0x590] sm:$0xff] }
 0x3d8   :  { %2309 = vmatpush.msrb.mxu0 %v7017_v11  ;;  %2349 = vmatpush.msra.mxu2 %v7020_v38  ;;  %9462 = vst [vmem:[#allocation160_spill] sm:$0xff] %v7033_v32  ;;  %v7037_v38 = vld [vmem:[#allocation9 + $0x50] sm:$0xff] }
 0x3d9   :  { %2318 = vmatpush.msrb.mxu1 %v7023_v39  ;;  %2358 = vmatpush.msra.mxu3 %v6502_v36  ;;  %9463 = vst [vmem:[#allocation161_spill] sm:$0xff] %v7037_v38  ;;  %v7040_v39 = vld [vmem:[#allocation9 + $0x58] sm:$0xff]  ;;  %v7043_v36 = vld [vmem:[#allocation9 + $0x560] sm:$0xff] }
 0x3da   :  { %2310 = vmatpush.msrb.mxu0 %v7027_v4  ;;  %2350 = vmatpush.msra.mxu2 %v7030_v27  ;;  %9464 = vst [vmem:[#allocation162_spill] sm:$0xff] %v7043_v36 }
 0x3db   :  { %2319 = vmatpush.msrb.mxu1 %v7033_v32  ;;  %2359 = vmatpush.msra.mxu3 %v6508_v25  ;;  %v7049_v32 = vld [vmem:[#allocation9 + $0x20] sm:$0xff]  ;;  %v7052_v25 = vld [vmem:[#allocation9 + $0x530] sm:$0xff] }
 0x3dc   :  { %2311 = vmatpush.msrb.mxu0 %v7037_v38  ;;  %2351 = vmatpush.msra.mxu2 %v7040_v39  ;;  %9465 = vst [vmem:[#allocation163_spill] sm:$0xff] %v7049_v32  ;;  %v7055_v38 = vld [vmem:[#allocation9 + $0x28] sm:$0xff] }
 0x3dd   :  { %2320 = vmatpush.msrb.mxu1 %v7043_v36  ;;  %2360 = vmatpush.msra.mxu3 %v6514_v8  ;;  %9466 = vst [vmem:[#allocation164_spill] sm:$0xff] %v7052_v25  ;;  %v7061_v8 = vld [vmem:[#allocation9 + $0x500] sm:$0xff]  ;;  %v7064_v36 = vld [vmem:[#allocation9 + $0x508] sm:$0xff] }
 0x3de   :  { %2253 = vmatmul.f32.vlgmr.msra.gmra.mxu1 %v7003_v62  ;;  %2293 = vmatmul.f32.vlgmr.msrb.gmra.mxu3 %v7003_v62  ;;  %9467 = vst [vmem:[#allocation165_spill] sm:$0xff] %v7055_v38 }
 0x3df   :  { %2312 = vmatpush.msrb.mxu0 %v7049_v32  ;;  %2321 = vmatpush.msrb.mxu1 %v7052_v25  ;;  %9468 = vst [vmem:[#allocation166_spill] sm:$0xff] %v7064_v36  ;;  %v7067_v32 = vld [vmem:[#allocation9 + $0x2d0] sm:$0xff]  ;;  %v7077_v25 = vld [vmem:[#allocation9 + $0x2a0] sm:$0xff] }
 0x3e0   :  { %2352 = vmatpush.msra.mxu2 %v7055_v38  ;;  %2361 = vmatpush.msra.mxu3 %v6522_v41  ;;  %9469 = vst [vmem:[#allocation167_spill] sm:$0xff] %v7067_v32  ;;  %v7071_v38 = vld [vmem:[#allocation9 + $0x4d0] sm:$0xff]  ;;  %v7074_v41 = vld [vmem:[#allocation9 + $0x4d8] sm:$0xff] }
 0x3e1   :  { %2313 = vmatmul.f32.vlgmr.msrb.gmra.mxu0 %v6921_v47  ;;  %2353 = vmatmul.f32.vlgmr.msra.gmra.mxu2 %v6921_v47  ;;  %9470 = vst [vmem:[#allocation168_spill] sm:$0xff] %v7074_v41 }
 0x3e2   :  { %2322 = vmatpush.msrb.mxu1 %v7061_v8  ;;  %2362 = vmatpush.msra.mxu3 %v7064_v36  ;;  %9471 = vst [vmem:[#allocation169_spill] sm:$0xff] %v7077_v25  ;;  %v7081_v36 = vld [vmem:[#allocation9 + $0x4a0] sm:$0xff] }
 0x3e3   :  { %2485 = vmatpush.msra.mxu0 %v7067_v32  ;;  %2525 = vmatpush.msrb.mxu2 %v6530_v49  ;;  %v7084_v32 = vld [vmem:[#allocation9 + $0x4a8] sm:$0xff]  ;;  %v7087_v49 = vld [vmem:[#allocation9 + $0x270] sm:$0xff] }
 0x3e4   :  { %2323 = vmatpush.msrb.mxu1 %v7071_v38  ;;  %2363 = vmatpush.msra.mxu3 %v7074_v41  ;;  %9472 = vst [vmem:[#allocation172_spill] sm:$0xff] %v7084_v32  ;;  %v7091_v41 = vld [vmem:[#allocation9 + $0x470] sm:$0xff] }
 0x3e5   :  { %2486 = vmatpush.msra.mxu0 %v7077_v25  ;;  %2526 = vmatpush.msrb.mxu2 %v6536_v18  ;;  %9473 = vst [vmem:[#allocation170_spill] sm:$0xff] %v7087_v49  ;;  %v7094_v25 = vld [vmem:[#allocation9 + $0x478] sm:$0xff]  ;;  %v7097_v18 = vld [vmem:[#allocation9 + $0x240] sm:$0xff] }
 0x3e6   :  { %2324 = vmatpush.msrb.mxu1 %v7081_v36  ;;  %2364 = vmatpush.msra.mxu3 %v7084_v32  ;;  %9474 = vst [vmem:[#allocation171_spill] sm:$0xff] %v7094_v25  ;;  %v7101_v32 = vld [vmem:[#allocation9 + $0x440] sm:$0xff] }
 0x3e7   :  { %2487 = vmatpush.msra.mxu0 %v7087_v49  ;;  %2527 = vmatpush.msrb.mxu2 %v6542_v46  ;;  %9475 = vst [vmem:[#allocation175_spill] sm:$0xff] %v7097_v18  ;;  %v7104_v49 = vld [vmem:[#allocation9 + $0x448] sm:$0xff]  ;;  %v7107_v46 = vld [vmem:[#allocation9 + $0x210] sm:$0xff] }
 0x3e8   :  { %2325 = vmatpush.msrb.mxu1 %v7091_v41  ;;  %2365 = vmatpush.msra.mxu3 %v7094_v25  ;;  %9476 = vst [vmem:[#allocation173_spill] sm:$0xff] %v7104_v49  ;;  %v7111_v25 = vld [vmem:[#allocation9 + $0x410] sm:$0xff] }
 0x3e9   :  { %2488 = vmatpush.msra.mxu0 %v7097_v18  ;;  %2528 = vmatpush.msrb.mxu2 %v6548_v34  ;;  %9477 = vst [vmem:[#allocation174_spill] sm:$0xff] %v7107_v46  ;;  %v7114_v18 = vld [vmem:[#allocation9 + $0x418] sm:$0xff]  ;;  %v7117_v34 = vld [vmem:[#allocation9 + $0x1e0] sm:$0xff] }
 0x3ea   :  { %2326 = vmatpush.msrb.mxu1 %v7101_v32  ;;  %2366 = vmatpush.msra.mxu3 %v7104_v49  ;;  %9478 = vst [vmem:[#allocation178_spill] sm:$0xff] %v7114_v18  ;;  %v7121_v49 = vld [vmem:[#allocation9 + $0x3e0] sm:$0xff] }
 0x3eb   :  { %2489 = vmatpush.msra.mxu0 %v7107_v46  ;;  %2529 = vmatpush.msrb.mxu2 %v6554_v26  ;;  %9479 = vst [vmem:[#allocation176_spill] sm:$0xff] %v7117_v34  ;;  %v7124_v46 = vld [vmem:[#allocation9 + $0x3e8] sm:$0xff]  ;;  %v7127_v26 = vld [vmem:[#allocation9 + $0x1b0] sm:$0xff] }
 0x3ec   :  { %2327 = vmatpush.msrb.mxu1 %v7111_v25  ;;  %2367 = vmatpush.msra.mxu3 %v7114_v18  ;;  %9480 = vst [vmem:[#allocation177_spill] sm:$0xff] %v7121_v49  ;;  %v7131_v18 = vld [vmem:[#allocation9 + $0x3b0] sm:$0xff] }
 0x3ed   :  { %2490 = vmatpush.msra.mxu0 %v7117_v34  ;;  %2530 = vmatpush.msrb.mxu2 %v6560_v22  ;;  %9481 = vst [vmem:[#allocation181_spill] sm:$0xff] %v7124_v46  ;;  %v7134_v34 = vld [vmem:[#allocation9 + $0x3b8] sm:$0xff]  ;;  %v7137_v22 = vld [vmem:[#allocation9 + $0x180] sm:$0xff] }
 0x3ee   :  { %2328 = vmatpush.msrb.mxu1 %v7121_v49  ;;  %2368 = vmatpush.msra.mxu3 %v7124_v46  ;;  %9482 = vst [vmem:[#allocation179_spill] sm:$0xff] %v7127_v26  ;;  %v7141_v46 = vld [vmem:[#allocation9 + $0x380] sm:$0xff] }
 0x3ef   :  { %2491 = vmatpush.msra.mxu0 %v7127_v26  ;;  %2531 = vmatpush.msrb.mxu2 %v6566_v29  ;;  %9483 = vst [vmem:[#allocation180_spill] sm:$0xff] %v7131_v18  ;;  %v7144_v26 = vld [vmem:[#allocation9 + $0x388] sm:$0xff]  ;;  %v7147_v29 = vld [vmem:[#allocation9 + $0x150] sm:$0xff] }
 0x3f0   :  { %2329 = vmatpush.msrb.mxu1 %v7131_v18  ;;  %9484 = vst [vmem:[#allocation184_spill] sm:$0xff] %v7134_v34  ;;  %2369 = vmatpush.msra.mxu3 %v7134_v34  ;;  %v7151_v34 = vld [vmem:[#allocation9 + $0x350] sm:$0xff] }
 0x3f1   :  { %9485 = vst [vmem:[#allocation182_spill] sm:$0xff] %v7137_v22  ;;  %2492 = vmatpush.msra.mxu0 %v7137_v22  ;;  %2532 = vmatpush.msrb.mxu2 %v6572_v54  ;;  %v7154_v22 = vld [vmem:[#allocation9 + $0x358] sm:$0xff]  ;;  %v7157_v54 = vld [vmem:[#allocation9 + $0x120] sm:$0xff] }
 0x3f2   :  { %9486 = vst [vmem:[#allocation183_spill] sm:$0xff] %v7141_v46  ;;  %2330 = vmatpush.msrb.mxu1 %v7141_v46  ;;  %2370 = vmatpush.msra.mxu3 %v7144_v26 }
 0x3f3   :  { %9487 = vst [vmem:[#allocation187_spill] sm:$0xff] %v7144_v26  ;;  %2493 = vmatpush.msra.mxu0 %v7147_v29  ;;  %2533 = vmatpush.msrb.mxu2 %v6578_v55  ;;  %v7161_v26 = vld [vmem:[#allocation9 + $0x320] sm:$0xff]  ;;  %v7171_v55 = vld [vmem:[#allocation9 + $0x5d0] sm:$0xff] }
 0x3f4   :  { %9488 = vst [vmem:[#allocation185_spill] sm:$0xff] %v7147_v29  ;;  %2331 = vmatpush.msrb.mxu1 %v7151_v34  ;;  %2371 = vmatpush.msra.mxu3 %v7154_v22  ;;  %v7164_v29 = vld [vmem:[#allocation9 + $0x328] sm:$0xff] }
 0x3f5   :  { %9489 = vst [vmem:[#allocation186_spill] sm:$0xff] %v7151_v34  ;;  %2494 = vmatpush.msra.mxu0 %v7157_v54  ;;  %2534 = vmatpush.msrb.mxu2 %v6584_v48  ;;  %v7177_v48 = vld [vmem:[#allocation9 + $0x5a0] sm:$0xff] }
 0x3f6   :  { %9490 = vst [vmem:[#allocation188_spill] sm:$0xff] %v7154_v22  ;;  %2332 = vmatpush.msrb.mxu1 %v7161_v26  ;;  %2372 = vmatpush.msra.mxu3 %v7164_v29 }
 0x3f7   :  { %9491 = vst [vmem:[#allocation189_spill] sm:$0xff] %v7157_v54  ;;  %2333 = vmatmul.f32.vlgmr.msrb.gmra.mxu1 %v7003_v62  ;;  %2373 = vmatmul.f32.vlgmr.msra.gmra.mxu3 %v7003_v62 }
 0x3f8   :  { %9492 = vst [vmem:[#allocation190_spill] sm:$0xff] %v7161_v26  ;;  %2495 = vmatpush.msra.mxu0 %v6591_v31  ;;  %2535 = vmatpush.msrb.mxu2 %v6594_v30  ;;  %v7183_v31 = vld [vmem:[#allocation9 + $0x570] sm:$0xff]  ;;  %v7189_v30 = vld [vmem:[#allocation9 + $0x540] sm:$0xff] }
 0x3f9   :  { %9493 = vst [vmem:[#allocation191_spill] sm:$0xff] %v7164_v29  ;;  %2505 = vmatpush.msra.mxu1 %v7171_v55  ;;  %2545 = vmatpush.msrb.mxu3 %v6598_v63  ;;  %v7195_v63 = vld [vmem:[#allocation9 + $0x510] sm:$0xff] }
 0x3fa   :  { %9494 = vst [vmem:[#allocation192_spill] sm:$0xff] %v7171_v55  ;;  %2496 = vmatpush.msra.mxu0 %v6601_v56  ;;  %2536 = vmatpush.msrb.mxu2 %v6604_v0  ;;  %v9499_v56 = vld [vmem:[#allocation44_spill] sm:$0xff]  ;;  %v9590_v55 = vld [vmem:[#allocation26_spill] sm:$0xff] }
 0x3fb   :  { %9495 = vst [vmem:[#allocation52_spill] sm:$0xff] %v7177_v48  ;;  %2506 = vmatpush.msra.mxu1 %v7177_v48  ;;  %2546 = vmatpush.msrb.mxu3 %v6608_v1  ;;  %v9500_v0 = vld [vmem:[#allocation48_spill] sm:$0xff]  ;;  %v9501_v1 = vld [vmem:[#allocation58_spill] sm:$0xff] }
 0x3fc   :  { %2497 = vmatpush.msra.mxu0 %v6611_v20  ;;  %2537 = vmatpush.msrb.mxu2 %v6614_v2  ;;  %9496 = vst [vmem:[#allocation38_spill] sm:$0xff] %v7183_v31  ;;  %v7203_v20 = vld [vmem:[#allocation9 + $0x4e0] sm:$0xff] }
 0x3fd   :  { %2507 = vmatpush.msra.mxu1 %v7183_v31  ;;  %2547 = vmatpush.msrb.mxu3 %v6618_v24  ;;  %9497 = vst [vmem:[#allocation55_spill] sm:$0xff] %v7189_v30  ;;  %v9503_v2 = vld [vmem:[#allocation67_spill] sm:$0xff]  ;;  %v9589_v31 = vld [vmem:[#allocation37_spill] sm:$0xff] }
 0x3fe   :  { %2498 = vmatpush.msra.mxu0 %v6621_v23  ;;  %2538 = vmatpush.msrb.mxu2 %v6624_v3  ;;  %9498 = vst [vmem:[#allocation53_spill] sm:$0xff] %v7195_v63  ;;  %v9504_v24 = vld [vmem:[#allocation71_spill] sm:$0xff]  ;;  %v7209_v3 = vld [vmem:[#allocation9 + $0x4b0] sm:$0xff] }
 0x3ff   :  { %2508 = vmatpush.msra.mxu1 %v7189_v30  ;;  %2548 = vmatpush.msrb.mxu3 %v6628_v53  ;;  %9502 = vst [vmem:[#allocation49_spill] sm:$0xff] %v7203_v20  ;;  %v9505_v23 = vld [vmem:[#allocation63_spill] sm:$0xff]  ;;  %v9507_v53 = vld [vmem:[#allocation62_spill] sm:$0xff] }
 0x400   :  { %2499 = vmatpush.msra.mxu0 %v6631_v14  ;;  %2539 = vmatpush.msrb.mxu2 %v6634_v21  ;;  %9506 = vst [vmem:[#allocation41_spill] sm:$0xff] %v7209_v3  ;;  %v9508_v14 = vld [vmem:[#allocation74_spill] sm:$0xff]  ;;  %v9509_v21 = vld [vmem:[#allocation51_spill] sm:$0xff] }
 0x401   :  { %2509 = vmatpush.msra.mxu1 %v7195_v63  ;;  %2549 = vmatpush.msrb.mxu3 %v6638_v50  ;;  %v7215_v50 = vld [vmem:[#allocation9 + $0x480] sm:$0xff]  ;;  %v9588_v63 = vld [vmem:[#allocation141_spill] sm:$0xff] }
 0x402   :  { %2500 = vmatpush.msra.mxu0 %v6641_v13  ;;  %2540 = vmatpush.msrb.mxu2 %v9499_v56  ;;  %9510 = vst [vmem:[#allocation136_spill] sm:$0xff] %v7215_v50  ;;  %v9511_v13 = vld [vmem:[#allocation69_spill] sm:$0xff] }
 0x403   :  { %2510 = vmatpush.msra.mxu1 %v7203_v20  ;;  %2550 = vmatpush.msrb.mxu3 %v9503_v2  ;;  %v9512_v56 = vld [vmem:[#allocation57_spill] sm:$0xff]  ;;  %v9515_v2 = vld [vmem:[#allocation72_spill] sm:$0xff] }
 0x404   :  { %2565 = vmatpush.msrb.mxu0 %v9500_v0  ;;  %2605 = vmatpush.msra.mxu2 %v9501_v1  ;;  %v9513_v0 = vld [vmem:[#allocation54_spill] sm:$0xff]  ;;  %v7221_v1 = vld [vmem:[#allocation9 + $0x450] sm:$0xff] }
 0x405   :  { %2511 = vmatpush.msra.mxu1 %v7209_v3  ;;  %2551 = vmatpush.msrb.mxu3 %v9507_v53  ;;  %9514 = vst [vmem:[#allocation138_spill] sm:$0xff] %v7221_v1  ;;  %v7227_v53 = vld [vmem:[#allocation9 + $0x420] sm:$0xff] }
 0x406   :  { %2566 = vmatpush.msrb.mxu0 %v9504_v24  ;;  %2606 = vmatpush.msra.mxu2 %v9505_v23  ;;  %v9516_v24 = vld [vmem:[#allocation77_spill] sm:$0xff]  ;;  %v9517_v23 = vld [vmem:[#allocation64_spill] sm:$0xff]  ;;  %9518 = vst [vmem:[#allocation146_spill] sm:$0xff] %v7227_v53 }
 0x407   :  { %2512 = vmatpush.msra.mxu1 %v7215_v50  ;;  %2552 = vmatpush.msrb.mxu3 %v9511_v13  ;;  %v9521_v13 = vld [vmem:[#allocation122_spill] sm:$0xff] }
 0x408   :  { %2567 = vmatpush.msrb.mxu0 %v9508_v14  ;;  %2607 = vmatpush.msra.mxu2 %v9509_v21  ;;  %v9519_v14 = vld [vmem:[#allocation75_spill] sm:$0xff]  ;;  %v9520_v21 = vld [vmem:[#allocation61_spill] sm:$0xff]  ;;  %v9532_v50 = vld [vmem:[#allocation70_spill] sm:$0xff] }
 0x409   :  { %2513 = vmatpush.msra.mxu1 %v7221_v1  ;;  %2553 = vmatpush.msrb.mxu3 %v9515_v2  ;;  %v9524_v2 = vld [vmem:[#allocation81_spill] sm:$0xff] }
 0x40a   :  { %2568 = vmatpush.msrb.mxu0 %v9512_v56  ;;  %2608 = vmatpush.msra.mxu2 %v9513_v0  ;;  %v7233_v56 = vld [vmem:[#allocation9 + $0x3f0] sm:$0xff]  ;;  %v9523_v0 = vld [vmem:[#allocation78_spill] sm:$0xff] }
 0x40b   :  { %2514 = vmatpush.msra.mxu1 %v7227_v53  ;;  %2554 = vmatpush.msrb.mxu3 %v9519_v14  ;;  %9522 = vst [vmem:[#allocation140_spill] sm:$0xff] %v7233_v56  ;;  %v9527_v1 = vld [vmem:[#allocation85_spill] sm:$0xff]  ;;  %v9529_v14 = vld [vmem:[#allocation80_spill] sm:$0xff] }
 0x40c   :  { %2569 = vmatpush.msrb.mxu0 %v9516_v24  ;;  %2609 = vmatpush.msra.mxu2 %v9517_v23  ;;  %v9525_v24 = vld [vmem:[#allocation66_spill] sm:$0xff]  ;;  %v9526_v23 = vld [vmem:[#allocation68_spill] sm:$0xff]  ;;  %v9528_v53 = vld [vmem:[#allocation65_spill] sm:$0xff] }
 0x40d   :  { %2515 = vmatpush.msra.mxu1 %v7233_v56  ;;  %2555 = vmatpush.msrb.mxu3 %v9523_v0  ;;  %v9533_v56 = vld [vmem:[#allocation89_spill] sm:$0xff]  ;;  %v9534_v0 = vld [vmem:[#allocation79_spill] sm:$0xff] }
 0x40e   :  { %2570 = vmatpush.msrb.mxu0 %v9520_v21  ;;  %2610 = vmatpush.msra.mxu2 %v9521_v13  ;;  %v9530_v21 = vld [vmem:[#allocation73_spill] sm:$0xff]  ;;  %v9531_v13 = vld [vmem:[#allocation94_spill] sm:$0xff] }
 0x40f   :  { %2516 = vmatpush.msra.mxu1 %v9526_v23  ;;  %2556 = vmatpush.msrb.mxu3 %v9527_v1  ;;  %v9537_v23 = vld [vmem:[#allocation97_spill] sm:$0xff] }
 0x410   :  { %2571 = vmatpush.msrb.mxu0 %v9524_v2  ;;  %2611 = vmatpush.msra.mxu2 %v9525_v24  ;;  %v9535_v2 = vld [vmem:[#allocation101_spill] sm:$0xff]  ;;  %v9536_v24 = vld [vmem:[#allocation76_spill] sm:$0xff] }
 0x411   :  { %2517 = vmatpush.msra.mxu1 %v9530_v21  ;;  %2557 = vmatpush.msrb.mxu3 %v9531_v13  ;;  %v9538_v1 = vld [vmem:[#allocation105_spill] sm:$0xff]  ;;  %v9541_v21 = vld [vmem:[#allocation86_spill] sm:$0xff] }
 0x412   :  { %2572 = vmatpush.msrb.mxu0 %v9528_v53  ;;  %2612 = vmatpush.msra.mxu2 %v9529_v14  ;;  %v9539_v53 = vld [vmem:[#allocation110_spill] sm:$0xff]  ;;  %v9542_v13 = vld [vmem:[#allocation113_spill] sm:$0xff] }
 0x413   :  { %2518 = vmatpush.msra.mxu1 %v9534_v0  ;;  %2558 = vmatpush.msrb.mxu3 %v9535_v2  ;;  %v9540_v14 = vld [vmem:[#allocation82_spill] sm:$0xff]  ;;  %v9545_v0 = vld [vmem:[#allocation93_spill] sm:$0xff] }
 0x414   :  { %2573 = vmatpush.msrb.mxu0 %v9532_v50  ;;  %2613 = vmatpush.msra.mxu2 %v9533_v56  ;;  %v9543_v50 = vld [vmem:[#allocation117_spill] sm:$0xff]  ;;  %v9544_v56 = vld [vmem:[#allocation90_spill] sm:$0xff] }
 0x415   :  { %2519 = vmatpush.msra.mxu1 %v9538_v1  ;;  %2559 = vmatpush.msrb.mxu3 %v9539_v53  ;;  %v9546_v2 = vld [vmem:[#allocation121_spill] sm:$0xff]  ;;  %v9549_v1 = vld [vmem:[#allocation103_spill] sm:$0xff]  ;;  %v9550_v53 = vld [vmem:[#allocation130_spill] sm:$0xff] }
 0x416   :  { %2574 = vmatpush.msrb.mxu0 %v9536_v24  ;;  %2614 = vmatpush.msra.mxu2 %v9537_v23  ;;  %v9547_v24 = vld [vmem:[#allocation126_spill] sm:$0xff]  ;;  %v9548_v23 = vld [vmem:[#allocation99_spill] sm:$0xff] }
 0x417   :  { %2520 = vmatpush.msra.mxu1 %v9542_v13  ;;  %2560 = vmatpush.msrb.mxu3 %v9543_v50  ;;  %v9553_v13 = vld [vmem:[#allocation111_spill] sm:$0xff] }
 0x418   :  { %2575 = vmatpush.msrb.mxu0 %v9540_v14  ;;  %2615 = vmatpush.msra.mxu2 %v9541_v21  ;;  %v9551_v14 = vld [vmem:[#allocation115_spill] sm:$0xff] }
 0x419   :  { %2585 = vmatpush.msrb.mxu1 %v9545_v0  ;;  %2625 = vmatpush.msra.mxu3 %v9547_v24  ;;  %v9552_v21 = vld [vmem:[#allocation107_spill] sm:$0xff] }
 0x41a   :  { %2576 = vmatpush.msrb.mxu0 %v9544_v56  ;;  %2616 = vmatpush.msra.mxu2 %v9546_v2  ;;  %v9554_v50 = vld [vmem:[#allocation119_spill] sm:$0xff] }
 0x41b   :  { %2586 = vmatpush.msrb.mxu1 %v9549_v1  ;;  %2626 = vmatpush.msra.mxu3 %v9551_v14  ;;  %v9555_v56 = vld [vmem:[#allocation91_spill] sm:$0xff]  ;;  %v9560_v1 = vld [vmem:[#allocation102_spill] sm:$0xff] }
 0x41c   :  { %2577 = vmatpush.msrb.mxu0 %v9548_v23  ;;  %2617 = vmatpush.msra.mxu2 %v9550_v53  ;;  %v9556_v0 = vld [vmem:[#allocation83_spill] sm:$0xff]  ;;  %v9559_v23 = vld [vmem:[#allocation98_spill] sm:$0xff]  ;;  %v9561_v53 = vld [vmem:[#allocation84_spill] sm:$0xff] }
 0x41d   :  { %2587 = vmatpush.msrb.mxu1 %v9553_v13  ;;  %2627 = vmatpush.msra.mxu3 %v9555_v56  ;;  %v9557_v2 = vld [vmem:[#allocation87_spill] sm:$0xff]  ;;  %v9562_v14 = vld [vmem:[#allocation106_spill] sm:$0xff]  ;;  %v9564_v13 = vld [vmem:[#allocation109_spill] sm:$0xff] }
 0x41e   :  { %2578 = vmatpush.msrb.mxu0 %v9552_v21  ;;  %2618 = vmatpush.msra.mxu2 %v9554_v50  ;;  %v9558_v24 = vld [vmem:[#allocation95_spill] sm:$0xff]  ;;  %v9563_v21 = vld [vmem:[#allocation88_spill] sm:$0xff]  ;;  %v9566_v56 = vld [vmem:[#allocation114_spill] sm:$0xff] }
 0x41f   :  { %2588 = vmatpush.msrb.mxu1 %v9557_v2  ;;  %2628 = vmatpush.msra.mxu3 %v9559_v23  ;;  %v9565_v50 = vld [vmem:[#allocation92_spill] sm:$0xff]  ;;  %v9568_v2 = vld [vmem:[#allocation118_spill] sm:$0xff]  ;;  %v9570_v23 = vld [vmem:[#allocation123_spill] sm:$0xff] }
 0x420   :  { %2579 = vmatpush.msrb.mxu0 %v9556_v0  ;;  %2619 = vmatpush.msra.mxu2 %v9558_v24  ;;  %v9567_v0 = vld [vmem:[#allocation96_spill] sm:$0xff] }
 0x421   :  { %2589 = vmatpush.msrb.mxu1 %v9561_v53  ;;  %2629 = vmatpush.msra.mxu3 %v9563_v21  ;;  %v9569_v24 = vld [vmem:[#allocation100_spill] sm:$0xff]  ;;  %v9572_v53 = vld [vmem:[#allocation127_spill] sm:$0xff] }
 0x422   :  { %2580 = vmatpush.msrb.mxu0 %v9560_v1  ;;  %2620 = vmatpush.msra.mxu2 %v9562_v14  ;;  %v9571_v1 = vld [vmem:[#allocation104_spill] sm:$0xff] }
 0x423   :  { %2590 = vmatpush.msrb.mxu1 %v9564_v13  ;;  %2630 = vmatpush.msra.mxu3 %v9565_v50  ;;  %v9573_v14 = vld [vmem:[#allocation108_spill] sm:$0xff] }
 0x424   :  { %v9574_v21 = vld [vmem:[#allocation112_spill] sm:$0xff] }
 0x425   :  { %2591 = vmatpush.msrb.mxu1 %v9566_v56  ;;  %2631 = vmatpush.msra.mxu3 %v9567_v0  ;;  %v9575_v13 = vld [vmem:[#allocation116_spill] sm:$0xff]  ;;  %v9578_v0 = vld [vmem:[#allocation139_spill] sm:$0xff] }
 0x426   :  { %v9576_v50 = vld [vmem:[#allocation120_spill] sm:$0xff] }
 0x427   :  { %2592 = vmatpush.msrb.mxu1 %v9568_v2  ;;  %2632 = vmatpush.msra.mxu3 %v9569_v24  ;;  %v9577_v56 = vld [vmem:[#allocation124_spill] sm:$0xff] }
 0x428   :  { %v9579_v2 = vld [vmem:[#allocation152_spill] sm:$0xff] }
 0x429   :  { %2593 = vmatpush.msrb.mxu1 %v9570_v23  ;;  %2633 = vmatpush.msra.mxu3 %v9571_v1  ;;  %v9580_v24 = vld [vmem:[#allocation132_spill] sm:$0xff]  ;;  %v9581_v23 = vld [vmem:[#allocation134_spill] sm:$0xff] }
 0x42a   :  { %v9582_v1 = vld [vmem:[#allocation150_spill] sm:$0xff] }
 0x42b   :  { %2594 = vmatpush.msrb.mxu1 %v9572_v53  ;;  %2634 = vmatpush.msra.mxu3 %v9573_v14  ;;  %v9583_v53 = vld [vmem:[#allocation135_spill] sm:$0xff] }
 0x42c   :  { %v9584_v14 = vld [vmem:[#allocation35_spill] sm:$0xff] }
 0x42d   :  { %2595 = vmatpush.msrb.mxu1 %v9574_v21  ;;  %2635 = vmatpush.msra.mxu3 %v9575_v13  ;;  %v9585_v21 = vld [vmem:[#allocation28_spill] sm:$0xff] }
 0x42f   :  { %2596 = vmatpush.msrb.mxu1 %v9576_v50  ;;  %2636 = vmatpush.msra.mxu3 %v9577_v56  ;;  %v9586_v50 = vld [vmem:[#allocation33_spill] sm:$0xff] }
 0x431   :  { %2597 = vmatpush.msrb.mxu1 %v9578_v0  ;;  %2637 = vmatpush.msra.mxu3 %v9579_v2  ;;  %v9587_v0 = vld [vmem:[#allocation24_spill] sm:$0xff] }
 0x432   :  { %v222_v2 = vadd.f32 %v9588_v63, %v9587_v0 }
 0x433   :  { %2598 = vmatpush.msrb.mxu1 %v9580_v24  ;;  %2638 = vmatpush.msra.mxu3 %v9581_v23 }
 0x435   :  { %2599 = vmatpush.msrb.mxu1 %v9582_v1  ;;  %2639 = vmatpush.msra.mxu3 %v9583_v53  ;;  %v9591_v53 = vld [vmem:[#allocation143_spill] sm:$0xff] }
 0x436   :  { %v263_v29 = vadd.f32 %v9591_v53, %v9590_v55 }
 0x437   :  { %2600 = vmatpush.msrb.mxu1 %v9584_v14  ;;  %2640 = vmatpush.msra.mxu3 %v9585_v21 }
 0x43b   :  { %v2154_v13 = vpop.f32.mrf.mxu0 }
 0x43c   :  { %v2155_v3 = vadd.f32 %v2154_v13, %v9586_v50  ;;  %v9592_v50 = vld [vmem:[#allocation39_spill] sm:$0xff] }
 0x441   :  { %v2194_v56 = vpop.f32.mrf.mxu2 }
 0x442   :  { %v2195_v23 = vadd.f32 %v2194_v56, %v9589_v31 }
 0x449   :  { %v2274_v26 = vpop.f32.mrf.mxu2 }
 0x44a   :  { %v2275_v22 = vadd.f32 %v2274_v26, %v9592_v50 }
 0x453   :  { %v2174_v20 = vpop.f32.mrf.mxu1 }
 0x454   :  { %v2175_v30 = vadd.f32 %v2174_v20, %v2155_v3  ;;  %v9593_v20 = vld [vmem:[#allocation43_spill] sm:$0xff] }
 0x456   :  { %v2383_v24 = vadd.f32 %v2175_v30, %v222_v2  ;;  %v9594_v30 = vld [vmem:[#allocation142_spill] sm:$0xff] }
 0x457   :  { %v342_v3 = vadd.f32 %v9594_v30, %v9593_v20 }
 0x458   :  { %v3629_v48 = vmul.f32 -1.442695, %v2383_v24 }
 0x459   :  { %v2214_v1 = vpop.f32.mrf.mxu3 }
 0x45a   :  { %3739 = vpow2.f32 %v3629_v48  ;;  %v2215_v14 = vadd.f32 %v2214_v1, %v2195_v23  ;;  %v2234_v48 = vpop.f32.mrf.mxu0 }
 0x45b   :  { %v2254_v1 = vpop.f32.mrf.mxu1 }
 0x45c   :  { %v2403_v21 = vadd.f32 %v2215_v14, %v263_v29 }
 0x45e   :  { %v3630_v54 = vmul.f32 -1.442695, %v2403_v21 }
 0x460   :  { %v3740_v13 = vpop.eup %3739  ;;  %3741 = vpow2.f32 %v3630_v54 }
 0x461   :  { %v2387_v34 = vadd.f32 1.0, %v3740_v13  ;;  %v2294_v63 = vpop.f32.mrf.mxu3 }
 0x462   :  { %v2295_v56 = vadd.f32 %v2294_v63, %v2275_v22  ;;  %v9595_v22 = vld [vmem:[#allocation42_spill] sm:$0xff] }
 0x463   :  { %3743 = vrcp.f32 %v2387_v34  ;;  %v2399_v26 = vand.u32 2147483648, %v2387_v34  ;;  %v2397_v13 = vand.u32 2147483647, %v2387_v34  ;;  %v2235_v63 = vadd.f32 %v2234_v48, %v9595_v22 }
 0x464   :  { %v2430_v2 = vadd.f32 %v2295_v56, %v342_v3  ;;  %vm2393_vm5 = vweird.f32 %v2387_v34 }
 0x465   :  { %v2255_v20 = vadd.f32 %v2254_v1, %v2235_v63  ;;  %vm2398_vm8 = vcmp.eq.f32.partialorder %v2397_v13, 8.507059e+37 }
 0x466   :  { %v3742_v24 = vpop.eup %3741  ;;  %v3631_v31 = vmul.f32 -1.442695, %v2430_v2  ;;  %v2314_v2 = vpop.f32.mrf.mxu0 }
 0x467   :  { %v2407_v53 = vadd.f32 1.0, %v3742_v24  ;;  %v2315_v46 = vadd.f32 %v2314_v2, %v9304_v42 }
 0x468   :  { %3745 = vpow2.f32 %v3631_v31  ;;  %v2400_v31 = vor.u32 1.1754944e-38, %v2399_v26 }
 0x469   :  { %v3744_v29 = vpop.eup %3743  ;;  %3747 = vrcp.f32 %v2407_v53  ;;  %v2419_v48 = vand.u32 2147483648, %v2407_v53  ;;  %v2417_v26 = vand.u32 2147483647, %v2407_v53  ;;  %vm2413_vm14 = vweird.f32 %v2407_v53 }
 0x46a   :  { %v2389_v23 = vmul.f32 %v3744_v29, %v2387_v34  ;;  %vm2394_vm2 = vweird.f32 %v3744_v29  ;;  %v9597_v34 = vld [vmem:[#allocation23_spill] sm:$0xff] }
 0x46b   :  { %vm2395_vm7 = vmor %vm2393_vm5, %vm2394_vm2  ;;  %v383_v18 = vadd.f32 %v9597_v34, %v5519_v15  ;;  %vm2418_vm0 = vcmp.eq.f32.partialorder %v2417_v26, 8.507059e+37 }
 0x46c   :  { %v2390_v14 = vsub.f32 1.0, %v2389_v23  ;;  %v9596_v23 = vld [vmem:[#allocation144_spill] sm:$0xff] }
 0x46e   :  { %v3746_v54 = vpop.eup %3745  ;;  %v2391_v21 = vmul.f32 %v3744_v29, %v2390_v14  ;;  %v304_v14 = vadd.f32 %v9596_v23, %v9153_v7 }
 0x46f   :  { %v3748_v50 = vpop.eup %3747  ;;  %v2434_v30 = vadd.f32 1.0, %v3746_v54 }
 0x470   :  { %v2409_v3 = vmul.f32 %v3748_v50, %v2407_v53  ;;  %v2392_v56 = vadd.f32 %v3744_v29, %v2391_v21  ;;  %vm2414_vm10 = vweird.f32 %v3748_v50 }
 0x471   :  { %3749 = vrcp.f32 %v2434_v30  ;;  %vm2415_vm15 = vmor %vm2413_vm14, %vm2414_vm10  ;;  %vm2440_vm5 = vweird.f32 %v2434_v30 }
 0x472   :  { %v2410_v24 = vsub.f32 1.0, %v2409_v3  ;;  %v2396_v55 = vsel %vm2395_vm7, %v3744_v29, %v2392_v56  ;;  %v2420_v3 = vor.u32 1.1754944e-38, %v2419_v48 }
 0x473   :  { %v2401_v0 = vsel %vm2398_vm8, %v2400_v31, %v2396_v55 }
 0x474   :  { %v2411_v54 = vmul.f32 %v3748_v50, %v2410_v24  ;;  %v2423_v22 = vmul.f32 %v2401_v0, %v2255_v20  ;;  %v2334_v21 = vpop.f32.mrf.mxu1  ;;  %v2354_v20 = vpop.f32.mrf.mxu2  ;;  %v2446_v24 = vand.u32 2147483648, %v2434_v30 }
 0x475   :  { %v2335_v49 = vadd.f32 %v2334_v21, %v2315_v46  ;;  %v2444_v46 = vand.u32 2147483647, %v2434_v30 }
 0x476   :  { %v2412_v1 = vadd.f32 %v3748_v50, %v2411_v54  ;;  %v2424_v29 = vadd.f32 %v2423_v22, %v304_v14  ;;  %v2355_v14 = vadd.f32 %v2354_v20, %v5529_v51  ;;  %v2447_v48 = vor.u32 1.1754944e-38, %v2446_v24  ;;  %v7468_v24 = vld [vmem:[#allocation9 + $0xf8] sm:$0xff] }
 0x477   :  { %v3750_v13 = vpop.eup %3749  ;;  %v2450_v63 = vadd.f32 %v2335_v49, %v383_v18  ;;  %vm2445_vm8 = vcmp.eq.f32.partialorder %v2444_v46, 8.507059e+37 }
 0x478   :  { %v2416_v55 = vsel %vm2415_vm15, %v3748_v50, %v2412_v1  ;;  %3751 = vtanh.f32 %v2424_v29  ;;  %v2436_v56 = vmul.f32 %v3750_v13, %v2434_v30  ;;  %vm2441_vm2 = vweird.f32 %v3750_v13 }
 0x479   :  { %v3632_v2 = vmul.f32 -1.442695, %v2450_v63  ;;  %v2421_v31 = vsel %vm2418_vm0, %v2420_v3, %v2416_v55  ;;  %vm2442_vm7 = vmor %vm2440_vm5, %vm2441_vm2  ;;  %v9598_v55 = vld [vmem:[#allocation36_spill] sm:$0xff]  ;;  %v2134_v30 = vsel %vm2129_vm1, %v6990_v35, 0.0 }
 0x47a   :  { %v2437_v0 = vsub.f32 1.0, %v2436_v56  ;;  %v2426_v53 = vsub.f32 1.0, %v2421_v31  ;;  %v2374_v54 = vpop.f32.mrf.mxu3  ;;  %v2428_v50 = vmul.f32 %v2421_v31, %v6921_v47  ;;  %v424_v56 = vadd.f32 %v9598_v55, %v5564_v19  ;;  %v9620_v55 = vld [vmem:[#allocation170_spill] sm:$0xff] }
 0x47b   :  { %3753 = vpow2.f32 %v3632_v2  ;;  %v2375_v21 = vadd.f32 %v2374_v54, %v2355_v14  ;;  %v7376_v14 = vld [vmem:[#allocation9 + $0x5c8] sm:$0xff] }
 0x47c   :  { %v2438_v23 = vmul.f32 %v3750_v13, %v2437_v0 }
 0x47e   :  { %v3752_v22 = vpop.eup %3751  ;;  %v2439_v49 = vadd.f32 %v3750_v13, %v2438_v23 }
 0x47f   :  { %v2427_v18 = vmul.f32 %v3752_v22, %v2426_v53  ;;  %v9608_v22 = vld [vmem:[#allocation159_spill] sm:$0xff] }
 0x480   :  { %v2443_v34 = vsel %vm2442_vm7, %v3750_v13, %v2439_v49  ;;  %v9609_v49 = vld [vmem:[#allocation160_spill] sm:$0xff] }
 0x481   :  { %v3754_v26 = vpop.eup %3753  ;;  %v2429_v1 = vadd.f32 %v2428_v50, %v2427_v18  ;;  %v2448_v29 = vsel %vm2445_vm8, %v2447_v48, %v2443_v34  ;;  %v7382_v18 = vld [vmem:[#allocation9 + $0x598] sm:$0xff]  ;;  %v9610_v50 = vld [vmem:[#allocation161_spill] sm:$0xff]  ;;  %v7388_v48 = vld [vmem:[#allocation9 + $0x568] sm:$0xff] }
 0x482   :  { %v2454_v63 = vadd.f32 1.0, %v3754_v26  ;;  %v2470_v3 = vmul.f32 %v2448_v29, %v2375_v21  ;;  %v9614_v21 = vld [vmem:[#allocation165_spill] sm:$0xff]  ;;  %v7396_v34 = vld [vmem:[#allocation9 + $0x538] sm:$0xff]  ;;  %v9616_v26 = vld [vmem:[#allocation167_spill] sm:$0xff] }
 0x483   :  { %v2479_v2 = vsel %vm2129_vm1, %v2429_v1, 0.0  ;;  %v7326_v13 = vsel %vm2129_vm1, %v2429_v1, %v6921_v47  ;;  %v7404_v1 = vld [vmem:[#allocation9 + $0x2d8] sm:$0xff]  ;;  %v9617_v29 = vld [vmem:[#allocation168_spill] sm:$0xff] }
 0x484   :  { %v3548_v31 = vadd.f32 %v2479_v2, %v2134_v30  ;;  %3755 = vrcp.f32 %v2454_v63  ;;  %2501 = vmatmul.f32.vlgmr.msra.gmra.mxu0 %v7326_v13  ;;  %2541 = vmatmul.f32.vlgmr.msrb.gmra.mxu2 %v7326_v13  ;;  %v2471_v0 = vadd.f32 %v2470_v3, %v424_v56  ;;  %vm2460_vm10 = vweird.f32 %v2454_v63  ;;  %v7410_v3 = vld [vmem:[#allocation9 + $0x2a8] sm:$0xff]  ;;  %v7416_v56 = vld [vmem:[#allocation9 + $0x278] sm:$0xff]  ;;  %v9622_v30 = vld [vmem:[#allocation175_spill] sm:$0xff] }
 0x485   :  { %2645 = vmatpush.msra.mxu0 %v6925_v28  ;;  %2685 = vmatpush.msrb.mxu2 %v6928_v40  ;;  %v2466_v40 = vand.u32 2147483648, %v2454_v63  ;;  %v7422_v2 = vld [vmem:[#allocation9 + $0x248] sm:$0xff] }
 0x486   :  { %3556 = vst [vmem:[#allocation10 + $0x20] sm:$0xff] %v3548_v31  ;;  %3757 = vtanh.f32 %v2471_v0  ;;  %v9624_v31 = vld [vmem:[#allocation174_spill] sm:$0xff] }
 0x487   :  { %2646 = vmatpush.msra.mxu0 %v6931_v10  ;;  %2686 = vmatpush.msrb.mxu2 %v6934_v44  ;;  %v2464_v44 = vand.u32 2147483647, %v2454_v63  ;;  %v7428_v0 = vld [vmem:[#allocation9 + $0x218] sm:$0xff] }
 0x489   :  { %2647 = vmatpush.msra.mxu0 %v6937_v58  ;;  %2687 = vmatpush.msrb.mxu2 %v6940_v16  ;;  %v2467_v16 = vor.u32 1.1754944e-38, %v2466_v40  ;;  %vm2465_vm15 = vcmp.eq.f32.partialorder %v2464_v44, 8.507059e+37  ;;  %v9629_v40 = vld [vmem:[#allocation179_spill] sm:$0xff]  ;;  %v9630_v44 = vld [vmem:[#allocation180_spill] sm:$0xff] }
 0x48a   :  { %v3756_v47 = vpop.eup %3755 }
 0x48b   :  { %v2456_v57 = vmul.f32 %v3756_v47, %v2454_v63  ;;  %2648 = vmatpush.msra.mxu0 %v6943_v17  ;;  %2688 = vmatpush.msrb.mxu2 %v6946_v12  ;;  %vm2461_vm1 = vweird.f32 %v3756_v47  ;;  %v9599_v12 = vld [vmem:[#allocation153_spill] sm:$0xff] }
 0x48c   :  { %2581 = vmatmul.f32.vlgmr.msrb.gmra.mxu0 %v7326_v13  ;;  %2621 = vmatmul.f32.vlgmr.msra.gmra.mxu2 %v7326_v13  ;;  %vm2462_vm14 = vmor %vm2460_vm10, %vm2461_vm1  ;;  %v3758_v35 = vpop.eup %3757  ;;  %v9618_v63 = vld [vmem:[#allocation169_spill] sm:$0xff] }
 0x48d   :  { %v2457_v28 = vsub.f32 1.0, %v2456_v57  ;;  %2649 = vmatpush.msra.mxu0 %v6951_v60  ;;  %2689 = vmatpush.msrb.mxu2 %v6954_v5  ;;  %v7434_v57 = vld [vmem:[#allocation9 + $0x1e8] sm:$0xff] }
 0x48f   :  { %v2458_v10 = vmul.f32 %v3756_v47, %v2457_v28  ;;  %2650 = vmatpush.msra.mxu0 %v6957_v61  ;;  %2690 = vmatpush.msrb.mxu2 %v6960_v45  ;;  %v9600_v61 = vld [vmem:[#allocation46_spill] sm:$0xff]  ;;  %v9627_v28 = vld [vmem:[#allocation177_spill] sm:$0xff] }
 0x490   :  { %v9601_v45 = vld [vmem:[#allocation154_spill] sm:$0xff] }
 0x491   :  { %v2459_v58 = vadd.f32 %v3756_v47, %v2458_v10  ;;  %2651 = vmatpush.msra.mxu0 %v6963_v52  ;;  %2691 = vmatpush.msrb.mxu2 %v6966_v33  ;;  %v7440_v10 = vld [vmem:[#allocation9 + $0x1b8] sm:$0xff] }
 0x493   :  { %v2463_v17 = vsel %vm2462_vm14, %v3756_v47, %v2459_v58  ;;  %2652 = vmatpush.msra.mxu0 %v9599_v12  ;;  %2692 = vmatpush.msrb.mxu2 %v6972_v6  ;;  %v9602_v6 = vld [vmem:[#allocation31_spill] sm:$0xff]  ;;  %v9626_v47 = vld [vmem:[#allocation176_spill] sm:$0xff]  ;;  %v9632_v58 = vld [vmem:[#allocation182_spill] sm:$0xff] }
 0x494   :  { %v2468_v60 = vsel %vm2465_vm15, %v2467_v16, %v2463_v17  ;;  %v2131_v23 = vsel %vm2123_vm9, %v9602_v6, 0.0  ;;  %v7446_v16 = vld [vmem:[#allocation9 + $0x188] sm:$0xff]  ;;  %v9633_v17 = vld [vmem:[#allocation183_spill] sm:$0xff]  ;;  %v7465_v6 = vld [vmem:[#allocation9 + $0xf0] sm:$0xff] }
 0x495   :  { %v2473_v5 = vsub.f32 1.0, %v2468_v60  ;;  %2653 = vmatpush.msra.mxu0 %v9600_v61  ;;  %2693 = vmatpush.msrb.mxu2 %v9601_v45  ;;  %v2475_v52 = vmul.f32 %v2468_v60, %v7003_v62  ;;  %v9634_v12 = vld [vmem:[#allocation187_spill] sm:$0xff]  ;;  %v9635_v60 = vld [vmem:[#allocation185_spill] sm:$0xff]  ;;  %v9636_v61 = vld [vmem:[#allocation186_spill] sm:$0xff] }
 0x496   :  { %v9637_v45 = vld [vmem:[#allocation188_spill] sm:$0xff] }
 0x497   :  { %v2474_v20 = vmul.f32 %v3758_v35, %v2473_v5  ;;  %2654 = vmatpush.msra.mxu0 %v6984_v43  ;;  %2694 = vmatpush.msrb.mxu2 %v6987_v59  ;;  %v9604_v43 = vld [vmem:[#allocation155_spill] sm:$0xff]  ;;  %v9605_v59 = vld [vmem:[#allocation157_spill] sm:$0xff]  ;;  %v7452_v5 = vld [vmem:[#allocation9 + $0x158] sm:$0xff] }
 0x498   :  { %v9638_v35 = vld [vmem:[#allocation189_spill] sm:$0xff] }
 0x499   :  { %v2476_v33 = vadd.f32 %v2475_v52, %v2474_v20  ;;  %2655 = vmatpush.msra.mxu0 %v6992_v37  ;;  %2695 = vmatpush.msrb.mxu2 %v6995_v9  ;;  %v9606_v9 = vld [vmem:[#allocation156_spill] sm:$0xff]  ;;  %v7370_v37 = vld [vmem:[#allocation9 + $0x5f8] sm:$0xff] }
 0x49a   :  { %v7458_v20 = vld [vmem:[#allocation9 + $0x128] sm:$0xff]  ;;  %v9639_v52 = vld [vmem:[#allocation190_spill] sm:$0xff] }
 0x49b   :  { %v2482_v46 = vsel %vm2123_vm9, %v2476_v33, 0.0  ;;  %v7363_v53 = vsel %vm2123_vm9, %v2476_v33, %v7003_v62  ;;  %2656 = vmatpush.msra.mxu0 %v9604_v43  ;;  %2696 = vmatpush.msrb.mxu2 %v9605_v59  ;;  %v9607_v62 = vld [vmem:[#allocation158_spill] sm:$0xff]  ;;  %v9640_v33 = vld [vmem:[#allocation191_spill] sm:$0xff]  ;;  %v7478_v59 = vld [vmem:[#allocation9 + $0xc8] sm:$0xff] }
 0x49c   :  { %v3547_v54 = vadd.f32 %v2482_v46, %v2131_v23  ;;  %2521 = vmatmul.f32.vlgmr.msra.gmra.mxu1 %v7363_v53  ;;  %2561 = vmatmul.f32.vlgmr.msrb.gmra.mxu3 %v7363_v53  ;;  %v9641_v23 = vld [vmem:[#allocation192_spill] sm:$0xff]  ;;  %v7472_v46 = vld [vmem:[#allocation9 + $0x5d8] sm:$0xff]  ;;  %v7475_v43 = vld [vmem:[#allocation9 + $0xc0] sm:$0xff] }
 0x49d   :  { %2665 = vmatpush.msra.mxu1 %v9606_v9  ;;  %2705 = vmatpush.msrb.mxu3 %v7370_v37  ;;  %v7482_v9 = vld [vmem:[#allocation9 + $0x5a8] sm:$0xff] }
 0x49e   :  { %3555 = vst [vmem:[#allocation10 + $0x18] sm:$0xff] %v3547_v54  ;;  %2657 = vmatpush.msra.mxu0 %v7017_v11  ;;  %2697 = vmatpush.msrb.mxu2 %v9607_v62  ;;  %v9611_v11 = vld [vmem:[#allocation162_spill] sm:$0xff]  ;;  %v9642_v54 = vld [vmem:[#allocation52_spill] sm:$0xff]  ;;  %v7485_v62 = vld [vmem:[#allocation9 + $0x90] sm:$0xff] }
 0x49f   :  { %2666 = vmatpush.msra.mxu1 %v9608_v22  ;;  %2706 = vmatpush.msrb.mxu3 %v7376_v14  ;;  %v7488_v22 = vld [vmem:[#allocation9 + $0x98] sm:$0xff] }
 0x4a0   :  { %2658 = vmatpush.msra.mxu0 %v7027_v4  ;;  %2698 = vmatpush.msrb.mxu2 %v7030_v27  ;;  %v9612_v4 = vld [vmem:[#allocation163_spill] sm:$0xff]  ;;  %v9613_v27 = vld [vmem:[#allocation164_spill] sm:$0xff] }
 0x4a1   :  { %2667 = vmatpush.msra.mxu1 %v9609_v49  ;;  %2707 = vmatpush.msrb.mxu3 %v7382_v18  ;;  %v9643_v49 = vld [vmem:[#allocation38_spill] sm:$0xff] }
 0x4a2   :  { %2659 = vmatpush.msra.mxu0 %v9610_v50  ;;  %2699 = vmatpush.msrb.mxu2 %v7040_v39  ;;  %v9615_v39 = vld [vmem:[#allocation166_spill] sm:$0xff] }
 0x4a3   :  { %2668 = vmatpush.msra.mxu1 %v9611_v11  ;;  %2708 = vmatpush.msrb.mxu3 %v7388_v48  ;;  %v7492_v50 = vld [vmem:[#allocation9 + $0x578] sm:$0xff]  ;;  %v7495_v11 = vld [vmem:[#allocation9 + $0x60] sm:$0xff] }
 0x4a4   :  { %2601 = vmatmul.f32.vlgmr.msrb.gmra.mxu1 %v7363_v53  ;;  %2641 = vmatmul.f32.vlgmr.msra.gmra.mxu3 %v7363_v53 }
 0x4a5   :  { %2660 = vmatpush.msra.mxu0 %v9612_v4  ;;  %2669 = vmatpush.msra.mxu1 %v9613_v27  ;;  %v7498_v4 = vld [vmem:[#allocation9 + $0x68] sm:$0xff]  ;;  %v9644_v27 = vld [vmem:[#allocation55_spill] sm:$0xff] }
 0x4a6   :  { %2700 = vmatpush.msrb.mxu2 %v9614_v21  ;;  %2709 = vmatpush.msrb.mxu3 %v7396_v34  ;;  %v7502_v21 = vld [vmem:[#allocation9 + $0x548] sm:$0xff] }
 0x4a7   :  { %2661 = vmatmul.f32.vlgmr.msra.gmra.mxu0 %v7326_v13  ;;  %2701 = vmatmul.f32.vlgmr.msrb.gmra.mxu2 %v7326_v13 }
 0x4a8   :  { %2670 = vmatpush.msra.mxu1 %v7061_v8  ;;  %2710 = vmatpush.msrb.mxu3 %v9615_v39  ;;  %v9619_v8 = vld [vmem:[#allocation172_spill] sm:$0xff]  ;;  %v7505_v39 = vld [vmem:[#allocation9 + $0x30] sm:$0xff] }
 0x4a9   :  { %2833 = vmatpush.msrb.mxu0 %v9616_v26  ;;  %2873 = vmatpush.msra.mxu2 %v7404_v1  ;;  %v7508_v26 = vld [vmem:[#allocation9 + $0x38] sm:$0xff] }
 0x4aa   :  { %2671 = vmatpush.msra.mxu1 %v7071_v38  ;;  %2711 = vmatpush.msrb.mxu3 %v9617_v29  ;;  %v9621_v38 = vld [vmem:[#allocation171_spill] sm:$0xff]  ;;  %v9645_v29 = vld [vmem:[#allocation53_spill] sm:$0xff] }
 0x4ab   :  { %2834 = vmatpush.msrb.mxu0 %v9618_v63  ;;  %2874 = vmatpush.msra.mxu2 %v7410_v3  ;;  %v7512_v63 = vld [vmem:[#allocation9 + $0x518] sm:$0xff] }
 0x4ac   :  { %2672 = vmatpush.msra.mxu1 %v7081_v36  ;;  %2712 = vmatpush.msrb.mxu3 %v9619_v8  ;;  %v9623_v36 = vld [vmem:[#allocation173_spill] sm:$0xff]  ;;  %v7515_v8 = vld [vmem:[#allocation9] sm:$0xff] }
 0x4ad   :  { %2835 = vmatpush.msrb.mxu0 %v9620_v55  ;;  %2875 = vmatpush.msra.mxu2 %v7416_v56  ;;  %v7518_v55 = vld [vmem:[#allocation9 + $0x8] sm:$0xff] }
 0x4ae   :  { %2673 = vmatpush.msra.mxu1 %v7091_v41  ;;  %2713 = vmatpush.msrb.mxu3 %v9621_v38  ;;  %v9625_v41 = vld [vmem:[#allocation178_spill] sm:$0xff]  ;;  %9646 = vst [vmem:[#allocation40_spill] sm:$0xff] %v7518_v55  ;;  %v7521_v38 = vld [vmem:[#allocation9 + $0x2e0] sm:$0xff] }
 0x4af   :  { %2836 = vmatpush.msrb.mxu0 %v9622_v30  ;;  %2876 = vmatpush.msra.mxu2 %v7422_v2  ;;  %9647 = vst [vmem:[#allocation29_spill] sm:$0xff] %v7521_v38  ;;  %v7524_v30 = vld [vmem:[#allocation9 + $0x2e8] sm:$0xff] }
 0x4b0   :  { %2674 = vmatpush.msra.mxu1 %v7101_v32  ;;  %2714 = vmatpush.msrb.mxu3 %v9623_v36  ;;  %v9628_v32 = vld [vmem:[#allocation181_spill] sm:$0xff]  ;;  %9648 = vst [vmem:[#allocation44_spill] sm:$0xff] %v7524_v30 }
 0x4b1   :  { %2837 = vmatpush.msrb.mxu0 %v9624_v31  ;;  %2877 = vmatpush.msra.mxu2 %v7428_v0  ;;  %v9649_v36 = vld [vmem:[#allocation49_spill] sm:$0xff]  ;;  %v7528_v31 = vld [vmem:[#allocation9 + $0x4e8] sm:$0xff] }
 0x4b2   :  { %2675 = vmatpush.msra.mxu1 %v7111_v25  ;;  %2715 = vmatpush.msrb.mxu3 %v9625_v41  ;;  %v9631_v25 = vld [vmem:[#allocation184_spill] sm:$0xff]  ;;  %9650 = vst [vmem:[#allocation48_spill] sm:$0xff] %v7528_v31  ;;  %v7531_v41 = vld [vmem:[#allocation9 + $0x2b0] sm:$0xff] }
 0x4b3   :  { %2838 = vmatpush.msrb.mxu0 %v9626_v47  ;;  %2878 = vmatpush.msra.mxu2 %v7434_v57  ;;  %9651 = vst [vmem:[#allocation58_spill] sm:$0xff] %v7531_v41  ;;  %v7534_v47 = vld [vmem:[#allocation9 + $0x2b8] sm:$0xff] }
 0x4b4   :  { %2676 = vmatpush.msra.mxu1 %v9627_v28  ;;  %2716 = vmatpush.msrb.mxu3 %v9628_v32  ;;  %9652 = vst [vmem:[#allocation67_spill] sm:$0xff] %v7534_v47  ;;  %v9653_v28 = vld [vmem:[#allocation41_spill] sm:$0xff]  ;;  %v7538_v32 = vld [vmem:[#allocation9 + $0x4b8] sm:$0xff] }
 0x4b5   :  { %2839 = vmatpush.msrb.mxu0 %v9629_v40  ;;  %2879 = vmatpush.msra.mxu2 %v7440_v10  ;;  %9654 = vst [vmem:[#allocation71_spill] sm:$0xff] %v7538_v32  ;;  %v7541_v40 = vld [vmem:[#allocation9 + $0x280] sm:$0xff] }
 0x4b6   :  { %2677 = vmatpush.msra.mxu1 %v9630_v44  ;;  %2717 = vmatpush.msrb.mxu3 %v9631_v25  ;;  %9655 = vst [vmem:[#allocation63_spill] sm:$0xff] %v7541_v40  ;;  %v7544_v44 = vld [vmem:[#allocation9 + $0x288] sm:$0xff] }
 0x4b7   :  { %2840 = vmatpush.msrb.mxu0 %v9632_v58  ;;  %2880 = vmatpush.msra.mxu2 %v7446_v16  ;;  %9656 = vst [vmem:[#allocation62_spill] sm:$0xff] %v7544_v44  ;;  %v9657_v25 = vld [vmem:[#allocation136_spill] sm:$0xff] }
 0x4b8   :  { %2678 = vmatpush.msra.mxu1 %v9633_v17  ;;  %2718 = vmatpush.msrb.mxu3 %v9634_v12  ;;  %v7548_v58 = vld [vmem:[#allocation9 + $0x488] sm:$0xff]  ;;  %v7551_v17 = vld [vmem:[#allocation9 + $0x250] sm:$0xff]  ;;  %v7554_v12 = vld [vmem:[#allocation9 + $0x258] sm:$0xff] }
 0x4b9   :  { %2841 = vmatpush.msrb.mxu0 %v9635_v60  ;;  %2881 = vmatpush.msra.mxu2 %v7452_v5  ;;  %9658 = vst [vmem:[#allocation74_spill] sm:$0xff] %v7548_v58  ;;  %v9661_v60 = vld [vmem:[#allocation138_spill] sm:$0xff] }
 0x4ba   :  { %2679 = vmatpush.msra.mxu1 %v9636_v61  ;;  %2719 = vmatpush.msrb.mxu3 %v9637_v45  ;;  %9659 = vst [vmem:[#allocation51_spill] sm:$0xff] %v7551_v17  ;;  %v7558_v61 = vld [vmem:[#allocation9 + $0x458] sm:$0xff]  ;;  %v7561_v45 = vld [vmem:[#allocation9 + $0x220] sm:$0xff] }
 0x4bb   :  { %2842 = vmatpush.msrb.mxu0 %v9638_v35  ;;  %2882 = vmatpush.msra.mxu2 %v7458_v20  ;;  %9660 = vst [vmem:[#allocation69_spill] sm:$0xff] %v7554_v12  ;;  %v7564_v35 = vld [vmem:[#allocation9 + $0x228] sm:$0xff] }
 0x4bc   :  { %2680 = vmatpush.msra.mxu1 %v9639_v52  ;;  %2720 = vmatpush.msrb.mxu3 %v9640_v33  ;;  %9662 = vst [vmem:[#allocation57_spill] sm:$0xff] %v7558_v61  ;;  %v9665_v52 = vld [vmem:[#allocation146_spill] sm:$0xff]  ;;  %v7568_v33 = vld [vmem:[#allocation9 + $0x428] sm:$0xff] }
 0x4bd   :  { %2681 = vmatmul.f32.vlgmr.msra.gmra.mxu1 %v7363_v53  ;;  %2721 = vmatmul.f32.vlgmr.msrb.gmra.mxu3 %v7363_v53  ;;  %9663 = vst [vmem:[#allocation54_spill] sm:$0xff] %v7561_v45 }
 0x4be   :  { %2843 = vmatpush.msrb.mxu0 %v7465_v6  ;;  %2883 = vmatpush.msra.mxu2 %v7468_v24  ;;  %9664 = vst [vmem:[#allocation72_spill] sm:$0xff] %v7564_v35 }
 0x4bf   :  { %2853 = vmatpush.msrb.mxu1 %v9641_v23  ;;  %2893 = vmatpush.msra.mxu3 %v7472_v46  ;;  %9666 = vst [vmem:[#allocation77_spill] sm:$0xff] %v7568_v33  ;;  %v7571_v23 = vld [vmem:[#allocation9 + $0x1f0] sm:$0xff] }
 0x4c0   :  { %2844 = vmatpush.msrb.mxu0 %v7475_v43  ;;  %2884 = vmatpush.msra.mxu2 %v7478_v59  ;;  %9667 = vst [vmem:[#allocation64_spill] sm:$0xff] %v7571_v23 }
 0x4c1   :  { %2854 = vmatpush.msrb.mxu1 %v9642_v54  ;;  %2894 = vmatpush.msra.mxu3 %v7482_v9  ;;  %v7574_v54 = vld [vmem:[#allocation9 + $0x1f8] sm:$0xff] }
 0x4c2   :  { %2845 = vmatpush.msrb.mxu0 %v7485_v62  ;;  %2885 = vmatpush.msra.mxu2 %v7488_v22  ;;  %9668 = vst [vmem:[#allocation75_spill] sm:$0xff] %v7574_v54 }
 0x4c3   :  { %2855 = vmatpush.msrb.mxu1 %v9643_v49  ;;  %2895 = vmatpush.msra.mxu3 %v7492_v50  ;;  %v9669_v49 = vld [vmem:[#allocation140_spill] sm:$0xff] }
 0x4c4   :  { %2846 = vmatpush.msrb.mxu0 %v7495_v11  ;;  %2886 = vmatpush.msra.mxu2 %v7498_v4 }
 0x4c5   :  { %2856 = vmatpush.msrb.mxu1 %v9644_v27  ;;  %2896 = vmatpush.msra.mxu3 %v7502_v21  ;;  %v7578_v27 = vld [vmem:[#allocation9 + $0x3f8] sm:$0xff] }
 0x4c6   :  { %2847 = vmatpush.msrb.mxu0 %v7505_v39  ;;  %2887 = vmatpush.msra.mxu2 %v7508_v26  ;;  %9670 = vst [vmem:[#allocation61_spill] sm:$0xff] %v7578_v27 }
 0x4c7   :  { %2857 = vmatpush.msrb.mxu1 %v9645_v29  ;;  %2897 = vmatpush.msra.mxu3 %v7512_v63  ;;  %v7581_v29 = vld [vmem:[#allocation9 + $0x1c0] sm:$0xff] }
 0x4c8   :  { %2848 = vmatpush.msrb.mxu0 %v7515_v8  ;;  %2888 = vmatpush.msra.mxu2 %v7518_v55  ;;  %9671 = vst [vmem:[#allocation122_spill] sm:$0xff] %v7581_v29 }
 0x4c9   :  { %2858 = vmatpush.msrb.mxu1 %v9649_v36  ;;  %2898 = vmatpush.msra.mxu3 %v7528_v31  ;;  %v7584_v36 = vld [vmem:[#allocation9 + $0x1c8] sm:$0xff] }
 0x4ca   :  { %2913 = vmatpush.msra.mxu0 %v7521_v38  ;;  %2953 = vmatpush.msrb.mxu2 %v7524_v30  ;;  %9672 = vst [vmem:[#allocation78_spill] sm:$0xff] %v7584_v36 }
 0x4cb   :  { %2859 = vmatpush.msrb.mxu1 %v9653_v28  ;;  %2899 = vmatpush.msra.mxu3 %v7538_v32  ;;  %v7587_v28 = vld [vmem:[#allocation9 + $0x3c0] sm:$0xff] }
 0x4cc   :  { %2914 = vmatpush.msra.mxu0 %v7531_v41  ;;  %2954 = vmatpush.msrb.mxu2 %v7534_v47  ;;  %9673 = vst [vmem:[#allocation81_spill] sm:$0xff] %v7587_v28 }
 0x4cd   :  { %2860 = vmatpush.msrb.mxu1 %v9657_v25  ;;  %2900 = vmatpush.msra.mxu3 %v7548_v58  ;;  %v7590_v25 = vld [vmem:[#allocation9 + $0x3c8] sm:$0xff]  ;;  %v9737_v58 = vld [vmem:[#allocation26_spill] sm:$0xff] }
 0x4ce   :  { %2915 = vmatpush.msra.mxu0 %v7541_v40  ;;  %2955 = vmatpush.msrb.mxu2 %v7544_v44  ;;  %9674 = vst [vmem:[#allocation66_spill] sm:$0xff] %v7590_v25 }
 0x4cf   :  { %2861 = vmatpush.msrb.mxu1 %v9661_v60  ;;  %2901 = vmatpush.msra.mxu3 %v7558_v61  ;;  %v7593_v60 = vld [vmem:[#allocation9 + $0x190] sm:$0xff] }
 0x4d0   :  { %2916 = vmatpush.msra.mxu0 %v7551_v17  ;;  %2956 = vmatpush.msrb.mxu2 %v7554_v12  ;;  %9675 = vst [vmem:[#allocation68_spill] sm:$0xff] %v7593_v60  ;;  %v9736_v61 = vld [vmem:[#allocation37_spill] sm:$0xff] }
 0x4d1   :  { %2862 = vmatpush.msrb.mxu1 %v9665_v52  ;;  %2902 = vmatpush.msra.mxu3 %v7568_v33  ;;  %v7596_v52 = vld [vmem:[#allocation9 + $0x198] sm:$0xff]  ;;  %v9735_v33 = vld [vmem:[#allocation145_spill] sm:$0xff] }
 0x4d2   :  { %2917 = vmatpush.msra.mxu0 %v7561_v45  ;;  %2957 = vmatpush.msrb.mxu2 %v7564_v35  ;;  %9676 = vst [vmem:[#allocation85_spill] sm:$0xff] %v7596_v52 }
 0x4d3   :  { %2863 = vmatpush.msrb.mxu1 %v9669_v49  ;;  %2903 = vmatpush.msra.mxu3 %v7578_v27  ;;  %v7599_v49 = vld [vmem:[#allocation9 + $0x390] sm:$0xff] }
 0x4d4   :  { %2918 = vmatpush.msra.mxu0 %v7571_v23  ;;  %2958 = vmatpush.msrb.mxu2 %v7574_v54  ;;  %9677 = vst [vmem:[#allocation65_spill] sm:$0xff] %v7599_v49  ;;  %v9734_v23 = vld [vmem:[#allocation24_spill] sm:$0xff] }
 0x4d5   :  { %2864 = vmatpush.msrb.mxu1 %v7587_v28  ;;  %2904 = vmatpush.msra.mxu3 %v7590_v25  ;;  %v7605_v28 = vld [vmem:[#allocation9 + $0x160] sm:$0xff]  ;;  %v7608_v25 = vld [vmem:[#allocation9 + $0x168] sm:$0xff] }
 0x4d6   :  { %2919 = vmatpush.msra.mxu0 %v7581_v29  ;;  %2959 = vmatpush.msrb.mxu2 %v7584_v36  ;;  %v7602_v36 = vld [vmem:[#allocation9 + $0x398] sm:$0xff]  ;;  %9679 = vst [vmem:[#allocation73_spill] sm:$0xff] %v7605_v28  ;;  %v9733_v29 = vld [vmem:[#allocation33_spill] sm:$0xff] }
 0x4d7   :  { %2865 = vmatpush.msrb.mxu1 %v7599_v49  ;;  %9678 = vst [vmem:[#allocation80_spill] sm:$0xff] %v7602_v36  ;;  %2905 = vmatpush.msra.mxu3 %v7602_v36  ;;  %v7617_v49 = vld [vmem:[#allocation9 + $0x130] sm:$0xff]  ;;  %v7620_v36 = vld [vmem:[#allocation9 + $0x138] sm:$0xff] }
 0x4d8   :  { %2920 = vmatpush.msra.mxu0 %v7593_v60  ;;  %2960 = vmatpush.msrb.mxu2 %v7596_v52  ;;  %9680 = vst [vmem:[#allocation94_spill] sm:$0xff] %v7608_v25  ;;  %v7611_v60 = vld [vmem:[#allocation9 + $0x360] sm:$0xff]  ;;  %v7614_v52 = vld [vmem:[#allocation9 + $0x368] sm:$0xff] }
 0x4d9   :  { %9681 = vst [vmem:[#allocation70_spill] sm:$0xff] %v7611_v60  ;;  %2866 = vmatpush.msrb.mxu1 %v7611_v60  ;;  %2906 = vmatpush.msra.mxu3 %v7614_v52  ;;  %v7629_v60 = vld [vmem:[#allocation9 + $0x100] sm:$0xff] }
 0x4da   :  { %2921 = vmatpush.msra.mxu0 %v7605_v28  ;;  %2961 = vmatpush.msrb.mxu2 %v7608_v25  ;;  %9682 = vst [vmem:[#allocation89_spill] sm:$0xff] %v7614_v52  ;;  %v7623_v28 = vld [vmem:[#allocation9 + $0x330] sm:$0xff]  ;;  %v7626_v25 = vld [vmem:[#allocation9 + $0x338] sm:$0xff]  ;;  %v7632_v52 = vld [vmem:[#allocation9 + $0x108] sm:$0xff] }
 0x4db   :  { %9683 = vst [vmem:[#allocation79_spill] sm:$0xff] %v7617_v49  ;;  %2867 = vmatpush.msrb.mxu1 %v7623_v28  ;;  %2907 = vmatpush.msra.mxu3 %v7626_v25 }
 0x4dc   :  { %2922 = vmatpush.msra.mxu0 %v7617_v49  ;;  %9684 = vst [vmem:[#allocation101_spill] sm:$0xff] %v7620_v36  ;;  %2962 = vmatpush.msrb.mxu2 %v7620_v36  ;;  %v7635_v49 = vld [vmem:[#allocation9 + $0x300] sm:$0xff]  ;;  %v7638_v36 = vld [vmem:[#allocation9 + $0x308] sm:$0xff] }
 0x4dd   :  { %9685 = vst [vmem:[#allocation76_spill] sm:$0xff] %v7623_v28  ;;  %2868 = vmatpush.msrb.mxu1 %v7635_v49  ;;  %2908 = vmatpush.msra.mxu3 %v7638_v36  ;;  %v7641_v28 = vld [vmem:[#allocation9 + $0xd0] sm:$0xff] }
 0x4de   :  { %9686 = vst [vmem:[#allocation97_spill] sm:$0xff] %v7626_v25  ;;  %2923 = vmatpush.msra.mxu0 %v7629_v60  ;;  %2963 = vmatpush.msrb.mxu2 %v7632_v52  ;;  %v7644_v25 = vld [vmem:[#allocation9 + $0x5e0] sm:$0xff] }
 0x4df   :  { %9687 = vst [vmem:[#allocation105_spill] sm:$0xff] %v7629_v60  ;;  %2933 = vmatpush.msra.mxu1 %v7644_v25  ;;  %v7647_v60 = vld [vmem:[#allocation9 + $0xd8] sm:$0xff] }
 0x4e0   :  { %9688 = vst [vmem:[#allocation110_spill] sm:$0xff] %v7632_v52  ;;  %2924 = vmatpush.msra.mxu0 %v7641_v28  ;;  %2964 = vmatpush.msrb.mxu2 %v7647_v60  ;;  %v7650_v52 = vld [vmem:[#allocation9 + $0x5e8] sm:$0xff] }
 0x4e1   :  { %9689 = vst [vmem:[#allocation82_spill] sm:$0xff] %v7635_v49  ;;  %2973 = vmatpush.msrb.mxu3 %v7650_v52  ;;  %v7653_v49 = vld [vmem:[#allocation9 + $0xa0] sm:$0xff] }
 0x4e2   :  { %9690 = vst [vmem:[#allocation86_spill] sm:$0xff] %v7638_v36  ;;  %2925 = vmatpush.msra.mxu0 %v7653_v49  ;;  %v7656_v36 = vld [vmem:[#allocation9 + $0x5b0] sm:$0xff] }
 0x4e3   :  { %9691 = vst [vmem:[#allocation113_spill] sm:$0xff] %v7641_v28  ;;  %2934 = vmatpush.msra.mxu1 %v7656_v36  ;;  %v7659_v28 = vld [vmem:[#allocation9 + $0xa8] sm:$0xff] }
 0x4e4   :  { %9692 = vst [vmem:[#allocation117_spill] sm:$0xff] %v7644_v25  ;;  %2965 = vmatpush.msrb.mxu2 %v7659_v28  ;;  %v7662_v25 = vld [vmem:[#allocation9 + $0x5b8] sm:$0xff] }
 0x4e5   :  { %9693 = vst [vmem:[#allocation90_spill] sm:$0xff] %v7647_v60  ;;  %2974 = vmatpush.msrb.mxu3 %v7662_v25  ;;  %v7665_v60 = vld [vmem:[#allocation9 + $0x70] sm:$0xff] }
 0x4e6   :  { %9694 = vst [vmem:[#allocation93_spill] sm:$0xff] %v7650_v52  ;;  %2926 = vmatpush.msra.mxu0 %v7665_v60  ;;  %v7668_v52 = vld [vmem:[#allocation9 + $0x580] sm:$0xff] }
 0x4e7   :  { %9695 = vst [vmem:[#allocation121_spill] sm:$0xff] %v7653_v49  ;;  %2935 = vmatpush.msra.mxu1 %v7668_v52  ;;  %v7671_v49 = vld [vmem:[#allocation9 + $0x78] sm:$0xff] }
 0x4e8   :  { %9696 = vst [vmem:[#allocation126_spill] sm:$0xff] %v7656_v36  ;;  %2966 = vmatpush.msrb.mxu2 %v7671_v49  ;;  %v7674_v36 = vld [vmem:[#allocation9 + $0x588] sm:$0xff] }
 0x4e9   :  { %9697 = vst [vmem:[#allocation99_spill] sm:$0xff] %v7659_v28  ;;  %2975 = vmatpush.msrb.mxu3 %v7674_v36  ;;  %v7677_v28 = vld [vmem:[#allocation9 + $0x40] sm:$0xff] }
 0x4ea   :  { %9698 = vst [vmem:[#allocation103_spill] sm:$0xff] %v7662_v25  ;;  %2927 = vmatpush.msra.mxu0 %v7677_v28  ;;  %v7680_v25 = vld [vmem:[#allocation9 + $0x550] sm:$0xff] }
 0x4eb   :  { %9699 = vst [vmem:[#allocation130_spill] sm:$0xff] %v7665_v60  ;;  %2936 = vmatpush.msra.mxu1 %v7680_v25  ;;  %v7683_v60 = vld [vmem:[#allocation9 + $0x48] sm:$0xff] }
 0x4ec   :  { %9700 = vst [vmem:[#allocation115_spill] sm:$0xff] %v7668_v52  ;;  %2967 = vmatpush.msrb.mxu2 %v7683_v60  ;;  %v7686_v52 = vld [vmem:[#allocation9 + $0x558] sm:$0xff] }
 0x4ed   :  { %9701 = vst [vmem:[#allocation107_spill] sm:$0xff] %v7671_v49  ;;  %2976 = vmatpush.msrb.mxu3 %v7686_v52  ;;  %v7689_v49 = vld [vmem:[#allocation9 + $0x10] sm:$0xff] }
 0x4ee   :  { %9702 = vst [vmem:[#allocation111_spill] sm:$0xff] %v7674_v36  ;;  %2928 = vmatpush.msra.mxu0 %v7689_v49  ;;  %v7692_v36 = vld [vmem:[#allocation9 + $0x520] sm:$0xff] }
 0x4ef   :  { %9703 = vst [vmem:[#allocation119_spill] sm:$0xff] %v7677_v28  ;;  %2937 = vmatpush.msra.mxu1 %v7692_v36  ;;  %v7695_v28 = vld [vmem:[#allocation9 + $0x18] sm:$0xff] }
 0x4f0   :  { %9704 = vst [vmem:[#allocation91_spill] sm:$0xff] %v7680_v25  ;;  %2968 = vmatpush.msrb.mxu2 %v7695_v28  ;;  %v7698_v25 = vld [vmem:[#allocation9 + $0x528] sm:$0xff] }
 0x4f1   :  { %9705 = vst [vmem:[#allocation83_spill] sm:$0xff] %v7683_v60  ;;  %2977 = vmatpush.msrb.mxu3 %v7698_v25  ;;  %v7701_v60 = vld [vmem:[#allocation9 + $0x4f0] sm:$0xff] }
 0x4f2   :  { %9706 = vst [vmem:[#allocation87_spill] sm:$0xff] %v7686_v52  ;;  %2938 = vmatpush.msra.mxu1 %v7701_v60  ;;  %v7704_v52 = vld [vmem:[#allocation9 + $0x4f8] sm:$0xff] }
 0x4f3   :  { %9707 = vst [vmem:[#allocation95_spill] sm:$0xff] %v7689_v49  ;;  %2978 = vmatpush.msrb.mxu3 %v7704_v52  ;;  %v7707_v49 = vld [vmem:[#allocation9 + $0x4c0] sm:$0xff] }
 0x4f4   :  { %9708 = vst [vmem:[#allocation98_spill] sm:$0xff] %v7692_v36  ;;  %2939 = vmatpush.msra.mxu1 %v7707_v49  ;;  %v7710_v36 = vld [vmem:[#allocation9 + $0x4c8] sm:$0xff] }
 0x4f5   :  { %9709 = vst [vmem:[#allocation102_spill] sm:$0xff] %v7695_v28  ;;  %2979 = vmatpush.msrb.mxu3 %v7710_v36  ;;  %v7713_v28 = vld [vmem:[#allocation9 + $0x490] sm:$0xff] }
 0x4f6   :  { %9710 = vst [vmem:[#allocation84_spill] sm:$0xff] %v7698_v25  ;;  %2940 = vmatpush.msra.mxu1 %v7713_v28  ;;  %v7716_v25 = vld [vmem:[#allocation9 + $0x498] sm:$0xff] }
 0x4f7   :  { %9711 = vst [vmem:[#allocation106_spill] sm:$0xff] %v7701_v60  ;;  %2980 = vmatpush.msrb.mxu3 %v7716_v25  ;;  %v7719_v60 = vld [vmem:[#allocation9 + $0x460] sm:$0xff] }
 0x4f8   :  { %9712 = vst [vmem:[#allocation88_spill] sm:$0xff] %v7704_v52  ;;  %2941 = vmatpush.msra.mxu1 %v7719_v60  ;;  %v7722_v52 = vld [vmem:[#allocation9 + $0x468] sm:$0xff] }
 0x4f9   :  { %9713 = vst [vmem:[#allocation109_spill] sm:$0xff] %v7707_v49  ;;  %2981 = vmatpush.msrb.mxu3 %v7722_v52  ;;  %v7725_v49 = vld [vmem:[#allocation9 + $0x430] sm:$0xff] }
 0x4fa   :  { %9714 = vst [vmem:[#allocation92_spill] sm:$0xff] %v7710_v36  ;;  %2942 = vmatpush.msra.mxu1 %v7725_v49  ;;  %v7728_v36 = vld [vmem:[#allocation9 + $0x438] sm:$0xff] }
 0x4fb   :  { %9715 = vst [vmem:[#allocation114_spill] sm:$0xff] %v7713_v28  ;;  %2982 = vmatpush.msrb.mxu3 %v7728_v36  ;;  %v7731_v28 = vld [vmem:[#allocation9 + $0x400] sm:$0xff] }
 0x4fc   :  { %9716 = vst [vmem:[#allocation96_spill] sm:$0xff] %v7716_v25  ;;  %2943 = vmatpush.msra.mxu1 %v7731_v28  ;;  %v7734_v25 = vld [vmem:[#allocation9 + $0x408] sm:$0xff] }
 0x4fd   :  { %9717 = vst [vmem:[#allocation118_spill] sm:$0xff] %v7719_v60  ;;  %2983 = vmatpush.msrb.mxu3 %v7734_v25  ;;  %v7737_v60 = vld [vmem:[#allocation9 + $0x3d0] sm:$0xff] }
 0x4fe   :  { %9718 = vst [vmem:[#allocation100_spill] sm:$0xff] %v7722_v52  ;;  %2944 = vmatpush.msra.mxu1 %v7737_v60  ;;  %v7740_v52 = vld [vmem:[#allocation9 + $0x3d8] sm:$0xff] }
 0x4ff   :  { %9719 = vst [vmem:[#allocation123_spill] sm:$0xff] %v7725_v49  ;;  %2984 = vmatpush.msrb.mxu3 %v7740_v52  ;;  %v7743_v49 = vld [vmem:[#allocation9 + $0x3a0] sm:$0xff] }
 0x500   :  { %9720 = vst [vmem:[#allocation104_spill] sm:$0xff] %v7728_v36  ;;  %2945 = vmatpush.msra.mxu1 %v7743_v49  ;;  %v7746_v36 = vld [vmem:[#allocation9 + $0x3a8] sm:$0xff] }
 0x501   :  { %9721 = vst [vmem:[#allocation127_spill] sm:$0xff] %v7731_v28  ;;  %2985 = vmatpush.msrb.mxu3 %v7746_v36  ;;  %v7749_v28 = vld [vmem:[#allocation9 + $0x370] sm:$0xff] }
 0x502   :  { %9722 = vst [vmem:[#allocation108_spill] sm:$0xff] %v7734_v25  ;;  %2946 = vmatpush.msra.mxu1 %v7749_v28  ;;  %v7752_v25 = vld [vmem:[#allocation9 + $0x378] sm:$0xff] }
 0x503   :  { %9723 = vst [vmem:[#allocation112_spill] sm:$0xff] %v7737_v60  ;;  %2986 = vmatpush.msrb.mxu3 %v7752_v25  ;;  %v7755_v60 = vld [vmem:[#allocation9 + $0x340] sm:$0xff] }
 0x504   :  { %9724 = vst [vmem:[#allocation116_spill] sm:$0xff] %v7740_v52  ;;  %2947 = vmatpush.msra.mxu1 %v7755_v60  ;;  %v7758_v52 = vld [vmem:[#allocation9 + $0x348] sm:$0xff] }
 0x505   :  { %9725 = vst [vmem:[#allocation120_spill] sm:$0xff] %v7743_v49  ;;  %2987 = vmatpush.msrb.mxu3 %v7758_v52  ;;  %v7761_v49 = vld [vmem:[#allocation9 + $0x310] sm:$0xff] }
 0x506   :  { %9726 = vst [vmem:[#allocation124_spill] sm:$0xff] %v7746_v36  ;;  %2948 = vmatpush.msra.mxu1 %v7761_v49  ;;  %v7764_v36 = vld [vmem:[#allocation9 + $0x318] sm:$0xff] }
 0x507   :  { %9727 = vst [vmem:[#allocation139_spill] sm:$0xff] %v7749_v28  ;;  %2988 = vmatpush.msrb.mxu3 %v7764_v36  ;;  %v2502_v28 = vpop.f32.mrf.mxu0 }
 0x508   :  { %9728 = vst [vmem:[#allocation152_spill] sm:$0xff] %v7752_v25  ;;  %v2503_v27 = vadd.f32 %v2502_v28, %v9733_v29  ;;  %v2542_v25 = vpop.f32.mrf.mxu2  ;;  %v9739_v29 = vld [vmem:[#allocation39_spill] sm:$0xff] }
 0x509   :  { %9729 = vst [vmem:[#allocation132_spill] sm:$0xff] %v7755_v60  ;;  %v225_v60 = vadd.f32 %v9735_v33, %v9734_v23 }
 0x50a   :  { %9730 = vst [vmem:[#allocation134_spill] sm:$0xff] %v7758_v52  ;;  %v2543_v52 = vadd.f32 %v2542_v25, %v9736_v61 }
 0x50b   :  { %9731 = vst [vmem:[#allocation150_spill] sm:$0xff] %v7761_v49  ;;  %v9738_v49 = vld [vmem:[#allocation147_spill] sm:$0xff] }
 0x50c   :  { %9732 = vst [vmem:[#allocation135_spill] sm:$0xff] %v7764_v36  ;;  %v266_v44 = vadd.f32 %v9738_v49, %v9737_v58 }
 0x510   :  { %v2622_v32 = vpop.f32.mrf.mxu2 }
 0x511   :  { %v2623_v41 = vadd.f32 %v2622_v32, %v9739_v29 }
 0x519   :  { %v2522_v54 = vpop.f32.mrf.mxu1 }
 0x51a   :  { %v2523_v35 = vadd.f32 %v2522_v54, %v2503_v27  ;;  %v9740_v54 = vld [vmem:[#allocation43_spill] sm:$0xff] }
 0x51c   :  { %v2731_v45 = vadd.f32 %v2523_v35, %v225_v60  ;;  %v9741_v35 = vld [vmem:[#allocation137_spill] sm:$0xff] }
 0x51d   :  { %v339_v27 = vadd.f32 %v9741_v35, %v9740_v54 }
 0x51e   :  { %v3633_v12 = vmul.f32 -1.442695, %v2731_v45 }
 0x51f   :  { %v2562_v17 = vpop.f32.mrf.mxu3 }
 0x520   :  { %3759 = vpow2.f32 %v3633_v12  ;;  %v2563_v40 = vadd.f32 %v2562_v17, %v2543_v52  ;;  %v2582_v12 = vpop.f32.mrf.mxu0 }
 0x521   :  { %v2602_v17 = vpop.f32.mrf.mxu1 }
 0x522   :  { %v2751_v36 = vadd.f32 %v2563_v40, %v266_v44 }
 0x524   :  { %v3634_v47 = vmul.f32 -1.442695, %v2751_v36 }
 0x526   :  { %v3760_v28 = vpop.eup %3759  ;;  %3761 = vpow2.f32 %v3634_v47 }
 0x527   :  { %v2735_v31 = vadd.f32 1.0, %v3760_v28  ;;  %v2642_v33 = vpop.f32.mrf.mxu3 }
 0x528   :  { %v2643_v25 = vadd.f32 %v2642_v33, %v2623_v41  ;;  %v9742_v41 = vld [vmem:[#allocation42_spill] sm:$0xff] }
 0x529   :  { %3763 = vrcp.f32 %v2735_v31  ;;  %v2747_v32 = vand.u32 2147483648, %v2735_v31  ;;  %v2745_v28 = vand.u32 2147483647, %v2735_v31  ;;  %v2583_v33 = vadd.f32 %v2582_v12, %v9742_v41 }
 0x52a   :  { %v2778_v45 = vadd.f32 %v2643_v25, %v339_v27  ;;  %vm2741_vm0 = vweird.f32 %v2735_v31 }
 0x52b   :  { %v2603_v54 = vadd.f32 %v2602_v17, %v2583_v33  ;;  %vm2746_vm5 = vcmp.eq.f32.partialorder %v2745_v28, 8.507059e+37 }
 0x52c   :  { %v3762_v60 = vpop.eup %3761  ;;  %v3635_v61 = vmul.f32 -1.442695, %v2778_v45  ;;  %v2662_v45 = vpop.f32.mrf.mxu0 }
 0x52d   :  { %v2755_v49 = vadd.f32 1.0, %v3762_v60  ;;  %v2663_v30 = vadd.f32 %v2662_v45, %v9304_v42 }
 0x52e   :  { %3765 = vpow2.f32 %v3635_v61  ;;  %v2748_v61 = vor.u32 1.1754944e-38, %v2747_v32 }
 0x52f   :  { %v3764_v40 = vpop.eup %3763  ;;  %3767 = vrcp.f32 %v2755_v49  ;;  %v2767_v12 = vand.u32 2147483648, %v2755_v49  ;;  %v2765_v32 = vand.u32 2147483647, %v2755_v49  ;;  %vm2761_vm8 = vweird.f32 %v2755_v49 }
 0x530   :  { %v2737_v44 = vmul.f32 %v3764_v40, %v2735_v31  ;;  %vm2742_vm9 = vweird.f32 %v3764_v40  ;;  %v9744_v31 = vld [vmem:[#allocation20_spill] sm:$0xff] }
 0x531   :  { %vm2743_vm2 = vmor %vm2741_vm0, %vm2742_vm9  ;;  %v380_v38 = vadd.f32 %v9744_v31, %v5519_v15  ;;  %vm2766_vm10 = vcmp.eq.f32.partialorder %v2765_v32, 8.507059e+37 }
 0x532   :  { %v2738_v36 = vsub.f32 1.0, %v2737_v44  ;;  %v9743_v44 = vld [vmem:[#allocation148_spill] sm:$0xff] }
 0x534   :  { %v3766_v47 = vpop.eup %3765  ;;  %v2739_v52 = vmul.f32 %v3764_v40, %v2738_v36  ;;  %v307_v36 = vadd.f32 %v9743_v44, %v9153_v7 }
 0x535   :  { %v3768_v29 = vpop.eup %3767  ;;  %v2782_v35 = vadd.f32 1.0, %v3766_v47 }
 0x536   :  { %v2757_v27 = vmul.f32 %v3768_v29, %v2755_v49  ;;  %v2740_v25 = vadd.f32 %v3764_v40, %v2739_v52  ;;  %vm2762_vm7 = vweird.f32 %v3768_v29 }
 0x537   :  { %3769 = vrcp.f32 %v2782_v35  ;;  %vm2763_vm1 = vmor %vm2761_vm8, %vm2762_vm7  ;;  %vm2788_vm15 = vweird.f32 %v2782_v35 }
 0x538   :  { %v2758_v60 = vsub.f32 1.0, %v2757_v27  ;;  %v2744_v58 = vsel %vm2743_vm2, %v3764_v40, %v2740_v25  ;;  %v2768_v27 = vor.u32 1.1754944e-38, %v2767_v12 }
 0x539   :  { %v2749_v23 = vsel %vm2746_vm5, %v2748_v61, %v2744_v58 }
 0x53a   :  { %v2759_v47 = vmul.f32 %v3768_v29, %v2758_v60  ;;  %v2771_v41 = vmul.f32 %v2749_v23, %v2603_v54  ;;  %v2682_v52 = vpop.f32.mrf.mxu1  ;;  %v2702_v54 = vpop.f32.mrf.mxu2  ;;  %v2794_v60 = vand.u32 2147483648, %v2782_v35 }
 0x53b   :  { %v2683_v55 = vadd.f32 %v2682_v52, %v2663_v30  ;;  %v2792_v30 = vand.u32 2147483647, %v2782_v35 }
 0x53c   :  { %v2760_v17 = vadd.f32 %v3768_v29, %v2759_v47  ;;  %v2772_v40 = vadd.f32 %v2771_v41, %v307_v36  ;;  %v2703_v36 = vadd.f32 %v2702_v54, %v5529_v51  ;;  %v2795_v12 = vor.u32 1.1754944e-38, %v2794_v60 }
 0x53d   :  { %v3770_v28 = vpop.eup %3769  ;;  %v2798_v33 = vadd.f32 %v2683_v55, %v380_v38  ;;  %vm2793_vm0 = vcmp.eq.f32.partialorder %v2792_v30, 8.507059e+37  ;;  %v7801_v30 = vld [vmem:[#allocation9 + $0x2f8] sm:$0xff] }
 0x53e   :  { %v2764_v58 = vsel %vm2763_vm1, %v3768_v29, %v2760_v17  ;;  %3771 = vtanh.f32 %v2772_v40  ;;  %v2784_v25 = vmul.f32 %v3770_v28, %v2782_v35  ;;  %vm2789_vm14 = vweird.f32 %v3770_v28 }
 0x53f   :  { %v3636_v45 = vmul.f32 -1.442695, %v2798_v33  ;;  %v2769_v61 = vsel %vm2766_vm10, %v2768_v27, %v2764_v58  ;;  %vm2790_vm9 = vmor %vm2788_vm15, %vm2789_vm14  ;;  %v9745_v58 = vld [vmem:[#allocation32_spill] sm:$0xff] }
 0x540   :  { %v2785_v23 = vsub.f32 1.0, %v2784_v25  ;;  %v2774_v49 = vsub.f32 1.0, %v2769_v61  ;;  %v2722_v47 = vpop.f32.mrf.mxu3  ;;  %v2776_v29 = vmul.f32 %v2769_v61, %v7326_v13  ;;  %v421_v25 = vadd.f32 %v9745_v58, %v5564_v19  ;;  %v7833_v58 = vld [vmem:[#allocation9 + $0x208] sm:$0xff] }
 0x541   :  { %3773 = vpow2.f32 %v3636_v45  ;;  %v2723_v52 = vadd.f32 %v2722_v47, %v2703_v36  ;;  %v9746_v45 = vld [vmem:[#allocation60_spill] sm:$0xff]  ;;  %v7810_v47 = vld [vmem:[#allocation9 + $0x290] sm:$0xff] }
 0x542   :  { %v2786_v44 = vmul.f32 %v3770_v28, %v2785_v23  ;;  %v1772_v35 = vsel %vm1767_vm6, %v9746_v45, 0.0  ;;  %v7836_v45 = vld [vmem:[#allocation9 + $0x1d0] sm:$0xff]  ;;  %v7839_v23 = vld [vmem:[#allocation9 + $0x1d8] sm:$0xff] }
 0x544   :  { %v3772_v41 = vpop.eup %3771  ;;  %v2787_v55 = vadd.f32 %v3770_v28, %v2786_v44  ;;  %v7798_v44 = vld [vmem:[#allocation9 + $0x2f0] sm:$0xff] }
 0x545   :  { %v2775_v38 = vmul.f32 %v3772_v41, %v2774_v49  ;;  %v7804_v49 = vld [vmem:[#allocation9 + $0x2c0] sm:$0xff]  ;;  %v7813_v41 = vld [vmem:[#allocation9 + $0x298] sm:$0xff] }
 0x546   :  { %v2791_v31 = vsel %vm2790_vm9, %v3770_v28, %v2787_v55 }
 0x547   :  { %v3774_v32 = vpop.eup %3773  ;;  %v2777_v17 = vadd.f32 %v2776_v29, %v2775_v38  ;;  %v2796_v40 = vsel %vm2793_vm0, %v2795_v12, %v2791_v31  ;;  %v7816_v38 = vld [vmem:[#allocation9 + $0x260] sm:$0xff]  ;;  %v7819_v29 = vld [vmem:[#allocation9 + $0x268] sm:$0xff]  ;;  %v7827_v31 = vld [vmem:[#allocation9 + $0x238] sm:$0xff] }
 0x548   :  { %v2802_v33 = vadd.f32 1.0, %v3774_v32  ;;  %v2818_v27 = vmul.f32 %v2796_v40, %v2723_v52  ;;  %v7824_v52 = vld [vmem:[#allocation9 + $0x230] sm:$0xff] }
 0x549   :  { %v2827_v61 = vsel %vm1767_vm6, %v2777_v17, 0.0  ;;  %v7794_v28 = vsel %vm1767_vm6, %v2777_v17, %v7326_v13  ;;  %v7807_v13 = vld [vmem:[#allocation9 + $0x2c8] sm:$0xff] }
 0x54a   :  { %v3549_v54 = vadd.f32 %v2827_v61, %v1772_v35  ;;  %3775 = vrcp.f32 %v2802_v33  ;;  %2849 = vmatmul.f32.vlgmr.msrb.gmra.mxu0 %v7794_v28  ;;  %2889 = vmatmul.f32.vlgmr.msra.gmra.mxu2 %v7794_v28  ;;  %v2819_v60 = vadd.f32 %v2818_v27, %v421_v25  ;;  %v2814_v32 = vand.u32 2147483648, %v2802_v33  ;;  %v7830_v27 = vld [vmem:[#allocation9 + $0x200] sm:$0xff] }
 0x54b   :  { %2993 = vmatpush.msrb.mxu0 %v7798_v44  ;;  %3033 = vmatpush.msra.mxu2 %v7801_v30  ;;  %v2812_v40 = vand.u32 2147483647, %v2802_v33  ;;  %vm2808_vm2 = vweird.f32 %v2802_v33 }
 0x54c   :  { %3557 = vst [vmem:[#allocation10 + $0x28] sm:$0xff] %v3549_v54  ;;  %3777 = vtanh.f32 %v2819_v60  ;;  %v2815_v35 = vor.u32 1.1754944e-38, %v2814_v32  ;;  %v7842_v54 = vld [vmem:[#allocation9 + $0x1a0] sm:$0xff] }
 0x54d   :  { %2994 = vmatpush.msrb.mxu0 %v7804_v49  ;;  %3034 = vmatpush.msra.mxu2 %v7807_v13  ;;  %vm2813_vm7 = vcmp.eq.f32.partialorder %v2812_v40, 8.507059e+37  ;;  %9748 = vst [vmem:[#allocation35_spill] sm:$0xff] %v7842_v54 }
 0x54f   :  { %2995 = vmatpush.msrb.mxu0 %v7810_v47  ;;  %3035 = vmatpush.msra.mxu2 %v7813_v41 }
 0x550   :  { %v3776_v36 = vpop.eup %3775 }
 0x551   :  { %v2804_v55 = vmul.f32 %v3776_v36, %v2802_v33  ;;  %2996 = vmatpush.msrb.mxu0 %v7816_v38  ;;  %3036 = vmatpush.msra.mxu2 %v7819_v29  ;;  %vm2809_vm6 = vweird.f32 %v3776_v36 }
 0x552   :  { %2929 = vmatmul.f32.vlgmr.msra.gmra.mxu0 %v7794_v28  ;;  %2969 = vmatmul.f32.vlgmr.msrb.gmra.mxu2 %v7794_v28  ;;  %vm2810_vm5 = vmor %vm2808_vm2, %vm2809_vm6 }
 0x553   :  { %v2805_v12 = vsub.f32 1.0, %v2804_v55  ;;  %2997 = vmatpush.msrb.mxu0 %v7824_v52  ;;  %3037 = vmatpush.msra.mxu2 %v7827_v31  ;;  %v7845_v55 = vld [vmem:[#allocation9 + $0x1a8] sm:$0xff] }
 0x555   :  { %v2806_v17 = vmul.f32 %v3776_v36, %v2805_v12  ;;  %2998 = vmatpush.msrb.mxu0 %v7830_v27  ;;  %3038 = vmatpush.msra.mxu2 %v7833_v58  ;;  %v7848_v12 = vld [vmem:[#allocation9 + $0x170] sm:$0xff] }
 0x556   :  { %9749 = vst [vmem:[#allocation28_spill] sm:$0xff] %v7848_v12 }
 0x557   :  { %v2807_v25 = vadd.f32 %v3776_v36, %v2806_v17  ;;  %2999 = vmatpush.msrb.mxu0 %v7836_v45  ;;  %3039 = vmatpush.msra.mxu2 %v7839_v23  ;;  %v7851_v17 = vld [vmem:[#allocation9 + $0x178] sm:$0xff] }
 0x558   :  { %9750 = vst [vmem:[#allocation141_spill] sm:$0xff] %v7851_v17 }
 0x559   :  { %v2811_v61 = vsel %vm2810_vm5, %v3776_v36, %v2807_v25  ;;  %3000 = vmatpush.msrb.mxu0 %v7842_v54  ;;  %3040 = vmatpush.msra.mxu2 %v7845_v55  ;;  %v3778_v36 = vpop.eup %3777  ;;  %v7855_v25 = vld [vmem:[#allocation9 + $0x140] sm:$0xff]  ;;  %v7858_v54 = vld [vmem:[#allocation9 + $0x148] sm:$0xff] }
 0x55a   :  { %v2816_v33 = vsel %vm2813_vm7, %v2815_v35, %v2811_v61  ;;  %9751 = vst [vmem:[#allocation143_spill] sm:$0xff] %v7855_v25  ;;  %v7861_v61 = vld [vmem:[#allocation9 + $0x110] sm:$0xff] }
 0x55b   :  { %v2821_v60 = vsub.f32 1.0, %v2816_v33  ;;  %3001 = vmatpush.msrb.mxu0 %v7848_v12  ;;  %3041 = vmatpush.msra.mxu2 %v7851_v17  ;;  %v2823_v40 = vmul.f32 %v2816_v33, %v7363_v53  ;;  %v7864_v12 = vld [vmem:[#allocation9 + $0x118] sm:$0xff]  ;;  %v7874_v17 = vld [vmem:[#allocation9 + $0xe0] sm:$0xff] }
 0x55c   :  { %9752 = vst [vmem:[#allocation142_spill] sm:$0xff] %v7864_v12 }
 0x55d   :  { %v2822_v32 = vmul.f32 %v3778_v36, %v2821_v60  ;;  %3002 = vmatpush.msrb.mxu0 %v7855_v25  ;;  %3042 = vmatpush.msra.mxu2 %v7858_v54  ;;  %v3530_v36 = vld [vmem:[#allocation10 + $0x10] sm:$0xff]  ;;  %v7892_v60 = vld [vmem:[#allocation9 + $0x5c0] sm:$0xff] }
 0x55e   :  { %9754 = vst [vmem:[#allocation144_spill] sm:$0xff] %v7892_v60 }
 0x55f   :  { %v2824_v35 = vadd.f32 %v2823_v40, %v2822_v32  ;;  %3003 = vmatpush.msrb.mxu0 %v7861_v61  ;;  %3043 = vmatpush.msra.mxu2 %v7864_v12  ;;  %v7877_v32 = vld [vmem:[#allocation9 + $0xe8] sm:$0xff]  ;;  %v7882_v12 = vld [vmem:[#allocation9 + $0x5f0] sm:$0xff] }
 0x561   :  { %v2830_v33 = vsel %vm1761_vm13, %v2824_v35, 0.0  ;;  %v7872_v25 = vsel %vm1761_vm13, %v2824_v35, %v7363_v53  ;;  %3004 = vmatpush.msrb.mxu0 %v7874_v17  ;;  %3044 = vmatpush.msra.mxu2 %v7877_v32  ;;  %v7886_v53 = vld [vmem:[#allocation9 + $0xb0] sm:$0xff]  ;;  %v7889_v35 = vld [vmem:[#allocation9 + $0xb8] sm:$0xff] }
 0x562   :  { %v3546_v40 = vadd.f32 %v3530_v36, %v2830_v33  ;;  %2869 = vmatmul.f32.vlgmr.msrb.gmra.mxu1 %v7872_v25  ;;  %2909 = vmatmul.f32.vlgmr.msra.gmra.mxu3 %v7872_v25  ;;  %v7896_v33 = vld [vmem:[#allocation9 + $0x80] sm:$0xff]  ;;  %v7902_v36 = vld [vmem:[#allocation9 + $0x590] sm:$0xff] }
 0x563   :  { %3013 = vmatpush.msrb.mxu1 %v7882_v12  ;;  %3053 = vmatpush.msra.mxu3 %v7370_v37  ;;  %v7899_v37 = vld [vmem:[#allocation9 + $0x88] sm:$0xff]  ;;  %9755 = vst [vmem:[#allocation23_spill] sm:$0xff] %v7902_v36 }
 0x564   :  { %3554 = vst [vmem:[#allocation10 + $0x10] sm:$0xff] %v3546_v40  ;;  %3005 = vmatpush.msrb.mxu0 %v7886_v53  ;;  %3045 = vmatpush.msra.mxu2 %v7889_v35  ;;  %v7906_v40 = vld [vmem:[#allocation9 + $0x50] sm:$0xff] }
 0x565   :  { %3014 = vmatpush.msrb.mxu1 %v7892_v60  ;;  %3054 = vmatpush.msra.mxu3 %v7376_v14  ;;  %9756 = vst [vmem:[#allocation36_spill] sm:$0xff] %v7906_v40  ;;  %v7909_v60 = vld [vmem:[#allocation9 + $0x58] sm:$0xff]  ;;  %v7912_v14 = vld [vmem:[#allocation9 + $0x560] sm:$0xff] }
 0x566   :  { %3006 = vmatpush.msrb.mxu0 %v7896_v33  ;;  %3046 = vmatpush.msra.mxu2 %v7899_v37  ;;  %9757 = vst [vmem:[#allocation153_spill] sm:$0xff] %v7912_v14 }
 0x567   :  { %3015 = vmatpush.msrb.mxu1 %v7902_v36  ;;  %3055 = vmatpush.msra.mxu3 %v7382_v18  ;;  %v7918_v36 = vld [vmem:[#allocation9 + $0x20] sm:$0xff]  ;;  %v7921_v18 = vld [vmem:[#allocation9 + $0x530] sm:$0xff] }
 0x568   :  { %3007 = vmatpush.msrb.mxu0 %v7906_v40  ;;  %3047 = vmatpush.msra.mxu2 %v7909_v60  ;;  %9758 = vst [vmem:[#allocation46_spill] sm:$0xff] %v7918_v36  ;;  %v7924_v40 = vld [vmem:[#allocation9 + $0x28] sm:$0xff] }
 0x569   :  { %3016 = vmatpush.msrb.mxu1 %v7912_v14  ;;  %3056 = vmatpush.msra.mxu3 %v7388_v48  ;;  %9759 = vst [vmem:[#allocation154_spill] sm:$0xff] %v7921_v18  ;;  %v7930_v48 = vld [vmem:[#allocation9 + $0x500] sm:$0xff]  ;;  %v7933_v14 = vld [vmem:[#allocation9 + $0x508] sm:$0xff] }
 0x56a   :  { %2949 = vmatmul.f32.vlgmr.msra.gmra.mxu1 %v7872_v25  ;;  %2989 = vmatmul.f32.vlgmr.msrb.gmra.mxu3 %v7872_v25  ;;  %9760 = vst [vmem:[#allocation31_spill] sm:$0xff] %v7924_v40 }
 0x56b   :  { %3008 = vmatpush.msrb.mxu0 %v7918_v36  ;;  %3017 = vmatpush.msrb.mxu1 %v7921_v18  ;;  %9761 = vst [vmem:[#allocation34_spill] sm:$0xff] %v7930_v48  ;;  %v4376_v36 = vld [vmem:[#allocation9 + $0x2d0] sm:$0xff] }
 0x56c   :  { %3048 = vmatpush.msra.mxu2 %v7924_v40  ;;  %3057 = vmatpush.msra.mxu3 %v7396_v34  ;;  %9762 = vst [vmem:[#allocation155_spill] sm:$0xff] %v7933_v14  ;;  %v7937_v18 = vld [vmem:[#allocation9 + $0x4d0] sm:$0xff]  ;;  %v7940_v34 = vld [vmem:[#allocation9 + $0x4d8] sm:$0xff]  ;;  %v4379_v40 = vld [vmem:[#allocation9 + $0x2a0] sm:$0xff] }
 0x56d   :  { %3009 = vmatmul.f32.vlgmr.msrb.gmra.mxu0 %v7794_v28  ;;  %3049 = vmatmul.f32.vlgmr.msra.gmra.mxu2 %v7794_v28  ;;  %9763 = vst [vmem:[#allocation157_spill] sm:$0xff] %v7940_v34 }
 0x56e   :  { %3018 = vmatpush.msrb.mxu1 %v7930_v48  ;;  %3058 = vmatpush.msra.mxu3 %v7933_v14  ;;  %v7944_v48 = vld [vmem:[#allocation9 + $0x4a0] sm:$0xff]  ;;  %v7947_v14 = vld [vmem:[#allocation9 + $0x4a8] sm:$0xff] }
 0x56f   :  { %3181 = vmatpush.msra.mxu0 %v4376_v36  ;;  %3221 = vmatpush.msrb.mxu2 %v7404_v1  ;;  %9764 = vst [vmem:[#allocation156_spill] sm:$0xff] %v7947_v14  ;;  %v4382_v1 = vld [vmem:[#allocation9 + $0x270] sm:$0xff] }
 0x570   :  { %3019 = vmatpush.msrb.mxu1 %v7937_v18  ;;  %3059 = vmatpush.msra.mxu3 %v7940_v34  ;;  %v7951_v36 = vld [vmem:[#allocation9 + $0x470] sm:$0xff]  ;;  %v7954_v34 = vld [vmem:[#allocation9 + $0x478] sm:$0xff] }
 0x571   :  { %3182 = vmatpush.msra.mxu0 %v4379_v40  ;;  %3222 = vmatpush.msrb.mxu2 %v7410_v3  ;;  %9765 = vst [vmem:[#allocation158_spill] sm:$0xff] %v7954_v34  ;;  %v4385_v3 = vld [vmem:[#allocation9 + $0x240] sm:$0xff] }
 0x572   :  { %3020 = vmatpush.msrb.mxu1 %v7944_v48  ;;  %3060 = vmatpush.msra.mxu3 %v7947_v14  ;;  %v7958_v40 = vld [vmem:[#allocation9 + $0x440] sm:$0xff]  ;;  %v7961_v14 = vld [vmem:[#allocation9 + $0x448] sm:$0xff] }
 0x573   :  { %3183 = vmatpush.msra.mxu0 %v4382_v1  ;;  %3223 = vmatpush.msrb.mxu2 %v7416_v56  ;;  %9766 = vst [vmem:[#allocation159_spill] sm:$0xff] %v7961_v14  ;;  %v4388_v56 = vld [vmem:[#allocation9 + $0x210] sm:$0xff] }
 0x574   :  { %3021 = vmatpush.msrb.mxu1 %v7951_v36  ;;  %3061 = vmatpush.msra.mxu3 %v7954_v34  ;;  %v7965_v1 = vld [vmem:[#allocation9 + $0x410] sm:$0xff]  ;;  %v7968_v34 = vld [vmem:[#allocation9 + $0x418] sm:$0xff] }
 0x575   :  { %3184 = vmatpush.msra.mxu0 %v4385_v3  ;;  %3224 = vmatpush.msrb.mxu2 %v7422_v2  ;;  %9767 = vst [vmem:[#allocation160_spill] sm:$0xff] %v7968_v34  ;;  %v4391_v2 = vld [vmem:[#allocation9 + $0x1e0] sm:$0xff] }
 0x576   :  { %3022 = vmatpush.msrb.mxu1 %v7958_v40  ;;  %3062 = vmatpush.msra.mxu3 %v7961_v14  ;;  %v7972_v3 = vld [vmem:[#allocation9 + $0x3e0] sm:$0xff]  ;;  %v7975_v14 = vld [vmem:[#allocation9 + $0x3e8] sm:$0xff] }
 0x577   :  { %3185 = vmatpush.msra.mxu0 %v4388_v56  ;;  %3225 = vmatpush.msrb.mxu2 %v7428_v0  ;;  %9768 = vst [vmem:[#allocation161_spill] sm:$0xff] %v7975_v14  ;;  %v4394_v0 = vld [vmem:[#allocation9 + $0x1b0] sm:$0xff] }
 0x578   :  { %3023 = vmatpush.msrb.mxu1 %v7965_v1  ;;  %3063 = vmatpush.msra.mxu3 %v7968_v34  ;;  %v7979_v56 = vld [vmem:[#allocation9 + $0x3b0] sm:$0xff]  ;;  %v7982_v34 = vld [vmem:[#allocation9 + $0x3b8] sm:$0xff] }
 0x579   :  { %3186 = vmatpush.msra.mxu0 %v4391_v2  ;;  %3226 = vmatpush.msrb.mxu2 %v7434_v57  ;;  %9769 = vst [vmem:[#allocation162_spill] sm:$0xff] %v7979_v56  ;;  %v4397_v57 = vld [vmem:[#allocation9 + $0x180] sm:$0xff] }
 0x57a   :  { %3024 = vmatpush.msrb.mxu1 %v7972_v3  ;;  %3064 = vmatpush.msra.mxu3 %v7975_v14  ;;  %9770 = vst [vmem:[#allocation163_spill] sm:$0xff] %v7982_v34  ;;  %v7986_v2 = vld [vmem:[#allocation9 + $0x380] sm:$0xff]  ;;  %v7989_v14 = vld [vmem:[#allocation9 + $0x388] sm:$0xff] }
 0x57b   :  { %3187 = vmatpush.msra.mxu0 %v4394_v0  ;;  %3227 = vmatpush.msrb.mxu2 %v7440_v10  ;;  %9771 = vst [vmem:[#allocation164_spill] sm:$0xff] %v7986_v2  ;;  %v4400_v10 = vld [vmem:[#allocation9 + $0x150] sm:$0xff] }
 0x57c   :  { %3025 = vmatpush.msrb.mxu1 %v7979_v56  ;;  %3065 = vmatpush.msra.mxu3 %v7982_v34  ;;  %9772 = vst [vmem:[#allocation165_spill] sm:$0xff] %v7989_v14  ;;  %v7993_v0 = vld [vmem:[#allocation9 + $0x350] sm:$0xff]  ;;  %v7996_v34 = vld [vmem:[#allocation9 + $0x358] sm:$0xff] }
 0x57d   :  { %3188 = vmatpush.msra.mxu0 %v4397_v57  ;;  %3228 = vmatpush.msrb.mxu2 %v7446_v16  ;;  %9773 = vst [vmem:[#allocation166_spill] sm:$0xff] %v7993_v0  ;;  %v4403_v16 = vld [vmem:[#allocation9 + $0x120] sm:$0xff] }
 0x57e   :  { %3026 = vmatpush.msrb.mxu1 %v7986_v2  ;;  %3066 = vmatpush.msra.mxu3 %v7989_v14  ;;  %9774 = vst [vmem:[#allocation167_spill] sm:$0xff] %v7996_v34  ;;  %v8000_v57 = vld [vmem:[#allocation9 + $0x320] sm:$0xff]  ;;  %v8003_v14 = vld [vmem:[#allocation9 + $0x328] sm:$0xff] }
 0x57f   :  { %3189 = vmatpush.msra.mxu0 %v4400_v10  ;;  %3229 = vmatpush.msrb.mxu2 %v7452_v5  ;;  %9775 = vst [vmem:[#allocation168_spill] sm:$0xff] %v8000_v57  ;;  %v4406_v5 = vld [vmem:[#allocation9 + $0x5d0] sm:$0xff] }
 0x580   :  { %3027 = vmatpush.msrb.mxu1 %v7993_v0  ;;  %3067 = vmatpush.msra.mxu3 %v7996_v34  ;;  %9776 = vst [vmem:[#allocation169_spill] sm:$0xff] %v8003_v14  ;;  %v4408_v10 = vld [vmem:[#allocation9 + $0x570] sm:$0xff] }
 0x581   :  { %3190 = vmatpush.msra.mxu0 %v4403_v16  ;;  %3230 = vmatpush.msrb.mxu2 %v7458_v20  ;;  %v4407_v20 = vld [vmem:[#allocation9 + $0x5a0] sm:$0xff]  ;;  %v9788_v16 = vld [vmem:[#allocation69_spill] sm:$0xff] }
 0x582   :  { %3028 = vmatpush.msrb.mxu1 %v8000_v57  ;;  %3068 = vmatpush.msra.mxu3 %v8003_v14 }
 0x583   :  { %3029 = vmatmul.f32.vlgmr.msrb.gmra.mxu1 %v7872_v25  ;;  %3069 = vmatmul.f32.vlgmr.msra.gmra.mxu3 %v7872_v25 }
 0x584   :  { %3191 = vmatpush.msra.mxu0 %v7465_v6  ;;  %3231 = vmatpush.msrb.mxu2 %v7468_v24  ;;  %v4409_v6 = vld [vmem:[#allocation9 + $0x540] sm:$0xff]  ;;  %v4410_v24 = vld [vmem:[#allocation9 + $0x510] sm:$0xff] }
 0x585   :  { %3201 = vmatpush.msra.mxu1 %v4406_v5  ;;  %3241 = vmatpush.msrb.mxu3 %v7472_v46  ;;  %v9777_v46 = vld [vmem:[#allocation40_spill] sm:$0xff]  ;;  %v4414_v5 = vld [vmem:[#allocation9 + $0x450] sm:$0xff] }
 0x586   :  { %3192 = vmatpush.msra.mxu0 %v7475_v43  ;;  %3232 = vmatpush.msrb.mxu2 %v7478_v59  ;;  %v9778_v43 = vld [vmem:[#allocation29_spill] sm:$0xff]  ;;  %v9779_v59 = vld [vmem:[#allocation44_spill] sm:$0xff] }
 0x587   :  { %3202 = vmatpush.msra.mxu1 %v4407_v20  ;;  %3242 = vmatpush.msrb.mxu3 %v7482_v9  ;;  %v4411_v9 = vld [vmem:[#allocation9 + $0x4e0] sm:$0xff]  ;;  %v9789_v20 = vld [vmem:[#allocation57_spill] sm:$0xff] }
 0x588   :  { %3193 = vmatpush.msra.mxu0 %v7485_v62  ;;  %3233 = vmatpush.msrb.mxu2 %v7488_v22  ;;  %v9780_v62 = vld [vmem:[#allocation48_spill] sm:$0xff]  ;;  %v9781_v22 = vld [vmem:[#allocation58_spill] sm:$0xff] }
 0x589   :  { %3203 = vmatpush.msra.mxu1 %v4408_v10  ;;  %3243 = vmatpush.msrb.mxu3 %v7492_v50  ;;  %v9782_v50 = vld [vmem:[#allocation67_spill] sm:$0xff]  ;;  %v9790_v10 = vld [vmem:[#allocation54_spill] sm:$0xff] }
 0x58a   :  { %3194 = vmatpush.msra.mxu0 %v7495_v11  ;;  %3234 = vmatpush.msrb.mxu2 %v7498_v4  ;;  %v4412_v11 = vld [vmem:[#allocation9 + $0x4b0] sm:$0xff]  ;;  %v9783_v4 = vld [vmem:[#allocation71_spill] sm:$0xff] }
 0x58b   :  { %3204 = vmatpush.msra.mxu1 %v4409_v6  ;;  %3244 = vmatpush.msrb.mxu3 %v7502_v21  ;;  %v9784_v21 = vld [vmem:[#allocation63_spill] sm:$0xff]  ;;  %v9791_v6 = vld [vmem:[#allocation72_spill] sm:$0xff] }
 0x58c   :  { %3195 = vmatpush.msra.mxu0 %v7505_v39  ;;  %3235 = vmatpush.msrb.mxu2 %v7508_v26  ;;  %v9785_v39 = vld [vmem:[#allocation62_spill] sm:$0xff]  ;;  %v4413_v26 = vld [vmem:[#allocation9 + $0x480] sm:$0xff] }
 0x58d   :  { %3205 = vmatpush.msra.mxu1 %v4410_v24  ;;  %3245 = vmatpush.msrb.mxu3 %v7512_v63  ;;  %v9786_v63 = vld [vmem:[#allocation74_spill] sm:$0xff]  ;;  %v4415_v24 = vld [vmem:[#allocation9 + $0x420] sm:$0xff] }
 0x58e   :  { %3196 = vmatpush.msra.mxu0 %v7515_v8  ;;  %3236 = vmatpush.msrb.mxu2 %v9777_v46  ;;  %v9787_v8 = vld [vmem:[#allocation51_spill] sm:$0xff]  ;;  %v9792_v46 = vld [vmem:[#allocation77_spill] sm:$0xff] }
 0x58f   :  { %3206 = vmatpush.msra.mxu1 %v4411_v9  ;;  %3246 = vmatpush.msrb.mxu3 %v9780_v62  ;;  %v4416_v9 = vld [vmem:[#allocation9 + $0x3f0] sm:$0xff] }
 0x590   :  { %3261 = vmatpush.msrb.mxu0 %v9778_v43  ;;  %3301 = vmatpush.msra.mxu2 %v9779_v59  ;;  %v9793_v43 = vld [vmem:[#allocation64_spill] sm:$0xff]  ;;  %v9794_v59 = vld [vmem:[#allocation75_spill] sm:$0xff]  ;;  %v9795_v62 = vld [vmem:[#allocation61_spill] sm:$0xff] }
 0x591   :  { %3207 = vmatpush.msra.mxu1 %v4412_v11  ;;  %3247 = vmatpush.msrb.mxu3 %v9783_v4  ;;  %v9798_v11 = vld [vmem:[#allocation81_spill] sm:$0xff]  ;;  %v9799_v4 = vld [vmem:[#allocation66_spill] sm:$0xff] }
 0x592   :  { %3262 = vmatpush.msrb.mxu0 %v9781_v22  ;;  %3302 = vmatpush.msra.mxu2 %v9782_v50  ;;  %v9796_v22 = vld [vmem:[#allocation122_spill] sm:$0xff] }
 0x593   :  { %3208 = vmatpush.msra.mxu1 %v4413_v26  ;;  %3248 = vmatpush.msrb.mxu3 %v9786_v63  ;;  %v9797_v50 = vld [vmem:[#allocation78_spill] sm:$0xff]  ;;  %v9802_v26 = vld [vmem:[#allocation65_spill] sm:$0xff]  ;;  %v9803_v63 = vld [vmem:[#allocation80_spill] sm:$0xff] }
 0x594   :  { %3263 = vmatpush.msrb.mxu0 %v9784_v21  ;;  %3303 = vmatpush.msra.mxu2 %v9785_v39  ;;  %v9800_v21 = vld [vmem:[#allocation68_spill] sm:$0xff]  ;;  %v9801_v39 = vld [vmem:[#allocation85_spill] sm:$0xff] }
 0x595   :  { %3209 = vmatpush.msra.mxu1 %v4414_v5  ;;  %3249 = vmatpush.msrb.mxu3 %v9789_v20  ;;  %v9806_v5 = vld [vmem:[#allocation70_spill] sm:$0xff]  ;;  %v9807_v20 = vld [vmem:[#allocation89_spill] sm:$0xff] }
 0x596   :  { %3264 = vmatpush.msrb.mxu0 %v9787_v8  ;;  %3304 = vmatpush.msra.mxu2 %v9788_v16  ;;  %v9804_v8 = vld [vmem:[#allocation73_spill] sm:$0xff]  ;;  %v9805_v16 = vld [vmem:[#allocation94_spill] sm:$0xff] }
 0x597   :  { %3210 = vmatpush.msra.mxu1 %v4415_v24  ;;  %3250 = vmatpush.msrb.mxu3 %v9792_v46  ;;  %v9810_v24 = vld [vmem:[#allocation76_spill] sm:$0xff]  ;;  %v9811_v46 = vld [vmem:[#allocation97_spill] sm:$0xff] }
 0x598   :  { %3265 = vmatpush.msrb.mxu0 %v9790_v10  ;;  %3305 = vmatpush.msra.mxu2 %v9791_v6  ;;  %v9808_v10 = vld [vmem:[#allocation79_spill] sm:$0xff]  ;;  %v9809_v6 = vld [vmem:[#allocation101_spill] sm:$0xff] }
 0x599   :  { %3211 = vmatpush.msra.mxu1 %v4416_v9  ;;  %3251 = vmatpush.msrb.mxu3 %v9795_v62  ;;  %v9814_v9 = vld [vmem:[#allocation82_spill] sm:$0xff] }
 0x59a   :  { %3266 = vmatpush.msrb.mxu0 %v9793_v43  ;;  %3306 = vmatpush.msra.mxu2 %v9794_v59  ;;  %v9812_v43 = vld [vmem:[#allocation105_spill] sm:$0xff]  ;;  %v9813_v59 = vld [vmem:[#allocation110_spill] sm:$0xff] }
 0x59b   :  { %3212 = vmatpush.msra.mxu1 %v9798_v11  ;;  %3252 = vmatpush.msrb.mxu3 %v9799_v4  ;;  %v9815_v62 = vld [vmem:[#allocation86_spill] sm:$0xff]  ;;  %v9819_v4 = vld [vmem:[#allocation93_spill] sm:$0xff] }
 0x59c   :  { %3267 = vmatpush.msrb.mxu0 %v9796_v22  ;;  %3307 = vmatpush.msra.mxu2 %v9797_v50  ;;  %v9816_v22 = vld [vmem:[#allocation113_spill] sm:$0xff]  ;;  %v9818_v11 = vld [vmem:[#allocation90_spill] sm:$0xff] }
 0x59d   :  { %3213 = vmatpush.msra.mxu1 %v9802_v26  ;;  %3253 = vmatpush.msrb.mxu3 %v9803_v63  ;;  %v9817_v50 = vld [vmem:[#allocation117_spill] sm:$0xff]  ;;  %v9822_v26 = vld [vmem:[#allocation99_spill] sm:$0xff] }
 0x59e   :  { %3268 = vmatpush.msrb.mxu0 %v9800_v21  ;;  %3308 = vmatpush.msra.mxu2 %v9801_v39  ;;  %v9820_v21 = vld [vmem:[#allocation121_spill] sm:$0xff]  ;;  %v9821_v39 = vld [vmem:[#allocation126_spill] sm:$0xff]  ;;  %v9823_v63 = vld [vmem:[#allocation103_spill] sm:$0xff] }
 0x59f   :  { %3214 = vmatpush.msra.mxu1 %v9806_v5  ;;  %3254 = vmatpush.msrb.mxu3 %v9807_v20  ;;  %v9826_v5 = vld [vmem:[#allocation107_spill] sm:$0xff] }
 0x5a0   :  { %3269 = vmatpush.msrb.mxu0 %v9804_v8  ;;  %3309 = vmatpush.msra.mxu2 %v9805_v16  ;;  %v9824_v8 = vld [vmem:[#allocation130_spill] sm:$0xff]  ;;  %v9825_v16 = vld [vmem:[#allocation115_spill] sm:$0xff] }
 0x5a1   :  { %3215 = vmatpush.msra.mxu1 %v9810_v24  ;;  %3255 = vmatpush.msrb.mxu3 %v9811_v46  ;;  %v9827_v20 = vld [vmem:[#allocation111_spill] sm:$0xff] }
 0x5a2   :  { %3270 = vmatpush.msrb.mxu0 %v9808_v10  ;;  %3310 = vmatpush.msra.mxu2 %v9809_v6  ;;  %v9828_v10 = vld [vmem:[#allocation119_spill] sm:$0xff] }
 0x5a3   :  { %3216 = vmatpush.msra.mxu1 %v9814_v9  ;;  %3256 = vmatpush.msrb.mxu3 %v9815_v62  ;;  %v9829_v6 = vld [vmem:[#allocation91_spill] sm:$0xff]  ;;  %v9834_v9 = vld [vmem:[#allocation102_spill] sm:$0xff]  ;;  %v9835_v62 = vld [vmem:[#allocation84_spill] sm:$0xff] }
 0x5a4   :  { %3271 = vmatpush.msrb.mxu0 %v9812_v43  ;;  %3311 = vmatpush.msra.mxu2 %v9813_v59  ;;  %v9830_v24 = vld [vmem:[#allocation83_spill] sm:$0xff]  ;;  %v9833_v59 = vld [vmem:[#allocation98_spill] sm:$0xff] }
 0x5a5   :  { %3281 = vmatpush.msrb.mxu1 %v9817_v50  ;;  %3321 = vmatpush.msra.mxu3 %v9819_v4  ;;  %v9831_v46 = vld [vmem:[#allocation87_spill] sm:$0xff]  ;;  %v9837_v50 = vld [vmem:[#allocation88_spill] sm:$0xff] }
 0x5a6   :  { %3272 = vmatpush.msrb.mxu0 %v9816_v22  ;;  %3312 = vmatpush.msra.mxu2 %v9818_v11  ;;  %v9832_v43 = vld [vmem:[#allocation95_spill] sm:$0xff]  ;;  %v9836_v22 = vld [vmem:[#allocation106_spill] sm:$0xff]  ;;  %v9838_v11 = vld [vmem:[#allocation109_spill] sm:$0xff] }
 0x5a7   :  { %3282 = vmatpush.msrb.mxu1 %v9821_v39  ;;  %3322 = vmatpush.msra.mxu3 %v9823_v63  ;;  %v9839_v4 = vld [vmem:[#allocation92_spill] sm:$0xff] }
 0x5a8   :  { %3273 = vmatpush.msrb.mxu0 %v9820_v21  ;;  %3313 = vmatpush.msra.mxu2 %v9822_v26  ;;  %v9840_v21 = vld [vmem:[#allocation114_spill] sm:$0xff]  ;;  %v9841_v39 = vld [vmem:[#allocation96_spill] sm:$0xff] }
 0x5a9   :  { %3283 = vmatpush.msrb.mxu1 %v9825_v16  ;;  %3323 = vmatpush.msra.mxu3 %v9827_v20  ;;  %v9842_v26 = vld [vmem:[#allocation118_spill] sm:$0xff]  ;;  %v9843_v63 = vld [vmem:[#allocation100_spill] sm:$0xff] }
 0x5aa   :  { %3274 = vmatpush.msrb.mxu0 %v9824_v8  ;;  %3314 = vmatpush.msra.mxu2 %v9826_v5  ;;  %v9844_v8 = vld [vmem:[#allocation123_spill] sm:$0xff]  ;;  %v9845_v16 = vld [vmem:[#allocation104_spill] sm:$0xff] }
 0x5ab   :  { %3284 = vmatpush.msrb.mxu1 %v9829_v6  ;;  %3324 = vmatpush.msra.mxu3 %v9831_v46  ;;  %v9846_v5 = vld [vmem:[#allocation127_spill] sm:$0xff]  ;;  %v9847_v20 = vld [vmem:[#allocation108_spill] sm:$0xff] }
 0x5ac   :  { %3275 = vmatpush.msrb.mxu0 %v9828_v10  ;;  %3315 = vmatpush.msra.mxu2 %v9830_v24  ;;  %v9848_v10 = vld [vmem:[#allocation112_spill] sm:$0xff] }
 0x5ad   :  { %3285 = vmatpush.msrb.mxu1 %v9833_v59  ;;  %3325 = vmatpush.msra.mxu3 %v9835_v62  ;;  %v9849_v6 = vld [vmem:[#allocation116_spill] sm:$0xff]  ;;  %v9855_v62 = vld [vmem:[#allocation134_spill] sm:$0xff] }
 0x5ae   :  { %3276 = vmatpush.msrb.mxu0 %v9832_v43  ;;  %3316 = vmatpush.msra.mxu2 %v9834_v9  ;;  %v9850_v24 = vld [vmem:[#allocation120_spill] sm:$0xff]  ;;  %v9852_v43 = vld [vmem:[#allocation139_spill] sm:$0xff] }
 0x5af   :  { %3286 = vmatpush.msrb.mxu1 %v9836_v22  ;;  %3326 = vmatpush.msra.mxu3 %v9837_v50  ;;  %v9851_v46 = vld [vmem:[#allocation124_spill] sm:$0xff]  ;;  %v9856_v22 = vld [vmem:[#allocation150_spill] sm:$0xff]  ;;  %v9857_v50 = vld [vmem:[#allocation135_spill] sm:$0xff] }
 0x5b0   :  { %v9853_v59 = vld [vmem:[#allocation152_spill] sm:$0xff] }
 0x5b1   :  { %3287 = vmatpush.msrb.mxu1 %v9838_v11  ;;  %3327 = vmatpush.msra.mxu3 %v9839_v4  ;;  %v9854_v9 = vld [vmem:[#allocation132_spill] sm:$0xff]  ;;  %v9858_v4 = vld [vmem:[#allocation33_spill] sm:$0xff] }
 0x5b3   :  { %3288 = vmatpush.msrb.mxu1 %v9840_v21  ;;  %3328 = vmatpush.msra.mxu3 %v9841_v39 }
 0x5b5   :  { %3289 = vmatpush.msrb.mxu1 %v9842_v26  ;;  %3329 = vmatpush.msra.mxu3 %v9843_v63  ;;  %v9859_v63 = vld [vmem:[#allocation24_spill] sm:$0xff] }
 0x5b7   :  { %3290 = vmatpush.msrb.mxu1 %v9844_v8  ;;  %3330 = vmatpush.msra.mxu3 %v9845_v16  ;;  %v9860_v8 = vld [vmem:[#allocation149_spill] sm:$0xff] }
 0x5b8   :  { %v228_v16 = vadd.f32 %v9860_v8, %v9859_v63 }
 0x5b9   :  { %3291 = vmatpush.msrb.mxu1 %v9846_v5  ;;  %3331 = vmatpush.msra.mxu3 %v9847_v20 }
 0x5bb   :  { %3292 = vmatpush.msrb.mxu1 %v9848_v10  ;;  %3332 = vmatpush.msra.mxu3 %v9849_v6  ;;  %v9861_v10 = vld [vmem:[#allocation37_spill] sm:$0xff] }
 0x5bd   :  { %3293 = vmatpush.msrb.mxu1 %v9850_v24  ;;  %3333 = vmatpush.msra.mxu3 %v9851_v46 }
 0x5bf   :  { %3294 = vmatpush.msrb.mxu1 %v9852_v43  ;;  %3334 = vmatpush.msra.mxu3 %v9853_v59  ;;  %v9862_v43 = vld [vmem:[#allocation26_spill] sm:$0xff]  ;;  %v9863_v59 = vld [vmem:[#allocation151_spill] sm:$0xff] }
 0x5c1   :  { %3295 = vmatpush.msrb.mxu1 %v9854_v9  ;;  %3335 = vmatpush.msra.mxu3 %v9855_v62  ;;  %v269_v9 = vadd.f32 %v9863_v59, %v9862_v43 }
 0x5c3   :  { %3296 = vmatpush.msrb.mxu1 %v9856_v22  ;;  %3336 = vmatpush.msra.mxu3 %v9857_v50 }
 0x5c7   :  { %v2850_v11 = vpop.f32.mrf.mxu0 }
 0x5c8   :  { %v2851_v21 = vadd.f32 %v2850_v11, %v9858_v4  ;;  %v9864_v4 = vld [vmem:[#allocation39_spill] sm:$0xff] }
 0x5cd   :  { %v2890_v39 = vpop.f32.mrf.mxu2 }
 0x5ce   :  { %v2891_v6 = vadd.f32 %v2890_v39, %v9861_v10 }
 0x5d5   :  { %v2970_v50 = vpop.f32.mrf.mxu2 }
 0x5d6   :  { %v2971_v57 = vadd.f32 %v2970_v50, %v9864_v4 }
 0x5df   :  { %v2870_v26 = vpop.f32.mrf.mxu1 }
 0x5e0   :  { %v2871_v5 = vadd.f32 %v2870_v26, %v2851_v21  ;;  %v9865_v21 = vld [vmem:[#allocation43_spill] sm:$0xff]  ;;  %v9866_v26 = vld [vmem:[#allocation133_spill] sm:$0xff] }
 0x5e2   :  { %v3079_v20 = vadd.f32 %v2871_v5, %v228_v16  ;;  %v336_v16 = vadd.f32 %v9866_v26, %v9865_v21 }
 0x5e4   :  { %v3637_v24 = vmul.f32 -1.442695, %v3079_v20 }
 0x5e5   :  { %v2910_v46 = vpop.f32.mrf.mxu3 }
 0x5e6   :  { %3779 = vpow2.f32 %v3637_v24  ;;  %v2911_v62 = vadd.f32 %v2910_v46, %v2891_v6  ;;  %v2930_v24 = vpop.f32.mrf.mxu0 }
 0x5e8   :  { %v3099_v22 = vadd.f32 %v2911_v62, %v269_v9  ;;  %v2950_v9 = vpop.f32.mrf.mxu1 }
 0x5ea   :  { %v3638_v14 = vmul.f32 -1.442695, %v3099_v22 }
 0x5ec   :  { %v3780_v11 = vpop.eup %3779  ;;  %3781 = vpow2.f32 %v3638_v14 }
 0x5ed   :  { %v3083_v34 = vadd.f32 1.0, %v3780_v11  ;;  %v2990_v8 = vpop.f32.mrf.mxu3 }
 0x5ee   :  { %v2991_v39 = vadd.f32 %v2990_v8, %v2971_v57  ;;  %v9867_v57 = vld [vmem:[#allocation42_spill] sm:$0xff] }
 0x5ef   :  { %3783 = vrcp.f32 %v3083_v34  ;;  %v3095_v22 = vand.u32 2147483648, %v3083_v34  ;;  %v3093_v11 = vand.u32 2147483647, %v3083_v34  ;;  %v2931_v8 = vadd.f32 %v2930_v24, %v9867_v57 }
 0x5f0   :  { %v3126_v5 = vadd.f32 %v2991_v39, %v336_v16  ;;  %vm3089_vm8 = vweird.f32 %v3083_v34 }
 0x5f1   :  { %v2951_v21 = vadd.f32 %v2950_v9, %v2931_v8  ;;  %vm3094_vm10 = vcmp.eq.f32.partialorder %v3093_v11, 8.507059e+37 }
 0x5f2   :  { %v3782_v20 = vpop.eup %3781  ;;  %v3639_v10 = vmul.f32 -1.442695, %v3126_v5  ;;  %v3010_v5 = vpop.f32.mrf.mxu0 }
 0x5f3   :  { %v3103_v59 = vadd.f32 1.0, %v3782_v20  ;;  %v3011_v0 = vadd.f32 %v3010_v5, %v9304_v42 }
 0x5f4   :  { %3785 = vpow2.f32 %v3639_v10  ;;  %v3096_v10 = vor.u32 1.1754944e-38, %v3095_v22 }
 0x5f5   :  { %v3784_v6 = vpop.eup %3783  ;;  %3787 = vrcp.f32 %v3103_v59  ;;  %v3115_v24 = vand.u32 2147483648, %v3103_v59  ;;  %v3113_v22 = vand.u32 2147483647, %v3103_v59  ;;  %vm3109_vm15 = vweird.f32 %v3103_v59 }
 0x5f6   :  { %v3085_v46 = vmul.f32 %v3784_v6, %v3083_v34  ;;  %vm3090_vm13 = vweird.f32 %v3784_v6  ;;  %v9869_v34 = vld [vmem:[#allocation25_spill] sm:$0xff] }
 0x5f7   :  { %vm3091_vm1 = vmor %vm3089_vm8, %vm3090_vm13  ;;  %v377_v2 = vadd.f32 %v9869_v34, %v5519_v15  ;;  %vm3114_vm0 = vcmp.eq.f32.partialorder %v3113_v22, 8.507059e+37 }
 0x5f8   :  { %v3086_v62 = vsub.f32 1.0, %v3085_v46  ;;  %v9868_v46 = vld [vmem:[#allocation27_spill] sm:$0xff] }
 0x5fa   :  { %v3786_v14 = vpop.eup %3785  ;;  %v3087_v50 = vmul.f32 %v3784_v6, %v3086_v62  ;;  %v310_v62 = vadd.f32 %v9868_v46, %v9153_v7 }
 0x5fb   :  { %v3788_v4 = vpop.eup %3787  ;;  %v3130_v26 = vadd.f32 1.0, %v3786_v14 }
 0x5fc   :  { %v3105_v16 = vmul.f32 %v3788_v4, %v3103_v59  ;;  %v3088_v39 = vadd.f32 %v3784_v6, %v3087_v50  ;;  %vm3110_vm14 = vweird.f32 %v3788_v4 }
 0x5fd   :  { %3789 = vrcp.f32 %v3130_v26  ;;  %vm3111_vm9 = vmor %vm3109_vm15, %vm3110_vm14  ;;  %vm3136_vm2 = vweird.f32 %v3130_v26 }
 0x5fe   :  { %v3106_v20 = vsub.f32 1.0, %v3105_v16  ;;  %v3092_v43 = vsel %vm3091_vm1, %v3784_v6, %v3088_v39  ;;  %v3116_v16 = vor.u32 1.1754944e-38, %v3115_v24 }
 0x5ff   :  { %v3097_v63 = vsel %vm3094_vm10, %v3096_v10, %v3092_v43 }
 0x600   :  { %v3107_v14 = vmul.f32 %v3788_v4, %v3106_v20  ;;  %v3119_v57 = vmul.f32 %v3097_v63, %v2951_v21  ;;  %v3030_v50 = vpop.f32.mrf.mxu1  ;;  %v3050_v21 = vpop.f32.mrf.mxu2  ;;  %v3142_v20 = vand.u32 2147483648, %v3130_v26 }
 0x601   :  { %v3031_v56 = vadd.f32 %v3030_v50, %v3011_v0  ;;  %v3140_v0 = vand.u32 2147483647, %v3130_v26 }
 0x602   :  { %v3108_v9 = vadd.f32 %v3788_v4, %v3107_v14  ;;  %v3120_v6 = vadd.f32 %v3119_v57, %v310_v62  ;;  %v3051_v62 = vadd.f32 %v3050_v21, %v5529_v51  ;;  %v3143_v24 = vor.u32 1.1754944e-38, %v3142_v20 }
 0x603   :  { %v3790_v11 = vpop.eup %3789  ;;  %v3146_v8 = vadd.f32 %v3031_v56, %v377_v2  ;;  %vm3141_vm7 = vcmp.eq.f32.partialorder %v3140_v0, 8.507059e+37 }
 0x604   :  { %v3112_v43 = vsel %vm3111_vm9, %v3788_v4, %v3108_v9  ;;  %3791 = vtanh.f32 %v3120_v6  ;;  %v3132_v39 = vmul.f32 %v3790_v11, %v3130_v26  ;;  %vm3137_vm6 = vweird.f32 %v3790_v11 }
 0x605   :  { %v3640_v5 = vmul.f32 -1.442695, %v3146_v8  ;;  %v3117_v10 = vsel %vm3114_vm0, %v3116_v16, %v3112_v43  ;;  %vm3138_vm5 = vmor %vm3136_vm2, %vm3137_vm6  ;;  %v9870_v43 = vld [vmem:[#allocation21_spill] sm:$0xff] }
 0x606   :  { %v3133_v63 = vsub.f32 1.0, %v3132_v39  ;;  %v3122_v59 = vsub.f32 1.0, %v3117_v10  ;;  %v3070_v14 = vpop.f32.mrf.mxu3  ;;  %v3124_v4 = vmul.f32 %v3117_v10, %v7794_v28  ;;  %v418_v39 = vadd.f32 %v9870_v43, %v5564_v19  ;;  %v9894_v43 = vld [vmem:[#allocation162_spill] sm:$0xff] }
 0x607   :  { %3793 = vpow2.f32 %v3640_v5  ;;  %v3071_v50 = vadd.f32 %v3070_v14, %v3051_v62  ;;  %v9871_v5 = vld [vmem:[#allocation131_spill] sm:$0xff] }
 0x608   :  { %v3134_v46 = vmul.f32 %v3790_v11, %v3133_v63  ;;  %v1410_v26 = vsel %vm1405_vm12, %v9871_v5, 0.0  ;;  %v9876_v14 = vld [vmem:[#allocation143_spill] sm:$0xff]  ;;  %v9898_v5 = vld [vmem:[#allocation166_spill] sm:$0xff]  ;;  %v9900_v63 = vld [vmem:[#allocation168_spill] sm:$0xff] }
 0x60a   :  { %v3792_v57 = vpop.eup %3791  ;;  %v3135_v56 = vadd.f32 %v3790_v11, %v3134_v46 }
 0x60b   :  { %v3123_v2 = vmul.f32 %v3792_v57, %v3122_v59  ;;  %v9877_v57 = vld [vmem:[#allocation142_spill] sm:$0xff] }
 0x60c   :  { %v3139_v34 = vsel %vm3138_vm5, %v3790_v11, %v3135_v56  ;;  %v3529_v56 = vld [vmem:[#allocation10 + $0x8] sm:$0xff] }
 0x60d   :  { %v3794_v22 = vpop.eup %3793  ;;  %v3125_v9 = vadd.f32 %v3124_v4, %v3123_v2  ;;  %v3144_v6 = vsel %vm3141_vm7, %v3143_v24, %v3139_v34  ;;  %v9882_v24 = vld [vmem:[#allocation153_spill] sm:$0xff]  ;;  %v9887_v34 = vld [vmem:[#allocation155_spill] sm:$0xff] }
 0x60e   :  { %v3150_v8 = vadd.f32 1.0, %v3794_v22  ;;  %v3166_v16 = vmul.f32 %v3144_v6, %v3071_v50  ;;  %v4421_v50 = vld [vmem:[#allocation9 + $0x538] sm:$0xff]  ;;  %v9888_v22 = vld [vmem:[#allocation157_spill] sm:$0xff] }
 0x60f   :  { %v3175_v10 = vsel %vm1405_vm12, %v3125_v9, 0.0  ;;  %v8132_v11 = vsel %vm1405_vm12, %v3125_v9, %v7794_v28  ;;  %v9889_v9 = vld [vmem:[#allocation156_spill] sm:$0xff]  ;;  %v9890_v6 = vld [vmem:[#allocation158_spill] sm:$0xff] }
 0x610   :  { %v3550_v21 = vadd.f32 %v3175_v10, %v1410_v26  ;;  %3795 = vrcp.f32 %v3150_v8  ;;  %3197 = vmatmul.f32.vlgmr.msra.gmra.mxu0 %v8132_v11  ;;  %3237 = vmatmul.f32.vlgmr.msrb.gmra.mxu2 %v8132_v11  ;;  %v3167_v20 = vadd.f32 %v3166_v16, %v418_v39  ;;  %vm3156_vm13 = vweird.f32 %v3150_v8  ;;  %v9892_v16 = vld [vmem:[#allocation160_spill] sm:$0xff]  ;;  %v9902_v26 = vld [vmem:[#allocation33_spill] sm:$0xff] }
 0x611   :  { %3341 = vmatpush.msra.mxu0 %v7798_v44  ;;  %3381 = vmatpush.msrb.mxu2 %v7801_v30  ;;  %v3162_v30 = vand.u32 2147483648, %v3150_v8  ;;  %v9896_v39 = vld [vmem:[#allocation164_spill] sm:$0xff] }
 0x612   :  { %3558 = vst [vmem:[#allocation10 + $0x30] sm:$0xff] %v3550_v21  ;;  %3797 = vtanh.f32 %v3167_v20 }
 0x613   :  { %3342 = vmatpush.msra.mxu0 %v7804_v49  ;;  %3382 = vmatpush.msrb.mxu2 %v7807_v13  ;;  %v3160_v13 = vand.u32 2147483647, %v3150_v8 }
 0x615   :  { %3343 = vmatpush.msra.mxu0 %v7810_v47  ;;  %3383 = vmatpush.msrb.mxu2 %v7813_v41  ;;  %v3163_v41 = vor.u32 1.1754944e-38, %v3162_v30  ;;  %vm3161_vm1 = vcmp.eq.f32.partialorder %v3160_v13, 8.507059e+37  ;;  %v9905_v13 = vld [vmem:[#allocation37_spill] sm:$0xff] }
 0x616   :  { %v3796_v28 = vpop.eup %3795 }
 0x617   :  { %v3152_v46 = vmul.f32 %v3796_v28, %v3150_v8  ;;  %3344 = vmatpush.msra.mxu0 %v7816_v38  ;;  %3384 = vmatpush.msrb.mxu2 %v7819_v29  ;;  %vm3157_vm12 = vweird.f32 %v3796_v28  ;;  %v9873_v29 = vld [vmem:[#allocation35_spill] sm:$0xff] }
 0x618   :  { %3277 = vmatmul.f32.vlgmr.msrb.gmra.mxu0 %v8132_v11  ;;  %3317 = vmatmul.f32.vlgmr.msra.gmra.mxu2 %v8132_v11  ;;  %vm3158_vm8 = vmor %vm3156_vm13, %vm3157_vm12  ;;  %v3798_v0 = vpop.eup %3797  ;;  %v9891_v8 = vld [vmem:[#allocation159_spill] sm:$0xff] }
 0x619   :  { %v3153_v44 = vsub.f32 1.0, %v3152_v46  ;;  %3345 = vmatpush.msra.mxu0 %v7824_v52  ;;  %3385 = vmatpush.msrb.mxu2 %v7827_v31  ;;  %v9904_v46 = vld [vmem:[#allocation17_spill] sm:$0xff] }
 0x61b   :  { %v3154_v49 = vmul.f32 %v3796_v28, %v3153_v44  ;;  %3346 = vmatpush.msra.mxu0 %v7830_v27  ;;  %3386 = vmatpush.msrb.mxu2 %v7833_v58  ;;  %v9874_v27 = vld [vmem:[#allocation28_spill] sm:$0xff]  ;;  %v9875_v58 = vld [vmem:[#allocation141_spill] sm:$0xff] }
 0x61d   :  { %v3155_v47 = vadd.f32 %v3796_v28, %v3154_v49  ;;  %3347 = vmatpush.msra.mxu0 %v7836_v45  ;;  %3387 = vmatpush.msrb.mxu2 %v7839_v23 }
 0x61f   :  { %v3159_v38 = vsel %vm3158_vm8, %v3796_v28, %v3155_v47  ;;  %3348 = vmatpush.msra.mxu0 %v9873_v29  ;;  %3388 = vmatpush.msrb.mxu2 %v7845_v55  ;;  %v9903_v28 = vld [vmem:[#allocation24_spill] sm:$0xff]  ;;  %v9906_v29 = vld [vmem:[#allocation26_spill] sm:$0xff] }
 0x620   :  { %v3164_v52 = vsel %vm3161_vm1, %v3163_v41, %v3159_v38  ;;  %v231_v44 = vadd.f32 %v9904_v46, %v9903_v28  ;;  %v9913_v28 = vld [vmem:[#allocation19_spill] sm:$0xff] }
 0x621   :  { %v3169_v31 = vsub.f32 1.0, %v3164_v52  ;;  %3349 = vmatpush.msra.mxu0 %v9874_v27  ;;  %3389 = vmatpush.msrb.mxu2 %v9875_v58  ;;  %v3171_v45 = vmul.f32 %v3164_v52, %v7872_v25  ;;  %v9907_v52 = vld [vmem:[#allocation22_spill] sm:$0xff]  ;;  %v374_v46 = vadd.f32 %v9913_v28, %v5519_v15 }
 0x623   :  { %v3170_v59 = vmul.f32 %v3798_v0, %v3169_v31  ;;  %3350 = vmatpush.msra.mxu0 %v9876_v14  ;;  %3390 = vmatpush.msrb.mxu2 %v7858_v54  ;;  %v4417_v54 = vld [vmem:[#allocation9 + $0x5f8] sm:$0xff]  ;;  %v272_v31 = vadd.f32 %v9907_v52, %v9906_v29  ;;  %v9908_v14 = vld [vmem:[#allocation39_spill] sm:$0xff] }
 0x625   :  { %v3172_v23 = vadd.f32 %v3171_v45, %v3170_v59  ;;  %3351 = vmatpush.msra.mxu0 %v7861_v61  ;;  %3391 = vmatpush.msrb.mxu2 %v9877_v57  ;;  %v4418_v61 = vld [vmem:[#allocation9 + $0x5c8] sm:$0xff] }
 0x627   :  { %v3178_v62 = vsel %vm1399_vm3, %v3172_v23, 0.0  ;;  %v8166_v2 = vsel %vm1399_vm3, %v3172_v23, %v7872_v25  ;;  %3352 = vmatpush.msra.mxu0 %v7874_v17  ;;  %3392 = vmatpush.msrb.mxu2 %v7877_v32  ;;  %v9879_v25 = vld [vmem:[#allocation144_spill] sm:$0xff]  ;;  %v9880_v17 = vld [vmem:[#allocation23_spill] sm:$0xff]  ;;  %v4419_v32 = vld [vmem:[#allocation9 + $0x598] sm:$0xff] }
 0x628   :  { %v3545_v4 = vadd.f32 %v3529_v56, %v3178_v62  ;;  %3217 = vmatmul.f32.vlgmr.msra.gmra.mxu1 %v8166_v2  ;;  %3257 = vmatmul.f32.vlgmr.msrb.gmra.mxu3 %v8166_v2  ;;  %v9909_v62 = vld [vmem:[#allocation43_spill] sm:$0xff]  ;;  %v9910_v56 = vld [vmem:[#allocation128_spill] sm:$0xff] }
 0x629   :  { %3361 = vmatpush.msra.mxu1 %v7882_v12  ;;  %3401 = vmatpush.msrb.mxu3 %v4417_v54  ;;  %v9881_v12 = vld [vmem:[#allocation36_spill] sm:$0xff] }
 0x62a   :  { %3553 = vst [vmem:[#allocation10 + $0x8] sm:$0xff] %v3545_v4  ;;  %3353 = vmatpush.msra.mxu0 %v7886_v53  ;;  %3393 = vmatpush.msrb.mxu2 %v7889_v35  ;;  %v4420_v53 = vld [vmem:[#allocation9 + $0x568] sm:$0xff]  ;;  %v9883_v35 = vld [vmem:[#allocation46_spill] sm:$0xff]  ;;  %v333_v4 = vadd.f32 %v9910_v56, %v9909_v62 }
 0x62b   :  { %3362 = vmatpush.msra.mxu1 %v9879_v25  ;;  %3402 = vmatpush.msrb.mxu3 %v4418_v61 }
 0x62c   :  { %3354 = vmatpush.msra.mxu0 %v7896_v33  ;;  %3394 = vmatpush.msrb.mxu2 %v7899_v37  ;;  %v9884_v33 = vld [vmem:[#allocation154_spill] sm:$0xff]  ;;  %v9885_v37 = vld [vmem:[#allocation31_spill] sm:$0xff] }
 0x62d   :  { %3363 = vmatpush.msra.mxu1 %v9880_v17  ;;  %3403 = vmatpush.msrb.mxu3 %v4419_v32 }
 0x62e   :  { %3355 = vmatpush.msra.mxu0 %v9881_v12  ;;  %3395 = vmatpush.msrb.mxu2 %v7909_v60  ;;  %v9886_v60 = vld [vmem:[#allocation34_spill] sm:$0xff] }
 0x62f   :  { %3364 = vmatpush.msra.mxu1 %v9882_v24  ;;  %3404 = vmatpush.msrb.mxu3 %v4420_v53 }
 0x630   :  { %3297 = vmatmul.f32.vlgmr.msrb.gmra.mxu1 %v8166_v2  ;;  %3337 = vmatmul.f32.vlgmr.msra.gmra.mxu3 %v8166_v2 }
 0x631   :  { %3356 = vmatpush.msra.mxu0 %v9883_v35  ;;  %3365 = vmatpush.msra.mxu1 %v9884_v33 }
 0x632   :  { %3396 = vmatpush.msrb.mxu2 %v9885_v37  ;;  %3405 = vmatpush.msrb.mxu3 %v4421_v50 }
 0x633   :  { %3357 = vmatmul.f32.vlgmr.msra.gmra.mxu0 %v8132_v11  ;;  %3397 = vmatmul.f32.vlgmr.msrb.gmra.mxu2 %v8132_v11 }
 0x634   :  { %3366 = vmatpush.msra.mxu1 %v9886_v60  ;;  %3406 = vmatpush.msrb.mxu3 %v9887_v34 }
 0x636   :  { %3367 = vmatpush.msra.mxu1 %v7937_v18  ;;  %3407 = vmatpush.msrb.mxu3 %v9888_v22  ;;  %v9893_v18 = vld [vmem:[#allocation161_spill] sm:$0xff] }
 0x638   :  { %3368 = vmatpush.msra.mxu1 %v7944_v48  ;;  %3408 = vmatpush.msrb.mxu3 %v9889_v9  ;;  %v9895_v48 = vld [vmem:[#allocation163_spill] sm:$0xff] }
 0x63a   :  { %3369 = vmatpush.msra.mxu1 %v7951_v36  ;;  %3409 = vmatpush.msrb.mxu3 %v9890_v6  ;;  %v9897_v36 = vld [vmem:[#allocation165_spill] sm:$0xff]  ;;  %v9911_v6 = vld [vmem:[#allocation42_spill] sm:$0xff] }
 0x63c   :  { %3370 = vmatpush.msra.mxu1 %v7958_v40  ;;  %3410 = vmatpush.msrb.mxu3 %v9891_v8  ;;  %v9899_v40 = vld [vmem:[#allocation167_spill] sm:$0xff] }
 0x63e   :  { %3371 = vmatpush.msra.mxu1 %v7965_v1  ;;  %3411 = vmatpush.msrb.mxu3 %v9892_v16  ;;  %v9901_v1 = vld [vmem:[#allocation169_spill] sm:$0xff] }
 0x640   :  { %3372 = vmatpush.msra.mxu1 %v7972_v3  ;;  %3412 = vmatpush.msrb.mxu3 %v9893_v18 }
 0x642   :  { %3373 = vmatpush.msra.mxu1 %v9894_v43  ;;  %3413 = vmatpush.msrb.mxu3 %v9895_v48 }
 0x644   :  { %3374 = vmatpush.msra.mxu1 %v9896_v39  ;;  %3414 = vmatpush.msrb.mxu3 %v9897_v36 }
 0x646   :  { %3375 = vmatpush.msra.mxu1 %v9898_v5  ;;  %3415 = vmatpush.msrb.mxu3 %v9899_v40  ;;  %v9912_v40 = vld [vmem:[#allocation30_spill] sm:$0xff] }
 0x648   :  { %3376 = vmatpush.msra.mxu1 %v9900_v63  ;;  %3416 = vmatpush.msrb.mxu3 %v9901_v1  ;;  %v313_v63 = vadd.f32 %v9912_v40, %v9153_v7 }
 0x649   :  { %3377 = vmatmul.f32.vlgmr.msra.gmra.mxu1 %v8166_v2  ;;  %3417 = vmatmul.f32.vlgmr.msrb.gmra.mxu3 %v8166_v2 }
 0x68d   :  { %v3198_v3 = vpop.f32.mrf.mxu0 }
 0x68e   :  { %v3199_v10 = vadd.f32 %v3198_v3, %v9902_v26 }
 0x693   :  { %v3238_v21 = vpop.f32.mrf.mxu2 }
 0x694   :  { %v3239_v47 = vadd.f32 %v3238_v21, %v9905_v13 }
 0x695   :  { %v3278_v12 = vpop.f32.mrf.mxu0 }
 0x696   :  { %v3279_v8 = vadd.f32 %v3278_v12, %v9911_v6 }
 0x69b   :  { %v3318_v0 = vpop.f32.mrf.mxu2 }
 0x69c   :  { %v3319_v23 = vadd.f32 %v3318_v0, %v9908_v14 }
 0x6a5   :  { %v3218_v20 = vpop.f32.mrf.mxu1 }
 0x6a6   :  { %v3219_v30 = vadd.f32 %v3218_v20, %v3199_v10 }
 0x6a8   :  { %v3427_v49 = vadd.f32 %v3219_v30, %v231_v44 }
 0x6aa   :  { %v3641_v41 = vmul.f32 -1.442695, %v3427_v49 }
 0x6ab   :  { %v3258_v38 = vpop.f32.mrf.mxu3 }
 0x6ac   :  { %3799 = vpow2.f32 %v3641_v41  ;;  %v3259_v27 = vadd.f32 %v3258_v38, %v3239_v47 }
 0x6ad   :  { %v3298_v35 = vpop.f32.mrf.mxu1 }
 0x6ae   :  { %v3447_v58 = vadd.f32 %v3259_v27, %v272_v31  ;;  %v3299_v36 = vadd.f32 %v3298_v35, %v3279_v8 }
 0x6b0   :  { %v3642_v59 = vmul.f32 -1.442695, %v3447_v58  ;;  %v3358_v43 = vpop.f32.mrf.mxu0 }
 0x6b1   :  { %v3359_v3 = vadd.f32 %v3358_v43, %v9304_v42 }
 0x6b2   :  { %v3800_v45 = vpop.eup %3799  ;;  %3801 = vpow2.f32 %v3642_v59 }
 0x6b3   :  { %v3431_v57 = vadd.f32 1.0, %v3800_v45  ;;  %v3338_v55 = vpop.f32.mrf.mxu3 }
 0x6b4   :  { %v3339_v54 = vadd.f32 %v3338_v55, %v3319_v23 }
 0x6b5   :  { %3803 = vrcp.f32 %v3431_v57  ;;  %v3443_v37 = vand.u32 2147483648, %v3431_v57  ;;  %v3441_v34 = vand.u32 2147483647, %v3431_v57  ;;  %vm3437_vm10 = vweird.f32 %v3431_v57 }
 0x6b6   :  { %v3474_v25 = vadd.f32 %v3339_v54, %v333_v4  ;;  %v3398_v27 = vpop.f32.mrf.mxu2 }
 0x6b7   :  { %v3444_v48 = vor.u32 1.1754944e-38, %v3443_v37  ;;  %vm3442_vm15 = vcmp.eq.f32.partialorder %v3441_v34, 8.507059e+37  ;;  %v3399_v23 = vadd.f32 %v3398_v27, %v5529_v51  ;;  %v9916_v37 = vld [vmem:[#allocation129_spill] sm:$0xff] }
 0x6b8   :  { %v3802_v61 = vpop.eup %3801  ;;  %v3643_v17 = vmul.f32 -1.442695, %v3474_v25 }
 0x6b9   :  { %v3451_v32 = vadd.f32 1.0, %v3802_v61 }
 0x6ba   :  { %3805 = vpow2.f32 %v3643_v17 }
 0x6bb   :  { %v3804_v24 = vpop.eup %3803  ;;  %3807 = vrcp.f32 %v3451_v32  ;;  %v3463_v10 = vand.u32 2147483648, %v3451_v32  ;;  %v3461_v44 = vand.u32 2147483647, %v3451_v32  ;;  %vm3457_vm0 = vweird.f32 %v3451_v32 }
 0x6bc   :  { %v3433_v53 = vmul.f32 %v3804_v24, %v3431_v57  ;;  %vm3438_vm3 = vweird.f32 %v3804_v24 }
 0x6bd   :  { %vm3439_vm14 = vmor %vm3437_vm10, %vm3438_vm3  ;;  %v3464_v7 = vor.u32 1.1754944e-38, %v3463_v10  ;;  %vm3462_vm2 = vcmp.eq.f32.partialorder %v3461_v44, 8.507059e+37 }
 0x6be   :  { %v3434_v33 = vsub.f32 1.0, %v3433_v53 }
 0x6c0   :  { %v3806_v50 = vpop.eup %3805  ;;  %v3435_v60 = vmul.f32 %v3804_v24, %v3434_v33 }
 0x6c1   :  { %v3808_v22 = vpop.eup %3807  ;;  %v3478_v9 = vadd.f32 1.0, %v3806_v50 }
 0x6c2   :  { %v3453_v16 = vmul.f32 %v3808_v22, %v3451_v32  ;;  %v3436_v18 = vadd.f32 %v3804_v24, %v3435_v60  ;;  %vm3458_vm9 = vweird.f32 %v3808_v22 }
 0x6c3   :  { %3809 = vrcp.f32 %v3478_v9  ;;  %vm3459_vm6 = vmor %vm3457_vm0, %vm3458_vm9  ;;  %v3490_v58 = vand.u32 2147483648, %v3478_v9  ;;  %v3488_v0 = vand.u32 2147483647, %v3478_v9  ;;  %vm3484_vm7 = vweird.f32 %v3478_v9 }
 0x6c4   :  { %v3454_v39 = vsub.f32 1.0, %v3453_v16  ;;  %v3440_v5 = vsel %vm3439_vm14, %v3804_v24, %v3436_v18  ;;  %v9914_v24 = vld [vmem:[#allocation18_spill] sm:$0xff] }
 0x6c5   :  { %v3445_v1 = vsel %vm3442_vm15, %v3444_v48, %v3440_v5  ;;  %v3491_v56 = vor.u32 1.1754944e-38, %v3490_v58  ;;  %vm3489_vm13 = vcmp.eq.f32.partialorder %v3488_v0, 8.507059e+37  ;;  %v415_v53 = vadd.f32 %v9914_v24, %v5564_v19 }
 0x6c6   :  { %v3455_v26 = vmul.f32 %v3808_v22, %v3454_v39  ;;  %v3467_v21 = vmul.f32 %v3445_v1, %v3299_v36  ;;  %v3378_v20 = vpop.f32.mrf.mxu1 }
 0x6c7   :  { %v3379_v30 = vadd.f32 %v3378_v20, %v3359_v3  ;;  %v3528_v3 = vld [vmem:[#allocation10] sm:$0xff] }
 0x6c8   :  { %v3456_v49 = vadd.f32 %v3808_v22, %v3455_v26  ;;  %v3468_v13 = vadd.f32 %v3467_v21, %v313_v63 }
 0x6c9   :  { %v3810_v47 = vpop.eup %3809  ;;  %v3494_v41 = vadd.f32 %v3379_v30, %v374_v46 }
 0x6ca   :  { %v3460_v38 = vsel %vm3459_vm6, %v3808_v22, %v3456_v49  ;;  %3811 = vtanh.f32 %v3468_v13  ;;  %v3480_v42 = vmul.f32 %v3810_v47, %v3478_v9  ;;  %vm3485_vm5 = vweird.f32 %v3810_v47 }
 0x6cb   :  { %v3644_v29 = vmul.f32 -1.442695, %v3494_v41  ;;  %v3465_v52 = vsel %vm3462_vm2, %v3464_v7, %v3460_v38  ;;  %vm3486_vm12 = vmor %vm3484_vm7, %vm3485_vm5 }
 0x6cc   :  { %v3481_v31 = vsub.f32 1.0, %v3480_v42  ;;  %v3470_v59 = vsub.f32 1.0, %v3465_v52  ;;  %v3418_v45 = vpop.f32.mrf.mxu3  ;;  %v3472_v62 = vmul.f32 %v3465_v52, %v8132_v11 }
 0x6cd   :  { %3813 = vpow2.f32 %v3644_v29  ;;  %v3419_v4 = vadd.f32 %v3418_v45, %v3399_v23 }
 0x6ce   :  { %v3482_v15 = vmul.f32 %v3810_v47, %v3481_v31 }
 0x6d0   :  { %v3812_v14 = vpop.eup %3811  ;;  %v3483_v57 = vadd.f32 %v3810_v47, %v3482_v15 }
 0x6d1   :  { %v3471_v55 = vmul.f32 %v3812_v14, %v3470_v59 }
 0x6d2   :  { %v3487_v54 = vsel %vm3486_vm12, %v3810_v47, %v3483_v57 }
 0x6d3   :  { %v3814_v25 = vpop.eup %3813  ;;  %v3473_v61 = vadd.f32 %v3472_v62, %v3471_v55  ;;  %v3492_v17 = vsel %vm3489_vm13, %v3491_v56, %v3487_v54 }
 0x6d4   :  { %v3498_v32 = vadd.f32 1.0, %v3814_v25  ;;  %v3514_v12 = vmul.f32 %v3492_v17, %v3419_v4 }
 0x6d5   :  { %v3523_v51 = vsel %vm1046_vm4, %v3473_v61, 0.0  ;;  %v3521_v33 = vsel %vm1046_vm4, %v3473_v61, %v8132_v11 }
 0x6d6   :  { %v3551_v50 = vadd.f32 %v3523_v51, %v9916_v37  ;;  %3815 = vrcp.f32 %v3498_v32  ;;  %3560 = vst [vmem:[#allocation11] sm:$0xff] %v3521_v33  ;;  %v3515_v60 = vadd.f32 %v3514_v12, %v415_v53  ;;  %v3510_v6 = vand.u32 2147483648, %v3498_v32 }
 0x6d7   :  { %v3508_v19 = vand.u32 2147483647, %v3498_v32  ;;  %vm3504_vm1 = vweird.f32 %v3498_v32 }
 0x6d8   :  { %3559 = vst [vmem:[#allocation10 + $0x38] sm:$0xff] %v3551_v50  ;;  %3817 = vtanh.f32 %v3515_v60  ;;  %v3511_v18 = vor.u32 1.1754944e-38, %v3510_v6 }
 0x6d9   :  { %vm3509_vm4 = vcmp.eq.f32.partialorder %v3508_v19, 8.507059e+37 }
 0x6dc   :  { %v3816_v34 = vpop.eup %3815 }
 0x6dd   :  { %v3500_v22 = vmul.f32 %v3816_v34, %v3498_v32  ;;  %vm3505_vm8 = vweird.f32 %v3816_v34 }
 0x6de   :  { %vm3506_vm3 = vmor %vm3504_vm1, %vm3505_vm8  ;;  %v3818_v39 = vpop.eup %3817 }
 0x6df   :  { %v3501_v9 = vsub.f32 1.0, %v3500_v22 }
 0x6e1   :  { %v3502_v8 = vmul.f32 %v3816_v34, %v3501_v9 }
 0x6e3   :  { %v3503_v16 = vadd.f32 %v3816_v34, %v3502_v8 }
 0x6e5   :  { %v3507_v43 = vsel %vm3506_vm3, %v3816_v34, %v3503_v16 }
 0x6e6   :  { %v3512_v11 = vsel %vm3509_vm4, %v3511_v18, %v3507_v43 }
 0x6e7   :  { %v3517_v48 = vsub.f32 1.0, %v3512_v11  ;;  %v3519_v5 = vmul.f32 %v3512_v11, %v8166_v2 }
 0x6e9   :  { %v3518_v36 = vmul.f32 %v3818_v39, %v3517_v48 }
 0x6eb   :  { %v3520_v40 = vadd.f32 %v3519_v5, %v3518_v36 }
 0x6ed   :  { %v3526_v1 = vsel %vm1040_vm11, %v3520_v40, 0.0  ;;  %v3522_v26 = vsel %vm1040_vm11, %v3520_v40, %v8166_v2 }
 0x6ee   :  { %v3544_v10 = vadd.f32 %v3528_v3, %v3526_v1  ;;  %3562 = vst [vmem:[#allocation11 + $0x8] sm:$0xff] %v3522_v26 }
 0x6ef   :  { %3588 = dma.vmem_to_hbm [thread:$0]  %s3581_s23, 256, %s3583_s26, [#allocation12], %s4554_s13, %s4554_s13, %s4555_s14  }
 0x6f0   :  { %3552 = vst [vmem:[#allocation10] sm:$0xff] %v3544_v10 }
 0x6f1   :  { %3575 = dma.vmem_to_hbm [thread:$0]  %s3568_s28, 1024, %s3570_s8, [#allocation6], %s4554_s13, %s4554_s13, %s4555_s14  }
 0x6f2   :  { %4546 = dma.done.wait [#allocation6], 1024  }
 0x6f3   :  { %4547 = vsyncadd [#allocation6], 4294966272 }
 0x6f4   :  { %4548 = dma.done.wait [#allocation12], 256  }
 0x6f5   :  { %4549 = vsyncadd [#allocation12], 4294967040 }
 0x6f6   :  { %3597 = vsyncpa [#allocation5], 1 }
 0x6f7   :  { %3598 = vsyncpa [#allocation8], 1 }
 0x6f8   :  { %3599 = vsyncpa [#allocation6], 1 }
 0x6f9   :  { %3600 = vsyncpa [#allocation12], 1 }

</bundles_post_ra>
